<compile_context>
chip_gen: v6e
topology: v6e:2x2x1
jax: 0.10.0
libtpu: 0.0.40
codegen_flags: <defaults>
</compile_context>

<pallas_src>
import math

import jax
import jax.numpy as jnp
from jax import lax
from jax.experimental import pallas as pl
from jax.experimental.pallas import tpu as pltpu

PRIME_LIST = [7, 11, 15, 19, 23, 27]
DILATION = 4
BN_EPS = 1e-5


# ----------------------------------------------------------------------------
# architecture-description helpers (pure python, same as the torch reference)
# ----------------------------------------------------------------------------
def get_out_channel_number(parameter_layer, in_channel, prime_list):
    return max(1, int(parameter_layer / (in_channel * sum(prime_list))))


def generate_layer_parameter_list(start, end, layers, in_channel=1):
    prime_list = PRIME_LIST
    layer_parameter_list = []
    for parameter_number_of_layer in layers:
        out_channel = get_out_channel_number(parameter_number_of_layer, in_channel, prime_list)
        tuples_in_layer = [(in_channel, out_channel, prime) for prime in prime_list]
        in_channel = len(prime_list) * out_channel
        layer_parameter_list.append(tuples_in_layer)
    first_out_channel = len(prime_list) * get_out_channel_number(layers[0], 1, prime_list)
    layer_parameter_list.append([(in_channel, first_out_channel, 1),
                                 (in_channel, first_out_channel, 3),
                                 (in_channel, first_out_channel, 5)])
    return layer_parameter_list


def _round_up(x, m):
    return (x + m - 1) // m * m


def _channel_tile(c_total):
    # one MXU-aligned tile for small layers; 128-channel tiles (grid -> v7x
    # megacore shardable, MXU-aligned) for big ones.
    return _round_up(c_total, 16) if c_total <= 128 else 128


def _vmem_limit(*arrs):
    total = 0
    for a in arrs:
        total += math.prod(a.shape) * a.dtype.itemsize
    return int(min(48 * 1024 * 1024, max(8 * 1024 * 1024, 2 * total + (2 << 20))))


# ----------------------------------------------------------------------------
# GRU imputation kernel
# ----------------------------------------------------------------------------
def gru_impute_kernel(x_ref, wih_ref, whh_ref, bih_ref, bhh_ref, fcw_ref, fcb_ref,
                      newin_ref, pred_ref):
    """Fused GRU imputation + prediction head.

    x_ref:     [seq, B]   time-major input (lane-dense rows)
    newin_ref: [seq, B]   imputed inputs (fed to the conv stack)
    pred_ref:  [seq-1, B] fc(h_t) for t=0..seq-2 (== the imputation x_hat's)
    """
    seq, B = x_ref.shape
    H = whh_ref.shape[0]

    # hoist loop-invariant operands out of the serial recurrence
    wih = wih_ref[...]            # [1, 3H]
    whh = whh_ref[...]            # [H, 3H]
    bih = bih_ref[...]            # [1, 3H]
    bhh = bhh_ref[...]            # [1, 3H]
    fcw = fcw_ref[...]            # [1, H]
    fcb = fcb_ref[0, 0]           # scalar

    def cell(h_prev, cur):
        # PyTorch GRUCell, gate order (r, z, n).  Kept f32: recurrence and the
        # ==128 sentinel / imputation path stay in full precision.
        gi = cur[:, None] * wih + bih                                          # [B, 3H]
        gh = jnp.dot(h_prev, whh, preferred_element_type=jnp.float32) + bhh    # [B, 3H]
        r = jax.nn.sigmoid(gi[:, 0:H] + gh[:, 0:H])
        z = jax.nn.sigmoid(gi[:, H:2 * H] + gh[:, H:2 * H])
        n = jnp.tanh(gi[:, 2 * H:3 * H] + r * gh[:, 2 * H:3 * H])
        return (1.0 - z) * n + z * h_prev

    def fc(h):                    # [B, H] -> [B]
        return jnp.sum(h * fcw, axis=1) + fcb

    def body(h_prev, x_t):
        x_hat = fc(h_prev)                               # == prediction[t-1]
        cur = jnp.where(x_t == 128.0, x_hat, x_t)        # impute missing values
        return x_hat, cur, cell(h_prev, cur)

    # step 0: no imputation, zero initial hidden state
    x0 = x_ref[0]
    newin_ref[0] = x0
    h = cell(jnp.zeros((B, H), jnp.float32), x0)

    if seq <= 64:
        # short sequence: full static unroll (max LLO scheduling visibility)
        for t in range(1, seq):
            x_hat, cur, h = body(h, x_ref[t])
            pred_ref[t - 1] = x_hat
            newin_ref[t] = cur
    else:
        def step(t, h_prev):
            x_hat, cur, h_new = body(h_prev, x_ref[t])
            pred_ref[t - 1] = x_hat
            newin_ref[t] = cur
            return h_new
        # TODO(synk): unroll-by-2/4 for very long sequences once scan-unroll
        # inside Pallas fori bodies is validated on this JAX version.
        lax.fori_loop(1, seq, step, h)


def gru_impute(x_sb, rnn_params):
    """x_sb: [seq, B] -> (new_input [seq, B], pred [seq-1, B])."""
    seq, B = x_sb.shape
    H = rnn_params["whh"].shape[1]
    wih_row = rnn_params["wih"].T                       # [1, 3H]
    whh_t = rnn_params["whh"].T                         # [H, 3H]
    bih = rnn_params["bih"].reshape(1, 3 * H)
    bhh = rnn_params["bhh"].reshape(1, 3 * H)
    fcw = rnn_params["fcw"]                             # [1, H]
    fcb = rnn_params["fcb"].reshape(1, 1)

    out_shapes = (jax.ShapeDtypeStruct((seq, B), jnp.float32),
                  jax.ShapeDtypeStruct((seq - 1, B), jnp.float32))
    args = (x_sb, wih_row, whh_t, bih, bhh, fcw, fcb)
    return pl.pallas_call(
        gru_impute_kernel,
        out_shape=out_shapes,
        compiler_params=pltpu.CompilerParams(
            vmem_limit_bytes=_vmem_limit(*args, *out_shapes)),
    )(*args)


# ----------------------------------------------------------------------------
# OS-CNN conv layer kernels
# ----------------------------------------------------------------------------
def _conv_bn_relu_block(xp_ref, w_ref, g_ref, beta_ref, out_len):
    """Conv (shift-and-matmul over J shared dilated taps) + batch-stat BN + ReLU
    for one output-channel tile.  bf16 MXU operands, f32 accumulate/elementwise.

    xp_ref:  [B, Cin, Lp] padded activation slab (f32, VMEM-resident, shared by tiles)
    w_ref:   [TC, J*Cin]  fused layer weight tile (bf16, tap-major columns)
    g/beta:  [TC, 1]      BN affine (f32)
    returns a list of B per-batch [TC, out_len] f32 activations.
    """
    B, cin, lp = xp_ref.shape
    tc, jc = w_ref.shape
    J = jc // cin
    L = out_len
    w = w_ref[...]                                       # [TC, J*Cin] bf16
    inv_n = 1.0 / float(B * L)

    accs = []
    s1 = jnp.zeros((tc, 1), jnp.float32)
    for b in range(B):
        xb = xp_ref[b]                                   # [Cin, Lp] f32 (one load per batch)
        acc = jnp.zeros((tc, L), jnp.float32)
        for j in range(J):
            tap = xb[:, DILATION * j: DILATION * j + L]  # [Cin, L]
            wj = w[:, j * cin:(j + 1) * cin]             # [TC, Cin] bf16
            if cin == 1:
                # K=1 outer product: cheaper on the VPU than an MXU push
                acc = acc + wj.astype(jnp.float32) * tap
            else:
                acc = acc + jnp.dot(wj, tap.astype(jnp.bfloat16),
                                    preferred_element_type=jnp.float32)
        accs.append(acc)
        s1 = s1 + jnp.sum(acc, axis=1, keepdims=True)

    # Train-mode BatchNorm over (batch, length) per channel, biased variance,
    # exact two-pass (no catastrophic cancellation).  Conv bias is omitted on
    # purpose: it cancels exactly in y - mean(y).
    mean = s1 * inv_n
    s2 = jnp.zeros((tc, 1), jnp.float32)
    for acc in accs:
        d = acc - mean
        s2 = s2 + jnp.sum(d * d, axis=1, keepdims=True)
    rstd = lax.rsqrt(s2 * inv_n + BN_EPS)
    scale = g_ref[...] * rstd                            # fold BN affine into one FMA
    shift = beta_ref[...] - mean * scale
    return [jnp.maximum(acc * scale + shift, 0.0) for acc in accs]


def conv_layer_kernel(xp_ref, w_ref, g_ref, beta_ref, o_ref):
    """One whole OS-CNN layer (all branches fused) for one output-channel tile."""
    L = o_ref.shape[2]
    outs = _conv_bn_relu_block(xp_ref, w_ref, g_ref, beta_ref, L)
    for b, yb in enumerate(outs):
        o_ref[b] = yb                                    # [TC, L]


def conv_gap_head_kernel(xp_ref, w_ref, g_ref, beta_ref, wh_ref, bh_ref, o_ref, z_acc):
    """Last OS-CNN layer fused with the Linear head and AdaptiveAvgPool1d(1).

    Head first, pool second (linear ops commute with the mean): per channel tile
    z[b] += wh_tile @ y_tile[b]; on the last tile take the per-batch mean over L
    and add the head bias.  No [B*L, B] pooling matmul.
    """
    i = pl.program_id(0)
    B, L = z_acc.shape

    @pl.when(i == 0)
    def _():
        z_acc[...] = jnp.zeros_like(z_acc)

    ys = _conv_bn_relu_block(xp_ref, w_ref, g_ref, beta_ref, L)   # B x [TC, L]
    wh = wh_ref[...]                                              # [1, TC] f32
    for b in range(B):
        zb = jnp.dot(wh, ys[b], preferred_element_type=jnp.float32)   # [1, L]
        z_acc[b] = z_acc[b] + zb[0]

    @pl.when(i == pl.num_programs(0) - 1)
    def _():
        pooled = jnp.mean(z_acc[...], axis=1)                     # [B]
        o_ref[...] = pooled[None, :] + bh_ref[...]                # [1, B]


# ----------------------------------------------------------------------------
# conv-layer wrappers
# ----------------------------------------------------------------------------
def _prep_layer_weights(layer_params):
    """Fuse all branches of one OS-CNN layer onto the shared dilated-tap grid.

    All kernel sizes in a layer are odd and dilation=4, so every branch's taps
    are a centered subset of the J = max(K) shared taps at offsets 4*j.
    Returns (J, W_bf16 [C_pad, J*Cin], gamma [C_pad,1], beta [C_pad,1],
             C_total, C_pad, TC).  Rows >= C_total are zero padding so the
    channel axis is MXU/grid aligned (padded rows stay exactly 0 after BN+ReLU).
    """
    J = max(cp["w"].shape[2] for cp in layer_params)
    cin = layer_params[0]["w"].shape[1]
    w_rows, g_rows, beta_rows = [], [], []
    for cp in layer_params:
        cout, _, K = cp["w"].shape
        j0 = (J - K) // 2
        wt = jnp.transpose(cp["w"], (0, 2, 1))                       # [cout, K, cin]
        w_full = jnp.zeros((cout, J, cin), jnp.float32).at[:, j0:j0 + K, :].set(wt)
        w_rows.append(w_full.reshape(cout, J * cin))                 # col = j*cin + c
        g_rows.append(cp["gamma"])
        beta_rows.append(cp["beta"])
    W = jnp.concatenate(w_rows, axis=0)                              # [C_total, J*Cin]
    g = jnp.concatenate(g_rows)
    beta = jnp.concatenate(beta_rows)
    c_total = W.shape[0]
    tc = _channel_tile(c_total)
    c_pad = _round_up(c_total, tc)
    if c_pad > c_total:
        extra = c_pad - c_total
        W = jnp.concatenate([W, jnp.zeros((extra, W.shape[1]), jnp.float32)], axis=0)
        g = jnp.concatenate([g, jnp.zeros((extra,), jnp.float32)])
        beta = jnp.concatenate([beta, jnp.zeros((extra,), jnp.float32)])
    return (J, W.astype(jnp.bfloat16), g.reshape(-1, 1), beta.reshape(-1, 1),
            c_total, c_pad, tc)


def _pad_slab(x3, J):
    """[B, Cin, L] slab -> 'same'-padded slab [B, Cin, L + 4*(J-1)] (f32).

    TODO(synk): stream the slab in bf16 and tile the B*L axis with a two-pass
    (stats, normalize) BN for very long sequences so residency fits v7x VMEM.
    """
    pad = DILATION * (J - 1) // 2
    return jnp.pad(x3, ((0, 0), (0, 0), (pad, pad)))


def conv_layer(x3, layer_params):
    """One OS-CNN layer on a [B, Cin, L] slab -> [B, C_total, L]."""
    B, cin, L = x3.shape
    J, W, g, beta, c_total, c_pad, tc = _prep_layer_weights(layer_params)
    xp = _pad_slab(x3, J)
    out_shape = jax.ShapeDtypeStruct((B, c_pad, L), jnp.float32)
    y = pl.pallas_call(
        conv_layer_kernel,
        out_shape=out_shape,
        grid_spec=pltpu.PrefetchScalarGridSpec(
            num_scalar_prefetch=0,
            grid=(c_pad // tc,),
            in_specs=[
                pl.BlockSpec(xp.shape, lambda i: (0, 0, 0)),     # resident padded slab
                pl.BlockSpec((tc, W.shape[1]), lambda i: (i, 0)),
                pl.BlockSpec((tc, 1), lambda i: (i, 0)),
                pl.BlockSpec((tc, 1), lambda i: (i, 0)),
            ],
            out_specs=pl.BlockSpec((B, tc, L), lambda i: (0, i, 0)),
        ),
        compiler_params=pltpu.CompilerParams(
            dimension_semantics=("parallel",),     # channel tiles are independent
            vmem_limit_bytes=_vmem_limit(xp, W, g, beta, out_shape)),
    )(xp, W, g, beta)
    return y[:, :c_total, :]


def conv_gap_head(x3, layer_params, head_params):
    """Last layer + AdaptiveAvgPool1d(1) + Linear head -> [1, B]."""
    B, cin, L = x3.shape
    J, W, g, beta, c_total, c_pad, tc = _prep_layer_weights(layer_params)
    xp = _pad_slab(x3, J)
    wh = head_params["w"]                                # [1, C_total]
    if c_pad > c_total:
        wh = jnp.concatenate([wh, jnp.zeros((1, c_pad - c_total), jnp.float32)], axis=1)
    bh = head_params["b"].reshape(1, 1)
    out_shape = jax.ShapeDtypeStruct((1, B), jnp.float32)
    return pl.pallas_call(
        conv_gap_head_kernel,
        out_shape=out_shape,
        grid_spec=pltpu.PrefetchScalarGridSpec(
            num_scalar_prefetch=0,
            grid=(c_pad // tc,),
            in_specs=[
                pl.BlockSpec(xp.shape, lambda i: (0, 0, 0)),
                pl.BlockSpec((tc, W.shape[1]), lambda i: (i, 0)),
                pl.BlockSpec((tc, 1), lambda i: (i, 0)),
                pl.BlockSpec((tc, 1), lambda i: (i, 0)),
                pl.BlockSpec((1, tc), lambda i: (0, i)),
                pl.BlockSpec((1, 1), lambda i: (0, 0)),
            ],
            out_specs=pl.BlockSpec((1, B), lambda i: (0, 0)),
            scratch_shapes=[pltpu.VMEM((B, L), jnp.float32)],
        ),
        compiler_params=pltpu.CompilerParams(
            dimension_semantics=("arbitrary",),    # head accumulates across tiles
            vmem_limit_bytes=_vmem_limit(xp, W, g, beta, wh, bh, out_shape)),
    )(xp, W, g, beta, wh, bh)


# ----------------------------------------------------------------------------
# full forward
# ----------------------------------------------------------------------------
def model_forward(x_input, params):
    """x_input: [B, seq, 1] -> (head output [B, 1], prediction [B*(seq-1), 1])."""
    B, seq, _ = x_input.shape
    x_sb = jnp.transpose(x_input[:, :, 0])               # [seq, B] time-major, lane-dense

    new_input, pred = gru_impute(x_sb, params["rnn"])
    # torch row order for the prediction: row = b*(seq-1) + t
    prediction = jnp.transpose(pred).reshape(B * (seq - 1), 1)

    # conv stack on new_input.permute(1, 2, 0), kept as a [B, Cin, L] slab
    x3 = jnp.transpose(new_input)[:, None, :]            # [B, 1, seq]
    for layer_params in params["convs"][:-1]:
        x3 = conv_layer(x3, layer_params)
    head = conv_gap_head(x3, params["convs"][-1], params["head"])
    out = jnp.transpose(head)                             # [B, 1]
    return out, prediction


# ----------------------------------------------------------------------------
# deterministic parameter init
# ----------------------------------------------------------------------------
def init_params(key, layer_parameter_list, hidden, out_features):
    assert out_features == 1
    keys = jax.random.split(key, 8)
    rnn = dict(
        wih=jax.random.normal(keys[0], (3 * hidden, 1), jnp.float32) * 0.08,
        whh=jax.random.normal(keys[1], (3 * hidden, hidden), jnp.float32) * 0.08,
        bih=jax.random.normal(keys[2], (3 * hidden,), jnp.float32) * 0.08,
        bhh=jax.random.normal(keys[3], (3 * hidden,), jnp.float32) * 0.08,
        fcw=jax.random.normal(keys[4], (1, hidden), jnp.float32) * 0.08,
        fcb=jax.random.normal(keys[5], (1,), jnp.float32) * 0.08,
    )
    convs = []
    ck = keys[6]
    for layer in layer_parameter_list:
        lp = []
        for (cin, cout, ksz) in layer:
            ck, k1, k2 = jax.random.split(ck, 3)
            lp.append(dict(
                w=jax.random.normal(k1, (cout, cin, ksz), jnp.float32) * 0.1,
                # conv bias kept for parameter parity with torch; it is NOT
                # used in the kernels because it cancels exactly under
                # train-mode batch-statistic BatchNorm.
                b=jax.random.normal(k2, (cout,), jnp.float32) * 0.1,
                gamma=jnp.ones((cout,), jnp.float32),
                beta=jnp.zeros((cout,), jnp.float32),
            ))
        convs.append(lp)
    c_final = sum(p[1] for p in layer_parameter_list[-1])
    fk1, fk2 = jax.random.split(keys[7])
    head = dict(
        w=jax.random.normal(fk1, (out_features, c_final), jnp.float32) * 0.1,
        b=jax.random.normal(fk2, (out_features,), jnp.float32) * 0.1,
    )
    return dict(rnn=rnn, convs=convs, head=head)


# ----------------------------------------------------------------------------
if __name__ == "__main__":
    key = jax.random.PRNGKey(0)
    B, seq_len, in_features, out_features, hidden = 2, 8, 1, 1, 128
    # small analogue of the default layers=[5*128*256, 5*128*256 + 2*256*128]
    layers = [204, 2448]   # -> per-branch out channels 2 / 2, final layer 12 each (36 total)

    layer_parameter_list = generate_layer_parameter_list(
        1, seq_len // 4, layers, in_channel=in_features)
    key, pkey, xkey = jax.random.split(key, 3)
    params = init_params(pkey, layer_parameter_list, hidden, out_features)

    x_input = jax.random.normal(xkey, (B, seq_len, in_features), jnp.float32)
    # drop in a couple of "missing value" sentinels (== 128.0) to exercise imputation
    x_input = x_input.at[0, 3, 0].set(128.0).at[1, 5, 0].set(128.0)

    fwd = jax.jit(model_forward)
    out, prediction = fwd(x_input, params)
    jax.block_until_ready((out, prediction))

    assert out.shape == (B, out_features)
    assert prediction.shape == (B * (seq_len - 1), out_features)
    assert bool(jnp.all(jnp.isfinite(out))) and bool(jnp.all(jnp.isfinite(prediction)))
    print("KERNEL_OK")
</pallas_src>

<mosaic_0001>
module attributes {stable_mosaic.version = 11 : i64} {
  func.func @gru_impute_kernel(%arg0: memref<8x2xf32, #tpu.memory_space<vmem>>, %arg1: memref<1x384xf32, #tpu.memory_space<vmem>>, %arg2: memref<128x384xf32, #tpu.memory_space<vmem>>, %arg3: memref<1x384xf32, #tpu.memory_space<vmem>>, %arg4: memref<1x384xf32, #tpu.memory_space<vmem>>, %arg5: memref<1x128xf32, #tpu.memory_space<vmem>>, %arg6: memref<1x1xf32, #tpu.memory_space<vmem>>, %arg7: memref<8x2xf32, #tpu.memory_space<vmem>>, %arg8: memref<7x2xf32, #tpu.memory_space<vmem>>) attributes {dimension_semantics = [], scalar_prefetch = 0 : i64, scratch_operands = 0 : i64, tpu.core_type = #tpu.core_type<tc>} {
    %c0 = arith.constant 0 : index
    %c0_0 = arith.constant 0 : index
    %0 = vector.load %arg1[%c0, %c0_0] : memref<1x384xf32, #tpu.memory_space<vmem>>, vector<1x384xf32>
    %c0_1 = arith.constant 0 : index
    %c0_2 = arith.constant 0 : index
    %1 = vector.load %arg2[%c0_1, %c0_2] : memref<128x384xf32, #tpu.memory_space<vmem>>, vector<128x384xf32>
    %c0_3 = arith.constant 0 : index
    %c0_4 = arith.constant 0 : index
    %2 = vector.load %arg3[%c0_3, %c0_4] : memref<1x384xf32, #tpu.memory_space<vmem>>, vector<1x384xf32>
    %c0_5 = arith.constant 0 : index
    %c0_6 = arith.constant 0 : index
    %3 = vector.load %arg4[%c0_5, %c0_6] : memref<1x384xf32, #tpu.memory_space<vmem>>, vector<1x384xf32>
    %c0_7 = arith.constant 0 : index
    %c0_8 = arith.constant 0 : index
    %4 = vector.load %arg5[%c0_7, %c0_8] : memref<1x128xf32, #tpu.memory_space<vmem>>, vector<1x128xf32>
    %c0_9 = arith.constant 0 : index
    %c0_10 = arith.constant 0 : index
    %5 = vector.load %arg6[%c0_9, %c0_10] : memref<1x1xf32, #tpu.memory_space<vmem>>, vector<1x1xf32>
    %6 = vector.extract %5[0, 0] : f32 from vector<1x1xf32>
    %c0_11 = arith.constant 0 : index
    %c0_12 = arith.constant 0 : index
    %7 = vector.load %arg0[%c0_11, %c0_12] : memref<8x2xf32, #tpu.memory_space<vmem>>, vector<1x2xf32>
    %8 = vector.shape_cast %7 : vector<1x2xf32> to vector<2xf32>
    %c0_13 = arith.constant 0 : index
    %c0_14 = arith.constant 0 : index
    %9 = vector.load %arg7[%c0_13, %c0_14] : memref<8x2xf32, #tpu.memory_space<vmem>>, vector<1x2xf32>
    %10 = vector.shape_cast %9 : vector<1x2xf32> to vector<2xf32>
    %11 = vector.shape_cast %8 : vector<2xf32> to vector<1x2xf32>
    tpu.vector_store %arg7[%c0_13, %c0_14], %11 {strides = array<i32>} : memref<8x2xf32, #tpu.memory_space<vmem>>, vector<1x2xf32>,
    %cst = arith.constant 0.000000e+00 : f32
    %12 = vector.broadcast %cst : f32 to vector<2x128xf32>
    %13 = vector.shape_cast %8 : vector<2xf32> to vector<2x1xf32>
    %14 = vector.broadcast %13 : vector<2x1xf32> to vector<2x384xf32>
    %15 = vector.broadcast %0 : vector<1x384xf32> to vector<2x384xf32>
    %16 = arith.mulf %14, %15 : vector<2x384xf32>
    %17 = vector.broadcast %2 : vector<1x384xf32> to vector<2x384xf32>
    %18 = arith.addf %16, %17 : vector<2x384xf32>
    %cst_15 = arith.constant dense<0.000000e+00> : vector<2x384xf32>
    %19 = tpu.matmul %12, %1, %cst_15 {dimension_numbers = #tpu.dot_dimension_numbers<[1], [0], [0], [1], [0, 0, 1, 1], [], []>} : vector<2x128xf32>, vector<128x384xf32>, vector<2x384xf32> -> vector<2x384xf32>
    %20 = vector.broadcast %3 : vector<1x384xf32> to vector<2x384xf32>
    %21 = arith.addf %19, %20 : vector<2x384xf32>
    %22 = vector.extract_strided_slice %18 {offsets = [0, 0], sizes = [2, 128], strides = [1, 1]} : vector<2x384xf32> to vector<2x128xf32>
    %23 = vector.extract_strided_slice %21 {offsets = [0, 0], sizes = [2, 128], strides = [1, 1]} : vector<2x384xf32> to vector<2x128xf32>
    %24 = arith.addf %22, %23 : vector<2x128xf32>
    %25 = arith.negf %24 : vector<2x128xf32>
    %26 = math.exp %25 : vector<2x128xf32>
    %cst_16 = arith.constant 1.000000e+00 : f32
    %27 = vector.broadcast %cst_16 : f32 to vector<2x128xf32>
    %28 = arith.addf %27, %26 : vector<2x128xf32>
    %29 = arith.divf %27, %28 : vector<2x128xf32>
    %30 = vector.extract_strided_slice %18 {offsets = [0, 128], sizes = [2, 128], strides = [1, 1]} : vector<2x384xf32> to vector<2x128xf32>
    %31 = vector.extract_strided_slice %21 {offsets = [0, 128], sizes = [2, 128], strides = [1, 1]} : vector<2x384xf32> to vector<2x128xf32>
    %32 = arith.addf %30, %31 : vector<2x128xf32>
    %33 = arith.negf %32 : vector<2x128xf32>
    %34 = math.exp %33 : vector<2x128xf32>
    %cst_17 = arith.constant 1.000000e+00 : f32
    %35 = vector.broadcast %cst_17 : f32 to vector<2x128xf32>
    %36 = arith.addf %35, %34 : vector<2x128xf32>
    %37 = arith.divf %35, %36 : vector<2x128xf32>
    %38 = vector.extract_strided_slice %18 {offsets = [0, 256], sizes = [2, 128], strides = [1, 1]} : vector<2x384xf32> to vector<2x128xf32>
    %39 = vector.extract_strided_slice %21 {offsets = [0, 256], sizes = [2, 128], strides = [1, 1]} : vector<2x384xf32> to vector<2x128xf32>
    %40 = arith.mulf %29, %39 : vector<2x128xf32>
    %41 = arith.addf %38, %40 : vector<2x128xf32>
    %42 = math.tanh %41 : vector<2x128xf32>
    %cst_18 = arith.constant 1.000000e+00 : f32
    %43 = vector.broadcast %cst_18 : f32 to vector<2x128xf32>
    %44 = arith.subf %43, %37 : vector<2x128xf32>
    %45 = arith.mulf %44, %42 : vector<2x128xf32>
    %46 = arith.mulf %37, %12 : vector<2x128xf32>
    %47 = arith.addf %45, %46 : vector<2x128xf32>
    %c1 = arith.constant 1 : index
    %c0_19 = arith.constant 0 : index
    %48 = vector.load %arg0[%c1, %c0_19] : memref<8x2xf32, #tpu.memory_space<vmem>>, vector<1x2xf32>
    %49 = vector.shape_cast %48 : vector<1x2xf32> to vector<2xf32>
    %50 = vector.broadcast %4 : vector<1x128xf32> to vector<2x128xf32>
    %51 = arith.mulf %47, %50 : vector<2x128xf32>
    %cst_20 = arith.constant dense<0.000000e+00> : vector<2xf32>
    %52 = vector.multi_reduction <add>, %51, %cst_20 [1] : vector<2x128xf32> to vector<2xf32>
    %53 = vector.broadcast %6 : f32 to vector<2xf32>
    %54 = arith.addf %52, %53 : vector<2xf32>
    %cst_21 = arith.constant 1.280000e+02 : f32
    %55 = vector.broadcast %cst_21 : f32 to vector<2xf32>
    %56 = arith.cmpf oeq, %49, %55 : vector<2xf32>
    %57 = arith.select %56, %54, %49 : vector<2xi1>, vector<2xf32>
    %58 = vector.shape_cast %57 : vector<2xf32> to vector<2x1xf32>
    %59 = vector.broadcast %58 : vector<2x1xf32> to vector<2x384xf32>
    %60 = vector.broadcast %0 : vector<1x384xf32> to vector<2x384xf32>
    %61 = arith.mulf %59, %60 : vector<2x384xf32>
    %62 = vector.broadcast %2 : vector<1x384xf32> to vector<2x384xf32>
    %63 = arith.addf %61, %62 : vector<2x384xf32>
    %cst_22 = arith.constant dense<0.000000e+00> : vector<2x384xf32>
    %64 = tpu.matmul %47, %1, %cst_22 {dimension_numbers = #tpu.dot_dimension_numbers<[1], [0], [0], [1], [0, 0, 1, 1], [], []>} : vector<2x128xf32>, vector<128x384xf32>, vector<2x384xf32> -> vector<2x384xf32>
    %65 = vector.broadcast %3 : vector<1x384xf32> to vector<2x384xf32>
    %66 = arith.addf %64, %65 : vector<2x384xf32>
    %67 = vector.extract_strided_slice %63 {offsets = [0, 0], sizes = [2, 128], strides = [1, 1]} : vector<2x384xf32> to vector<2x128xf32>
    %68 = vector.extract_strided_slice %66 {offsets = [0, 0], sizes = [2, 128], strides = [1, 1]} : vector<2x384xf32> to vector<2x128xf32>
    %69 = arith.addf %67, %68 : vector<2x128xf32>
    %70 = arith.negf %69 : vector<2x128xf32>
    %71 = math.exp %70 : vector<2x128xf32>
    %cst_23 = arith.constant 1.000000e+00 : f32
    %72 = vector.broadcast %cst_23 : f32 to vector<2x128xf32>
    %73 = arith.addf %72, %71 : vector<2x128xf32>
    %74 = arith.divf %72, %73 : vector<2x128xf32>
    %75 = vector.extract_strided_slice %63 {offsets = [0, 128], sizes = [2, 128], strides = [1, 1]} : vector<2x384xf32> to vector<2x128xf32>
    %76 = vector.extract_strided_slice %66 {offsets = [0, 128], sizes = [2, 128], strides = [1, 1]} : vector<2x384xf32> to vector<2x128xf32>
    %77 = arith.addf %75, %76 : vector<2x128xf32>
    %78 = arith.negf %77 : vector<2x128xf32>
    %79 = math.exp %78 : vector<2x128xf32>
    %cst_24 = arith.constant 1.000000e+00 : f32
    %80 = vector.broadcast %cst_24 : f32 to vector<2x128xf32>
    %81 = arith.addf %80, %79 : vector<2x128xf32>
    %82 = arith.divf %80, %81 : vector<2x128xf32>
    %83 = vector.extract_strided_slice %63 {offsets = [0, 256], sizes = [2, 128], strides = [1, 1]} : vector<2x384xf32> to vector<2x128xf32>
    %84 = vector.extract_strided_slice %66 {offsets = [0, 256], sizes = [2, 128], strides = [1, 1]} : vector<2x384xf32> to vector<2x128xf32>
    %85 = arith.mulf %74, %84 : vector<2x128xf32>
    %86 = arith.addf %83, %85 : vector<2x128xf32>
    %87 = math.tanh %86 : vector<2x128xf32>
    %cst_25 = arith.constant 1.000000e+00 : f32
    %88 = vector.broadcast %cst_25 : f32 to vector<2x128xf32>
    %89 = arith.subf %88, %82 : vector<2x128xf32>
    %90 = arith.mulf %89, %87 : vector<2x128xf32>
    %91 = arith.mulf %82, %47 : vector<2x128xf32>
    %92 = arith.addf %90, %91 : vector<2x128xf32>
    %c0_26 = arith.constant 0 : index
    %c0_27 = arith.constant 0 : index
    %93 = vector.load %arg8[%c0_26, %c0_27] : memref<7x2xf32, #tpu.memory_space<vmem>>, vector<1x2xf32>
    %94 = vector.shape_cast %93 : vector<1x2xf32> to vector<2xf32>
    %95 = vector.shape_cast %54 : vector<2xf32> to vector<1x2xf32>
    tpu.vector_store %arg8[%c0_26, %c0_27], %95 {strides = array<i32>} : memref<7x2xf32, #tpu.memory_space<vmem>>, vector<1x2xf32>,
    %c1_28 = arith.constant 1 : index
    %c0_29 = arith.constant 0 : index
    %96 = vector.load %arg7[%c1_28, %c0_29] : memref<8x2xf32, #tpu.memory_space<vmem>>, vector<1x2xf32>
    %97 = vector.shape_cast %96 : vector<1x2xf32> to vector<2xf32>
    %98 = vector.shape_cast %57 : vector<2xf32> to vector<1x2xf32>
    tpu.vector_store %arg7[%c1_28, %c0_29], %98 {strides = array<i32>} : memref<8x2xf32, #tpu.memory_space<vmem>>, vector<1x2xf32>,
    %c2 = arith.constant 2 : index
    %c0_30 = arith.constant 0 : index
    %99 = vector.load %arg0[%c2, %c0_30] : memref<8x2xf32, #tpu.memory_space<vmem>>, vector<1x2xf32>
    %100 = vector.shape_cast %99 : vector<1x2xf32> to vector<2xf32>
    %101 = vector.broadcast %4 : vector<1x128xf32> to vector<2x128xf32>
    %102 = arith.mulf %92, %101 : vector<2x128xf32>
    %cst_31 = arith.constant dense<0.000000e+00> : vector<2xf32>
    %103 = vector.multi_reduction <add>, %102, %cst_31 [1] : vector<2x128xf32> to vector<2xf32>
    %104 = vector.broadcast %6 : f32 to vector<2xf32>
    %105 = arith.addf %103, %104 : vector<2xf32>
    %cst_32 = arith.constant 1.280000e+02 : f32
    %106 = vector.broadcast %cst_32 : f32 to vector<2xf32>
    %107 = arith.cmpf oeq, %100, %106 : vector<2xf32>
    %108 = arith.select %107, %105, %100 : vector<2xi1>, vector<2xf32>
    %109 = vector.shape_cast %108 : vector<2xf32> to vector<2x1xf32>
    %110 = vector.broadcast %109 : vector<2x1xf32> to vector<2x384xf32>
    %111 = vector.broadcast %0 : vector<1x384xf32> to vector<2x384xf32>
    %112 = arith.mulf %110, %111 : vector<2x384xf32>
    %113 = vector.broadcast %2 : vector<1x384xf32> to vector<2x384xf32>
    %114 = arith.addf %112, %113 : vector<2x384xf32>
    %cst_33 = arith.constant dense<0.000000e+00> : vector<2x384xf32>
    %115 = tpu.matmul %92, %1, %cst_33 {dimension_numbers = #tpu.dot_dimension_numbers<[1], [0], [0], [1], [0, 0, 1, 1], [], []>} : vector<2x128xf32>, vector<128x384xf32>, vector<2x384xf32> -> vector<2x384xf32>
    %116 = vector.broadcast %3 : vector<1x384xf32> to vector<2x384xf32>
    %117 = arith.addf %115, %116 : vector<2x384xf32>
    %118 = vector.extract_strided_slice %114 {offsets = [0, 0], sizes = [2, 128], strides = [1, 1]} : vector<2x384xf32> to vector<2x128xf32>
    %119 = vector.extract_strided_slice %117 {offsets = [0, 0], sizes = [2, 128], strides = [1, 1]} : vector<2x384xf32> to vector<2x128xf32>
    %120 = arith.addf %118, %119 : vector<2x128xf32>
    %121 = arith.negf %120 : vector<2x128xf32>
    %122 = math.exp %121 : vector<2x128xf32>
    %cst_34 = arith.constant 1.000000e+00 : f32
    %123 = vector.broadcast %cst_34 : f32 to vector<2x128xf32>
    %124 = arith.addf %123, %122 : vector<2x128xf32>
    %125 = arith.divf %123, %124 : vector<2x128xf32>
    %126 = vector.extract_strided_slice %114 {offsets = [0, 128], sizes = [2, 128], strides = [1, 1]} : vector<2x384xf32> to vector<2x128xf32>
    %127 = vector.extract_strided_slice %117 {offsets = [0, 128], sizes = [2, 128], strides = [1, 1]} : vector<2x384xf32> to vector<2x128xf32>
    %128 = arith.addf %126, %127 : vector<2x128xf32>
    %129 = arith.negf %128 : vector<2x128xf32>
    %130 = math.exp %129 : vector<2x128xf32>
    %cst_35 = arith.constant 1.000000e+00 : f32
    %131 = vector.broadcast %cst_35 : f32 to vector<2x128xf32>
    %132 = arith.addf %131, %130 : vector<2x128xf32>
    %133 = arith.divf %131, %132 : vector<2x128xf32>
    %134 = vector.extract_strided_slice %114 {offsets = [0, 256], sizes = [2, 128], strides = [1, 1]} : vector<2x384xf32> to vector<2x128xf32>
    %135 = vector.extract_strided_slice %117 {offsets = [0, 256], sizes = [2, 128], strides = [1, 1]} : vector<2x384xf32> to vector<2x128xf32>
    %136 = arith.mulf %125, %135 : vector<2x128xf32>
    %137 = arith.addf %134, %136 : vector<2x128xf32>
    %138 = math.tanh %137 : vector<2x128xf32>
    %cst_36 = arith.constant 1.000000e+00 : f32
    %139 = vector.broadcast %cst_36 : f32 to vector<2x128xf32>
    %140 = arith.subf %139, %133 : vector<2x128xf32>
    %141 = arith.mulf %140, %138 : vector<2x128xf32>
    %142 = arith.mulf %133, %92 : vector<2x128xf32>
    %143 = arith.addf %141, %142 : vector<2x128xf32>
    %c1_37 = arith.constant 1 : index
    %c0_38 = arith.constant 0 : index
    %144 = vector.load %arg8[%c1_37, %c0_38] : memref<7x2xf32, #tpu.memory_space<vmem>>, vector<1x2xf32>
    %145 = vector.shape_cast %144 : vector<1x2xf32> to vector<2xf32>
    %146 = vector.shape_cast %105 : vector<2xf32> to vector<1x2xf32>
    tpu.vector_store %arg8[%c1_37, %c0_38], %146 {strides = array<i32>} : memref<7x2xf32, #tpu.memory_space<vmem>>, vector<1x2xf32>,
    %c2_39 = arith.constant 2 : index
    %c0_40 = arith.constant 0 : index
    %147 = vector.load %arg7[%c2_39, %c0_40] : memref<8x2xf32, #tpu.memory_space<vmem>>, vector<1x2xf32>
    %148 = vector.shape_cast %147 : vector<1x2xf32> to vector<2xf32>
    %149 = vector.shape_cast %108 : vector<2xf32> to vector<1x2xf32>
    tpu.vector_store %arg7[%c2_39, %c0_40], %149 {strides = array<i32>} : memref<8x2xf32, #tpu.memory_space<vmem>>, vector<1x2xf32>,
    %c3 = arith.constant 3 : index
    %c0_41 = arith.constant 0 : index
    %150 = vector.load %arg0[%c3, %c0_41] : memref<8x2xf32, #tpu.memory_space<vmem>>, vector<1x2xf32>
    %151 = vector.shape_cast %150 : vector<1x2xf32> to vector<2xf32>
    %152 = vector.broadcast %4 : vector<1x128xf32> to vector<2x128xf32>
    %153 = arith.mulf %143, %152 : vector<2x128xf32>
    %cst_42 = arith.constant dense<0.000000e+00> : vector<2xf32>
    %154 = vector.multi_reduction <add>, %153, %cst_42 [1] : vector<2x128xf32> to vector<2xf32>
    %155 = vector.broadcast %6 : f32 to vector<2xf32>
    %156 = arith.addf %154, %155 : vector<2xf32>
    %cst_43 = arith.constant 1.280000e+02 : f32
    %157 = vector.broadcast %cst_43 : f32 to vector<2xf32>
    %158 = arith.cmpf oeq, %151, %157 : vector<2xf32>
    %159 = arith.select %158, %156, %151 : vector<2xi1>, vector<2xf32>
    %160 = vector.shape_cast %159 : vector<2xf32> to vector<2x1xf32>
    %161 = vector.broadcast %160 : vector<2x1xf32> to vector<2x384xf32>
    %162 = vector.broadcast %0 : vector<1x384xf32> to vector<2x384xf32>
    %163 = arith.mulf %161, %162 : vector<2x384xf32>
    %164 = vector.broadcast %2 : vector<1x384xf32> to vector<2x384xf32>
    %165 = arith.addf %163, %164 : vector<2x384xf32>
    %cst_44 = arith.constant dense<0.000000e+00> : vector<2x384xf32>
    %166 = tpu.matmul %143, %1, %cst_44 {dimension_numbers = #tpu.dot_dimension_numbers<[1], [0], [0], [1], [0, 0, 1, 1], [], []>} : vector<2x128xf32>, vector<128x384xf32>, vector<2x384xf32> -> vector<2x384xf32>
    %167 = vector.broadcast %3 : vector<1x384xf32> to vector<2x384xf32>
    %168 = arith.addf %166, %167 : vector<2x384xf32>
    %169 = vector.extract_strided_slice %165 {offsets = [0, 0], sizes = [2, 128], strides = [1, 1]} : vector<2x384xf32> to vector<2x128xf32>
    %170 = vector.extract_strided_slice %168 {offsets = [0, 0], sizes = [2, 128], strides = [1, 1]} : vector<2x384xf32> to vector<2x128xf32>
    %171 = arith.addf %169, %170 : vector<2x128xf32>
    %172 = arith.negf %171 : vector<2x128xf32>
    %173 = math.exp %172 : vector<2x128xf32>
    %cst_45 = arith.constant 1.000000e+00 : f32
    %174 = vector.broadcast %cst_45 : f32 to vector<2x128xf32>
    %175 = arith.addf %174, %173 : vector<2x128xf32>
    %176 = arith.divf %174, %175 : vector<2x128xf32>
    %177 = vector.extract_strided_slice %165 {offsets = [0, 128], sizes = [2, 128], strides = [1, 1]} : vector<2x384xf32> to vector<2x128xf32>
    %178 = vector.extract_strided_slice %168 {offsets = [0, 128], sizes = [2, 128], strides = [1, 1]} : vector<2x384xf32> to vector<2x128xf32>
    %179 = arith.addf %177, %178 : vector<2x128xf32>
    %180 = arith.negf %179 : vector<2x128xf32>
    %181 = math.exp %180 : vector<2x128xf32>
    %cst_46 = arith.constant 1.000000e+00 : f32
    %182 = vector.broadcast %cst_46 : f32 to vector<2x128xf32>
    %183 = arith.addf %182, %181 : vector<2x128xf32>
    %184 = arith.divf %182, %183 : vector<2x128xf32>
    %185 = vector.extract_strided_slice %165 {offsets = [0, 256], sizes = [2, 128], strides = [1, 1]} : vector<2x384xf32> to vector<2x128xf32>
    %186 = vector.extract_strided_slice %168 {offsets = [0, 256], sizes = [2, 128], strides = [1, 1]} : vector<2x384xf32> to vector<2x128xf32>
    %187 = arith.mulf %176, %186 : vector<2x128xf32>
    %188 = arith.addf %185, %187 : vector<2x128xf32>
    %189 = math.tanh %188 : vector<2x128xf32>
    %cst_47 = arith.constant 1.000000e+00 : f32
    %190 = vector.broadcast %cst_47 : f32 to vector<2x128xf32>
    %191 = arith.subf %190, %184 : vector<2x128xf32>
    %192 = arith.mulf %191, %189 : vector<2x128xf32>
    %193 = arith.mulf %184, %143 : vector<2x128xf32>
    %194 = arith.addf %192, %193 : vector<2x128xf32>
    %c2_48 = arith.constant 2 : index
    %c0_49 = arith.constant 0 : index
    %195 = vector.load %arg8[%c2_48, %c0_49] : memref<7x2xf32, #tpu.memory_space<vmem>>, vector<1x2xf32>
    %196 = vector.shape_cast %195 : vector<1x2xf32> to vector<2xf32>
    %197 = vector.shape_cast %156 : vector<2xf32> to vector<1x2xf32>
    tpu.vector_store %arg8[%c2_48, %c0_49], %197 {strides = array<i32>} : memref<7x2xf32, #tpu.memory_space<vmem>>, vector<1x2xf32>,
    %c3_50 = arith.constant 3 : index
    %c0_51 = arith.constant 0 : index
    %198 = vector.load %arg7[%c3_50, %c0_51] : memref<8x2xf32, #tpu.memory_space<vmem>>, vector<1x2xf32>
    %199 = vector.shape_cast %198 : vector<1x2xf32> to vector<2xf32>
    %200 = vector.shape_cast %159 : vector<2xf32> to vector<1x2xf32>
    tpu.vector_store %arg7[%c3_50, %c0_51], %200 {strides = array<i32>} : memref<8x2xf32, #tpu.memory_space<vmem>>, vector<1x2xf32>,
    %c4 = arith.constant 4 : index
    %c0_52 = arith.constant 0 : index
    %201 = vector.load %arg0[%c4, %c0_52] : memref<8x2xf32, #tpu.memory_space<vmem>>, vector<1x2xf32>
    %202 = vector.shape_cast %201 : vector<1x2xf32> to vector<2xf32>
    %203 = vector.broadcast %4 : vector<1x128xf32> to vector<2x128xf32>
    %204 = arith.mulf %194, %203 : vector<2x128xf32>
    %cst_53 = arith.constant dense<0.000000e+00> : vector<2xf32>
    %205 = vector.multi_reduction <add>, %204, %cst_53 [1] : vector<2x128xf32> to vector<2xf32>
    %206 = vector.broadcast %6 : f32 to vector<2xf32>
    %207 = arith.addf %205, %206 : vector<2xf32>
    %cst_54 = arith.constant 1.280000e+02 : f32
    %208 = vector.broadcast %cst_54 : f32 to vector<2xf32>
    %209 = arith.cmpf oeq, %202, %208 : vector<2xf32>
    %210 = arith.select %209, %207, %202 : vector<2xi1>, vector<2xf32>
    %211 = vector.shape_cast %210 : vector<2xf32> to vector<2x1xf32>
    %212 = vector.broadcast %211 : vector<2x1xf32> to vector<2x384xf32>
    %213 = vector.broadcast %0 : vector<1x384xf32> to vector<2x384xf32>
    %214 = arith.mulf %212, %213 : vector<2x384xf32>
    %215 = vector.broadcast %2 : vector<1x384xf32> to vector<2x384xf32>
    %216 = arith.addf %214, %215 : vector<2x384xf32>
    %cst_55 = arith.constant dense<0.000000e+00> : vector<2x384xf32>
    %217 = tpu.matmul %194, %1, %cst_55 {dimension_numbers = #tpu.dot_dimension_numbers<[1], [0], [0], [1], [0, 0, 1, 1], [], []>} : vector<2x128xf32>, vector<128x384xf32>, vector<2x384xf32> -> vector<2x384xf32>
    %218 = vector.broadcast %3 : vector<1x384xf32> to vector<2x384xf32>
    %219 = arith.addf %217, %218 : vector<2x384xf32>
    %220 = vector.extract_strided_slice %216 {offsets = [0, 0], sizes = [2, 128], strides = [1, 1]} : vector<2x384xf32> to vector<2x128xf32>
    %221 = vector.extract_strided_slice %219 {offsets = [0, 0], sizes = [2, 128], strides = [1, 1]} : vector<2x384xf32> to vector<2x128xf32>
    %222 = arith.addf %220, %221 : vector<2x128xf32>
    %223 = arith.negf %222 : vector<2x128xf32>
    %224 = math.exp %223 : vector<2x128xf32>
    %cst_56 = arith.constant 1.000000e+00 : f32
    %225 = vector.broadcast %cst_56 : f32 to vector<2x128xf32>
    %226 = arith.addf %225, %224 : vector<2x128xf32>
    %227 = arith.divf %225, %226 : vector<2x128xf32>
    %228 = vector.extract_strided_slice %216 {offsets = [0, 128], sizes = [2, 128], strides = [1, 1]} : vector<2x384xf32> to vector<2x128xf32>
    %229 = vector.extract_strided_slice %219 {offsets = [0, 128], sizes = [2, 128], strides = [1, 1]} : vector<2x384xf32> to vector<2x128xf32>
    %230 = arith.addf %228, %229 : vector<2x128xf32>
    %231 = arith.negf %230 : vector<2x128xf32>
    %232 = math.exp %231 : vector<2x128xf32>
    %cst_57 = arith.constant 1.000000e+00 : f32
    %233 = vector.broadcast %cst_57 : f32 to vector<2x128xf32>
    %234 = arith.addf %233, %232 : vector<2x128xf32>
    %235 = arith.divf %233, %234 : vector<2x128xf32>
    %236 = vector.extract_strided_slice %216 {offsets = [0, 256], sizes = [2, 128], strides = [1, 1]} : vector<2x384xf32> to vector<2x128xf32>
    %237 = vector.extract_strided_slice %219 {offsets = [0, 256], sizes = [2, 128], strides = [1, 1]} : vector<2x384xf32> to vector<2x128xf32>
    %238 = arith.mulf %227, %237 : vector<2x128xf32>
    %239 = arith.addf %236, %238 : vector<2x128xf32>
    %240 = math.tanh %239 : vector<2x128xf32>
    %cst_58 = arith.constant 1.000000e+00 : f32
    %241 = vector.broadcast %cst_58 : f32 to vector<2x128xf32>
    %242 = arith.subf %241, %235 : vector<2x128xf32>
    %243 = arith.mulf %242, %240 : vector<2x128xf32>
    %244 = arith.mulf %235, %194 : vector<2x128xf32>
    %245 = arith.addf %243, %244 : vector<2x128xf32>
    %c3_59 = arith.constant 3 : index
    %c0_60 = arith.constant 0 : index
    %246 = vector.load %arg8[%c3_59, %c0_60] : memref<7x2xf32, #tpu.memory_space<vmem>>, vector<1x2xf32>
    %247 = vector.shape_cast %246 : vector<1x2xf32> to vector<2xf32>
    %248 = vector.shape_cast %207 : vector<2xf32> to vector<1x2xf32>
    tpu.vector_store %arg8[%c3_59, %c0_60], %248 {strides = array<i32>} : memref<7x2xf32, #tpu.memory_space<vmem>>, vector<1x2xf32>,
    %c4_61 = arith.constant 4 : index
    %c0_62 = arith.constant 0 : index
    %249 = vector.load %arg7[%c4_61, %c0_62] : memref<8x2xf32, #tpu.memory_space<vmem>>, vector<1x2xf32>
    %250 = vector.shape_cast %249 : vector<1x2xf32> to vector<2xf32>
    %251 = vector.shape_cast %210 : vector<2xf32> to vector<1x2xf32>
    tpu.vector_store %arg7[%c4_61, %c0_62], %251 {strides = array<i32>} : memref<8x2xf32, #tpu.memory_space<vmem>>, vector<1x2xf32>,
    %c5 = arith.constant 5 : index
    %c0_63 = arith.constant 0 : index
    %252 = vector.load %arg0[%c5, %c0_63] : memref<8x2xf32, #tpu.memory_space<vmem>>, vector<1x2xf32>
    %253 = vector.shape_cast %252 : vector<1x2xf32> to vector<2xf32>
    %254 = vector.broadcast %4 : vector<1x128xf32> to vector<2x128xf32>
    %255 = arith.mulf %245, %254 : vector<2x128xf32>
    %cst_64 = arith.constant dense<0.000000e+00> : vector<2xf32>
    %256 = vector.multi_reduction <add>, %255, %cst_64 [1] : vector<2x128xf32> to vector<2xf32>
    %257 = vector.broadcast %6 : f32 to vector<2xf32>
    %258 = arith.addf %256, %257 : vector<2xf32>
    %cst_65 = arith.constant 1.280000e+02 : f32
    %259 = vector.broadcast %cst_65 : f32 to vector<2xf32>
    %260 = arith.cmpf oeq, %253, %259 : vector<2xf32>
    %261 = arith.select %260, %258, %253 : vector<2xi1>, vector<2xf32>
    %262 = vector.shape_cast %261 : vector<2xf32> to vector<2x1xf32>
    %263 = vector.broadcast %262 : vector<2x1xf32> to vector<2x384xf32>
    %264 = vector.broadcast %0 : vector<1x384xf32> to vector<2x384xf32>
    %265 = arith.mulf %263, %264 : vector<2x384xf32>
    %266 = vector.broadcast %2 : vector<1x384xf32> to vector<2x384xf32>
    %267 = arith.addf %265, %266 : vector<2x384xf32>
    %cst_66 = arith.constant dense<0.000000e+00> : vector<2x384xf32>
    %268 = tpu.matmul %245, %1, %cst_66 {dimension_numbers = #tpu.dot_dimension_numbers<[1], [0], [0], [1], [0, 0, 1, 1], [], []>} : vector<2x128xf32>, vector<128x384xf32>, vector<2x384xf32> -> vector<2x384xf32>
    %269 = vector.broadcast %3 : vector<1x384xf32> to vector<2x384xf32>
    %270 = arith.addf %268, %269 : vector<2x384xf32>
    %271 = vector.extract_strided_slice %267 {offsets = [0, 0], sizes = [2, 128], strides = [1, 1]} : vector<2x384xf32> to vector<2x128xf32>
    %272 = vector.extract_strided_slice %270 {offsets = [0, 0], sizes = [2, 128], strides = [1, 1]} : vector<2x384xf32> to vector<2x128xf32>
    %273 = arith.addf %271, %272 : vector<2x128xf32>
    %274 = arith.negf %273 : vector<2x128xf32>
    %275 = math.exp %274 : vector<2x128xf32>
    %cst_67 = arith.constant 1.000000e+00 : f32
    %276 = vector.broadcast %cst_67 : f32 to vector<2x128xf32>
    %277 = arith.addf %276, %275 : vector<2x128xf32>
    %278 = arith.divf %276, %277 : vector<2x128xf32>
    %279 = vector.extract_strided_slice %267 {offsets = [0, 128], sizes = [2, 128], strides = [1, 1]} : vector<2x384xf32> to vector<2x128xf32>
    %280 = vector.extract_strided_slice %270 {offsets = [0, 128], sizes = [2, 128], strides = [1, 1]} : vector<2x384xf32> to vector<2x128xf32>
    %281 = arith.addf %279, %280 : vector<2x128xf32>
    %282 = arith.negf %281 : vector<2x128xf32>
    %283 = math.exp %282 : vector<2x128xf32>
    %cst_68 = arith.constant 1.000000e+00 : f32
    %284 = vector.broadcast %cst_68 : f32 to vector<2x128xf32>
    %285 = arith.addf %284, %283 : vector<2x128xf32>
    %286 = arith.divf %284, %285 : vector<2x128xf32>
    %287 = vector.extract_strided_slice %267 {offsets = [0, 256], sizes = [2, 128], strides = [1, 1]} : vector<2x384xf32> to vector<2x128xf32>
    %288 = vector.extract_strided_slice %270 {offsets = [0, 256], sizes = [2, 128], strides = [1, 1]} : vector<2x384xf32> to vector<2x128xf32>
    %289 = arith.mulf %278, %288 : vector<2x128xf32>
    %290 = arith.addf %287, %289 : vector<2x128xf32>
    %291 = math.tanh %290 : vector<2x128xf32>
    %cst_69 = arith.constant 1.000000e+00 : f32
    %292 = vector.broadcast %cst_69 : f32 to vector<2x128xf32>
    %293 = arith.subf %292, %286 : vector<2x128xf32>
    %294 = arith.mulf %293, %291 : vector<2x128xf32>
    %295 = arith.mulf %286, %245 : vector<2x128xf32>
    %296 = arith.addf %294, %295 : vector<2x128xf32>
    %c4_70 = arith.constant 4 : index
    %c0_71 = arith.constant 0 : index
    %297 = vector.load %arg8[%c4_70, %c0_71] : memref<7x2xf32, #tpu.memory_space<vmem>>, vector<1x2xf32>
    %298 = vector.shape_cast %297 : vector<1x2xf32> to vector<2xf32>
    %299 = vector.shape_cast %258 : vector<2xf32> to vector<1x2xf32>
    tpu.vector_store %arg8[%c4_70, %c0_71], %299 {strides = array<i32>} : memref<7x2xf32, #tpu.memory_space<vmem>>, vector<1x2xf32>,
    %c5_72 = arith.constant 5 : index
    %c0_73 = arith.constant 0 : index
    %300 = vector.load %arg7[%c5_72, %c0_73] : memref<8x2xf32, #tpu.memory_space<vmem>>, vector<1x2xf32>
    %301 = vector.shape_cast %300 : vector<1x2xf32> to vector<2xf32>
    %302 = vector.shape_cast %261 : vector<2xf32> to vector<1x2xf32>
    tpu.vector_store %arg7[%c5_72, %c0_73], %302 {strides = array<i32>} : memref<8x2xf32, #tpu.memory_space<vmem>>, vector<1x2xf32>,
    %c6 = arith.constant 6 : index
    %c0_74 = arith.constant 0 : index
    %303 = vector.load %arg0[%c6, %c0_74] : memref<8x2xf32, #tpu.memory_space<vmem>>, vector<1x2xf32>
    %304 = vector.shape_cast %303 : vector<1x2xf32> to vector<2xf32>
    %305 = vector.broadcast %4 : vector<1x128xf32> to vector<2x128xf32>
    %306 = arith.mulf %296, %305 : vector<2x128xf32>
    %cst_75 = arith.constant dense<0.000000e+00> : vector<2xf32>
    %307 = vector.multi_reduction <add>, %306, %cst_75 [1] : vector<2x128xf32> to vector<2xf32>
    %308 = vector.broadcast %6 : f32 to vector<2xf32>
    %309 = arith.addf %307, %308 : vector<2xf32>
    %cst_76 = arith.constant 1.280000e+02 : f32
    %310 = vector.broadcast %cst_76 : f32 to vector<2xf32>
    %311 = arith.cmpf oeq, %304, %310 : vector<2xf32>
    %312 = arith.select %311, %309, %304 : vector<2xi1>, vector<2xf32>
    %313 = vector.shape_cast %312 : vector<2xf32> to vector<2x1xf32>
    %314 = vector.broadcast %313 : vector<2x1xf32> to vector<2x384xf32>
    %315 = vector.broadcast %0 : vector<1x384xf32> to vector<2x384xf32>
    %316 = arith.mulf %314, %315 : vector<2x384xf32>
    %317 = vector.broadcast %2 : vector<1x384xf32> to vector<2x384xf32>
    %318 = arith.addf %316, %317 : vector<2x384xf32>
    %cst_77 = arith.constant dense<0.000000e+00> : vector<2x384xf32>
    %319 = tpu.matmul %296, %1, %cst_77 {dimension_numbers = #tpu.dot_dimension_numbers<[1], [0], [0], [1], [0, 0, 1, 1], [], []>} : vector<2x128xf32>, vector<128x384xf32>, vector<2x384xf32> -> vector<2x384xf32>
    %320 = vector.broadcast %3 : vector<1x384xf32> to vector<2x384xf32>
    %321 = arith.addf %319, %320 : vector<2x384xf32>
    %322 = vector.extract_strided_slice %318 {offsets = [0, 0], sizes = [2, 128], strides = [1, 1]} : vector<2x384xf32> to vector<2x128xf32>
    %323 = vector.extract_strided_slice %321 {offsets = [0, 0], sizes = [2, 128], strides = [1, 1]} : vector<2x384xf32> to vector<2x128xf32>
    %324 = arith.addf %322, %323 : vector<2x128xf32>
    %325 = arith.negf %324 : vector<2x128xf32>
    %326 = math.exp %325 : vector<2x128xf32>
    %cst_78 = arith.constant 1.000000e+00 : f32
    %327 = vector.broadcast %cst_78 : f32 to vector<2x128xf32>
    %328 = arith.addf %327, %326 : vector<2x128xf32>
    %329 = arith.divf %327, %328 : vector<2x128xf32>
    %330 = vector.extract_strided_slice %318 {offsets = [0, 128], sizes = [2, 128], strides = [1, 1]} : vector<2x384xf32> to vector<2x128xf32>
    %331 = vector.extract_strided_slice %321 {offsets = [0, 128], sizes = [2, 128], strides = [1, 1]} : vector<2x384xf32> to vector<2x128xf32>
    %332 = arith.addf %330, %331 : vector<2x128xf32>
    %333 = arith.negf %332 : vector<2x128xf32>
    %334 = math.exp %333 : vector<2x128xf32>
    %cst_79 = arith.constant 1.000000e+00 : f32
    %335 = vector.broadcast %cst_79 : f32 to vector<2x128xf32>
    %336 = arith.addf %335, %334 : vector<2x128xf32>
    %337 = arith.divf %335, %336 : vector<2x128xf32>
    %338 = vector.extract_strided_slice %318 {offsets = [0, 256], sizes = [2, 128], strides = [1, 1]} : vector<2x384xf32> to vector<2x128xf32>
    %339 = vector.extract_strided_slice %321 {offsets = [0, 256], sizes = [2, 128], strides = [1, 1]} : vector<2x384xf32> to vector<2x128xf32>
    %340 = arith.mulf %329, %339 : vector<2x128xf32>
    %341 = arith.addf %338, %340 : vector<2x128xf32>
    %342 = math.tanh %341 : vector<2x128xf32>
    %cst_80 = arith.constant 1.000000e+00 : f32
    %343 = vector.broadcast %cst_80 : f32 to vector<2x128xf32>
    %344 = arith.subf %343, %337 : vector<2x128xf32>
    %345 = arith.mulf %344, %342 : vector<2x128xf32>
    %346 = arith.mulf %337, %296 : vector<2x128xf32>
    %347 = arith.addf %345, %346 : vector<2x128xf32>
    %c5_81 = arith.constant 5 : index
    %c0_82 = arith.constant 0 : index
    %348 = vector.load %arg8[%c5_81, %c0_82] : memref<7x2xf32, #tpu.memory_space<vmem>>, vector<1x2xf32>
    %349 = vector.shape_cast %348 : vector<1x2xf32> to vector<2xf32>
    %350 = vector.shape_cast %309 : vector<2xf32> to vector<1x2xf32>
    tpu.vector_store %arg8[%c5_81, %c0_82], %350 {strides = array<i32>} : memref<7x2xf32, #tpu.memory_space<vmem>>, vector<1x2xf32>,
    %c6_83 = arith.constant 6 : index
    %c0_84 = arith.constant 0 : index
    %351 = vector.load %arg7[%c6_83, %c0_84] : memref<8x2xf32, #tpu.memory_space<vmem>>, vector<1x2xf32>
    %352 = vector.shape_cast %351 : vector<1x2xf32> to vector<2xf32>
    %353 = vector.shape_cast %312 : vector<2xf32> to vector<1x2xf32>
    tpu.vector_store %arg7[%c6_83, %c0_84], %353 {strides = array<i32>} : memref<8x2xf32, #tpu.memory_space<vmem>>, vector<1x2xf32>,
    %c7 = arith.constant 7 : index
    %c0_85 = arith.constant 0 : index
    %354 = vector.load %arg0[%c7, %c0_85] : memref<8x2xf32, #tpu.memory_space<vmem>>, vector<1x2xf32>
    %355 = vector.shape_cast %354 : vector<1x2xf32> to vector<2xf32>
    %356 = vector.broadcast %4 : vector<1x128xf32> to vector<2x128xf32>
    %357 = arith.mulf %347, %356 : vector<2x128xf32>
    %cst_86 = arith.constant dense<0.000000e+00> : vector<2xf32>
    %358 = vector.multi_reduction <add>, %357, %cst_86 [1] : vector<2x128xf32> to vector<2xf32>
    %359 = vector.broadcast %6 : f32 to vector<2xf32>
    %360 = arith.addf %358, %359 : vector<2xf32>
    %cst_87 = arith.constant 1.280000e+02 : f32
    %361 = vector.broadcast %cst_87 : f32 to vector<2xf32>
    %362 = arith.cmpf oeq, %355, %361 : vector<2xf32>
    %363 = arith.select %362, %360, %355 : vector<2xi1>, vector<2xf32>
    %c6_88 = arith.constant 6 : index
    %c0_89 = arith.constant 0 : index
    %364 = vector.load %arg8[%c6_88, %c0_89] : memref<7x2xf32, #tpu.memory_space<vmem>>, vector<1x2xf32>
    %365 = vector.shape_cast %364 : vector<1x2xf32> to vector<2xf32>
    %366 = vector.shape_cast %360 : vector<2xf32> to vector<1x2xf32>
    tpu.vector_store %arg8[%c6_88, %c0_89], %366 {strides = array<i32>} : memref<7x2xf32, #tpu.memory_space<vmem>>, vector<1x2xf32>,
    %c7_90 = arith.constant 7 : index
    %c0_91 = arith.constant 0 : index
    %367 = vector.load %arg7[%c7_90, %c0_91] : memref<8x2xf32, #tpu.memory_space<vmem>>, vector<1x2xf32>
    %368 = vector.shape_cast %367 : vector<1x2xf32> to vector<2xf32>
    %369 = vector.shape_cast %363 : vector<2xf32> to vector<1x2xf32>
    tpu.vector_store %arg7[%c7_90, %c0_91], %369 {strides = array<i32>} : memref<8x2xf32, #tpu.memory_space<vmem>>, vector<1x2xf32>,
    return
  }
}

module attributes {stable_mosaic.version = 11 : i64} {
  func.func @conv_layer_kernel(%arg0: i32, %arg1: memref<2x1x112xf32, #tpu.memory_space<vmem>>, %arg2: memref<16x27xbf16, #tpu.memory_space<vmem>>, %arg3: memref<16x1xf32, #tpu.memory_space<vmem>>, %arg4: memref<16x1xf32, #tpu.memory_space<vmem>>, %arg5: memref<2x16x8xf32, #tpu.memory_space<vmem>>) attributes {dimension_semantics = [#tpu.dimension_semantics<parallel>], iteration_bounds = array<i64: 1>, scalar_prefetch = 0 : i64, scratch_operands = 0 : i64, tpu.core_type = #tpu.core_type<tc>, window_params = [{pipeline_mode = #tpu.pipeline_mode<synchronous>, transform_indices = @transform_0, window_bounds = array<i64: 2, 1, 112>}, {transform_indices = @transform_1, window_bounds = array<i64: 16, 27>}, {transform_indices = @transform_2, window_bounds = array<i64: 16, 1>}, {transform_indices = @transform_3, window_bounds = array<i64: 16, 1>}, {transform_indices = @transform_4, window_bounds = array<i64: 2, 16, 8>}]} {
    %c0 = arith.constant 0 : index
    %c0_0 = arith.constant 0 : index
    %0 = vector.load %arg2[%c0, %c0_0] : memref<16x27xbf16, #tpu.memory_space<vmem>>, vector<16x27xbf16>
    %cst = arith.constant 0.000000e+00 : f32
    %1 = vector.broadcast %cst : f32 to vector<16x1xf32>
    %c0_1 = arith.constant 0 : index
    %c0_2 = arith.constant 0 : index
    %c0_3 = arith.constant 0 : index
    %2 = vector.load %arg1[%c0_1, %c0_2, %c0_3] : memref<2x1x112xf32, #tpu.memory_space<vmem>>, vector<1x1x112xf32>
    %3 = vector.shape_cast %2 : vector<1x1x112xf32> to vector<1x112xf32>
    %cst_4 = arith.constant 0.000000e+00 : f32
    %4 = vector.broadcast %cst_4 : f32 to vector<16x8xf32>
    %5 = vector.extract_strided_slice %3 {offsets = [0, 0], sizes = [1, 8], strides = [1, 1]} : vector<1x112xf32> to vector<1x8xf32>
    %6 = vector.extract_strided_slice %0 {offsets = [0, 0], sizes = [16, 1], strides = [1, 1]} : vector<16x27xbf16> to vector<16x1xbf16>
    %7 = arith.extf %6 : vector<16x1xbf16> to vector<16x1xf32>
    %8 = vector.broadcast %7 : vector<16x1xf32> to vector<16x8xf32>
    %9 = vector.broadcast %5 : vector<1x8xf32> to vector<16x8xf32>
    %10 = arith.mulf %8, %9 : vector<16x8xf32>
    %11 = arith.addf %4, %10 : vector<16x8xf32>
    %12 = vector.extract_strided_slice %3 {offsets = [0, 4], sizes = [1, 8], strides = [1, 1]} : vector<1x112xf32> to vector<1x8xf32>
    %13 = vector.extract_strided_slice %0 {offsets = [0, 1], sizes = [16, 1], strides = [1, 1]} : vector<16x27xbf16> to vector<16x1xbf16>
    %14 = arith.extf %13 : vector<16x1xbf16> to vector<16x1xf32>
    %15 = vector.broadcast %14 : vector<16x1xf32> to vector<16x8xf32>
    %16 = vector.broadcast %12 : vector<1x8xf32> to vector<16x8xf32>
    %17 = arith.mulf %15, %16 : vector<16x8xf32>
    %18 = arith.addf %11, %17 : vector<16x8xf32>
    %19 = vector.extract_strided_slice %3 {offsets = [0, 8], sizes = [1, 8], strides = [1, 1]} : vector<1x112xf32> to vector<1x8xf32>
    %20 = vector.extract_strided_slice %0 {offsets = [0, 2], sizes = [16, 1], strides = [1, 1]} : vector<16x27xbf16> to vector<16x1xbf16>
    %21 = arith.extf %20 : vector<16x1xbf16> to vector<16x1xf32>
    %22 = vector.broadcast %21 : vector<16x1xf32> to vector<16x8xf32>
    %23 = vector.broadcast %19 : vector<1x8xf32> to vector<16x8xf32>
    %24 = arith.mulf %22, %23 : vector<16x8xf32>
    %25 = arith.addf %18, %24 : vector<16x8xf32>
    %26 = vector.extract_strided_slice %3 {offsets = [0, 12], sizes = [1, 8], strides = [1, 1]} : vector<1x112xf32> to vector<1x8xf32>
    %27 = vector.extract_strided_slice %0 {offsets = [0, 3], sizes = [16, 1], strides = [1, 1]} : vector<16x27xbf16> to vector<16x1xbf16>
    %28 = arith.extf %27 : vector<16x1xbf16> to vector<16x1xf32>
    %29 = vector.broadcast %28 : vector<16x1xf32> to vector<16x8xf32>
    %30 = vector.broadcast %26 : vector<1x8xf32> to vector<16x8xf32>
    %31 = arith.mulf %29, %30 : vector<16x8xf32>
    %32 = arith.addf %25, %31 : vector<16x8xf32>
    %33 = vector.extract_strided_slice %3 {offsets = [0, 16], sizes = [1, 8], strides = [1, 1]} : vector<1x112xf32> to vector<1x8xf32>
    %34 = vector.extract_strided_slice %0 {offsets = [0, 4], sizes = [16, 1], strides = [1, 1]} : vector<16x27xbf16> to vector<16x1xbf16>
    %35 = arith.extf %34 : vector<16x1xbf16> to vector<16x1xf32>
    %36 = vector.broadcast %35 : vector<16x1xf32> to vector<16x8xf32>
    %37 = vector.broadcast %33 : vector<1x8xf32> to vector<16x8xf32>
    %38 = arith.mulf %36, %37 : vector<16x8xf32>
    %39 = arith.addf %32, %38 : vector<16x8xf32>
    %40 = vector.extract_strided_slice %3 {offsets = [0, 20], sizes = [1, 8], strides = [1, 1]} : vector<1x112xf32> to vector<1x8xf32>
    %41 = vector.extract_strided_slice %0 {offsets = [0, 5], sizes = [16, 1], strides = [1, 1]} : vector<16x27xbf16> to vector<16x1xbf16>
    %42 = arith.extf %41 : vector<16x1xbf16> to vector<16x1xf32>
    %43 = vector.broadcast %42 : vector<16x1xf32> to vector<16x8xf32>
    %44 = vector.broadcast %40 : vector<1x8xf32> to vector<16x8xf32>
    %45 = arith.mulf %43, %44 : vector<16x8xf32>
    %46 = arith.addf %39, %45 : vector<16x8xf32>
    %47 = vector.extract_strided_slice %3 {offsets = [0, 24], sizes = [1, 8], strides = [1, 1]} : vector<1x112xf32> to vector<1x8xf32>
    %48 = vector.extract_strided_slice %0 {offsets = [0, 6], sizes = [16, 1], strides = [1, 1]} : vector<16x27xbf16> to vector<16x1xbf16>
    %49 = arith.extf %48 : vector<16x1xbf16> to vector<16x1xf32>
    %50 = vector.broadcast %49 : vector<16x1xf32> to vector<16x8xf32>
    %51 = vector.broadcast %47 : vector<1x8xf32> to vector<16x8xf32>
    %52 = arith.mulf %50, %51 : vector<16x8xf32>
    %53 = arith.addf %46, %52 : vector<16x8xf32>
    %54 = vector.extract_strided_slice %3 {offsets = [0, 28], sizes = [1, 8], strides = [1, 1]} : vector<1x112xf32> to vector<1x8xf32>
    %55 = vector.extract_strided_slice %0 {offsets = [0, 7], sizes = [16, 1], strides = [1, 1]} : vector<16x27xbf16> to vector<16x1xbf16>
    %56 = arith.extf %55 : vector<16x1xbf16> to vector<16x1xf32>
    %57 = vector.broadcast %56 : vector<16x1xf32> to vector<16x8xf32>
    %58 = vector.broadcast %54 : vector<1x8xf32> to vector<16x8xf32>
    %59 = arith.mulf %57, %58 : vector<16x8xf32>
    %60 = arith.addf %53, %59 : vector<16x8xf32>
    %61 = vector.extract_strided_slice %3 {offsets = [0, 32], sizes = [1, 8], strides = [1, 1]} : vector<1x112xf32> to vector<1x8xf32>
    %62 = vector.extract_strided_slice %0 {offsets = [0, 8], sizes = [16, 1], strides = [1, 1]} : vector<16x27xbf16> to vector<16x1xbf16>
    %63 = arith.extf %62 : vector<16x1xbf16> to vector<16x1xf32>
    %64 = vector.broadcast %63 : vector<16x1xf32> to vector<16x8xf32>
    %65 = vector.broadcast %61 : vector<1x8xf32> to vector<16x8xf32>
    %66 = arith.mulf %64, %65 : vector<16x8xf32>
    %67 = arith.addf %60, %66 : vector<16x8xf32>
    %68 = vector.extract_strided_slice %3 {offsets = [0, 36], sizes = [1, 8], strides = [1, 1]} : vector<1x112xf32> to vector<1x8xf32>
    %69 = vector.extract_strided_slice %0 {offsets = [0, 9], sizes = [16, 1], strides = [1, 1]} : vector<16x27xbf16> to vector<16x1xbf16>
    %70 = arith.extf %69 : vector<16x1xbf16> to vector<16x1xf32>
    %71 = vector.broadcast %70 : vector<16x1xf32> to vector<16x8xf32>
    %72 = vector.broadcast %68 : vector<1x8xf32> to vector<16x8xf32>
    %73 = arith.mulf %71, %72 : vector<16x8xf32>
    %74 = arith.addf %67, %73 : vector<16x8xf32>
    %75 = vector.extract_strided_slice %3 {offsets = [0, 40], sizes = [1, 8], strides = [1, 1]} : vector<1x112xf32> to vector<1x8xf32>
    %76 = vector.extract_strided_slice %0 {offsets = [0, 10], sizes = [16, 1], strides = [1, 1]} : vector<16x27xbf16> to vector<16x1xbf16>
    %77 = arith.extf %76 : vector<16x1xbf16> to vector<16x1xf32>
    %78 = vector.broadcast %77 : vector<16x1xf32> to vector<16x8xf32>
    %79 = vector.broadcast %75 : vector<1x8xf32> to vector<16x8xf32>
    %80 = arith.mulf %78, %79 : vector<16x8xf32>
    %81 = arith.addf %74, %80 : vector<16x8xf32>
    %82 = vector.extract_strided_slice %3 {offsets = [0, 44], sizes = [1, 8], strides = [1, 1]} : vector<1x112xf32> to vector<1x8xf32>
    %83 = vector.extract_strided_slice %0 {offsets = [0, 11], sizes = [16, 1], strides = [1, 1]} : vector<16x27xbf16> to vector<16x1xbf16>
    %84 = arith.extf %83 : vector<16x1xbf16> to vector<16x1xf32>
    %85 = vector.broadcast %84 : vector<16x1xf32> to vector<16x8xf32>
    %86 = vector.broadcast %82 : vector<1x8xf32> to vector<16x8xf32>
    %87 = arith.mulf %85, %86 : vector<16x8xf32>
    %88 = arith.addf %81, %87 : vector<16x8xf32>
    %89 = vector.extract_strided_slice %3 {offsets = [0, 48], sizes = [1, 8], strides = [1, 1]} : vector<1x112xf32> to vector<1x8xf32>
    %90 = vector.extract_strided_slice %0 {offsets = [0, 12], sizes = [16, 1], strides = [1, 1]} : vector<16x27xbf16> to vector<16x1xbf16>
    %91 = arith.extf %90 : vector<16x1xbf16> to vector<16x1xf32>
    %92 = vector.broadcast %91 : vector<16x1xf32> to vector<16x8xf32>
    %93 = vector.broadcast %89 : vector<1x8xf32> to vector<16x8xf32>
    %94 = arith.mulf %92, %93 : vector<16x8xf32>
    %95 = arith.addf %88, %94 : vector<16x8xf32>
    %96 = vector.extract_strided_slice %3 {offsets = [0, 52], sizes = [1, 8], strides = [1, 1]} : vector<1x112xf32> to vector<1x8xf32>
    %97 = vector.extract_strided_slice %0 {offsets = [0, 13], sizes = [16, 1], strides = [1, 1]} : vector<16x27xbf16> to vector<16x1xbf16>
    %98 = arith.extf %97 : vector<16x1xbf16> to vector<16x1xf32>
    %99 = vector.broadcast %98 : vector<16x1xf32> to vector<16x8xf32>
    %100 = vector.broadcast %96 : vector<1x8xf32> to vector<16x8xf32>
    %101 = arith.mulf %99, %100 : vector<16x8xf32>
    %102 = arith.addf %95, %101 : vector<16x8xf32>
    %103 = vector.extract_strided_slice %3 {offsets = [0, 56], sizes = [1, 8], strides = [1, 1]} : vector<1x112xf32> to vector<1x8xf32>
    %104 = vector.extract_strided_slice %0 {offsets = [0, 14], sizes = [16, 1], strides = [1, 1]} : vector<16x27xbf16> to vector<16x1xbf16>
    %105 = arith.extf %104 : vector<16x1xbf16> to vector<16x1xf32>
    %106 = vector.broadcast %105 : vector<16x1xf32> to vector<16x8xf32>
    %107 = vector.broadcast %103 : vector<1x8xf32> to vector<16x8xf32>
    %108 = arith.mulf %106, %107 : vector<16x8xf32>
    %109 = arith.addf %102, %108 : vector<16x8xf32>
    %110 = vector.extract_strided_slice %3 {offsets = [0, 60], sizes = [1, 8], strides = [1, 1]} : vector<1x112xf32> to vector<1x8xf32>
    %111 = vector.extract_strided_slice %0 {offsets = [0, 15], sizes = [16, 1], strides = [1, 1]} : vector<16x27xbf16> to vector<16x1xbf16>
    %112 = arith.extf %111 : vector<16x1xbf16> to vector<16x1xf32>
    %113 = vector.broadcast %112 : vector<16x1xf32> to vector<16x8xf32>
    %114 = vector.broadcast %110 : vector<1x8xf32> to vector<16x8xf32>
    %115 = arith.mulf %113, %114 : vector<16x8xf32>
    %116 = arith.addf %109, %115 : vector<16x8xf32>
    %117 = vector.extract_strided_slice %3 {offsets = [0, 64], sizes = [1, 8], strides = [1, 1]} : vector<1x112xf32> to vector<1x8xf32>
    %118 = vector.extract_strided_slice %0 {offsets = [0, 16], sizes = [16, 1], strides = [1, 1]} : vector<16x27xbf16> to vector<16x1xbf16>
    %119 = arith.extf %118 : vector<16x1xbf16> to vector<16x1xf32>
    %120 = vector.broadcast %119 : vector<16x1xf32> to vector<16x8xf32>
    %121 = vector.broadcast %117 : vector<1x8xf32> to vector<16x8xf32>
    %122 = arith.mulf %120, %121 : vector<16x8xf32>
    %123 = arith.addf %116, %122 : vector<16x8xf32>
    %124 = vector.extract_strided_slice %3 {offsets = [0, 68], sizes = [1, 8], strides = [1, 1]} : vector<1x112xf32> to vector<1x8xf32>
    %125 = vector.extract_strided_slice %0 {offsets = [0, 17], sizes = [16, 1], strides = [1, 1]} : vector<16x27xbf16> to vector<16x1xbf16>
    %126 = arith.extf %125 : vector<16x1xbf16> to vector<16x1xf32>
    %127 = vector.broadcast %126 : vector<16x1xf32> to vector<16x8xf32>
    %128 = vector.broadcast %124 : vector<1x8xf32> to vector<16x8xf32>
    %129 = arith.mulf %127, %128 : vector<16x8xf32>
    %130 = arith.addf %123, %129 : vector<16x8xf32>
    %131 = vector.extract_strided_slice %3 {offsets = [0, 72], sizes = [1, 8], strides = [1, 1]} : vector<1x112xf32> to vector<1x8xf32>
    %132 = vector.extract_strided_slice %0 {offsets = [0, 18], sizes = [16, 1], strides = [1, 1]} : vector<16x27xbf16> to vector<16x1xbf16>
    %133 = arith.extf %132 : vector<16x1xbf16> to vector<16x1xf32>
    %134 = vector.broadcast %133 : vector<16x1xf32> to vector<16x8xf32>
    %135 = vector.broadcast %131 : vector<1x8xf32> to vector<16x8xf32>
    %136 = arith.mulf %134, %135 : vector<16x8xf32>
    %137 = arith.addf %130, %136 : vector<16x8xf32>
    %138 = vector.extract_strided_slice %3 {offsets = [0, 76], sizes = [1, 8], strides = [1, 1]} : vector<1x112xf32> to vector<1x8xf32>
    %139 = vector.extract_strided_slice %0 {offsets = [0, 19], sizes = [16, 1], strides = [1, 1]} : vector<16x27xbf16> to vector<16x1xbf16>
    %140 = arith.extf %139 : vector<16x1xbf16> to vector<16x1xf32>
    %141 = vector.broadcast %140 : vector<16x1xf32> to vector<16x8xf32>
    %142 = vector.broadcast %138 : vector<1x8xf32> to vector<16x8xf32>
    %143 = arith.mulf %141, %142 : vector<16x8xf32>
    %144 = arith.addf %137, %143 : vector<16x8xf32>
    %145 = vector.extract_strided_slice %3 {offsets = [0, 80], sizes = [1, 8], strides = [1, 1]} : vector<1x112xf32> to vector<1x8xf32>
    %146 = vector.extract_strided_slice %0 {offsets = [0, 20], sizes = [16, 1], strides = [1, 1]} : vector<16x27xbf16> to vector<16x1xbf16>
    %147 = arith.extf %146 : vector<16x1xbf16> to vector<16x1xf32>
    %148 = vector.broadcast %147 : vector<16x1xf32> to vector<16x8xf32>
    %149 = vector.broadcast %145 : vector<1x8xf32> to vector<16x8xf32>
    %150 = arith.mulf %148, %149 : vector<16x8xf32>
    %151 = arith.addf %144, %150 : vector<16x8xf32>
    %152 = vector.extract_strided_slice %3 {offsets = [0, 84], sizes = [1, 8], strides = [1, 1]} : vector<1x112xf32> to vector<1x8xf32>
    %153 = vector.extract_strided_slice %0 {offsets = [0, 21], sizes = [16, 1], strides = [1, 1]} : vector<16x27xbf16> to vector<16x1xbf16>
    %154 = arith.extf %153 : vector<16x1xbf16> to vector<16x1xf32>
    %155 = vector.broadcast %154 : vector<16x1xf32> to vector<16x8xf32>
    %156 = vector.broadcast %152 : vector<1x8xf32> to vector<16x8xf32>
    %157 = arith.mulf %155, %156 : vector<16x8xf32>
    %158 = arith.addf %151, %157 : vector<16x8xf32>
    %159 = vector.extract_strided_slice %3 {offsets = [0, 88], sizes = [1, 8], strides = [1, 1]} : vector<1x112xf32> to vector<1x8xf32>
    %160 = vector.extract_strided_slice %0 {offsets = [0, 22], sizes = [16, 1], strides = [1, 1]} : vector<16x27xbf16> to vector<16x1xbf16>
    %161 = arith.extf %160 : vector<16x1xbf16> to vector<16x1xf32>
    %162 = vector.broadcast %161 : vector<16x1xf32> to vector<16x8xf32>
    %163 = vector.broadcast %159 : vector<1x8xf32> to vector<16x8xf32>
    %164 = arith.mulf %162, %163 : vector<16x8xf32>
    %165 = arith.addf %158, %164 : vector<16x8xf32>
    %166 = vector.extract_strided_slice %3 {offsets = [0, 92], sizes = [1, 8], strides = [1, 1]} : vector<1x112xf32> to vector<1x8xf32>
    %167 = vector.extract_strided_slice %0 {offsets = [0, 23], sizes = [16, 1], strides = [1, 1]} : vector<16x27xbf16> to vector<16x1xbf16>
    %168 = arith.extf %167 : vector<16x1xbf16> to vector<16x1xf32>
    %169 = vector.broadcast %168 : vector<16x1xf32> to vector<16x8xf32>
    %170 = vector.broadcast %166 : vector<1x8xf32> to vector<16x8xf32>
    %171 = arith.mulf %169, %170 : vector<16x8xf32>
    %172 = arith.addf %165, %171 : vector<16x8xf32>
    %173 = vector.extract_strided_slice %3 {offsets = [0, 96], sizes = [1, 8], strides = [1, 1]} : vector<1x112xf32> to vector<1x8xf32>
    %174 = vector.extract_strided_slice %0 {offsets = [0, 24], sizes = [16, 1], strides = [1, 1]} : vector<16x27xbf16> to vector<16x1xbf16>
    %175 = arith.extf %174 : vector<16x1xbf16> to vector<16x1xf32>
    %176 = vector.broadcast %175 : vector<16x1xf32> to vector<16x8xf32>
    %177 = vector.broadcast %173 : vector<1x8xf32> to vector<16x8xf32>
    %178 = arith.mulf %176, %177 : vector<16x8xf32>
    %179 = arith.addf %172, %178 : vector<16x8xf32>
    %180 = vector.extract_strided_slice %3 {offsets = [0, 100], sizes = [1, 8], strides = [1, 1]} : vector<1x112xf32> to vector<1x8xf32>
    %181 = vector.extract_strided_slice %0 {offsets = [0, 25], sizes = [16, 1], strides = [1, 1]} : vector<16x27xbf16> to vector<16x1xbf16>
    %182 = arith.extf %181 : vector<16x1xbf16> to vector<16x1xf32>
    %183 = vector.broadcast %182 : vector<16x1xf32> to vector<16x8xf32>
    %184 = vector.broadcast %180 : vector<1x8xf32> to vector<16x8xf32>
    %185 = arith.mulf %183, %184 : vector<16x8xf32>
    %186 = arith.addf %179, %185 : vector<16x8xf32>
    %187 = vector.extract_strided_slice %3 {offsets = [0, 104], sizes = [1, 8], strides = [1, 1]} : vector<1x112xf32> to vector<1x8xf32>
    %188 = vector.extract_strided_slice %0 {offsets = [0, 26], sizes = [16, 1], strides = [1, 1]} : vector<16x27xbf16> to vector<16x1xbf16>
    %189 = arith.extf %188 : vector<16x1xbf16> to vector<16x1xf32>
    %190 = vector.broadcast %189 : vector<16x1xf32> to vector<16x8xf32>
    %191 = vector.broadcast %187 : vector<1x8xf32> to vector<16x8xf32>
    %192 = arith.mulf %190, %191 : vector<16x8xf32>
    %193 = arith.addf %186, %192 : vector<16x8xf32>
    %cst_5 = arith.constant dense<0.000000e+00> : vector<16xf32>
    %194 = vector.multi_reduction <add>, %193, %cst_5 [1] : vector<16x8xf32> to vector<16xf32>
    %195 = vector.shape_cast %194 : vector<16xf32> to vector<16x1xf32>
    %196 = arith.addf %1, %195 : vector<16x1xf32>
    %c1 = arith.constant 1 : index
    %c0_6 = arith.constant 0 : index
    %c0_7 = arith.constant 0 : index
    %197 = vector.load %arg1[%c1, %c0_6, %c0_7] : memref<2x1x112xf32, #tpu.memory_space<vmem>>, vector<1x1x112xf32>
    %198 = vector.shape_cast %197 : vector<1x1x112xf32> to vector<1x112xf32>
    %cst_8 = arith.constant 0.000000e+00 : f32
    %199 = vector.broadcast %cst_8 : f32 to vector<16x8xf32>
    %200 = vector.extract_strided_slice %198 {offsets = [0, 0], sizes = [1, 8], strides = [1, 1]} : vector<1x112xf32> to vector<1x8xf32>
    %201 = vector.extract_strided_slice %0 {offsets = [0, 0], sizes = [16, 1], strides = [1, 1]} : vector<16x27xbf16> to vector<16x1xbf16>
    %202 = arith.extf %201 : vector<16x1xbf16> to vector<16x1xf32>
    %203 = vector.broadcast %202 : vector<16x1xf32> to vector<16x8xf32>
    %204 = vector.broadcast %200 : vector<1x8xf32> to vector<16x8xf32>
    %205 = arith.mulf %203, %204 : vector<16x8xf32>
    %206 = arith.addf %199, %205 : vector<16x8xf32>
    %207 = vector.extract_strided_slice %198 {offsets = [0, 4], sizes = [1, 8], strides = [1, 1]} : vector<1x112xf32> to vector<1x8xf32>
    %208 = vector.extract_strided_slice %0 {offsets = [0, 1], sizes = [16, 1], strides = [1, 1]} : vector<16x27xbf16> to vector<16x1xbf16>
    %209 = arith.extf %208 : vector<16x1xbf16> to vector<16x1xf32>
    %210 = vector.broadcast %209 : vector<16x1xf32> to vector<16x8xf32>
    %211 = vector.broadcast %207 : vector<1x8xf32> to vector<16x8xf32>
    %212 = arith.mulf %210, %211 : vector<16x8xf32>
    %213 = arith.addf %206, %212 : vector<16x8xf32>
    %214 = vector.extract_strided_slice %198 {offsets = [0, 8], sizes = [1, 8], strides = [1, 1]} : vector<1x112xf32> to vector<1x8xf32>
    %215 = vector.extract_strided_slice %0 {offsets = [0, 2], sizes = [16, 1], strides = [1, 1]} : vector<16x27xbf16> to vector<16x1xbf16>
    %216 = arith.extf %215 : vector<16x1xbf16> to vector<16x1xf32>
    %217 = vector.broadcast %216 : vector<16x1xf32> to vector<16x8xf32>
    %218 = vector.broadcast %214 : vector<1x8xf32> to vector<16x8xf32>
    %219 = arith.mulf %217, %218 : vector<16x8xf32>
    %220 = arith.addf %213, %219 : vector<16x8xf32>
    %221 = vector.extract_strided_slice %198 {offsets = [0, 12], sizes = [1, 8], strides = [1, 1]} : vector<1x112xf32> to vector<1x8xf32>
    %222 = vector.extract_strided_slice %0 {offsets = [0, 3], sizes = [16, 1], strides = [1, 1]} : vector<16x27xbf16> to vector<16x1xbf16>
    %223 = arith.extf %222 : vector<16x1xbf16> to vector<16x1xf32>
    %224 = vector.broadcast %223 : vector<16x1xf32> to vector<16x8xf32>
    %225 = vector.broadcast %221 : vector<1x8xf32> to vector<16x8xf32>
    %226 = arith.mulf %224, %225 : vector<16x8xf32>
    %227 = arith.addf %220, %226 : vector<16x8xf32>
    %228 = vector.extract_strided_slice %198 {offsets = [0, 16], sizes = [1, 8], strides = [1, 1]} : vector<1x112xf32> to vector<1x8xf32>
    %229 = vector.extract_strided_slice %0 {offsets = [0, 4], sizes = [16, 1], strides = [1, 1]} : vector<16x27xbf16> to vector<16x1xbf16>
    %230 = arith.extf %229 : vector<16x1xbf16> to vector<16x1xf32>
    %231 = vector.broadcast %230 : vector<16x1xf32> to vector<16x8xf32>
    %232 = vector.broadcast %228 : vector<1x8xf32> to vector<16x8xf32>
    %233 = arith.mulf %231, %232 : vector<16x8xf32>
    %234 = arith.addf %227, %233 : vector<16x8xf32>
    %235 = vector.extract_strided_slice %198 {offsets = [0, 20], sizes = [1, 8], strides = [1, 1]} : vector<1x112xf32> to vector<1x8xf32>
    %236 = vector.extract_strided_slice %0 {offsets = [0, 5], sizes = [16, 1], strides = [1, 1]} : vector<16x27xbf16> to vector<16x1xbf16>
    %237 = arith.extf %236 : vector<16x1xbf16> to vector<16x1xf32>
    %238 = vector.broadcast %237 : vector<16x1xf32> to vector<16x8xf32>
    %239 = vector.broadcast %235 : vector<1x8xf32> to vector<16x8xf32>
    %240 = arith.mulf %238, %239 : vector<16x8xf32>
    %241 = arith.addf %234, %240 : vector<16x8xf32>
    %242 = vector.extract_strided_slice %198 {offsets = [0, 24], sizes = [1, 8], strides = [1, 1]} : vector<1x112xf32> to vector<1x8xf32>
    %243 = vector.extract_strided_slice %0 {offsets = [0, 6], sizes = [16, 1], strides = [1, 1]} : vector<16x27xbf16> to vector<16x1xbf16>
    %244 = arith.extf %243 : vector<16x1xbf16> to vector<16x1xf32>
    %245 = vector.broadcast %244 : vector<16x1xf32> to vector<16x8xf32>
    %246 = vector.broadcast %242 : vector<1x8xf32> to vector<16x8xf32>
    %247 = arith.mulf %245, %246 : vector<16x8xf32>
    %248 = arith.addf %241, %247 : vector<16x8xf32>
    %249 = vector.extract_strided_slice %198 {offsets = [0, 28], sizes = [1, 8], strides = [1, 1]} : vector<1x112xf32> to vector<1x8xf32>
    %250 = vector.extract_strided_slice %0 {offsets = [0, 7], sizes = [16, 1], strides = [1, 1]} : vector<16x27xbf16> to vector<16x1xbf16>
    %251 = arith.extf %250 : vector<16x1xbf16> to vector<16x1xf32>
    %252 = vector.broadcast %251 : vector<16x1xf32> to vector<16x8xf32>
    %253 = vector.broadcast %249 : vector<1x8xf32> to vector<16x8xf32>
    %254 = arith.mulf %252, %253 : vector<16x8xf32>
    %255 = arith.addf %248, %254 : vector<16x8xf32>
    %256 = vector.extract_strided_slice %198 {offsets = [0, 32], sizes = [1, 8], strides = [1, 1]} : vector<1x112xf32> to vector<1x8xf32>
    %257 = vector.extract_strided_slice %0 {offsets = [0, 8], sizes = [16, 1], strides = [1, 1]} : vector<16x27xbf16> to vector<16x1xbf16>
    %258 = arith.extf %257 : vector<16x1xbf16> to vector<16x1xf32>
    %259 = vector.broadcast %258 : vector<16x1xf32> to vector<16x8xf32>
    %260 = vector.broadcast %256 : vector<1x8xf32> to vector<16x8xf32>
    %261 = arith.mulf %259, %260 : vector<16x8xf32>
    %262 = arith.addf %255, %261 : vector<16x8xf32>
    %263 = vector.extract_strided_slice %198 {offsets = [0, 36], sizes = [1, 8], strides = [1, 1]} : vector<1x112xf32> to vector<1x8xf32>
    %264 = vector.extract_strided_slice %0 {offsets = [0, 9], sizes = [16, 1], strides = [1, 1]} : vector<16x27xbf16> to vector<16x1xbf16>
    %265 = arith.extf %264 : vector<16x1xbf16> to vector<16x1xf32>
    %266 = vector.broadcast %265 : vector<16x1xf32> to vector<16x8xf32>
    %267 = vector.broadcast %263 : vector<1x8xf32> to vector<16x8xf32>
    %268 = arith.mulf %266, %267 : vector<16x8xf32>
    %269 = arith.addf %262, %268 : vector<16x8xf32>
    %270 = vector.extract_strided_slice %198 {offsets = [0, 40], sizes = [1, 8], strides = [1, 1]} : vector<1x112xf32> to vector<1x8xf32>
    %271 = vector.extract_strided_slice %0 {offsets = [0, 10], sizes = [16, 1], strides = [1, 1]} : vector<16x27xbf16> to vector<16x1xbf16>
    %272 = arith.extf %271 : vector<16x1xbf16> to vector<16x1xf32>
    %273 = vector.broadcast %272 : vector<16x1xf32> to vector<16x8xf32>
    %274 = vector.broadcast %270 : vector<1x8xf32> to vector<16x8xf32>
    %275 = arith.mulf %273, %274 : vector<16x8xf32>
    %276 = arith.addf %269, %275 : vector<16x8xf32>
    %277 = vector.extract_strided_slice %198 {offsets = [0, 44], sizes = [1, 8], strides = [1, 1]} : vector<1x112xf32> to vector<1x8xf32>
    %278 = vector.extract_strided_slice %0 {offsets = [0, 11], sizes = [16, 1], strides = [1, 1]} : vector<16x27xbf16> to vector<16x1xbf16>
    %279 = arith.extf %278 : vector<16x1xbf16> to vector<16x1xf32>
    %280 = vector.broadcast %279 : vector<16x1xf32> to vector<16x8xf32>
    %281 = vector.broadcast %277 : vector<1x8xf32> to vector<16x8xf32>
    %282 = arith.mulf %280, %281 : vector<16x8xf32>
    %283 = arith.addf %276, %282 : vector<16x8xf32>
    %284 = vector.extract_strided_slice %198 {offsets = [0, 48], sizes = [1, 8], strides = [1, 1]} : vector<1x112xf32> to vector<1x8xf32>
    %285 = vector.extract_strided_slice %0 {offsets = [0, 12], sizes = [16, 1], strides = [1, 1]} : vector<16x27xbf16> to vector<16x1xbf16>
    %286 = arith.extf %285 : vector<16x1xbf16> to vector<16x1xf32>
    %287 = vector.broadcast %286 : vector<16x1xf32> to vector<16x8xf32>
    %288 = vector.broadcast %284 : vector<1x8xf32> to vector<16x8xf32>
    %289 = arith.mulf %287, %288 : vector<16x8xf32>
    %290 = arith.addf %283, %289 : vector<16x8xf32>
    %291 = vector.extract_strided_slice %198 {offsets = [0, 52], sizes = [1, 8], strides = [1, 1]} : vector<1x112xf32> to vector<1x8xf32>
    %292 = vector.extract_strided_slice %0 {offsets = [0, 13], sizes = [16, 1], strides = [1, 1]} : vector<16x27xbf16> to vector<16x1xbf16>
    %293 = arith.extf %292 : vector<16x1xbf16> to vector<16x1xf32>
    %294 = vector.broadcast %293 : vector<16x1xf32> to vector<16x8xf32>
    %295 = vector.broadcast %291 : vector<1x8xf32> to vector<16x8xf32>
    %296 = arith.mulf %294, %295 : vector<16x8xf32>
    %297 = arith.addf %290, %296 : vector<16x8xf32>
    %298 = vector.extract_strided_slice %198 {offsets = [0, 56], sizes = [1, 8], strides = [1, 1]} : vector<1x112xf32> to vector<1x8xf32>
    %299 = vector.extract_strided_slice %0 {offsets = [0, 14], sizes = [16, 1], strides = [1, 1]} : vector<16x27xbf16> to vector<16x1xbf16>
    %300 = arith.extf %299 : vector<16x1xbf16> to vector<16x1xf32>
    %301 = vector.broadcast %300 : vector<16x1xf32> to vector<16x8xf32>
    %302 = vector.broadcast %298 : vector<1x8xf32> to vector<16x8xf32>
    %303 = arith.mulf %301, %302 : vector<16x8xf32>
    %304 = arith.addf %297, %303 : vector<16x8xf32>
    %305 = vector.extract_strided_slice %198 {offsets = [0, 60], sizes = [1, 8], strides = [1, 1]} : vector<1x112xf32> to vector<1x8xf32>
    %306 = vector.extract_strided_slice %0 {offsets = [0, 15], sizes = [16, 1], strides = [1, 1]} : vector<16x27xbf16> to vector<16x1xbf16>
    %307 = arith.extf %306 : vector<16x1xbf16> to vector<16x1xf32>
    %308 = vector.broadcast %307 : vector<16x1xf32> to vector<16x8xf32>
    %309 = vector.broadcast %305 : vector<1x8xf32> to vector<16x8xf32>
    %310 = arith.mulf %308, %309 : vector<16x8xf32>
    %311 = arith.addf %304, %310 : vector<16x8xf32>
    %312 = vector.extract_strided_slice %198 {offsets = [0, 64], sizes = [1, 8], strides = [1, 1]} : vector<1x112xf32> to vector<1x8xf32>
    %313 = vector.extract_strided_slice %0 {offsets = [0, 16], sizes = [16, 1], strides = [1, 1]} : vector<16x27xbf16> to vector<16x1xbf16>
    %314 = arith.extf %313 : vector<16x1xbf16> to vector<16x1xf32>
    %315 = vector.broadcast %314 : vector<16x1xf32> to vector<16x8xf32>
    %316 = vector.broadcast %312 : vector<1x8xf32> to vector<16x8xf32>
    %317 = arith.mulf %315, %316 : vector<16x8xf32>
    %318 = arith.addf %311, %317 : vector<16x8xf32>
    %319 = vector.extract_strided_slice %198 {offsets = [0, 68], sizes = [1, 8], strides = [1, 1]} : vector<1x112xf32> to vector<1x8xf32>
    %320 = vector.extract_strided_slice %0 {offsets = [0, 17], sizes = [16, 1], strides = [1, 1]} : vector<16x27xbf16> to vector<16x1xbf16>
    %321 = arith.extf %320 : vector<16x1xbf16> to vector<16x1xf32>
    %322 = vector.broadcast %321 : vector<16x1xf32> to vector<16x8xf32>
    %323 = vector.broadcast %319 : vector<1x8xf32> to vector<16x8xf32>
    %324 = arith.mulf %322, %323 : vector<16x8xf32>
    %325 = arith.addf %318, %324 : vector<16x8xf32>
    %326 = vector.extract_strided_slice %198 {offsets = [0, 72], sizes = [1, 8], strides = [1, 1]} : vector<1x112xf32> to vector<1x8xf32>
    %327 = vector.extract_strided_slice %0 {offsets = [0, 18], sizes = [16, 1], strides = [1, 1]} : vector<16x27xbf16> to vector<16x1xbf16>
    %328 = arith.extf %327 : vector<16x1xbf16> to vector<16x1xf32>
    %329 = vector.broadcast %328 : vector<16x1xf32> to vector<16x8xf32>
    %330 = vector.broadcast %326 : vector<1x8xf32> to vector<16x8xf32>
    %331 = arith.mulf %329, %330 : vector<16x8xf32>
    %332 = arith.addf %325, %331 : vector<16x8xf32>
    %333 = vector.extract_strided_slice %198 {offsets = [0, 76], sizes = [1, 8], strides = [1, 1]} : vector<1x112xf32> to vector<1x8xf32>
    %334 = vector.extract_strided_slice %0 {offsets = [0, 19], sizes = [16, 1], strides = [1, 1]} : vector<16x27xbf16> to vector<16x1xbf16>
    %335 = arith.extf %334 : vector<16x1xbf16> to vector<16x1xf32>
    %336 = vector.broadcast %335 : vector<16x1xf32> to vector<16x8xf32>
    %337 = vector.broadcast %333 : vector<1x8xf32> to vector<16x8xf32>
    %338 = arith.mulf %336, %337 : vector<16x8xf32>
    %339 = arith.addf %332, %338 : vector<16x8xf32>
    %340 = vector.extract_strided_slice %198 {offsets = [0, 80], sizes = [1, 8], strides = [1, 1]} : vector<1x112xf32> to vector<1x8xf32>
    %341 = vector.extract_strided_slice %0 {offsets = [0, 20], sizes = [16, 1], strides = [1, 1]} : vector<16x27xbf16> to vector<16x1xbf16>
    %342 = arith.extf %341 : vector<16x1xbf16> to vector<16x1xf32>
    %343 = vector.broadcast %342 : vector<16x1xf32> to vector<16x8xf32>
    %344 = vector.broadcast %340 : vector<1x8xf32> to vector<16x8xf32>
    %345 = arith.mulf %343, %344 : vector<16x8xf32>
    %346 = arith.addf %339, %345 : vector<16x8xf32>
    %347 = vector.extract_strided_slice %198 {offsets = [0, 84], sizes = [1, 8], strides = [1, 1]} : vector<1x112xf32> to vector<1x8xf32>
    %348 = vector.extract_strided_slice %0 {offsets = [0, 21], sizes = [16, 1], strides = [1, 1]} : vector<16x27xbf16> to vector<16x1xbf16>
    %349 = arith.extf %348 : vector<16x1xbf16> to vector<16x1xf32>
    %350 = vector.broadcast %349 : vector<16x1xf32> to vector<16x8xf32>
    %351 = vector.broadcast %347 : vector<1x8xf32> to vector<16x8xf32>
    %352 = arith.mulf %350, %351 : vector<16x8xf32>
    %353 = arith.addf %346, %352 : vector<16x8xf32>
    %354 = vector.extract_strided_slice %198 {offsets = [0, 88], sizes = [1, 8], strides = [1, 1]} : vector<1x112xf32> to vector<1x8xf32>
    %355 = vector.extract_strided_slice %0 {offsets = [0, 22], sizes = [16, 1], strides = [1, 1]} : vector<16x27xbf16> to vector<16x1xbf16>
    %356 = arith.extf %355 : vector<16x1xbf16> to vector<16x1xf32>
    %357 = vector.broadcast %356 : vector<16x1xf32> to vector<16x8xf32>
    %358 = vector.broadcast %354 : vector<1x8xf32> to vector<16x8xf32>
    %359 = arith.mulf %357, %358 : vector<16x8xf32>
    %360 = arith.addf %353, %359 : vector<16x8xf32>
    %361 = vector.extract_strided_slice %198 {offsets = [0, 92], sizes = [1, 8], strides = [1, 1]} : vector<1x112xf32> to vector<1x8xf32>
    %362 = vector.extract_strided_slice %0 {offsets = [0, 23], sizes = [16, 1], strides = [1, 1]} : vector<16x27xbf16> to vector<16x1xbf16>
    %363 = arith.extf %362 : vector<16x1xbf16> to vector<16x1xf32>
    %364 = vector.broadcast %363 : vector<16x1xf32> to vector<16x8xf32>
    %365 = vector.broadcast %361 : vector<1x8xf32> to vector<16x8xf32>
    %366 = arith.mulf %364, %365 : vector<16x8xf32>
    %367 = arith.addf %360, %366 : vector<16x8xf32>
    %368 = vector.extract_strided_slice %198 {offsets = [0, 96], sizes = [1, 8], strides = [1, 1]} : vector<1x112xf32> to vector<1x8xf32>
    %369 = vector.extract_strided_slice %0 {offsets = [0, 24], sizes = [16, 1], strides = [1, 1]} : vector<16x27xbf16> to vector<16x1xbf16>
    %370 = arith.extf %369 : vector<16x1xbf16> to vector<16x1xf32>
    %371 = vector.broadcast %370 : vector<16x1xf32> to vector<16x8xf32>
    %372 = vector.broadcast %368 : vector<1x8xf32> to vector<16x8xf32>
    %373 = arith.mulf %371, %372 : vector<16x8xf32>
    %374 = arith.addf %367, %373 : vector<16x8xf32>
    %375 = vector.extract_strided_slice %198 {offsets = [0, 100], sizes = [1, 8], strides = [1, 1]} : vector<1x112xf32> to vector<1x8xf32>
    %376 = vector.extract_strided_slice %0 {offsets = [0, 25], sizes = [16, 1], strides = [1, 1]} : vector<16x27xbf16> to vector<16x1xbf16>
    %377 = arith.extf %376 : vector<16x1xbf16> to vector<16x1xf32>
    %378 = vector.broadcast %377 : vector<16x1xf32> to vector<16x8xf32>
    %379 = vector.broadcast %375 : vector<1x8xf32> to vector<16x8xf32>
    %380 = arith.mulf %378, %379 : vector<16x8xf32>
    %381 = arith.addf %374, %380 : vector<16x8xf32>
    %382 = vector.extract_strided_slice %198 {offsets = [0, 104], sizes = [1, 8], strides = [1, 1]} : vector<1x112xf32> to vector<1x8xf32>
    %383 = vector.extract_strided_slice %0 {offsets = [0, 26], sizes = [16, 1], strides = [1, 1]} : vector<16x27xbf16> to vector<16x1xbf16>
    %384 = arith.extf %383 : vector<16x1xbf16> to vector<16x1xf32>
    %385 = vector.broadcast %384 : vector<16x1xf32> to vector<16x8xf32>
    %386 = vector.broadcast %382 : vector<1x8xf32> to vector<16x8xf32>
    %387 = arith.mulf %385, %386 : vector<16x8xf32>
    %388 = arith.addf %381, %387 : vector<16x8xf32>
    %cst_9 = arith.constant dense<0.000000e+00> : vector<16xf32>
    %389 = vector.multi_reduction <add>, %388, %cst_9 [1] : vector<16x8xf32> to vector<16xf32>
    %390 = vector.shape_cast %389 : vector<16xf32> to vector<16x1xf32>
    %391 = arith.addf %196, %390 : vector<16x1xf32>
    %cst_10 = arith.constant 6.250000e-02 : f32
    %392 = vector.broadcast %cst_10 : f32 to vector<16x1xf32>
    %393 = arith.mulf %391, %392 : vector<16x1xf32>
    %cst_11 = arith.constant 0.000000e+00 : f32
    %394 = vector.broadcast %cst_11 : f32 to vector<16x1xf32>
    %395 = vector.broadcast %393 : vector<16x1xf32> to vector<16x8xf32>
    %396 = arith.subf %193, %395 : vector<16x8xf32>
    %397 = arith.mulf %396, %396 : vector<16x8xf32>
    %cst_12 = arith.constant dense<0.000000e+00> : vector<16xf32>
    %398 = vector.multi_reduction <add>, %397, %cst_12 [1] : vector<16x8xf32> to vector<16xf32>
    %399 = vector.shape_cast %398 : vector<16xf32> to vector<16x1xf32>
    %400 = arith.addf %394, %399 : vector<16x1xf32>
    %401 = vector.broadcast %393 : vector<16x1xf32> to vector<16x8xf32>
    %402 = arith.subf %388, %401 : vector<16x8xf32>
    %403 = arith.mulf %402, %402 : vector<16x8xf32>
    %cst_13 = arith.constant dense<0.000000e+00> : vector<16xf32>
    %404 = vector.multi_reduction <add>, %403, %cst_13 [1] : vector<16x8xf32> to vector<16xf32>
    %405 = vector.shape_cast %404 : vector<16xf32> to vector<16x1xf32>
    %406 = arith.addf %400, %405 : vector<16x1xf32>
    %cst_14 = arith.constant 6.250000e-02 : f32
    %407 = vector.broadcast %cst_14 : f32 to vector<16x1xf32>
    %408 = arith.mulf %406, %407 : vector<16x1xf32>
    %cst_15 = arith.constant 9.99999974E-6 : f32
    %409 = vector.broadcast %cst_15 : f32 to vector<16x1xf32>
    %410 = arith.addf %408, %409 : vector<16x1xf32>
    %411 = math.rsqrt %410 : vector<16x1xf32>
    %c0_16 = arith.constant 0 : index
    %c0_17 = arith.constant 0 : index
    %412 = vector.load %arg3[%c0_16, %c0_17] : memref<16x1xf32, #tpu.memory_space<vmem>>, vector<16x1xf32>
    %413 = arith.mulf %412, %411 : vector<16x1xf32>
    %c0_18 = arith.constant 0 : index
    %c0_19 = arith.constant 0 : index
    %414 = vector.load %arg4[%c0_18, %c0_19] : memref<16x1xf32, #tpu.memory_space<vmem>>, vector<16x1xf32>
    %415 = arith.mulf %393, %413 : vector<16x1xf32>
    %416 = arith.subf %414, %415 : vector<16x1xf32>
    %417 = vector.broadcast %413 : vector<16x1xf32> to vector<16x8xf32>
    %418 = arith.mulf %193, %417 : vector<16x8xf32>
    %419 = vector.broadcast %416 : vector<16x1xf32> to vector<16x8xf32>
    %420 = arith.addf %418, %419 : vector<16x8xf32>
    %cst_20 = arith.constant 0.000000e+00 : f32
    %421 = vector.broadcast %cst_20 : f32 to vector<16x8xf32>
    %422 = arith.maximumf %420, %421 : vector<16x8xf32>
    %423 = vector.broadcast %413 : vector<16x1xf32> to vector<16x8xf32>
    %424 = arith.mulf %388, %423 : vector<16x8xf32>
    %425 = vector.broadcast %416 : vector<16x1xf32> to vector<16x8xf32>
    %426 = arith.addf %424, %425 : vector<16x8xf32>
    %cst_21 = arith.constant 0.000000e+00 : f32
    %427 = vector.broadcast %cst_21 : f32 to vector<16x8xf32>
    %428 = arith.maximumf %426, %427 : vector<16x8xf32>
    %c0_22 = arith.constant 0 : index
    %c0_23 = arith.constant 0 : index
    %c0_24 = arith.constant 0 : index
    %429 = vector.load %arg5[%c0_22, %c0_23, %c0_24] : memref<2x16x8xf32, #tpu.memory_space<vmem>>, vector<1x16x8xf32>
    %430 = vector.shape_cast %429 : vector<1x16x8xf32> to vector<16x8xf32>
    %431 = vector.shape_cast %422 : vector<16x8xf32> to vector<1x16x8xf32>
    tpu.vector_store %arg5[%c0_22, %c0_23, %c0_24], %431 {strides = array<i32>} : memref<2x16x8xf32, #tpu.memory_space<vmem>>, vector<1x16x8xf32>,
    %c1_25 = arith.constant 1 : index
    %c0_26 = arith.constant 0 : index
    %c0_27 = arith.constant 0 : index
    %432 = vector.load %arg5[%c1_25, %c0_26, %c0_27] : memref<2x16x8xf32, #tpu.memory_space<vmem>>, vector<1x16x8xf32>
    %433 = vector.shape_cast %432 : vector<1x16x8xf32> to vector<16x8xf32>
    %434 = vector.shape_cast %428 : vector<16x8xf32> to vector<1x16x8xf32>
    tpu.vector_store %arg5[%c1_25, %c0_26, %c0_27], %434 {strides = array<i32>} : memref<2x16x8xf32, #tpu.memory_space<vmem>>, vector<1x16x8xf32>,
    return
  }
  func.func @transform_0(%arg0: i32) -> (i32, i32, i32) {
    %c0_i32 = arith.constant 0 : i32
    %c0_i32_0 = arith.constant 0 : i32
    %c0_i32_1 = arith.constant 0 : i32
    %c0_i32_2 = arith.constant 0 : i32
    return %c0_i32, %c0_i32_0, %c0_i32_1 : i32, i32, i32
  }
  func.func @transform_1(%arg0: i32) -> (i32, i32) {
    %c0_i32 = arith.constant 0 : i32
    %c0_i32_0 = arith.constant 0 : i32
    return %arg0, %c0_i32 : i32, i32
  }
  func.func @transform_2(%arg0: i32) -> (i32, i32) {
    %c0_i32 = arith.constant 0 : i32
    %c0_i32_0 = arith.constant 0 : i32
    return %arg0, %c0_i32 : i32, i32
  }
  func.func @transform_3(%arg0: i32) -> (i32, i32) {
    %c0_i32 = arith.constant 0 : i32
    %c0_i32_0 = arith.constant 0 : i32
    return %arg0, %c0_i32 : i32, i32
  }
  func.func @transform_4(%arg0: i32) -> (i32, i32, i32) {
    %c0_i32 = arith.constant 0 : i32
    %c0_i32_0 = arith.constant 0 : i32
    %c0_i32_1 = arith.constant 0 : i32
    return %c0_i32, %arg0, %c0_i32_0 : i32, i32, i32
  }
}

module attributes {stable_mosaic.version = 11 : i64} {
  func.func @conv_layer_kernel(%arg0: i32, %arg1: memref<2x12x112xf32, #tpu.memory_space<vmem>>, %arg2: memref<16x324xbf16, #tpu.memory_space<vmem>>, %arg3: memref<16x1xf32, #tpu.memory_space<vmem>>, %arg4: memref<16x1xf32, #tpu.memory_space<vmem>>, %arg5: memref<2x16x8xf32, #tpu.memory_space<vmem>>) attributes {dimension_semantics = [#tpu.dimension_semantics<parallel>], iteration_bounds = array<i64: 1>, scalar_prefetch = 0 : i64, scratch_operands = 0 : i64, tpu.core_type = #tpu.core_type<tc>, window_params = [{pipeline_mode = #tpu.pipeline_mode<synchronous>, transform_indices = @transform_0, window_bounds = array<i64: 2, 12, 112>}, {transform_indices = @transform_1, window_bounds = array<i64: 16, 324>}, {transform_indices = @transform_2, window_bounds = array<i64: 16, 1>}, {transform_indices = @transform_3, window_bounds = array<i64: 16, 1>}, {transform_indices = @transform_4, window_bounds = array<i64: 2, 16, 8>}]} {
    %c0 = arith.constant 0 : index
    %c0_0 = arith.constant 0 : index
    %0 = vector.load %arg2[%c0, %c0_0] : memref<16x324xbf16, #tpu.memory_space<vmem>>, vector<16x324xbf16>
    %cst = arith.constant 0.000000e+00 : f32
    %1 = vector.broadcast %cst : f32 to vector<16x1xf32>
    %c0_1 = arith.constant 0 : index
    %c0_2 = arith.constant 0 : index
    %c0_3 = arith.constant 0 : index
    %2 = vector.load %arg1[%c0_1, %c0_2, %c0_3] : memref<2x12x112xf32, #tpu.memory_space<vmem>>, vector<1x12x112xf32>
    %3 = vector.shape_cast %2 : vector<1x12x112xf32> to vector<12x112xf32>
    %cst_4 = arith.constant 0.000000e+00 : f32
    %4 = vector.broadcast %cst_4 : f32 to vector<16x8xf32>
    %5 = vector.extract_strided_slice %3 {offsets = [0, 0], sizes = [12, 8], strides = [1, 1]} : vector<12x112xf32> to vector<12x8xf32>
    %6 = vector.extract_strided_slice %0 {offsets = [0, 0], sizes = [16, 12], strides = [1, 1]} : vector<16x324xbf16> to vector<16x12xbf16>
    %7 = arith.truncf %5 : vector<12x8xf32> to vector<12x8xbf16>
    %cst_5 = arith.constant dense<0.000000e+00> : vector<16x8xf32>
    %8 = tpu.matmul %6, %7, %cst_5 {dimension_numbers = #tpu.dot_dimension_numbers<[1], [0], [0], [1], [0, 0, 1, 1], [], []>} : vector<16x12xbf16>, vector<12x8xbf16>, vector<16x8xf32> -> vector<16x8xf32>
    %9 = arith.addf %4, %8 : vector<16x8xf32>
    %10 = vector.extract_strided_slice %3 {offsets = [0, 4], sizes = [12, 8], strides = [1, 1]} : vector<12x112xf32> to vector<12x8xf32>
    %11 = vector.extract_strided_slice %0 {offsets = [0, 12], sizes = [16, 12], strides = [1, 1]} : vector<16x324xbf16> to vector<16x12xbf16>
    %12 = arith.truncf %10 : vector<12x8xf32> to vector<12x8xbf16>
    %cst_6 = arith.constant dense<0.000000e+00> : vector<16x8xf32>
    %13 = tpu.matmul %11, %12, %cst_6 {dimension_numbers = #tpu.dot_dimension_numbers<[1], [0], [0], [1], [0, 0, 1, 1], [], []>} : vector<16x12xbf16>, vector<12x8xbf16>, vector<16x8xf32> -> vector<16x8xf32>
    %14 = arith.addf %9, %13 : vector<16x8xf32>
    %15 = vector.extract_strided_slice %3 {offsets = [0, 8], sizes = [12, 8], strides = [1, 1]} : vector<12x112xf32> to vector<12x8xf32>
    %16 = vector.extract_strided_slice %0 {offsets = [0, 24], sizes = [16, 12], strides = [1, 1]} : vector<16x324xbf16> to vector<16x12xbf16>
    %17 = arith.truncf %15 : vector<12x8xf32> to vector<12x8xbf16>
    %cst_7 = arith.constant dense<0.000000e+00> : vector<16x8xf32>
    %18 = tpu.matmul %16, %17, %cst_7 {dimension_numbers = #tpu.dot_dimension_numbers<[1], [0], [0], [1], [0, 0, 1, 1], [], []>} : vector<16x12xbf16>, vector<12x8xbf16>, vector<16x8xf32> -> vector<16x8xf32>
    %19 = arith.addf %14, %18 : vector<16x8xf32>
    %20 = vector.extract_strided_slice %3 {offsets = [0, 12], sizes = [12, 8], strides = [1, 1]} : vector<12x112xf32> to vector<12x8xf32>
    %21 = vector.extract_strided_slice %0 {offsets = [0, 36], sizes = [16, 12], strides = [1, 1]} : vector<16x324xbf16> to vector<16x12xbf16>
    %22 = arith.truncf %20 : vector<12x8xf32> to vector<12x8xbf16>
    %cst_8 = arith.constant dense<0.000000e+00> : vector<16x8xf32>
    %23 = tpu.matmul %21, %22, %cst_8 {dimension_numbers = #tpu.dot_dimension_numbers<[1], [0], [0], [1], [0, 0, 1, 1], [], []>} : vector<16x12xbf16>, vector<12x8xbf16>, vector<16x8xf32> -> vector<16x8xf32>
    %24 = arith.addf %19, %23 : vector<16x8xf32>
    %25 = vector.extract_strided_slice %3 {offsets = [0, 16], sizes = [12, 8], strides = [1, 1]} : vector<12x112xf32> to vector<12x8xf32>
    %26 = vector.extract_strided_slice %0 {offsets = [0, 48], sizes = [16, 12], strides = [1, 1]} : vector<16x324xbf16> to vector<16x12xbf16>
    %27 = arith.truncf %25 : vector<12x8xf32> to vector<12x8xbf16>
    %cst_9 = arith.constant dense<0.000000e+00> : vector<16x8xf32>
    %28 = tpu.matmul %26, %27, %cst_9 {dimension_numbers = #tpu.dot_dimension_numbers<[1], [0], [0], [1], [0, 0, 1, 1], [], []>} : vector<16x12xbf16>, vector<12x8xbf16>, vector<16x8xf32> -> vector<16x8xf32>
    %29 = arith.addf %24, %28 : vector<16x8xf32>
    %30 = vector.extract_strided_slice %3 {offsets = [0, 20], sizes = [12, 8], strides = [1, 1]} : vector<12x112xf32> to vector<12x8xf32>
    %31 = vector.extract_strided_slice %0 {offsets = [0, 60], sizes = [16, 12], strides = [1, 1]} : vector<16x324xbf16> to vector<16x12xbf16>
    %32 = arith.truncf %30 : vector<12x8xf32> to vector<12x8xbf16>
    %cst_10 = arith.constant dense<0.000000e+00> : vector<16x8xf32>
    %33 = tpu.matmul %31, %32, %cst_10 {dimension_numbers = #tpu.dot_dimension_numbers<[1], [0], [0], [1], [0, 0, 1, 1], [], []>} : vector<16x12xbf16>, vector<12x8xbf16>, vector<16x8xf32> -> vector<16x8xf32>
    %34 = arith.addf %29, %33 : vector<16x8xf32>
    %35 = vector.extract_strided_slice %3 {offsets = [0, 24], sizes = [12, 8], strides = [1, 1]} : vector<12x112xf32> to vector<12x8xf32>
    %36 = vector.extract_strided_slice %0 {offsets = [0, 72], sizes = [16, 12], strides = [1, 1]} : vector<16x324xbf16> to vector<16x12xbf16>
    %37 = arith.truncf %35 : vector<12x8xf32> to vector<12x8xbf16>
    %cst_11 = arith.constant dense<0.000000e+00> : vector<16x8xf32>
    %38 = tpu.matmul %36, %37, %cst_11 {dimension_numbers = #tpu.dot_dimension_numbers<[1], [0], [0], [1], [0, 0, 1, 1], [], []>} : vector<16x12xbf16>, vector<12x8xbf16>, vector<16x8xf32> -> vector<16x8xf32>
    %39 = arith.addf %34, %38 : vector<16x8xf32>
    %40 = vector.extract_strided_slice %3 {offsets = [0, 28], sizes = [12, 8], strides = [1, 1]} : vector<12x112xf32> to vector<12x8xf32>
    %41 = vector.extract_strided_slice %0 {offsets = [0, 84], sizes = [16, 12], strides = [1, 1]} : vector<16x324xbf16> to vector<16x12xbf16>
    %42 = arith.truncf %40 : vector<12x8xf32> to vector<12x8xbf16>
    %cst_12 = arith.constant dense<0.000000e+00> : vector<16x8xf32>
    %43 = tpu.matmul %41, %42, %cst_12 {dimension_numbers = #tpu.dot_dimension_numbers<[1], [0], [0], [1], [0, 0, 1, 1], [], []>} : vector<16x12xbf16>, vector<12x8xbf16>, vector<16x8xf32> -> vector<16x8xf32>
    %44 = arith.addf %39, %43 : vector<16x8xf32>
    %45 = vector.extract_strided_slice %3 {offsets = [0, 32], sizes = [12, 8], strides = [1, 1]} : vector<12x112xf32> to vector<12x8xf32>
    %46 = vector.extract_strided_slice %0 {offsets = [0, 96], sizes = [16, 12], strides = [1, 1]} : vector<16x324xbf16> to vector<16x12xbf16>
    %47 = arith.truncf %45 : vector<12x8xf32> to vector<12x8xbf16>
    %cst_13 = arith.constant dense<0.000000e+00> : vector<16x8xf32>
    %48 = tpu.matmul %46, %47, %cst_13 {dimension_numbers = #tpu.dot_dimension_numbers<[1], [0], [0], [1], [0, 0, 1, 1], [], []>} : vector<16x12xbf16>, vector<12x8xbf16>, vector<16x8xf32> -> vector<16x8xf32>
    %49 = arith.addf %44, %48 : vector<16x8xf32>
    %50 = vector.extract_strided_slice %3 {offsets = [0, 36], sizes = [12, 8], strides = [1, 1]} : vector<12x112xf32> to vector<12x8xf32>
    %51 = vector.extract_strided_slice %0 {offsets = [0, 108], sizes = [16, 12], strides = [1, 1]} : vector<16x324xbf16> to vector<16x12xbf16>
    %52 = arith.truncf %50 : vector<12x8xf32> to vector<12x8xbf16>
    %cst_14 = arith.constant dense<0.000000e+00> : vector<16x8xf32>
    %53 = tpu.matmul %51, %52, %cst_14 {dimension_numbers = #tpu.dot_dimension_numbers<[1], [0], [0], [1], [0, 0, 1, 1], [], []>} : vector<16x12xbf16>, vector<12x8xbf16>, vector<16x8xf32> -> vector<16x8xf32>
    %54 = arith.addf %49, %53 : vector<16x8xf32>
    %55 = vector.extract_strided_slice %3 {offsets = [0, 40], sizes = [12, 8], strides = [1, 1]} : vector<12x112xf32> to vector<12x8xf32>
    %56 = vector.extract_strided_slice %0 {offsets = [0, 120], sizes = [16, 12], strides = [1, 1]} : vector<16x324xbf16> to vector<16x12xbf16>
    %57 = arith.truncf %55 : vector<12x8xf32> to vector<12x8xbf16>
    %cst_15 = arith.constant dense<0.000000e+00> : vector<16x8xf32>
    %58 = tpu.matmul %56, %57, %cst_15 {dimension_numbers = #tpu.dot_dimension_numbers<[1], [0], [0], [1], [0, 0, 1, 1], [], []>} : vector<16x12xbf16>, vector<12x8xbf16>, vector<16x8xf32> -> vector<16x8xf32>
    %59 = arith.addf %54, %58 : vector<16x8xf32>
    %60 = vector.extract_strided_slice %3 {offsets = [0, 44], sizes = [12, 8], strides = [1, 1]} : vector<12x112xf32> to vector<12x8xf32>
    %61 = vector.extract_strided_slice %0 {offsets = [0, 132], sizes = [16, 12], strides = [1, 1]} : vector<16x324xbf16> to vector<16x12xbf16>
    %62 = arith.truncf %60 : vector<12x8xf32> to vector<12x8xbf16>
    %cst_16 = arith.constant dense<0.000000e+00> : vector<16x8xf32>
    %63 = tpu.matmul %61, %62, %cst_16 {dimension_numbers = #tpu.dot_dimension_numbers<[1], [0], [0], [1], [0, 0, 1, 1], [], []>} : vector<16x12xbf16>, vector<12x8xbf16>, vector<16x8xf32> -> vector<16x8xf32>
    %64 = arith.addf %59, %63 : vector<16x8xf32>
    %65 = vector.extract_strided_slice %3 {offsets = [0, 48], sizes = [12, 8], strides = [1, 1]} : vector<12x112xf32> to vector<12x8xf32>
    %66 = vector.extract_strided_slice %0 {offsets = [0, 144], sizes = [16, 12], strides = [1, 1]} : vector<16x324xbf16> to vector<16x12xbf16>
    %67 = arith.truncf %65 : vector<12x8xf32> to vector<12x8xbf16>
    %cst_17 = arith.constant dense<0.000000e+00> : vector<16x8xf32>
    %68 = tpu.matmul %66, %67, %cst_17 {dimension_numbers = #tpu.dot_dimension_numbers<[1], [0], [0], [1], [0, 0, 1, 1], [], []>} : vector<16x12xbf16>, vector<12x8xbf16>, vector<16x8xf32> -> vector<16x8xf32>
    %69 = arith.addf %64, %68 : vector<16x8xf32>
    %70 = vector.extract_strided_slice %3 {offsets = [0, 52], sizes = [12, 8], strides = [1, 1]} : vector<12x112xf32> to vector<12x8xf32>
    %71 = vector.extract_strided_slice %0 {offsets = [0, 156], sizes = [16, 12], strides = [1, 1]} : vector<16x324xbf16> to vector<16x12xbf16>
    %72 = arith.truncf %70 : vector<12x8xf32> to vector<12x8xbf16>
    %cst_18 = arith.constant dense<0.000000e+00> : vector<16x8xf32>
    %73 = tpu.matmul %71, %72, %cst_18 {dimension_numbers = #tpu.dot_dimension_numbers<[1], [0], [0], [1], [0, 0, 1, 1], [], []>} : vector<16x12xbf16>, vector<12x8xbf16>, vector<16x8xf32> -> vector<16x8xf32>
    %74 = arith.addf %69, %73 : vector<16x8xf32>
    %75 = vector.extract_strided_slice %3 {offsets = [0, 56], sizes = [12, 8], strides = [1, 1]} : vector<12x112xf32> to vector<12x8xf32>
    %76 = vector.extract_strided_slice %0 {offsets = [0, 168], sizes = [16, 12], strides = [1, 1]} : vector<16x324xbf16> to vector<16x12xbf16>
    %77 = arith.truncf %75 : vector<12x8xf32> to vector<12x8xbf16>
    %cst_19 = arith.constant dense<0.000000e+00> : vector<16x8xf32>
    %78 = tpu.matmul %76, %77, %cst_19 {dimension_numbers = #tpu.dot_dimension_numbers<[1], [0], [0], [1], [0, 0, 1, 1], [], []>} : vector<16x12xbf16>, vector<12x8xbf16>, vector<16x8xf32> -> vector<16x8xf32>
    %79 = arith.addf %74, %78 : vector<16x8xf32>
    %80 = vector.extract_strided_slice %3 {offsets = [0, 60], sizes = [12, 8], strides = [1, 1]} : vector<12x112xf32> to vector<12x8xf32>
    %81 = vector.extract_strided_slice %0 {offsets = [0, 180], sizes = [16, 12], strides = [1, 1]} : vector<16x324xbf16> to vector<16x12xbf16>
    %82 = arith.truncf %80 : vector<12x8xf32> to vector<12x8xbf16>
    %cst_20 = arith.constant dense<0.000000e+00> : vector<16x8xf32>
    %83 = tpu.matmul %81, %82, %cst_20 {dimension_numbers = #tpu.dot_dimension_numbers<[1], [0], [0], [1], [0, 0, 1, 1], [], []>} : vector<16x12xbf16>, vector<12x8xbf16>, vector<16x8xf32> -> vector<16x8xf32>
    %84 = arith.addf %79, %83 : vector<16x8xf32>
    %85 = vector.extract_strided_slice %3 {offsets = [0, 64], sizes = [12, 8], strides = [1, 1]} : vector<12x112xf32> to vector<12x8xf32>
    %86 = vector.extract_strided_slice %0 {offsets = [0, 192], sizes = [16, 12], strides = [1, 1]} : vector<16x324xbf16> to vector<16x12xbf16>
    %87 = arith.truncf %85 : vector<12x8xf32> to vector<12x8xbf16>
    %cst_21 = arith.constant dense<0.000000e+00> : vector<16x8xf32>
    %88 = tpu.matmul %86, %87, %cst_21 {dimension_numbers = #tpu.dot_dimension_numbers<[1], [0], [0], [1], [0, 0, 1, 1], [], []>} : vector<16x12xbf16>, vector<12x8xbf16>, vector<16x8xf32> -> vector<16x8xf32>
    %89 = arith.addf %84, %88 : vector<16x8xf32>
    %90 = vector.extract_strided_slice %3 {offsets = [0, 68], sizes = [12, 8], strides = [1, 1]} : vector<12x112xf32> to vector<12x8xf32>
    %91 = vector.extract_strided_slice %0 {offsets = [0, 204], sizes = [16, 12], strides = [1, 1]} : vector<16x324xbf16> to vector<16x12xbf16>
    %92 = arith.truncf %90 : vector<12x8xf32> to vector<12x8xbf16>
    %cst_22 = arith.constant dense<0.000000e+00> : vector<16x8xf32>
    %93 = tpu.matmul %91, %92, %cst_22 {dimension_numbers = #tpu.dot_dimension_numbers<[1], [0], [0], [1], [0, 0, 1, 1], [], []>} : vector<16x12xbf16>, vector<12x8xbf16>, vector<16x8xf32> -> vector<16x8xf32>
    %94 = arith.addf %89, %93 : vector<16x8xf32>
    %95 = vector.extract_strided_slice %3 {offsets = [0, 72], sizes = [12, 8], strides = [1, 1]} : vector<12x112xf32> to vector<12x8xf32>
    %96 = vector.extract_strided_slice %0 {offsets = [0, 216], sizes = [16, 12], strides = [1, 1]} : vector<16x324xbf16> to vector<16x12xbf16>
    %97 = arith.truncf %95 : vector<12x8xf32> to vector<12x8xbf16>
    %cst_23 = arith.constant dense<0.000000e+00> : vector<16x8xf32>
    %98 = tpu.matmul %96, %97, %cst_23 {dimension_numbers = #tpu.dot_dimension_numbers<[1], [0], [0], [1], [0, 0, 1, 1], [], []>} : vector<16x12xbf16>, vector<12x8xbf16>, vector<16x8xf32> -> vector<16x8xf32>
    %99 = arith.addf %94, %98 : vector<16x8xf32>
    %100 = vector.extract_strided_slice %3 {offsets = [0, 76], sizes = [12, 8], strides = [1, 1]} : vector<12x112xf32> to vector<12x8xf32>
    %101 = vector.extract_strided_slice %0 {offsets = [0, 228], sizes = [16, 12], strides = [1, 1]} : vector<16x324xbf16> to vector<16x12xbf16>
    %102 = arith.truncf %100 : vector<12x8xf32> to vector<12x8xbf16>
    %cst_24 = arith.constant dense<0.000000e+00> : vector<16x8xf32>
    %103 = tpu.matmul %101, %102, %cst_24 {dimension_numbers = #tpu.dot_dimension_numbers<[1], [0], [0], [1], [0, 0, 1, 1], [], []>} : vector<16x12xbf16>, vector<12x8xbf16>, vector<16x8xf32> -> vector<16x8xf32>
    %104 = arith.addf %99, %103 : vector<16x8xf32>
    %105 = vector.extract_strided_slice %3 {offsets = [0, 80], sizes = [12, 8], strides = [1, 1]} : vector<12x112xf32> to vector<12x8xf32>
    %106 = vector.extract_strided_slice %0 {offsets = [0, 240], sizes = [16, 12], strides = [1, 1]} : vector<16x324xbf16> to vector<16x12xbf16>
    %107 = arith.truncf %105 : vector<12x8xf32> to vector<12x8xbf16>
    %cst_25 = arith.constant dense<0.000000e+00> : vector<16x8xf32>
    %108 = tpu.matmul %106, %107, %cst_25 {dimension_numbers = #tpu.dot_dimension_numbers<[1], [0], [0], [1], [0, 0, 1, 1], [], []>} : vector<16x12xbf16>, vector<12x8xbf16>, vector<16x8xf32> -> vector<16x8xf32>
    %109 = arith.addf %104, %108 : vector<16x8xf32>
    %110 = vector.extract_strided_slice %3 {offsets = [0, 84], sizes = [12, 8], strides = [1, 1]} : vector<12x112xf32> to vector<12x8xf32>
    %111 = vector.extract_strided_slice %0 {offsets = [0, 252], sizes = [16, 12], strides = [1, 1]} : vector<16x324xbf16> to vector<16x12xbf16>
    %112 = arith.truncf %110 : vector<12x8xf32> to vector<12x8xbf16>
    %cst_26 = arith.constant dense<0.000000e+00> : vector<16x8xf32>
    %113 = tpu.matmul %111, %112, %cst_26 {dimension_numbers = #tpu.dot_dimension_numbers<[1], [0], [0], [1], [0, 0, 1, 1], [], []>} : vector<16x12xbf16>, vector<12x8xbf16>, vector<16x8xf32> -> vector<16x8xf32>
    %114 = arith.addf %109, %113 : vector<16x8xf32>
    %115 = vector.extract_strided_slice %3 {offsets = [0, 88], sizes = [12, 8], strides = [1, 1]} : vector<12x112xf32> to vector<12x8xf32>
    %116 = vector.extract_strided_slice %0 {offsets = [0, 264], sizes = [16, 12], strides = [1, 1]} : vector<16x324xbf16> to vector<16x12xbf16>
    %117 = arith.truncf %115 : vector<12x8xf32> to vector<12x8xbf16>
    %cst_27 = arith.constant dense<0.000000e+00> : vector<16x8xf32>
    %118 = tpu.matmul %116, %117, %cst_27 {dimension_numbers = #tpu.dot_dimension_numbers<[1], [0], [0], [1], [0, 0, 1, 1], [], []>} : vector<16x12xbf16>, vector<12x8xbf16>, vector<16x8xf32> -> vector<16x8xf32>
    %119 = arith.addf %114, %118 : vector<16x8xf32>
    %120 = vector.extract_strided_slice %3 {offsets = [0, 92], sizes = [12, 8], strides = [1, 1]} : vector<12x112xf32> to vector<12x8xf32>
    %121 = vector.extract_strided_slice %0 {offsets = [0, 276], sizes = [16, 12], strides = [1, 1]} : vector<16x324xbf16> to vector<16x12xbf16>
    %122 = arith.truncf %120 : vector<12x8xf32> to vector<12x8xbf16>
    %cst_28 = arith.constant dense<0.000000e+00> : vector<16x8xf32>
    %123 = tpu.matmul %121, %122, %cst_28 {dimension_numbers = #tpu.dot_dimension_numbers<[1], [0], [0], [1], [0, 0, 1, 1], [], []>} : vector<16x12xbf16>, vector<12x8xbf16>, vector<16x8xf32> -> vector<16x8xf32>
    %124 = arith.addf %119, %123 : vector<16x8xf32>
    %125 = vector.extract_strided_slice %3 {offsets = [0, 96], sizes = [12, 8], strides = [1, 1]} : vector<12x112xf32> to vector<12x8xf32>
    %126 = vector.extract_strided_slice %0 {offsets = [0, 288], sizes = [16, 12], strides = [1, 1]} : vector<16x324xbf16> to vector<16x12xbf16>
    %127 = arith.truncf %125 : vector<12x8xf32> to vector<12x8xbf16>
    %cst_29 = arith.constant dense<0.000000e+00> : vector<16x8xf32>
    %128 = tpu.matmul %126, %127, %cst_29 {dimension_numbers = #tpu.dot_dimension_numbers<[1], [0], [0], [1], [0, 0, 1, 1], [], []>} : vector<16x12xbf16>, vector<12x8xbf16>, vector<16x8xf32> -> vector<16x8xf32>
    %129 = arith.addf %124, %128 : vector<16x8xf32>
    %130 = vector.extract_strided_slice %3 {offsets = [0, 100], sizes = [12, 8], strides = [1, 1]} : vector<12x112xf32> to vector<12x8xf32>
    %131 = vector.extract_strided_slice %0 {offsets = [0, 300], sizes = [16, 12], strides = [1, 1]} : vector<16x324xbf16> to vector<16x12xbf16>
    %132 = arith.truncf %130 : vector<12x8xf32> to vector<12x8xbf16>
    %cst_30 = arith.constant dense<0.000000e+00> : vector<16x8xf32>
    %133 = tpu.matmul %131, %132, %cst_30 {dimension_numbers = #tpu.dot_dimension_numbers<[1], [0], [0], [1], [0, 0, 1, 1], [], []>} : vector<16x12xbf16>, vector<12x8xbf16>, vector<16x8xf32> -> vector<16x8xf32>
    %134 = arith.addf %129, %133 : vector<16x8xf32>
    %135 = vector.extract_strided_slice %3 {offsets = [0, 104], sizes = [12, 8], strides = [1, 1]} : vector<12x112xf32> to vector<12x8xf32>
    %136 = vector.extract_strided_slice %0 {offsets = [0, 312], sizes = [16, 12], strides = [1, 1]} : vector<16x324xbf16> to vector<16x12xbf16>
    %137 = arith.truncf %135 : vector<12x8xf32> to vector<12x8xbf16>
    %cst_31 = arith.constant dense<0.000000e+00> : vector<16x8xf32>
    %138 = tpu.matmul %136, %137, %cst_31 {dimension_numbers = #tpu.dot_dimension_numbers<[1], [0], [0], [1], [0, 0, 1, 1], [], []>} : vector<16x12xbf16>, vector<12x8xbf16>, vector<16x8xf32> -> vector<16x8xf32>
    %139 = arith.addf %134, %138 : vector<16x8xf32>
    %cst_32 = arith.constant dense<0.000000e+00> : vector<16xf32>
    %140 = vector.multi_reduction <add>, %139, %cst_32 [1] : vector<16x8xf32> to vector<16xf32>
    %141 = vector.shape_cast %140 : vector<16xf32> to vector<16x1xf32>
    %142 = arith.addf %1, %141 : vector<16x1xf32>
    %c1 = arith.constant 1 : index
    %c0_33 = arith.constant 0 : index
    %c0_34 = arith.constant 0 : index
    %143 = vector.load %arg1[%c1, %c0_33, %c0_34] : memref<2x12x112xf32, #tpu.memory_space<vmem>>, vector<1x12x112xf32>
    %144 = vector.shape_cast %143 : vector<1x12x112xf32> to vector<12x112xf32>
    %cst_35 = arith.constant 0.000000e+00 : f32
    %145 = vector.broadcast %cst_35 : f32 to vector<16x8xf32>
    %146 = vector.extract_strided_slice %144 {offsets = [0, 0], sizes = [12, 8], strides = [1, 1]} : vector<12x112xf32> to vector<12x8xf32>
    %147 = vector.extract_strided_slice %0 {offsets = [0, 0], sizes = [16, 12], strides = [1, 1]} : vector<16x324xbf16> to vector<16x12xbf16>
    %148 = arith.truncf %146 : vector<12x8xf32> to vector<12x8xbf16>
    %cst_36 = arith.constant dense<0.000000e+00> : vector<16x8xf32>
    %149 = tpu.matmul %147, %148, %cst_36 {dimension_numbers = #tpu.dot_dimension_numbers<[1], [0], [0], [1], [0, 0, 1, 1], [], []>} : vector<16x12xbf16>, vector<12x8xbf16>, vector<16x8xf32> -> vector<16x8xf32>
    %150 = arith.addf %145, %149 : vector<16x8xf32>
    %151 = vector.extract_strided_slice %144 {offsets = [0, 4], sizes = [12, 8], strides = [1, 1]} : vector<12x112xf32> to vector<12x8xf32>
    %152 = vector.extract_strided_slice %0 {offsets = [0, 12], sizes = [16, 12], strides = [1, 1]} : vector<16x324xbf16> to vector<16x12xbf16>
    %153 = arith.truncf %151 : vector<12x8xf32> to vector<12x8xbf16>
    %cst_37 = arith.constant dense<0.000000e+00> : vector<16x8xf32>
    %154 = tpu.matmul %152, %153, %cst_37 {dimension_numbers = #tpu.dot_dimension_numbers<[1], [0], [0], [1], [0, 0, 1, 1], [], []>} : vector<16x12xbf16>, vector<12x8xbf16>, vector<16x8xf32> -> vector<16x8xf32>
    %155 = arith.addf %150, %154 : vector<16x8xf32>
    %156 = vector.extract_strided_slice %144 {offsets = [0, 8], sizes = [12, 8], strides = [1, 1]} : vector<12x112xf32> to vector<12x8xf32>
    %157 = vector.extract_strided_slice %0 {offsets = [0, 24], sizes = [16, 12], strides = [1, 1]} : vector<16x324xbf16> to vector<16x12xbf16>
    %158 = arith.truncf %156 : vector<12x8xf32> to vector<12x8xbf16>
    %cst_38 = arith.constant dense<0.000000e+00> : vector<16x8xf32>
    %159 = tpu.matmul %157, %158, %cst_38 {dimension_numbers = #tpu.dot_dimension_numbers<[1], [0], [0], [1], [0, 0, 1, 1], [], []>} : vector<16x12xbf16>, vector<12x8xbf16>, vector<16x8xf32> -> vector<16x8xf32>
    %160 = arith.addf %155, %159 : vector<16x8xf32>
    %161 = vector.extract_strided_slice %144 {offsets = [0, 12], sizes = [12, 8], strides = [1, 1]} : vector<12x112xf32> to vector<12x8xf32>
    %162 = vector.extract_strided_slice %0 {offsets = [0, 36], sizes = [16, 12], strides = [1, 1]} : vector<16x324xbf16> to vector<16x12xbf16>
    %163 = arith.truncf %161 : vector<12x8xf32> to vector<12x8xbf16>
    %cst_39 = arith.constant dense<0.000000e+00> : vector<16x8xf32>
    %164 = tpu.matmul %162, %163, %cst_39 {dimension_numbers = #tpu.dot_dimension_numbers<[1], [0], [0], [1], [0, 0, 1, 1], [], []>} : vector<16x12xbf16>, vector<12x8xbf16>, vector<16x8xf32> -> vector<16x8xf32>
    %165 = arith.addf %160, %164 : vector<16x8xf32>
    %166 = vector.extract_strided_slice %144 {offsets = [0, 16], sizes = [12, 8], strides = [1, 1]} : vector<12x112xf32> to vector<12x8xf32>
    %167 = vector.extract_strided_slice %0 {offsets = [0, 48], sizes = [16, 12], strides = [1, 1]} : vector<16x324xbf16> to vector<16x12xbf16>
    %168 = arith.truncf %166 : vector<12x8xf32> to vector<12x8xbf16>
    %cst_40 = arith.constant dense<0.000000e+00> : vector<16x8xf32>
    %169 = tpu.matmul %167, %168, %cst_40 {dimension_numbers = #tpu.dot_dimension_numbers<[1], [0], [0], [1], [0, 0, 1, 1], [], []>} : vector<16x12xbf16>, vector<12x8xbf16>, vector<16x8xf32> -> vector<16x8xf32>
    %170 = arith.addf %165, %169 : vector<16x8xf32>
    %171 = vector.extract_strided_slice %144 {offsets = [0, 20], sizes = [12, 8], strides = [1, 1]} : vector<12x112xf32> to vector<12x8xf32>
    %172 = vector.extract_strided_slice %0 {offsets = [0, 60], sizes = [16, 12], strides = [1, 1]} : vector<16x324xbf16> to vector<16x12xbf16>
    %173 = arith.truncf %171 : vector<12x8xf32> to vector<12x8xbf16>
    %cst_41 = arith.constant dense<0.000000e+00> : vector<16x8xf32>
    %174 = tpu.matmul %172, %173, %cst_41 {dimension_numbers = #tpu.dot_dimension_numbers<[1], [0], [0], [1], [0, 0, 1, 1], [], []>} : vector<16x12xbf16>, vector<12x8xbf16>, vector<16x8xf32> -> vector<16x8xf32>
    %175 = arith.addf %170, %174 : vector<16x8xf32>
    %176 = vector.extract_strided_slice %144 {offsets = [0, 24], sizes = [12, 8], strides = [1, 1]} : vector<12x112xf32> to vector<12x8xf32>
    %177 = vector.extract_strided_slice %0 {offsets = [0, 72], sizes = [16, 12], strides = [1, 1]} : vector<16x324xbf16> to vector<16x12xbf16>
    %178 = arith.truncf %176 : vector<12x8xf32> to vector<12x8xbf16>
    %cst_42 = arith.constant dense<0.000000e+00> : vector<16x8xf32>
    %179 = tpu.matmul %177, %178, %cst_42 {dimension_numbers = #tpu.dot_dimension_numbers<[1], [0], [0], [1], [0, 0, 1, 1], [], []>} : vector<16x12xbf16>, vector<12x8xbf16>, vector<16x8xf32> -> vector<16x8xf32>
    %180 = arith.addf %175, %179 : vector<16x8xf32>
    %181 = vector.extract_strided_slice %144 {offsets = [0, 28], sizes = [12, 8], strides = [1, 1]} : vector<12x112xf32> to vector<12x8xf32>
    %182 = vector.extract_strided_slice %0 {offsets = [0, 84], sizes = [16, 12], strides = [1, 1]} : vector<16x324xbf16> to vector<16x12xbf16>
    %183 = arith.truncf %181 : vector<12x8xf32> to vector<12x8xbf16>
    %cst_43 = arith.constant dense<0.000000e+00> : vector<16x8xf32>
    %184 = tpu.matmul %182, %183, %cst_43 {dimension_numbers = #tpu.dot_dimension_numbers<[1], [0], [0], [1], [0, 0, 1, 1], [], []>} : vector<16x12xbf16>, vector<12x8xbf16>, vector<16x8xf32> -> vector<16x8xf32>
    %185 = arith.addf %180, %184 : vector<16x8xf32>
    %186 = vector.extract_strided_slice %144 {offsets = [0, 32], sizes = [12, 8], strides = [1, 1]} : vector<12x112xf32> to vector<12x8xf32>
    %187 = vector.extract_strided_slice %0 {offsets = [0, 96], sizes = [16, 12], strides = [1, 1]} : vector<16x324xbf16> to vector<16x12xbf16>
    %188 = arith.truncf %186 : vector<12x8xf32> to vector<12x8xbf16>
    %cst_44 = arith.constant dense<0.000000e+00> : vector<16x8xf32>
    %189 = tpu.matmul %187, %188, %cst_44 {dimension_numbers = #tpu.dot_dimension_numbers<[1], [0], [0], [1], [0, 0, 1, 1], [], []>} : vector<16x12xbf16>, vector<12x8xbf16>, vector<16x8xf32> -> vector<16x8xf32>
    %190 = arith.addf %185, %189 : vector<16x8xf32>
    %191 = vector.extract_strided_slice %144 {offsets = [0, 36], sizes = [12, 8], strides = [1, 1]} : vector<12x112xf32> to vector<12x8xf32>
    %192 = vector.extract_strided_slice %0 {offsets = [0, 108], sizes = [16, 12], strides = [1, 1]} : vector<16x324xbf16> to vector<16x12xbf16>
    %193 = arith.truncf %191 : vector<12x8xf32> to vector<12x8xbf16>
    %cst_45 = arith.constant dense<0.000000e+00> : vector<16x8xf32>
    %194 = tpu.matmul %192, %193, %cst_45 {dimension_numbers = #tpu.dot_dimension_numbers<[1], [0], [0], [1], [0, 0, 1, 1], [], []>} : vector<16x12xbf16>, vector<12x8xbf16>, vector<16x8xf32> -> vector<16x8xf32>
    %195 = arith.addf %190, %194 : vector<16x8xf32>
    %196 = vector.extract_strided_slice %144 {offsets = [0, 40], sizes = [12, 8], strides = [1, 1]} : vector<12x112xf32> to vector<12x8xf32>
    %197 = vector.extract_strided_slice %0 {offsets = [0, 120], sizes = [16, 12], strides = [1, 1]} : vector<16x324xbf16> to vector<16x12xbf16>
    %198 = arith.truncf %196 : vector<12x8xf32> to vector<12x8xbf16>
    %cst_46 = arith.constant dense<0.000000e+00> : vector<16x8xf32>
    %199 = tpu.matmul %197, %198, %cst_46 {dimension_numbers = #tpu.dot_dimension_numbers<[1], [0], [0], [1], [0, 0, 1, 1], [], []>} : vector<16x12xbf16>, vector<12x8xbf16>, vector<16x8xf32> -> vector<16x8xf32>
    %200 = arith.addf %195, %199 : vector<16x8xf32>
    %201 = vector.extract_strided_slice %144 {offsets = [0, 44], sizes = [12, 8], strides = [1, 1]} : vector<12x112xf32> to vector<12x8xf32>
    %202 = vector.extract_strided_slice %0 {offsets = [0, 132], sizes = [16, 12], strides = [1, 1]} : vector<16x324xbf16> to vector<16x12xbf16>
    %203 = arith.truncf %201 : vector<12x8xf32> to vector<12x8xbf16>
    %cst_47 = arith.constant dense<0.000000e+00> : vector<16x8xf32>
    %204 = tpu.matmul %202, %203, %cst_47 {dimension_numbers = #tpu.dot_dimension_numbers<[1], [0], [0], [1], [0, 0, 1, 1], [], []>} : vector<16x12xbf16>, vector<12x8xbf16>, vector<16x8xf32> -> vector<16x8xf32>
    %205 = arith.addf %200, %204 : vector<16x8xf32>
    %206 = vector.extract_strided_slice %144 {offsets = [0, 48], sizes = [12, 8], strides = [1, 1]} : vector<12x112xf32> to vector<12x8xf32>
    %207 = vector.extract_strided_slice %0 {offsets = [0, 144], sizes = [16, 12], strides = [1, 1]} : vector<16x324xbf16> to vector<16x12xbf16>
    %208 = arith.truncf %206 : vector<12x8xf32> to vector<12x8xbf16>
    %cst_48 = arith.constant dense<0.000000e+00> : vector<16x8xf32>
    %209 = tpu.matmul %207, %208, %cst_48 {dimension_numbers = #tpu.dot_dimension_numbers<[1], [0], [0], [1], [0, 0, 1, 1], [], []>} : vector<16x12xbf16>, vector<12x8xbf16>, vector<16x8xf32> -> vector<16x8xf32>
    %210 = arith.addf %205, %209 : vector<16x8xf32>
    %211 = vector.extract_strided_slice %144 {offsets = [0, 52], sizes = [12, 8], strides = [1, 1]} : vector<12x112xf32> to vector<12x8xf32>
    %212 = vector.extract_strided_slice %0 {offsets = [0, 156], sizes = [16, 12], strides = [1, 1]} : vector<16x324xbf16> to vector<16x12xbf16>
    %213 = arith.truncf %211 : vector<12x8xf32> to vector<12x8xbf16>
    %cst_49 = arith.constant dense<0.000000e+00> : vector<16x8xf32>
    %214 = tpu.matmul %212, %213, %cst_49 {dimension_numbers = #tpu.dot_dimension_numbers<[1], [0], [0], [1], [0, 0, 1, 1], [], []>} : vector<16x12xbf16>, vector<12x8xbf16>, vector<16x8xf32> -> vector<16x8xf32>
    %215 = arith.addf %210, %214 : vector<16x8xf32>
    %216 = vector.extract_strided_slice %144 {offsets = [0, 56], sizes = [12, 8], strides = [1, 1]} : vector<12x112xf32> to vector<12x8xf32>
    %217 = vector.extract_strided_slice %0 {offsets = [0, 168], sizes = [16, 12], strides = [1, 1]} : vector<16x324xbf16> to vector<16x12xbf16>
    %218 = arith.truncf %216 : vector<12x8xf32> to vector<12x8xbf16>
    %cst_50 = arith.constant dense<0.000000e+00> : vector<16x8xf32>
    %219 = tpu.matmul %217, %218, %cst_50 {dimension_numbers = #tpu.dot_dimension_numbers<[1], [0], [0], [1], [0, 0, 1, 1], [], []>} : vector<16x12xbf16>, vector<12x8xbf16>, vector<16x8xf32> -> vector<16x8xf32>
    %220 = arith.addf %215, %219 : vector<16x8xf32>
    %221 = vector.extract_strided_slice %144 {offsets = [0, 60], sizes = [12, 8], strides = [1, 1]} : vector<12x112xf32> to vector<12x8xf32>
    %222 = vector.extract_strided_slice %0 {offsets = [0, 180], sizes = [16, 12], strides = [1, 1]} : vector<16x324xbf16> to vector<16x12xbf16>
    %223 = arith.truncf %221 : vector<12x8xf32> to vector<12x8xbf16>
    %cst_51 = arith.constant dense<0.000000e+00> : vector<16x8xf32>
    %224 = tpu.matmul %222, %223, %cst_51 {dimension_numbers = #tpu.dot_dimension_numbers<[1], [0], [0], [1], [0, 0, 1, 1], [], []>} : vector<16x12xbf16>, vector<12x8xbf16>, vector<16x8xf32> -> vector<16x8xf32>
    %225 = arith.addf %220, %224 : vector<16x8xf32>
    %226 = vector.extract_strided_slice %144 {offsets = [0, 64], sizes = [12, 8], strides = [1, 1]} : vector<12x112xf32> to vector<12x8xf32>
    %227 = vector.extract_strided_slice %0 {offsets = [0, 192], sizes = [16, 12], strides = [1, 1]} : vector<16x324xbf16> to vector<16x12xbf16>
    %228 = arith.truncf %226 : vector<12x8xf32> to vector<12x8xbf16>
    %cst_52 = arith.constant dense<0.000000e+00> : vector<16x8xf32>
    %229 = tpu.matmul %227, %228, %cst_52 {dimension_numbers = #tpu.dot_dimension_numbers<[1], [0], [0], [1], [0, 0, 1, 1], [], []>} : vector<16x12xbf16>, vector<12x8xbf16>, vector<16x8xf32> -> vector<16x8xf32>
    %230 = arith.addf %225, %229 : vector<16x8xf32>
    %231 = vector.extract_strided_slice %144 {offsets = [0, 68], sizes = [12, 8], strides = [1, 1]} : vector<12x112xf32> to vector<12x8xf32>
    %232 = vector.extract_strided_slice %0 {offsets = [0, 204], sizes = [16, 12], strides = [1, 1]} : vector<16x324xbf16> to vector<16x12xbf16>
    %233 = arith.truncf %231 : vector<12x8xf32> to vector<12x8xbf16>
    %cst_53 = arith.constant dense<0.000000e+00> : vector<16x8xf32>
    %234 = tpu.matmul %232, %233, %cst_53 {dimension_numbers = #tpu.dot_dimension_numbers<[1], [0], [0], [1], [0, 0, 1, 1], [], []>} : vector<16x12xbf16>, vector<12x8xbf16>, vector<16x8xf32> -> vector<16x8xf32>
    %235 = arith.addf %230, %234 : vector<16x8xf32>
    %236 = vector.extract_strided_slice %144 {offsets = [0, 72], sizes = [12, 8], strides = [1, 1]} : vector<12x112xf32> to vector<12x8xf32>
    %237 = vector.extract_strided_slice %0 {offsets = [0, 216], sizes = [16, 12], strides = [1, 1]} : vector<16x324xbf16> to vector<16x12xbf16>
    %238 = arith.truncf %236 : vector<12x8xf32> to vector<12x8xbf16>
    %cst_54 = arith.constant dense<0.000000e+00> : vector<16x8xf32>
    %239 = tpu.matmul %237, %238, %cst_54 {dimension_numbers = #tpu.dot_dimension_numbers<[1], [0], [0], [1], [0, 0, 1, 1], [], []>} : vector<16x12xbf16>, vector<12x8xbf16>, vector<16x8xf32> -> vector<16x8xf32>
    %240 = arith.addf %235, %239 : vector<16x8xf32>
    %241 = vector.extract_strided_slice %144 {offsets = [0, 76], sizes = [12, 8], strides = [1, 1]} : vector<12x112xf32> to vector<12x8xf32>
    %242 = vector.extract_strided_slice %0 {offsets = [0, 228], sizes = [16, 12], strides = [1, 1]} : vector<16x324xbf16> to vector<16x12xbf16>
    %243 = arith.truncf %241 : vector<12x8xf32> to vector<12x8xbf16>
    %cst_55 = arith.constant dense<0.000000e+00> : vector<16x8xf32>
    %244 = tpu.matmul %242, %243, %cst_55 {dimension_numbers = #tpu.dot_dimension_numbers<[1], [0], [0], [1], [0, 0, 1, 1], [], []>} : vector<16x12xbf16>, vector<12x8xbf16>, vector<16x8xf32> -> vector<16x8xf32>
    %245 = arith.addf %240, %244 : vector<16x8xf32>
    %246 = vector.extract_strided_slice %144 {offsets = [0, 80], sizes = [12, 8], strides = [1, 1]} : vector<12x112xf32> to vector<12x8xf32>
    %247 = vector.extract_strided_slice %0 {offsets = [0, 240], sizes = [16, 12], strides = [1, 1]} : vector<16x324xbf16> to vector<16x12xbf16>
    %248 = arith.truncf %246 : vector<12x8xf32> to vector<12x8xbf16>
    %cst_56 = arith.constant dense<0.000000e+00> : vector<16x8xf32>
    %249 = tpu.matmul %247, %248, %cst_56 {dimension_numbers = #tpu.dot_dimension_numbers<[1], [0], [0], [1], [0, 0, 1, 1], [], []>} : vector<16x12xbf16>, vector<12x8xbf16>, vector<16x8xf32> -> vector<16x8xf32>
    %250 = arith.addf %245, %249 : vector<16x8xf32>
    %251 = vector.extract_strided_slice %144 {offsets = [0, 84], sizes = [12, 8], strides = [1, 1]} : vector<12x112xf32> to vector<12x8xf32>
    %252 = vector.extract_strided_slice %0 {offsets = [0, 252], sizes = [16, 12], strides = [1, 1]} : vector<16x324xbf16> to vector<16x12xbf16>
    %253 = arith.truncf %251 : vector<12x8xf32> to vector<12x8xbf16>
    %cst_57 = arith.constant dense<0.000000e+00> : vector<16x8xf32>
    %254 = tpu.matmul %252, %253, %cst_57 {dimension_numbers = #tpu.dot_dimension_numbers<[1], [0], [0], [1], [0, 0, 1, 1], [], []>} : vector<16x12xbf16>, vector<12x8xbf16>, vector<16x8xf32> -> vector<16x8xf32>
    %255 = arith.addf %250, %254 : vector<16x8xf32>
    %256 = vector.extract_strided_slice %144 {offsets = [0, 88], sizes = [12, 8], strides = [1, 1]} : vector<12x112xf32> to vector<12x8xf32>
    %257 = vector.extract_strided_slice %0 {offsets = [0, 264], sizes = [16, 12], strides = [1, 1]} : vector<16x324xbf16> to vector<16x12xbf16>
    %258 = arith.truncf %256 : vector<12x8xf32> to vector<12x8xbf16>
    %cst_58 = arith.constant dense<0.000000e+00> : vector<16x8xf32>
    %259 = tpu.matmul %257, %258, %cst_58 {dimension_numbers = #tpu.dot_dimension_numbers<[1], [0], [0], [1], [0, 0, 1, 1], [], []>} : vector<16x12xbf16>, vector<12x8xbf16>, vector<16x8xf32> -> vector<16x8xf32>
    %260 = arith.addf %255, %259 : vector<16x8xf32>
    %261 = vector.extract_strided_slice %144 {offsets = [0, 92], sizes = [12, 8], strides = [1, 1]} : vector<12x112xf32> to vector<12x8xf32>
    %262 = vector.extract_strided_slice %0 {offsets = [0, 276], sizes = [16, 12], strides = [1, 1]} : vector<16x324xbf16> to vector<16x12xbf16>
    %263 = arith.truncf %261 : vector<12x8xf32> to vector<12x8xbf16>
    %cst_59 = arith.constant dense<0.000000e+00> : vector<16x8xf32>
    %264 = tpu.matmul %262, %263, %cst_59 {dimension_numbers = #tpu.dot_dimension_numbers<[1], [0], [0], [1], [0, 0, 1, 1], [], []>} : vector<16x12xbf16>, vector<12x8xbf16>, vector<16x8xf32> -> vector<16x8xf32>
    %265 = arith.addf %260, %264 : vector<16x8xf32>
    %266 = vector.extract_strided_slice %144 {offsets = [0, 96], sizes = [12, 8], strides = [1, 1]} : vector<12x112xf32> to vector<12x8xf32>
    %267 = vector.extract_strided_slice %0 {offsets = [0, 288], sizes = [16, 12], strides = [1, 1]} : vector<16x324xbf16> to vector<16x12xbf16>
    %268 = arith.truncf %266 : vector<12x8xf32> to vector<12x8xbf16>
    %cst_60 = arith.constant dense<0.000000e+00> : vector<16x8xf32>
    %269 = tpu.matmul %267, %268, %cst_60 {dimension_numbers = #tpu.dot_dimension_numbers<[1], [0], [0], [1], [0, 0, 1, 1], [], []>} : vector<16x12xbf16>, vector<12x8xbf16>, vector<16x8xf32> -> vector<16x8xf32>
    %270 = arith.addf %265, %269 : vector<16x8xf32>
    %271 = vector.extract_strided_slice %144 {offsets = [0, 100], sizes = [12, 8], strides = [1, 1]} : vector<12x112xf32> to vector<12x8xf32>
    %272 = vector.extract_strided_slice %0 {offsets = [0, 300], sizes = [16, 12], strides = [1, 1]} : vector<16x324xbf16> to vector<16x12xbf16>
    %273 = arith.truncf %271 : vector<12x8xf32> to vector<12x8xbf16>
    %cst_61 = arith.constant dense<0.000000e+00> : vector<16x8xf32>
    %274 = tpu.matmul %272, %273, %cst_61 {dimension_numbers = #tpu.dot_dimension_numbers<[1], [0], [0], [1], [0, 0, 1, 1], [], []>} : vector<16x12xbf16>, vector<12x8xbf16>, vector<16x8xf32> -> vector<16x8xf32>
    %275 = arith.addf %270, %274 : vector<16x8xf32>
    %276 = vector.extract_strided_slice %144 {offsets = [0, 104], sizes = [12, 8], strides = [1, 1]} : vector<12x112xf32> to vector<12x8xf32>
    %277 = vector.extract_strided_slice %0 {offsets = [0, 312], sizes = [16, 12], strides = [1, 1]} : vector<16x324xbf16> to vector<16x12xbf16>
    %278 = arith.truncf %276 : vector<12x8xf32> to vector<12x8xbf16>
    %cst_62 = arith.constant dense<0.000000e+00> : vector<16x8xf32>
    %279 = tpu.matmul %277, %278, %cst_62 {dimension_numbers = #tpu.dot_dimension_numbers<[1], [0], [0], [1], [0, 0, 1, 1], [], []>} : vector<16x12xbf16>, vector<12x8xbf16>, vector<16x8xf32> -> vector<16x8xf32>
    %280 = arith.addf %275, %279 : vector<16x8xf32>
    %cst_63 = arith.constant dense<0.000000e+00> : vector<16xf32>
    %281 = vector.multi_reduction <add>, %280, %cst_63 [1] : vector<16x8xf32> to vector<16xf32>
    %282 = vector.shape_cast %281 : vector<16xf32> to vector<16x1xf32>
    %283 = arith.addf %142, %282 : vector<16x1xf32>
    %cst_64 = arith.constant 6.250000e-02 : f32
    %284 = vector.broadcast %cst_64 : f32 to vector<16x1xf32>
    %285 = arith.mulf %283, %284 : vector<16x1xf32>
    %cst_65 = arith.constant 0.000000e+00 : f32
    %286 = vector.broadcast %cst_65 : f32 to vector<16x1xf32>
    %287 = vector.broadcast %285 : vector<16x1xf32> to vector<16x8xf32>
    %288 = arith.subf %139, %287 : vector<16x8xf32>
    %289 = arith.mulf %288, %288 : vector<16x8xf32>
    %cst_66 = arith.constant dense<0.000000e+00> : vector<16xf32>
    %290 = vector.multi_reduction <add>, %289, %cst_66 [1] : vector<16x8xf32> to vector<16xf32>
    %291 = vector.shape_cast %290 : vector<16xf32> to vector<16x1xf32>
    %292 = arith.addf %286, %291 : vector<16x1xf32>
    %293 = vector.broadcast %285 : vector<16x1xf32> to vector<16x8xf32>
    %294 = arith.subf %280, %293 : vector<16x8xf32>
    %295 = arith.mulf %294, %294 : vector<16x8xf32>
    %cst_67 = arith.constant dense<0.000000e+00> : vector<16xf32>
    %296 = vector.multi_reduction <add>, %295, %cst_67 [1] : vector<16x8xf32> to vector<16xf32>
    %297 = vector.shape_cast %296 : vector<16xf32> to vector<16x1xf32>
    %298 = arith.addf %292, %297 : vector<16x1xf32>
    %cst_68 = arith.constant 6.250000e-02 : f32
    %299 = vector.broadcast %cst_68 : f32 to vector<16x1xf32>
    %300 = arith.mulf %298, %299 : vector<16x1xf32>
    %cst_69 = arith.constant 9.99999974E-6 : f32
    %301 = vector.broadcast %cst_69 : f32 to vector<16x1xf32>
    %302 = arith.addf %300, %301 : vector<16x1xf32>
    %303 = math.rsqrt %302 : vector<16x1xf32>
    %c0_70 = arith.constant 0 : index
    %c0_71 = arith.constant 0 : index
    %304 = vector.load %arg3[%c0_70, %c0_71] : memref<16x1xf32, #tpu.memory_space<vmem>>, vector<16x1xf32>
    %305 = arith.mulf %304, %303 : vector<16x1xf32>
    %c0_72 = arith.constant 0 : index
    %c0_73 = arith.constant 0 : index
    %306 = vector.load %arg4[%c0_72, %c0_73] : memref<16x1xf32, #tpu.memory_space<vmem>>, vector<16x1xf32>
    %307 = arith.mulf %285, %305 : vector<16x1xf32>
    %308 = arith.subf %306, %307 : vector<16x1xf32>
    %309 = vector.broadcast %305 : vector<16x1xf32> to vector<16x8xf32>
    %310 = arith.mulf %139, %309 : vector<16x8xf32>
    %311 = vector.broadcast %308 : vector<16x1xf32> to vector<16x8xf32>
    %312 = arith.addf %310, %311 : vector<16x8xf32>
    %cst_74 = arith.constant 0.000000e+00 : f32
    %313 = vector.broadcast %cst_74 : f32 to vector<16x8xf32>
    %314 = arith.maximumf %312, %313 : vector<16x8xf32>
    %315 = vector.broadcast %305 : vector<16x1xf32> to vector<16x8xf32>
    %316 = arith.mulf %280, %315 : vector<16x8xf32>
    %317 = vector.broadcast %308 : vector<16x1xf32> to vector<16x8xf32>
    %318 = arith.addf %316, %317 : vector<16x8xf32>
    %cst_75 = arith.constant 0.000000e+00 : f32
    %319 = vector.broadcast %cst_75 : f32 to vector<16x8xf32>
    %320 = arith.maximumf %318, %319 : vector<16x8xf32>
    %c0_76 = arith.constant 0 : index
    %c0_77 = arith.constant 0 : index
    %c0_78 = arith.constant 0 : index
    %321 = vector.load %arg5[%c0_76, %c0_77, %c0_78] : memref<2x16x8xf32, #tpu.memory_space<vmem>>, vector<1x16x8xf32>
    %322 = vector.shape_cast %321 : vector<1x16x8xf32> to vector<16x8xf32>
    %323 = vector.shape_cast %314 : vector<16x8xf32> to vector<1x16x8xf32>
    tpu.vector_store %arg5[%c0_76, %c0_77, %c0_78], %323 {strides = array<i32>} : memref<2x16x8xf32, #tpu.memory_space<vmem>>, vector<1x16x8xf32>,
    %c1_79 = arith.constant 1 : index
    %c0_80 = arith.constant 0 : index
    %c0_81 = arith.constant 0 : index
    %324 = vector.load %arg5[%c1_79, %c0_80, %c0_81] : memref<2x16x8xf32, #tpu.memory_space<vmem>>, vector<1x16x8xf32>
    %325 = vector.shape_cast %324 : vector<1x16x8xf32> to vector<16x8xf32>
    %326 = vector.shape_cast %320 : vector<16x8xf32> to vector<1x16x8xf32>
    tpu.vector_store %arg5[%c1_79, %c0_80, %c0_81], %326 {strides = array<i32>} : memref<2x16x8xf32, #tpu.memory_space<vmem>>, vector<1x16x8xf32>,
    return
  }
  func.func @transform_0(%arg0: i32) -> (i32, i32, i32) {
    %c0_i32 = arith.constant 0 : i32
    %c0_i32_0 = arith.constant 0 : i32
    %c0_i32_1 = arith.constant 0 : i32
    %c0_i32_2 = arith.constant 0 : i32
    return %c0_i32, %c0_i32_0, %c0_i32_1 : i32, i32, i32
  }
  func.func @transform_1(%arg0: i32) -> (i32, i32) {
    %c0_i32 = arith.constant 0 : i32
    %c0_i32_0 = arith.constant 0 : i32
    return %arg0, %c0_i32 : i32, i32
  }
  func.func @transform_2(%arg0: i32) -> (i32, i32) {
    %c0_i32 = arith.constant 0 : i32
    %c0_i32_0 = arith.constant 0 : i32
    return %arg0, %c0_i32 : i32, i32
  }
  func.func @transform_3(%arg0: i32) -> (i32, i32) {
    %c0_i32 = arith.constant 0 : i32
    %c0_i32_0 = arith.constant 0 : i32
    return %arg0, %c0_i32 : i32, i32
  }
  func.func @transform_4(%arg0: i32) -> (i32, i32, i32) {
    %c0_i32 = arith.constant 0 : i32
    %c0_i32_0 = arith.constant 0 : i32
    %c0_i32_1 = arith.constant 0 : i32
    return %c0_i32, %arg0, %c0_i32_0 : i32, i32, i32
  }
}

module attributes {stable_mosaic.version = 11 : i64} {
  func.func @conv_gap_head_kernel(%arg0: i32, %arg1: memref<2x12x24xf32, #tpu.memory_space<vmem>>, %arg2: memref<48x60xbf16, #tpu.memory_space<vmem>>, %arg3: memref<48x1xf32, #tpu.memory_space<vmem>>, %arg4: memref<48x1xf32, #tpu.memory_space<vmem>>, %arg5: memref<1x48xf32, #tpu.memory_space<vmem>>, %arg6: memref<1x1xf32, #tpu.memory_space<vmem>>, %arg7: memref<1x2xf32, #tpu.memory_space<vmem>>, %arg8: memref<2x8xf32, #tpu.memory_space<vmem>>) attributes {dimension_semantics = [#tpu.dimension_semantics<arbitrary>], iteration_bounds = array<i64: 1>, scalar_prefetch = 0 : i64, scratch_operands = 1 : i64, tpu.core_type = #tpu.core_type<tc>, window_params = [{pipeline_mode = #tpu.pipeline_mode<synchronous>, transform_indices = @transform_0, window_bounds = array<i64: 2, 12, 24>}, {transform_indices = @transform_1, window_bounds = array<i64: 48, 60>}, {transform_indices = @transform_2, window_bounds = array<i64: 48, 1>}, {transform_indices = @transform_3, window_bounds = array<i64: 48, 1>}, {transform_indices = @transform_4, window_bounds = array<i64: 1, 48>}, {pipeline_mode = #tpu.pipeline_mode<synchronous>, transform_indices = @transform_5, window_bounds = array<i64: 1, 1>}, {pipeline_mode = #tpu.pipeline_mode<synchronous>, transform_indices = @transform_6, window_bounds = array<i64: 1, 2>}]} {
    %c0_i32 = arith.constant 0 : i32
    %0 = arith.cmpi eq, %arg0, %c0_i32 : i32
    %1 = arith.extui %0 : i1 to i32
    %c0_i32_0 = arith.constant 0 : i32
    %2 = arith.cmpi ne, %1, %c0_i32_0 : i32
    scf.if %2 {
      %cst_47 = arith.constant 0.000000e+00 : f32
      %124 = vector.broadcast %cst_47 : f32 to vector<2x8xf32>
      %c0_48 = arith.constant 0 : index
      %c0_49 = arith.constant 0 : index
      %125 = vector.load %arg8[%c0_48, %c0_49] : memref<2x8xf32, #tpu.memory_space<vmem>>, vector<2x8xf32>
      tpu.vector_store %arg8[%c0_48, %c0_49], %124 {strides = array<i32>} : memref<2x8xf32, #tpu.memory_space<vmem>>, vector<2x8xf32>,
    } else {
    }
    %c0 = arith.constant 0 : index
    %c0_1 = arith.constant 0 : index
    %3 = vector.load %arg2[%c0, %c0_1] : memref<48x60xbf16, #tpu.memory_space<vmem>>, vector<48x60xbf16>
    %cst = arith.constant 0.000000e+00 : f32
    %4 = vector.broadcast %cst : f32 to vector<48x1xf32>
    %c0_2 = arith.constant 0 : index
    %c0_3 = arith.constant 0 : index
    %c0_4 = arith.constant 0 : index
    %5 = vector.load %arg1[%c0_2, %c0_3, %c0_4] : memref<2x12x24xf32, #tpu.memory_space<vmem>>, vector<1x12x24xf32>
    %6 = vector.shape_cast %5 : vector<1x12x24xf32> to vector<12x24xf32>
    %cst_5 = arith.constant 0.000000e+00 : f32
    %7 = vector.broadcast %cst_5 : f32 to vector<48x8xf32>
    %8 = vector.extract_strided_slice %6 {offsets = [0, 0], sizes = [12, 8], strides = [1, 1]} : vector<12x24xf32> to vector<12x8xf32>
    %9 = vector.extract_strided_slice %3 {offsets = [0, 0], sizes = [48, 12], strides = [1, 1]} : vector<48x60xbf16> to vector<48x12xbf16>
    %10 = arith.truncf %8 : vector<12x8xf32> to vector<12x8xbf16>
    %cst_6 = arith.constant dense<0.000000e+00> : vector<48x8xf32>
    %11 = tpu.matmul %9, %10, %cst_6 {dimension_numbers = #tpu.dot_dimension_numbers<[1], [0], [0], [1], [0, 0, 1, 1], [], []>} : vector<48x12xbf16>, vector<12x8xbf16>, vector<48x8xf32> -> vector<48x8xf32>
    %12 = arith.addf %7, %11 : vector<48x8xf32>
    %13 = vector.extract_strided_slice %6 {offsets = [0, 4], sizes = [12, 8], strides = [1, 1]} : vector<12x24xf32> to vector<12x8xf32>
    %14 = vector.extract_strided_slice %3 {offsets = [0, 12], sizes = [48, 12], strides = [1, 1]} : vector<48x60xbf16> to vector<48x12xbf16>
    %15 = arith.truncf %13 : vector<12x8xf32> to vector<12x8xbf16>
    %cst_7 = arith.constant dense<0.000000e+00> : vector<48x8xf32>
    %16 = tpu.matmul %14, %15, %cst_7 {dimension_numbers = #tpu.dot_dimension_numbers<[1], [0], [0], [1], [0, 0, 1, 1], [], []>} : vector<48x12xbf16>, vector<12x8xbf16>, vector<48x8xf32> -> vector<48x8xf32>
    %17 = arith.addf %12, %16 : vector<48x8xf32>
    %18 = vector.extract_strided_slice %6 {offsets = [0, 8], sizes = [12, 8], strides = [1, 1]} : vector<12x24xf32> to vector<12x8xf32>
    %19 = vector.extract_strided_slice %3 {offsets = [0, 24], sizes = [48, 12], strides = [1, 1]} : vector<48x60xbf16> to vector<48x12xbf16>
    %20 = arith.truncf %18 : vector<12x8xf32> to vector<12x8xbf16>
    %cst_8 = arith.constant dense<0.000000e+00> : vector<48x8xf32>
    %21 = tpu.matmul %19, %20, %cst_8 {dimension_numbers = #tpu.dot_dimension_numbers<[1], [0], [0], [1], [0, 0, 1, 1], [], []>} : vector<48x12xbf16>, vector<12x8xbf16>, vector<48x8xf32> -> vector<48x8xf32>
    %22 = arith.addf %17, %21 : vector<48x8xf32>
    %23 = vector.extract_strided_slice %6 {offsets = [0, 12], sizes = [12, 8], strides = [1, 1]} : vector<12x24xf32> to vector<12x8xf32>
    %24 = vector.extract_strided_slice %3 {offsets = [0, 36], sizes = [48, 12], strides = [1, 1]} : vector<48x60xbf16> to vector<48x12xbf16>
    %25 = arith.truncf %23 : vector<12x8xf32> to vector<12x8xbf16>
    %cst_9 = arith.constant dense<0.000000e+00> : vector<48x8xf32>
    %26 = tpu.matmul %24, %25, %cst_9 {dimension_numbers = #tpu.dot_dimension_numbers<[1], [0], [0], [1], [0, 0, 1, 1], [], []>} : vector<48x12xbf16>, vector<12x8xbf16>, vector<48x8xf32> -> vector<48x8xf32>
    %27 = arith.addf %22, %26 : vector<48x8xf32>
    %28 = vector.extract_strided_slice %6 {offsets = [0, 16], sizes = [12, 8], strides = [1, 1]} : vector<12x24xf32> to vector<12x8xf32>
    %29 = vector.extract_strided_slice %3 {offsets = [0, 48], sizes = [48, 12], strides = [1, 1]} : vector<48x60xbf16> to vector<48x12xbf16>
    %30 = arith.truncf %28 : vector<12x8xf32> to vector<12x8xbf16>
    %cst_10 = arith.constant dense<0.000000e+00> : vector<48x8xf32>
    %31 = tpu.matmul %29, %30, %cst_10 {dimension_numbers = #tpu.dot_dimension_numbers<[1], [0], [0], [1], [0, 0, 1, 1], [], []>} : vector<48x12xbf16>, vector<12x8xbf16>, vector<48x8xf32> -> vector<48x8xf32>
    %32 = arith.addf %27, %31 : vector<48x8xf32>
    %cst_11 = arith.constant dense<0.000000e+00> : vector<48xf32>
    %33 = vector.multi_reduction <add>, %32, %cst_11 [1] : vector<48x8xf32> to vector<48xf32>
    %34 = vector.shape_cast %33 : vector<48xf32> to vector<48x1xf32>
    %35 = arith.addf %4, %34 : vector<48x1xf32>
    %c1 = arith.constant 1 : index
    %c0_12 = arith.constant 0 : index
    %c0_13 = arith.constant 0 : index
    %36 = vector.load %arg1[%c1, %c0_12, %c0_13] : memref<2x12x24xf32, #tpu.memory_space<vmem>>, vector<1x12x24xf32>
    %37 = vector.shape_cast %36 : vector<1x12x24xf32> to vector<12x24xf32>
    %cst_14 = arith.constant 0.000000e+00 : f32
    %38 = vector.broadcast %cst_14 : f32 to vector<48x8xf32>
    %39 = vector.extract_strided_slice %37 {offsets = [0, 0], sizes = [12, 8], strides = [1, 1]} : vector<12x24xf32> to vector<12x8xf32>
    %40 = vector.extract_strided_slice %3 {offsets = [0, 0], sizes = [48, 12], strides = [1, 1]} : vector<48x60xbf16> to vector<48x12xbf16>
    %41 = arith.truncf %39 : vector<12x8xf32> to vector<12x8xbf16>
    %cst_15 = arith.constant dense<0.000000e+00> : vector<48x8xf32>
    %42 = tpu.matmul %40, %41, %cst_15 {dimension_numbers = #tpu.dot_dimension_numbers<[1], [0], [0], [1], [0, 0, 1, 1], [], []>} : vector<48x12xbf16>, vector<12x8xbf16>, vector<48x8xf32> -> vector<48x8xf32>
    %43 = arith.addf %38, %42 : vector<48x8xf32>
    %44 = vector.extract_strided_slice %37 {offsets = [0, 4], sizes = [12, 8], strides = [1, 1]} : vector<12x24xf32> to vector<12x8xf32>
    %45 = vector.extract_strided_slice %3 {offsets = [0, 12], sizes = [48, 12], strides = [1, 1]} : vector<48x60xbf16> to vector<48x12xbf16>
    %46 = arith.truncf %44 : vector<12x8xf32> to vector<12x8xbf16>
    %cst_16 = arith.constant dense<0.000000e+00> : vector<48x8xf32>
    %47 = tpu.matmul %45, %46, %cst_16 {dimension_numbers = #tpu.dot_dimension_numbers<[1], [0], [0], [1], [0, 0, 1, 1], [], []>} : vector<48x12xbf16>, vector<12x8xbf16>, vector<48x8xf32> -> vector<48x8xf32>
    %48 = arith.addf %43, %47 : vector<48x8xf32>
    %49 = vector.extract_strided_slice %37 {offsets = [0, 8], sizes = [12, 8], strides = [1, 1]} : vector<12x24xf32> to vector<12x8xf32>
    %50 = vector.extract_strided_slice %3 {offsets = [0, 24], sizes = [48, 12], strides = [1, 1]} : vector<48x60xbf16> to vector<48x12xbf16>
    %51 = arith.truncf %49 : vector<12x8xf32> to vector<12x8xbf16>
    %cst_17 = arith.constant dense<0.000000e+00> : vector<48x8xf32>
    %52 = tpu.matmul %50, %51, %cst_17 {dimension_numbers = #tpu.dot_dimension_numbers<[1], [0], [0], [1], [0, 0, 1, 1], [], []>} : vector<48x12xbf16>, vector<12x8xbf16>, vector<48x8xf32> -> vector<48x8xf32>
    %53 = arith.addf %48, %52 : vector<48x8xf32>
    %54 = vector.extract_strided_slice %37 {offsets = [0, 12], sizes = [12, 8], strides = [1, 1]} : vector<12x24xf32> to vector<12x8xf32>
    %55 = vector.extract_strided_slice %3 {offsets = [0, 36], sizes = [48, 12], strides = [1, 1]} : vector<48x60xbf16> to vector<48x12xbf16>
    %56 = arith.truncf %54 : vector<12x8xf32> to vector<12x8xbf16>
    %cst_18 = arith.constant dense<0.000000e+00> : vector<48x8xf32>
    %57 = tpu.matmul %55, %56, %cst_18 {dimension_numbers = #tpu.dot_dimension_numbers<[1], [0], [0], [1], [0, 0, 1, 1], [], []>} : vector<48x12xbf16>, vector<12x8xbf16>, vector<48x8xf32> -> vector<48x8xf32>
    %58 = arith.addf %53, %57 : vector<48x8xf32>
    %59 = vector.extract_strided_slice %37 {offsets = [0, 16], sizes = [12, 8], strides = [1, 1]} : vector<12x24xf32> to vector<12x8xf32>
    %60 = vector.extract_strided_slice %3 {offsets = [0, 48], sizes = [48, 12], strides = [1, 1]} : vector<48x60xbf16> to vector<48x12xbf16>
    %61 = arith.truncf %59 : vector<12x8xf32> to vector<12x8xbf16>
    %cst_19 = arith.constant dense<0.000000e+00> : vector<48x8xf32>
    %62 = tpu.matmul %60, %61, %cst_19 {dimension_numbers = #tpu.dot_dimension_numbers<[1], [0], [0], [1], [0, 0, 1, 1], [], []>} : vector<48x12xbf16>, vector<12x8xbf16>, vector<48x8xf32> -> vector<48x8xf32>
    %63 = arith.addf %58, %62 : vector<48x8xf32>
    %cst_20 = arith.constant dense<0.000000e+00> : vector<48xf32>
    %64 = vector.multi_reduction <add>, %63, %cst_20 [1] : vector<48x8xf32> to vector<48xf32>
    %65 = vector.shape_cast %64 : vector<48xf32> to vector<48x1xf32>
    %66 = arith.addf %35, %65 : vector<48x1xf32>
    %cst_21 = arith.constant 6.250000e-02 : f32
    %67 = vector.broadcast %cst_21 : f32 to vector<48x1xf32>
    %68 = arith.mulf %66, %67 : vector<48x1xf32>
    %cst_22 = arith.constant 0.000000e+00 : f32
    %69 = vector.broadcast %cst_22 : f32 to vector<48x1xf32>
    %70 = vector.broadcast %68 : vector<48x1xf32> to vector<48x8xf32>
    %71 = arith.subf %32, %70 : vector<48x8xf32>
    %72 = arith.mulf %71, %71 : vector<48x8xf32>
    %cst_23 = arith.constant dense<0.000000e+00> : vector<48xf32>
    %73 = vector.multi_reduction <add>, %72, %cst_23 [1] : vector<48x8xf32> to vector<48xf32>
    %74 = vector.shape_cast %73 : vector<48xf32> to vector<48x1xf32>
    %75 = arith.addf %69, %74 : vector<48x1xf32>
    %76 = vector.broadcast %68 : vector<48x1xf32> to vector<48x8xf32>
    %77 = arith.subf %63, %76 : vector<48x8xf32>
    %78 = arith.mulf %77, %77 : vector<48x8xf32>
    %cst_24 = arith.constant dense<0.000000e+00> : vector<48xf32>
    %79 = vector.multi_reduction <add>, %78, %cst_24 [1] : vector<48x8xf32> to vector<48xf32>
    %80 = vector.shape_cast %79 : vector<48xf32> to vector<48x1xf32>
    %81 = arith.addf %75, %80 : vector<48x1xf32>
    %cst_25 = arith.constant 6.250000e-02 : f32
    %82 = vector.broadcast %cst_25 : f32 to vector<48x1xf32>
    %83 = arith.mulf %81, %82 : vector<48x1xf32>
    %cst_26 = arith.constant 9.99999974E-6 : f32
    %84 = vector.broadcast %cst_26 : f32 to vector<48x1xf32>
    %85 = arith.addf %83, %84 : vector<48x1xf32>
    %86 = math.rsqrt %85 : vector<48x1xf32>
    %c0_27 = arith.constant 0 : index
    %c0_28 = arith.constant 0 : index
    %87 = vector.load %arg3[%c0_27, %c0_28] : memref<48x1xf32, #tpu.memory_space<vmem>>, vector<48x1xf32>
    %88 = arith.mulf %87, %86 : vector<48x1xf32>
    %c0_29 = arith.constant 0 : index
    %c0_30 = arith.constant 0 : index
    %89 = vector.load %arg4[%c0_29, %c0_30] : memref<48x1xf32, #tpu.memory_space<vmem>>, vector<48x1xf32>
    %90 = arith.mulf %68, %88 : vector<48x1xf32>
    %91 = arith.subf %89, %90 : vector<48x1xf32>
    %92 = vector.broadcast %88 : vector<48x1xf32> to vector<48x8xf32>
    %93 = arith.mulf %32, %92 : vector<48x8xf32>
    %94 = vector.broadcast %91 : vector<48x1xf32> to vector<48x8xf32>
    %95 = arith.addf %93, %94 : vector<48x8xf32>
    %cst_31 = arith.constant 0.000000e+00 : f32
    %96 = vector.broadcast %cst_31 : f32 to vector<48x8xf32>
    %97 = arith.maximumf %95, %96 : vector<48x8xf32>
    %98 = vector.broadcast %88 : vector<48x1xf32> to vector<48x8xf32>
    %99 = arith.mulf %63, %98 : vector<48x8xf32>
    %100 = vector.broadcast %91 : vector<48x1xf32> to vector<48x8xf32>
    %101 = arith.addf %99, %100 : vector<48x8xf32>
    %cst_32 = arith.constant 0.000000e+00 : f32
    %102 = vector.broadcast %cst_32 : f32 to vector<48x8xf32>
    %103 = arith.maximumf %101, %102 : vector<48x8xf32>
    %c0_33 = arith.constant 0 : index
    %c0_34 = arith.constant 0 : index
    %104 = vector.load %arg5[%c0_33, %c0_34] : memref<1x48xf32, #tpu.memory_space<vmem>>, vector<1x48xf32>
    %cst_35 = arith.constant dense<0.000000e+00> : vector<1x8xf32>
    %105 = tpu.matmul %104, %97, %cst_35 {dimension_numbers = #tpu.dot_dimension_numbers<[1], [0], [0], [1], [0, 0, 1, 1], [], []>} : vector<1x48xf32>, vector<48x8xf32>, vector<1x8xf32> -> vector<1x8xf32>
    %c0_36 = arith.constant 0 : index
    %c0_37 = arith.constant 0 : index
    %106 = vector.load %arg8[%c0_36, %c0_37] : memref<2x8xf32, #tpu.memory_space<vmem>>, vector<1x8xf32>
    %107 = vector.shape_cast %106 : vector<1x8xf32> to vector<8xf32>
    %108 = vector.shape_cast %105 : vector<1x8xf32> to vector<8xf32>
    %109 = arith.addf %107, %108 : vector<8xf32>
    %c0_38 = arith.constant 0 : index
    %c0_39 = arith.constant 0 : index
    %110 = vector.load %arg8[%c0_38, %c0_39] : memref<2x8xf32, #tpu.memory_space<vmem>>, vector<1x8xf32>
    %111 = vector.shape_cast %110 : vector<1x8xf32> to vector<8xf32>
    %112 = vector.shape_cast %109 : vector<8xf32> to vector<1x8xf32>
    tpu.vector_store %arg8[%c0_38, %c0_39], %112 {strides = array<i32>} : memref<2x8xf32, #tpu.memory_space<vmem>>, vector<1x8xf32>,
    %cst_40 = arith.constant dense<0.000000e+00> : vector<1x8xf32>
    %113 = tpu.matmul %104, %103, %cst_40 {dimension_numbers = #tpu.dot_dimension_numbers<[1], [0], [0], [1], [0, 0, 1, 1], [], []>} : vector<1x48xf32>, vector<48x8xf32>, vector<1x8xf32> -> vector<1x8xf32>
    %c1_41 = arith.constant 1 : index
    %c0_42 = arith.constant 0 : index
    %114 = vector.load %arg8[%c1_41, %c0_42] : memref<2x8xf32, #tpu.memory_space<vmem>>, vector<1x8xf32>
    %115 = vector.shape_cast %114 : vector<1x8xf32> to vector<8xf32>
    %116 = vector.shape_cast %113 : vector<1x8xf32> to vector<8xf32>
    %117 = arith.addf %115, %116 : vector<8xf32>
    %c1_43 = arith.constant 1 : index
    %c0_44 = arith.constant 0 : index
    %118 = vector.load %arg8[%c1_43, %c0_44] : memref<2x8xf32, #tpu.memory_space<vmem>>, vector<1x8xf32>
    %119 = vector.shape_cast %118 : vector<1x8xf32> to vector<8xf32>
    %120 = vector.shape_cast %117 : vector<8xf32> to vector<1x8xf32>
    tpu.vector_store %arg8[%c1_43, %c0_44], %120 {strides = array<i32>} : memref<2x8xf32, #tpu.memory_space<vmem>>, vector<1x8xf32>,
    %c0_i32_45 = arith.constant 0 : i32
    %121 = arith.cmpi eq, %arg0, %c0_i32_45 : i32
    %122 = arith.extui %121 : i1 to i32
    %c0_i32_46 = arith.constant 0 : i32
    %123 = arith.cmpi ne, %122, %c0_i32_46 : i32
    scf.if %123 {
      %c0_47 = arith.constant 0 : index
      %c0_48 = arith.constant 0 : index
      %124 = vector.load %arg8[%c0_47, %c0_48] : memref<2x8xf32, #tpu.memory_space<vmem>>, vector<2x8xf32>
      %cst_49 = arith.constant dense<0.000000e+00> : vector<2xf32>
      %125 = vector.multi_reduction <add>, %124, %cst_49 [1] : vector<2x8xf32> to vector<2xf32>
      %cst_50 = arith.constant 8.000000e+00 : f32
      %126 = vector.broadcast %cst_50 : f32 to vector<2xf32>
      %127 = arith.divf %125, %126 : vector<2xf32>
      %128 = vector.shape_cast %127 : vector<2xf32> to vector<1x2xf32>
      %c0_51 = arith.constant 0 : index
      %c0_52 = arith.constant 0 : index
      %129 = vector.load %arg6[%c0_51, %c0_52] : memref<1x1xf32, #tpu.memory_space<vmem>>, vector<1x1xf32>
      %130 = vector.broadcast %129 : vector<1x1xf32> to vector<1x2xf32>
      %131 = arith.addf %128, %130 : vector<1x2xf32>
      %c0_53 = arith.constant 0 : index
      %c0_54 = arith.constant 0 : index
      %132 = vector.load %arg7[%c0_53, %c0_54] : memref<1x2xf32, #tpu.memory_space<vmem>>, vector<1x2xf32>
      tpu.vector_store %arg7[%c0_53, %c0_54], %131 {strides = array<i32>} : memref<1x2xf32, #tpu.memory_space<vmem>>, vector<1x2xf32>,
    } else {
    }
    return
  }
  func.func @transform_0(%arg0: i32) -> (i32, i32, i32) {
    %c0_i32 = arith.constant 0 : i32
    %c0_i32_0 = arith.constant 0 : i32
    %c0_i32_1 = arith.constant 0 : i32
    %c0_i32_2 = arith.constant 0 : i32
    return %c0_i32, %c0_i32_0, %c0_i32_1 : i32, i32, i32
  }
  func.func @transform_1(%arg0: i32) -> (i32, i32) {
    %c0_i32 = arith.constant 0 : i32
    %c0_i32_0 = arith.constant 0 : i32
    return %arg0, %c0_i32 : i32, i32
  }
  func.func @transform_2(%arg0: i32) -> (i32, i32) {
    %c0_i32 = arith.constant 0 : i32
    %c0_i32_0 = arith.constant 0 : i32
    return %arg0, %c0_i32 : i32, i32
  }
  func.func @transform_3(%arg0: i32) -> (i32, i32) {
    %c0_i32 = arith.constant 0 : i32
    %c0_i32_0 = arith.constant 0 : i32
    return %arg0, %c0_i32 : i32, i32
  }
  func.func @transform_4(%arg0: i32) -> (i32, i32) {
    %c0_i32 = arith.constant 0 : i32
    %c0_i32_0 = arith.constant 0 : i32
    return %c0_i32, %arg0 : i32, i32
  }
  func.func @transform_5(%arg0: i32) -> (i32, i32) {
    %c0_i32 = arith.constant 0 : i32
    %c0_i32_0 = arith.constant 0 : i32
    %c0_i32_1 = arith.constant 0 : i32
    return %c0_i32, %c0_i32_0 : i32, i32
  }
  func.func @transform_6(%arg0: i32) -> (i32, i32) {
    %c0_i32 = arith.constant 0 : i32
    %c0_i32_0 = arith.constant 0 : i32
    %c0_i32_1 = arith.constant 0 : i32
    return %c0_i32, %c0_i32_0 : i32, i32
  }
}

</mosaic_0001>

<bundles_post_ra>
// kernel: model_forward.4
= control target key start
LH: loop header
LB: loop body
LE: loop exit
PB: predicated region body
PF: predicated region fallthrough
CT: control target
= control target key end

     0   :  { %v3269_v3 = vmov 0.0   ;;  %vm1993_vm0 = vmmov 0   ;;  %vm85_vm1 = vcmask 8192   ;;  %v3268_v29 = vlaneseq  ;;  %s3259_s2 = inlined_call_operand.vmem [shape: f32[128,384], index: 2, kind: input, shape index: {}]   ;;  %s3260_s0 = inlined_call_operand.vmem [shape: f32[8,2], index: 0, kind: input, shape index: {}]   ;;  %s3261_s7 = inlined_call_operand.vmem [shape: f32[8,2], index: 7, kind: output, shape index: {0}]   ;;  %s3262_s6 = inlined_call_operand.<no memory space> [shape: f32[1,1], index: 6, kind: input, shape index: {}]   ;;  %s3263_s1 = inlined_call_operand.vmem [shape: f32[1,384], index: 1, kind: input, shape index: {}]   ;;  %s3264_s3 = inlined_call_operand.vmem [shape: f32[1,384], index: 3, kind: input, shape index: {}]   ;;  %s3265_s4 = inlined_call_operand.vmem [shape: f32[1,384], index: 4, kind: input, shape index: {}]   ;;  %s3266_s5 = inlined_call_operand.vmem [shape: f32[1,128], index: 5, kind: input, shape index: {}]   ;;  %s3267_s8 = inlined_call_operand.vmem [shape: f32[7,2], index: 8, kind: output, shape index: {1}]  }
   0x1   :  { %v2042_v0 = vld [vmem:[%s3259_s2 + $0x170] sm:$0xff]  ;;  %v2047_v1 = vld [vmem:[%s3259_s2 + $0x168] sm:$0xff]  ;;  %v2052_v2 = vld [vmem:[%s3259_s2 + $0x158] sm:$0xff]  ;;  %212 = vmatprep.mubr.f32.mxu0 %v3269_v3  ;;  %1624 = vmatprep.subr.mxu1 %v3269_v3  ;;  %v14_v54 = vstv %s3262_s6  ;;  %vm318_vm2 = vcmask 1041408  }
   0x2   :  { %3325 = vst [vmem:[#allocation3_spill] sm:$0xff] %v2042_v0  ;;  %148 = vmatprep.subr.mxu0 %v2042_v0  ;;  %v2060_v4 = vld [vmem:[%s3259_s2 + $0x150] sm:$0xff]  ;;  %1656 = vmatprep.mubr.msk.f32.mxu1 %vm1993_vm0, %v3269_v3  ;;  %v2068_v5 = vld [vmem:[%s3259_s2 + $0x140] sm:$0xff]  ;;  %v2074_v6 = vld [vmem:[%s3259_s2 + $0x138] sm:$0xff]  ;;  %v2253_v36 = vshrl.u32 %v3268_v29, 7 }
   0x3   :  { %149 = vmatpush1.msra.mxu0 %v2047_v1  ;;  %v2080_v7 = vld [vmem:[%s3259_s2 + $0x128] sm:$0xff]  ;;  %v2086_v8 = vld [vmem:[%s3259_s2 + $0x120] sm:$0xff]  ;;  %v2092_v9 = vld [vmem:[%s3259_s2 + $0x110] sm:$0xff]  ;;  %15 = vst [vmem:[#allocation2] sm:$0x1] %v14_v54 }
   0x4   :  { %150 = vmatprep.subr.mxu0 %v2052_v2  ;;  %v2098_v10 = vld [vmem:[%s3259_s2 + $0x108] sm:$0xff]  ;;  %v2104_v11 = vld [vmem:[%s3259_s2 + $0xf8] sm:$0xff]  ;;  %v2110_v12 = vld [vmem:[%s3259_s2 + $0xf0] sm:$0xff]  ;;  %v2294_v43 = vsub.s32 0, %v2253_v36  ;;  %v101_v61 = vsub.s32 1, %v2253_v36 }
   0x5   :  { %151 = vmatpush1.msra.mxu0 %v2060_v4  ;;  %v2116_v13 = vld [vmem:[%s3259_s2 + $0xe0] sm:$0xff]  ;;  %v2121_v14 = vld [vmem:[%s3259_s2 + $0x178] sm:$0xff]  ;;  %v2139_v17 = vld [vmem:[%s3259_s2 + $0xc8] sm:$0xff] }
   0x6   :  { %152 = vmatprep.subr.mxu0 %v2068_v5  ;;  %v2127_v15 = vld [vmem:[%s3259_s2 + $0xd8] sm:$0xff]  ;;  %1625 = vmatpush3.msra.mxu1 %v2121_v14  ;;  %v2133_v16 = vld [vmem:[%s3259_s2 + $0x160] sm:$0xff]  ;;  %v2145_v18 = vld [vmem:[%s3259_s2 + $0x148] sm:$0xff]  ;;  %3330 = vst [vmem:[#allocation8_spill] sm:$0xff] %v2294_v43 }
   0x7   :  { %153 = vmatpush1.msra.mxu0 %v2074_v6  ;;  %1626 = vmatprep.subr.mxu1 %v3269_v3  ;;  %v2151_v19 = vld [vmem:[%s3259_s2 + $0xc0] sm:$0xff]  ;;  %v2158_v20 = vld [vmem:[%s3259_s2 + $0xb0] sm:$0xff]  ;;  %v2170_v22 = vld [vmem:[%s3259_s2 + $0xa8] sm:$0xff] }
   0x8   :  { %154 = vmatprep.subr.mxu0 %v2080_v7  ;;  %1627 = vmatpush3.msra.mxu1 %v2133_v16  ;;  %v2164_v21 = vld [vmem:[%s3259_s2 + $0x130] sm:$0xff]  ;;  %v2177_v23 = vld [vmem:[%s3259_s2 + $0x98] sm:$0xff]  ;;  %v2188_v25 = vld [vmem:[%s3260_s0] sm:$0x1] }
   0x9   :  { %155 = vmatpush1.msra.mxu0 %v2086_v8  ;;  %1628 = vmatprep.subr.mxu1 %v3269_v3  ;;  %v2183_v24 = vld [vmem:[%s3259_s2 + $0x118] sm:$0xff]  ;;  %v2194_v26 = vld [vmem:[%s3259_s2 + $0x90] sm:$0xff]  ;;  %86 = vst.msk [vmem:[%s3261_s7] sm:$0x1] %vm85_vm1, %v2188_v25  ;;  %v2206_v27 = vld [vmem:[%s3259_s2 + $0x80] sm:$0xff]  ;;  %v90_v49 = vrot.slane %v2188_v25, %v2294_v43 }
   0xa   :  { %156 = vmatprep.subr.mxu0 %v2092_v9  ;;  %1629 = vmatpush3.msra.mxu1 %v2145_v18  ;;  %v2212_v28 = vld [vmem:[%s3259_s2 + $0x100] sm:$0xff]  ;;  %v2218_v30 = vld [vmem:[%s3259_s2 + $0x78] sm:$0xff]  ;;  %v2225_v31 = vld [vmem:[%s3259_s2 + $0x68] sm:$0xff] }
   0xb   :  { %157 = vmatpush1.msra.mxu0 %v2098_v10  ;;  %1630 = vmatprep.subr.mxu1 %v3269_v3  ;;  %v2231_v32 = vld [vmem:[%s3259_s2 + $0xe8] sm:$0xff]  ;;  %v2237_v33 = vld [vmem:[%s3259_s2 + $0x60] sm:$0xff]  ;;  %v2244_v34 = vld [vmem:[%s3259_s2 + $0x50] sm:$0xff] }
   0xc   :  { %158 = vmatprep.subr.mxu0 %v2104_v11  ;;  %1631 = vmatpush3.msra.mxu1 %v2164_v21  ;;  %v2250_v35 = vld [vmem:[%s3259_s2 + $0xd0] sm:$0xff]  ;;  %v2259_v37 = vld [vmem:[%s3259_s2 + $0x48] sm:$0xff]  ;;  %v2266_v38 = vld [vmem:[%s3259_s2 + $0x38] sm:$0xff] }
   0xd   :  { %159 = vmatpush1.msra.mxu0 %v2110_v12  ;;  %1632 = vmatprep.subr.mxu1 %v3269_v3  ;;  %3326 = vst [vmem:[#allocation4_spill] sm:$0xff] %v2259_v37  ;;  %3327 = vst [vmem:[#allocation5_spill] sm:$0xff] %v2266_v38  ;;  %v2272_v39 = vld [vmem:[%s3259_s2 + $0xb8] sm:$0xff]  ;;  %v2278_v40 = vld [vmem:[%s3259_s2 + $0x30] sm:$0xff] }
   0xe   :  { %160 = vmatprep.subr.mxu0 %v2116_v13  ;;  %1633 = vmatpush3.msra.mxu1 %v2183_v24  ;;  %3328 = vst [vmem:[#allocation6_spill] sm:$0xff] %v2278_v40  ;;  %v2285_v41 = vld [vmem:[%s3259_s2 + $0x20] sm:$0xff]  ;;  %v2300_v44 = vld [vmem:[%s3259_s2 + $0x18] sm:$0xff]  ;;  %v2307_v45 = vld [vmem:[%s3259_s2 + $0x8] sm:$0xff] }
   0xf   :  { %161 = vmatpush1.msra.mxu0 %v2127_v15  ;;  %1634 = vmatprep.subr.mxu1 %v3269_v3  ;;  %3329 = vst [vmem:[#allocation7_spill] sm:$0xff] %v2285_v41  ;;  %v2291_v42 = vld [vmem:[%s3259_s2 + $0xa0] sm:$0xff]  ;;  %3331 = vst [vmem:[#allocation9_spill] sm:$0xff] %v2300_v44  ;;  %v2313_v46 = vld [vmem:[%s3259_s2 + $0x88] sm:$0xff] }
  0x10   :  { %162 = vmatprep.subr.mxu0 %v2139_v17  ;;  %1635 = vmatpush3.msra.mxu1 %v2212_v28  ;;  %3332 = vst [vmem:[#allocation10_spill] sm:$0xff] %v2307_v45  ;;  %v2319_v47 = vld [vmem:[%s3259_s2] sm:$0xff]  ;;  %v2327_v48 = vld [vmem:[%s3259_s2 + $0x70] sm:$0xff]  ;;  %v2338_v50 = vld [vmem:[%s3259_s2 + $0x58] sm:$0xff] }
  0x11   :  { %163 = vmatpush1.msra.mxu0 %v2151_v19  ;;  %1636 = vmatprep.subr.mxu1 %v3269_v3  ;;  %3333 = vst [vmem:[#allocation11_spill] sm:$0xff] %v2319_v47  ;;  %3334 = vst [vmem:[#allocation12_spill] sm:$0xff] %v2338_v50  ;;  %v2346_v51 = vld [vmem:[%s3259_s2 + $0x40] sm:$0xff]  ;;  %v2354_v52 = vld [vmem:[%s3259_s2 + $0x28] sm:$0xff] }
  0x12   :  { %164 = vmatprep.subr.mxu0 %v2158_v20  ;;  %1637 = vmatpush3.msra.mxu1 %v2231_v32  ;;  %3335 = vst [vmem:[#allocation13_spill] sm:$0xff] %v2346_v51  ;;  %3336 = vst [vmem:[#allocation14_spill] sm:$0xff] %v2354_v52  ;;  %v2363_v53 = vld [vmem:[%s3259_s2 + $0x10] sm:$0xff]  ;;  %v82_v55 = vld [vmem:[#allocation2] sm:$0x1] }
  0x13   :  { %165 = vmatpush1.msra.mxu0 %v2170_v22  ;;  %1638 = vmatprep.subr.mxu1 %v3269_v3  ;;  %3337 = vst [vmem:[#allocation15_spill] sm:$0xff] %v2363_v53  ;;  %1869 = vpush %v82_v55  ;;  %v30_v56 = vld [vmem:[%s3263_s1] sm:$0x7] }
  0x14   :  { %166 = vmatprep.subr.mxu0 %v2177_v23  ;;  %1639 = vmatpush3.msra.mxu1 %v2250_v35  ;;  %v2442_v57 = vrot.slane %v30_v56, %v2294_v43  ;;  %v79_v58 = vld [vmem:[%s3264_s3] sm:$0x7] }
  0x15   :  { %167 = vmatpush1.msra.mxu0 %v2194_v26  ;;  %1640 = vmatprep.subr.mxu1 %v3269_v3  ;;  %v80_v60 = vld [vmem:[%s3265_s4] sm:$0x7]  ;;  %v2453_v63 = vrot.slane %v79_v58, %v2294_v43 }
  0x16   :  { %168 = vmatprep.subr.mxu0 %v2206_v27  ;;  %1641 = vmatpush3.msra.mxu1 %v2272_v39  ;;  %3338 = vst [vmem:[#allocation16_spill] sm:$0xff] %v2442_v57  ;;  %v2456_v25 = vrot.slane %v80_v60, %v2294_v43 }
  0x17   :  { %169 = vmatpush1.msra.mxu0 %v2218_v30  ;;  %1642 = vmatprep.subr.mxu1 %v3269_v3  ;;  %3339 = vst [vmem:[#allocation17_spill] sm:$0xff] %v2453_v63 }
  0x18   :  { %170 = vmatprep.subr.mxu0 %v2225_v31  ;;  %1643 = vmatpush3.msra.mxu1 %v2291_v42  ;;  %3340 = vst [vmem:[#allocation18_spill] sm:$0xff] %v2456_v25 }
  0x19   :  { %171 = vmatpush1.msra.mxu0 %v2237_v33  ;;  %1644 = vmatprep.subr.mxu1 %v3269_v3 }
  0x1a   :  { %172 = vmatprep.subr.mxu0 %v2244_v34  ;;  %1645 = vmatpush3.msra.mxu1 %v2313_v46 }
  0x1b   :  { %173 = vmatpush1.msra.mxu0 %v2259_v37  ;;  %1646 = vmatprep.subr.mxu1 %v3269_v3 }
  0x1c   :  { %174 = vmatprep.subr.mxu0 %v2266_v38  ;;  %1647 = vmatpush3.msra.mxu1 %v2327_v48 }
  0x1d   :  { %175 = vmatpush1.msra.mxu0 %v2278_v40  ;;  %1648 = vmatprep.subr.mxu1 %v3269_v3 }
  0x1e   :  { %176 = vmatprep.subr.mxu0 %v2285_v41  ;;  %92 = vbcast.lane.b32.xlu0 %v90_v49, 256  ;;  %v2458_v49 = vrot.slane %v30_v56, %v101_v61 }
  0x1f   :  { %177 = vmatpush1.msra.mxu0 %v2300_v44  ;;  %1649 = vmatpush3.msra.mxu1 %v2338_v50 }
  0x20   :  { %178 = vmatprep.subr.mxu0 %v2307_v45  ;;  %1650 = vmatprep.subr.mxu1 %v3269_v3  ;;  %3341 = vst [vmem:[#allocation19_spill] sm:$0xff] %v2458_v49 }
  0x21   :  { %179 = vmatpush1.msra.mxu0 %v2319_v47  ;;  %1651 = vmatpush3.msra.mxu1 %v2346_v51 }
  0x22   :  { %213 = vmatmul.mubr.f32.vlgmr.msra.gmra.mxu0 %v3269_v3  ;;  %347 = vmatprep.subr.mxu0 %v2042_v0 }
  0x23   :  { %348 = vmatpush1.msra.mxu0 %v2047_v1  ;;  %1652 = vmatprep.subr.mxu1 %v3269_v3 }
  0x24   :  { %349 = vmatprep.subr.mxu0 %v2052_v2  ;;  %1653 = vmatpush3.msra.mxu1 %v2354_v52 }
  0x25   :  { %350 = vmatpush1.msra.mxu0 %v2060_v4  ;;  %1654 = vmatprep.subr.mxu1 %v3269_v3 }
  0x26   :  { %351 = vmatprep.subr.mxu0 %v2068_v5  ;;  %1655 = vmatpush3.msra.mxu1 %v2363_v53 }
  0x27   :  { %352 = vmatpush1.msra.mxu0 %v2074_v6  ;;  %1657 = vmatmul.mubr.f32.vlgmr.msra.gmra.mxu1 %v3269_v3 }
  0x28   :  { %353 = vmatprep.subr.mxu0 %v2080_v7  ;;  %1659 = vmatprep.subr.mxu1 %v3269_v3 }
  0x29   :  { %1660 = vmatpush3.msra.mxu1 %v2121_v14  ;;  %354 = vmatpush1.msra.mxu0 %v2086_v8 }
  0x2a   :  { %1661 = vmatprep.subr.mxu1 %v3269_v3  ;;  %355 = vmatprep.subr.mxu0 %v2092_v9 }
  0x2b   :  { %1662 = vmatpush3.msra.mxu1 %v2133_v16  ;;  %356 = vmatpush1.msra.mxu0 %v2098_v10 }
  0x2c   :  { %1663 = vmatprep.subr.mxu1 %v3269_v3  ;;  %357 = vmatprep.subr.mxu0 %v2104_v11 }
  0x2d   :  { %1664 = vmatpush3.msra.mxu1 %v2145_v18  ;;  %358 = vmatpush1.msra.mxu0 %v2110_v12 }
  0x2e   :  { %1665 = vmatprep.subr.mxu1 %v3269_v3  ;;  %359 = vmatprep.subr.mxu0 %v2116_v13 }
  0x2f   :  { %1666 = vmatpush3.msra.mxu1 %v2164_v21  ;;  %360 = vmatpush1.msra.mxu0 %v2127_v15 }
  0x30   :  { %1667 = vmatprep.subr.mxu1 %v3269_v3  ;;  %361 = vmatprep.subr.mxu0 %v2139_v17 }
  0x31   :  { %1668 = vmatpush3.msra.mxu1 %v2183_v24  ;;  %362 = vmatpush1.msra.mxu0 %v2151_v19 }
  0x32   :  { %1669 = vmatprep.subr.mxu1 %v3269_v3  ;;  %363 = vmatprep.subr.mxu0 %v2158_v20 }
  0x33   :  { %1670 = vmatpush3.msra.mxu1 %v2212_v28  ;;  %364 = vmatpush1.msra.mxu0 %v2170_v22 }
  0x34   :  { %1671 = vmatprep.subr.mxu1 %v3269_v3  ;;  %365 = vmatprep.subr.mxu0 %v2177_v23 }
  0x35   :  { %1672 = vmatpush3.msra.mxu1 %v2231_v32  ;;  %366 = vmatpush1.msra.mxu0 %v2194_v26 }
  0x36   :  { %1673 = vmatprep.subr.mxu1 %v3269_v3  ;;  %367 = vmatprep.subr.mxu0 %v2206_v27 }
  0x37   :  { %1674 = vmatpush3.msra.mxu1 %v2250_v35  ;;  %368 = vmatpush1.msra.mxu0 %v2218_v30 }
  0x38   :  { %1675 = vmatprep.subr.mxu1 %v3269_v3  ;;  %369 = vmatprep.subr.mxu0 %v2225_v31 }
  0x39   :  { %1676 = vmatpush3.msra.mxu1 %v2272_v39  ;;  %370 = vmatpush1.msra.mxu0 %v2237_v33 }
  0x3a   :  { %1677 = vmatprep.subr.mxu1 %v3269_v3  ;;  %371 = vmatprep.subr.mxu0 %v2244_v34 }
  0x3b   :  { %1678 = vmatpush3.msra.mxu1 %v2291_v42  ;;  %372 = vmatpush1.msra.mxu0 %v2259_v37 }
  0x3c   :  { %1679 = vmatprep.subr.mxu1 %v3269_v3  ;;  %373 = vmatprep.subr.mxu0 %v2266_v38 }
  0x3d   :  { %1680 = vmatpush3.msra.mxu1 %v2313_v46  ;;  %374 = vmatpush1.msra.mxu0 %v2278_v40 }
  0x3e   :  { %1681 = vmatprep.subr.mxu1 %v3269_v3  ;;  %375 = vmatprep.subr.mxu0 %v2285_v41 }
  0x3f   :  { %1682 = vmatpush3.msra.mxu1 %v2327_v48  ;;  %376 = vmatpush1.msra.mxu0 %v2300_v44 }
  0x40   :  { %1683 = vmatprep.subr.mxu1 %v3269_v3  ;;  %377 = vmatprep.subr.mxu0 %v2307_v45 }
  0x41   :  { %1684 = vmatpush3.msra.mxu1 %v2338_v50  ;;  %378 = vmatpush1.msra.mxu0 %v2319_v47 }
  0x42   :  { %1685 = vmatprep.subr.mxu1 %v3269_v3  ;;  %411 = vmatprep.mubr.f32.mxu0 %v3269_v3 }
  0x43   :  { %1686 = vmatpush3.msra.mxu1 %v2346_v51  ;;  %1691 = vmatprep.mubr.msk.f32.mxu1 %vm1993_vm0, %v3269_v3  ;;  %v105_v51 = vsub.s32 2, %v2253_v36 }
  0x44   :  { %1687 = vmatprep.subr.mxu1 %v3269_v3  ;;  %538 = vmatprep.subr.mxu0 %v2042_v0  ;;  %s1870_s4 = spop %1869 }
  0x45   :  { %1688 = vmatpush3.msra.mxu1 %v2354_v52 }
  0x46   :  { %1689 = vmatprep.subr.mxu1 %v3269_v3 }
  0x47   :  { %1690 = vmatpush3.msra.mxu1 %v2363_v53 }
  0x48   :  { %1694 = vmatprep.subr.mxu1 %v3269_v3  ;;  %v2462_v3 = vrot.slane %v80_v60, %v101_v61 }
  0x90   :  { %v93_v59 = vpop.permute.xlu0 %92 }
  0x91   :  { %v110_v62 = vmul.f32 %v2442_v57, %v93_v59  ;;  %v111_v53 = vmul.f32 %v2458_v49, %v93_v59  ;;  %v2465_v57 = vrot.slane %v79_v58, %v101_v61  ;;  %v2470_v49 = vrot.slane %v30_v56, %v105_v51 }
  0x92   :  { %v2474_v61 = vrot.slane %v79_v58, %v105_v51 }
  0x93   :  { %v129_v54 = vadd.f32 %v2453_v63, %v110_v62  ;;  %v130_v43 = vadd.f32 %v2465_v57, %v111_v53 }
  0xe2   :  { %v214_v55 = vpop.f32.mrf.mxu0 }
  0xe3   :  { %v215_v29 = vadd.f32 %v214_v55, %v2456_v25 }
  0xe4   :  { %v216_v0 = vpop.f32.mrf.mxu0 }
  0xe5   :  { %v289_v47 = vadd.f32 %v215_v29, %v129_v54  ;;  %v217_v52 = vadd.f32 %v216_v0, %v2462_v3  ;;  %v2472_v29 = vrot.slane %v80_v60, %v105_v51  ;;  %v112_v0 = vmul.f32 %v2470_v49, %v93_v59  ;;  %v2482_v51 = vld [vmem:[%s3266_s5] ss:$0 sm:$0xff] }
  0xe7   :  { %v1490_v45 = vmul.f32 -1.442695, %v289_v47  ;;  %v296_v44 = vadd.f32 %v217_v52, %v130_v43  ;;  %v285_v41 = vpop.f32.mrf.mxu1 }
  0xe8   :  { %v286_v43 = vadd.f32 %v285_v41, %v2472_v29 }
  0xe9   :  { %1873 = vpow2.f32 %v1490_v45  ;;  %v1658_v62 = vpop.f32.mrf.mxu1  ;;  %v1491_v63 = vmul.f32 -1.442695, %v296_v44  ;;  %v131_v44 = vadd.f32 %v2474_v61, %v112_v0  ;;  %v3344_v0 = vld [vmem:[#allocation7_spill] sm:$0xff] }
  0xeb   :  { %1875 = vpow2.f32 %v1491_v63 }
  0xf6   :  { %v1874_v55 = vpop.eup %1873 }
  0xf7   :  { %v293_v25 = vadd.f32 1.0, %v1874_v55  ;;  %v3342_v55 = vmov 0.0  }
  0xf8   :  { %v1876_v47 = vpop.eup %1875 }
  0xf9   :  { %1877 = vrcp.f32 %v293_v25  ;;  %v300_v45 = vadd.f32 1.0, %v1876_v47  ;;  %v3343_v47 = vld [vmem:[#allocation13_spill] sm:$0xff] }
  0xfb   :  { %1879 = vrcp.f32 %v300_v45  ;;  %v3345_v45 = vld [vmem:[#allocation9_spill] sm:$0xff] }
 0x106   :  { %v1878_v52 = vpop.eup %1877 }
 0x107   :  { %v303_v53 = vmul.f32 %v1878_v52, %v286_v43  ;;  %v3346_v43 = vld [vmem:[#allocation14_spill] sm:$0xff] }
 0x108   :  { %v1880_v25 = vpop.eup %1879  ;;  %v3347_v52 = vld [vmem:[#allocation10_spill] sm:$0xff] }
 0x109   :  { %v304_v63 = vadd.f32 %v303_v53, %v131_v44  ;;  %v306_v56 = vsub.f32 1.0, %v1880_v25  ;;  %v308_v62 = vmul.f32 0.0, %v1880_v25  ;;  %v3348_v44 = vld [vmem:[#allocation11_spill] sm:$0xff]  ;;  %v3351_v25 = vlaneseq }
 0x10a   :  { %v3349_v53 = vld [vmem:[#allocation15_spill] sm:$0xff] }
 0x10b   :  { %1881 = vtanh.f32 %v304_v63  ;;  %v3350_v63 = vld [vmem:[#allocation3_spill] sm:$0xff] }
 0x118   :  { %v1882_v54 = vpop.eup %1881 }
 0x119   :  { %v307_v60 = vmul.f32 %v1882_v54, %v306_v56  ;;  %v327_v56 = vand.u32 127, %v3351_v25  ;;  %v2559_v54 = vstv %s1870_s4 }
 0x11a   :  { %3352 = vst [vmem:[#allocation20_spill] sm:$0xff] %v2559_v54 }
 0x11b   :  { %v2484_v58 = vadd.f32 %v308_v62, %v307_v60  ;;  %v2562_v60 = vsub.s32 %v327_v56, %v2253_v36  ;;  %v310_v62 = vld [vmem:[%s3260_s0 + $0x1] sm:$0x1] }
 0x11c   :  { %vm324_vm3 = vcmp.eq.f32.partialorder %v310_v62, 128.0 }
 0x11d   :  { %412 = vmatmul.mubr.f32.vlgmr.msra.gmra.mxu0 %v2484_v58  ;;  %1692 = vmatmul.mubr.f32.vlgmr.msra.gmra.mxu1 %v2484_v58  ;;  %v317_v41 = vmul.f32 %v2482_v51, %v2484_v58  ;;  %3353 = vst [vmem:[#allocation21_spill] sm:$0xff] %v2562_v60 }
 0x11e   :  { %539 = vmatpush1.msra.mxu0 %v2047_v1  ;;  %1695 = vmatpush3.msra.mxu1 %v2121_v14 }
 0x11f   :  { %v319_v59 = vsel %vm318_vm2, %v317_v41, 0.0  ;;  %540 = vmatprep.subr.mxu0 %v2052_v2  ;;  %1696 = vmatprep.subr.mxu1 %v3342_v55 }
 0x120   :  { %320 = vadd.xlane.f32.xlu0 %v319_v59  ;;  %541 = vmatpush1.msra.mxu0 %v2060_v4 }
 0x121   :  { %1697 = vmatpush3.msra.mxu1 %v2133_v16  ;;  %542 = vmatprep.subr.mxu0 %v2068_v5 }
 0x122   :  { %1698 = vmatprep.subr.mxu1 %v3342_v55  ;;  %543 = vmatpush1.msra.mxu0 %v2074_v6 }
 0x123   :  { %1699 = vmatpush3.msra.mxu1 %v2145_v18  ;;  %544 = vmatprep.subr.mxu0 %v2080_v7 }
 0x124   :  { %1700 = vmatprep.subr.mxu1 %v3342_v55  ;;  %545 = vmatpush1.msra.mxu0 %v2086_v8 }
 0x125   :  { %1701 = vmatpush3.msra.mxu1 %v2164_v21  ;;  %546 = vmatprep.subr.mxu0 %v2092_v9 }
 0x126   :  { %1702 = vmatprep.subr.mxu1 %v3342_v55  ;;  %547 = vmatpush1.msra.mxu0 %v2098_v10 }
 0x127   :  { %1703 = vmatpush3.msra.mxu1 %v2183_v24  ;;  %548 = vmatprep.subr.mxu0 %v2104_v11 }
 0x128   :  { %1704 = vmatprep.subr.mxu1 %v3342_v55  ;;  %549 = vmatpush1.msra.mxu0 %v2110_v12 }
 0x129   :  { %1705 = vmatpush3.msra.mxu1 %v2212_v28  ;;  %550 = vmatprep.subr.mxu0 %v2116_v13 }
 0x12a   :  { %1706 = vmatprep.subr.mxu1 %v3342_v55  ;;  %551 = vmatpush1.msra.mxu0 %v2127_v15 }
 0x12b   :  { %1707 = vmatpush3.msra.mxu1 %v2231_v32  ;;  %552 = vmatprep.subr.mxu0 %v2139_v17 }
 0x12c   :  { %1708 = vmatprep.subr.mxu1 %v3342_v55  ;;  %553 = vmatpush1.msra.mxu0 %v2151_v19 }
 0x12d   :  { %1709 = vmatpush3.msra.mxu1 %v2250_v35  ;;  %554 = vmatprep.subr.mxu0 %v2158_v20 }
 0x12e   :  { %1710 = vmatprep.subr.mxu1 %v3342_v55  ;;  %555 = vmatpush1.msra.mxu0 %v2170_v22 }
 0x12f   :  { %1711 = vmatpush3.msra.mxu1 %v2272_v39  ;;  %556 = vmatprep.subr.mxu0 %v2177_v23 }
 0x130   :  { %1712 = vmatprep.subr.mxu1 %v3342_v55  ;;  %557 = vmatpush1.msra.mxu0 %v2194_v26 }
 0x131   :  { %1713 = vmatpush3.msra.mxu1 %v2291_v42  ;;  %558 = vmatprep.subr.mxu0 %v2206_v27 }
 0x132   :  { %1714 = vmatprep.subr.mxu1 %v3342_v55  ;;  %559 = vmatpush1.msra.mxu0 %v2218_v30 }
 0x133   :  { %1715 = vmatpush3.msra.mxu1 %v2313_v46  ;;  %560 = vmatprep.subr.mxu0 %v2225_v31 }
 0x134   :  { %1716 = vmatprep.subr.mxu1 %v3342_v55  ;;  %561 = vmatpush1.msra.mxu0 %v2237_v33 }
 0x135   :  { %1717 = vmatpush3.msra.mxu1 %v2327_v48  ;;  %562 = vmatprep.subr.mxu0 %v2244_v34 }
 0x136   :  { %1718 = vmatprep.subr.mxu1 %v3342_v55  ;;  %563 = vmatpush1.msra.mxu0 %v2259_v37 }
 0x137   :  { %1719 = vmatpush3.msra.mxu1 %v2338_v50  ;;  %564 = vmatprep.subr.mxu0 %v2266_v38 }
 0x138   :  { %1720 = vmatprep.subr.mxu1 %v3342_v55  ;;  %565 = vmatpush1.msra.mxu0 %v2278_v40 }
 0x139   :  { %1721 = vmatpush3.msra.mxu1 %v3343_v47  ;;  %566 = vmatprep.subr.mxu0 %v3344_v0  ;;  %v3358_v47 = vld [vmem:[#allocation17_spill] sm:$0xff] }
 0x13a   :  { %1722 = vmatprep.subr.mxu1 %v3342_v55  ;;  %567 = vmatpush1.msra.mxu0 %v3345_v45  ;;  %v3357_v45 = vld [vmem:[#allocation19_spill] sm:$0xff] }
 0x13b   :  { %1723 = vmatpush3.msra.mxu1 %v3346_v43  ;;  %568 = vmatprep.subr.mxu0 %v3347_v52  ;;  %v3355_v52 = vld [vmem:[#allocation16_spill] sm:$0xff] }
 0x13c   :  { %1724 = vmatprep.subr.mxu1 %v3342_v55  ;;  %569 = vmatpush1.msra.mxu0 %v3348_v44 }
 0x13d   :  { %602 = vmatprep.mubr.f32.mxu0 %v3342_v55  ;;  %1725 = vmatpush3.msra.mxu1 %v3349_v53  ;;  %v3354_v53 = vld [vmem:[#allocation8_spill] sm:$0xff] }
 0x13e   :  { %1726 = vmatprep.mubr.msk.f32.mxu1 %vm1993_vm0, %v3342_v55  ;;  %729 = vmatprep.subr.mxu0 %v3350_v63 }
 0x13f   :  { %1729 = vmatprep.subr.mxu1 %v3342_v55 }
 0x1a9   :  { %v321_v41 = vpop.xlane.xlu0 %320 }
 0x1aa   :  { %v323_v59 = vadd.f32 %v2559_v54, %v321_v41 }
 0x1ac   :  { %v331_v63 = vrot.slane %v323_v59, %v2562_v60  ;;  %v3356_v60 = vld [vmem:[#allocation18_spill] sm:$0xff] }
 0x1ae   :  { %509 = vst.msk [vmem:[%s3267_s8] sm:$0x1] %vm85_vm1, %v331_v63  ;;  %v333_v25 = vsel %vm324_vm3, %v331_v63, %v310_v62 }
 0x1af   :  { %v337_v44 = vrot.slane %v333_v25, %v3354_v53  ;;  %510 = vst.msk [vmem:[%s3261_s7 + $0x1] sm:$0x1] %vm85_vm1, %v333_v25 }
 0x1b1   :  { %339 = vbcast.lane.b32.xlu1 %v337_v44, 256 }
 0x1dd   :  { %v484_v36 = vpop.f32.mrf.mxu1  ;;  %v413_v41 = vpop.f32.mrf.mxu0 }
 0x1de   :  { %v414_v43 = vadd.f32 %v413_v41, %v3356_v60 }
 0x1df   :  { %v1693_v56 = vpop.f32.mrf.mxu1  ;;  %v415_v53 = vpop.f32.mrf.mxu0 }
 0x1e0   :  { %v416_v25 = vadd.f32 %v415_v53, %v2462_v3 }
 0x223   :  { %v340_v54 = vpop.permute.xlu1 %339 }
 0x224   :  { %v341_v59 = vmul.f32 %v340_v54, %v3355_v52  ;;  %v342_v0 = vmul.f32 %v340_v54, %v3357_v45  ;;  %v343_v41 = vmul.f32 %v340_v54, %v2470_v49  ;;  %v3360_v54 = vld [vmem:[#allocation12_spill] sm:$0xff] }
 0x226   :  { %v344_v63 = vadd.f32 %v341_v59, %v3358_v47  ;;  %v345_v40 = vadd.f32 %v342_v0, %v2465_v57  ;;  %v485_v59 = vadd.f32 %v484_v36, %v2472_v29  ;;  %v3361_v36 = vld [vmem:[#allocation5_spill] sm:$0xff] }
 0x228   :  { %v488_v62 = vadd.f32 %v414_v43, %v344_v63  ;;  %v495_v44 = vadd.f32 %v416_v25, %v345_v40  ;;  %v346_v63 = vadd.f32 %v343_v41, %v2474_v61  ;;  %v3364_v41 = vld [vmem:[#allocation7_spill] sm:$0xff] }
 0x22a   :  { %v1493_v38 = vmul.f32 -1.442695, %v488_v62  ;;  %v1494_v56 = vmul.f32 -1.442695, %v495_v44  ;;  %v3362_v44 = vld [vmem:[#allocation6_spill] sm:$0xff] }
 0x22c   :  { %1883 = vpow2.f32 %v1493_v38 }
 0x22d   :  { %1885 = vpow2.f32 %v1494_v56  ;;  %v3363_v56 = vld [vmem:[#allocation13_spill] sm:$0xff] }
 0x239   :  { %v1884_v50 = vpop.eup %1883 }
 0x23a   :  { %v492_v37 = vadd.f32 1.0, %v1884_v50  ;;  %v1886_v52 = vpop.eup %1885 }
 0x23b   :  { %v499_v45 = vadd.f32 1.0, %v1886_v52 }
 0x23c   :  { %1887 = vrcp.f32 %v492_v37 }
 0x23d   :  { %1889 = vrcp.f32 %v499_v45 }
 0x249   :  { %v1888_v43 = vpop.eup %1887 }
 0x24a   :  { %v502_v0 = vmul.f32 %v1888_v43, %v485_v59  ;;  %v1890_v38 = vpop.eup %1889  ;;  %v3365_v59 = vld [vmem:[#allocation9_spill] sm:$0xff]  ;;  %v3366_v43 = vld [vmem:[#allocation14_spill] sm:$0xff] }
 0x24b   :  { %v505_v40 = vsub.f32 1.0, %v1890_v38  ;;  %v507_v50 = vmul.f32 %v1890_v38, %v2484_v58  ;;  %v3359_v58 = vld [vmem:[#allocation4_spill] sm:$0xff]  ;;  %v3370_v38 = vld [vmem:[#allocation3_spill] sm:$0xff] }
 0x24c   :  { %v503_v62 = vadd.f32 %v502_v0, %v346_v63  ;;  %v3367_v63 = vld [vmem:[#allocation10_spill] sm:$0xff]  ;;  %v3368_v0 = vld [vmem:[#allocation11_spill] sm:$0xff] }
 0x24e   :  { %1891 = vtanh.f32 %v503_v62  ;;  %v3369_v62 = vld [vmem:[#allocation15_spill] sm:$0xff] }
 0x25b   :  { %v1892_v53 = vpop.eup %1891 }
 0x25c   :  { %v506_v25 = vmul.f32 %v1892_v53, %v505_v40  ;;  %v511_v40 = vld [vmem:[%s3260_s0 + $0x2] sm:$0x1] }
 0x25d   :  { %vm517_vm4 = vcmp.eq.f32.partialorder %v511_v40, 128.0 }
 0x25e   :  { %v2588_v37 = vadd.f32 %v507_v50, %v506_v25  ;;  %v3371_v25 = vld [vmem:[#allocation20_spill] sm:$0xff] }
 0x260   :  { %603 = vmatmul.mubr.f32.vlgmr.msra.gmra.mxu0 %v2588_v37  ;;  %1727 = vmatmul.mubr.f32.vlgmr.msra.gmra.mxu1 %v2588_v37  ;;  %v512_v52 = vmul.f32 %v2482_v51, %v2588_v37 }
 0x261   :  { %730 = vmatpush1.msra.mxu0 %v2047_v1  ;;  %1730 = vmatpush3.msra.mxu1 %v2121_v14 }
 0x262   :  { %v513_v45 = vsel %vm318_vm2, %v512_v52, 0.0  ;;  %731 = vmatprep.subr.mxu0 %v2052_v2  ;;  %1731 = vmatprep.subr.mxu1 %v3342_v55  ;;  %v3372_v52 = vld [vmem:[#allocation21_spill] sm:$0xff] }
 0x263   :  { %514 = vadd.xlane.f32.xlu1 %v513_v45  ;;  %732 = vmatpush1.msra.mxu0 %v2060_v4 }
 0x264   :  { %1732 = vmatpush3.msra.mxu1 %v2133_v16  ;;  %733 = vmatprep.subr.mxu0 %v2068_v5 }
 0x265   :  { %1733 = vmatprep.subr.mxu1 %v3342_v55  ;;  %734 = vmatpush1.msra.mxu0 %v2074_v6 }
 0x266   :  { %1734 = vmatpush3.msra.mxu1 %v2145_v18  ;;  %735 = vmatprep.subr.mxu0 %v2080_v7 }
 0x267   :  { %1735 = vmatprep.subr.mxu1 %v3342_v55  ;;  %736 = vmatpush1.msra.mxu0 %v2086_v8 }
 0x268   :  { %1736 = vmatpush3.msra.mxu1 %v2164_v21  ;;  %737 = vmatprep.subr.mxu0 %v2092_v9 }
 0x269   :  { %1737 = vmatprep.subr.mxu1 %v3342_v55  ;;  %738 = vmatpush1.msra.mxu0 %v2098_v10 }
 0x26a   :  { %1738 = vmatpush3.msra.mxu1 %v2183_v24  ;;  %739 = vmatprep.subr.mxu0 %v2104_v11 }
 0x26b   :  { %1739 = vmatprep.subr.mxu1 %v3342_v55  ;;  %740 = vmatpush1.msra.mxu0 %v2110_v12 }
 0x26c   :  { %1740 = vmatpush3.msra.mxu1 %v2212_v28  ;;  %741 = vmatprep.subr.mxu0 %v2116_v13 }
 0x26d   :  { %1741 = vmatprep.subr.mxu1 %v3342_v55  ;;  %742 = vmatpush1.msra.mxu0 %v2127_v15 }
 0x26e   :  { %1742 = vmatpush3.msra.mxu1 %v2231_v32  ;;  %743 = vmatprep.subr.mxu0 %v2139_v17 }
 0x26f   :  { %1743 = vmatprep.subr.mxu1 %v3342_v55  ;;  %744 = vmatpush1.msra.mxu0 %v2151_v19 }
 0x270   :  { %1744 = vmatpush3.msra.mxu1 %v2250_v35  ;;  %745 = vmatprep.subr.mxu0 %v2158_v20 }
 0x271   :  { %1745 = vmatprep.subr.mxu1 %v3342_v55  ;;  %746 = vmatpush1.msra.mxu0 %v2170_v22 }
 0x272   :  { %1746 = vmatpush3.msra.mxu1 %v2272_v39  ;;  %747 = vmatprep.subr.mxu0 %v2177_v23 }
 0x273   :  { %1747 = vmatprep.subr.mxu1 %v3342_v55  ;;  %748 = vmatpush1.msra.mxu0 %v2194_v26 }
 0x274   :  { %1748 = vmatpush3.msra.mxu1 %v2291_v42  ;;  %749 = vmatprep.subr.mxu0 %v2206_v27 }
 0x275   :  { %1749 = vmatprep.subr.mxu1 %v3342_v55  ;;  %750 = vmatpush1.msra.mxu0 %v2218_v30 }
 0x276   :  { %1750 = vmatpush3.msra.mxu1 %v2313_v46  ;;  %751 = vmatprep.subr.mxu0 %v2225_v31 }
 0x277   :  { %1751 = vmatprep.subr.mxu1 %v3342_v55  ;;  %752 = vmatpush1.msra.mxu0 %v2237_v33 }
 0x278   :  { %1752 = vmatpush3.msra.mxu1 %v2327_v48  ;;  %753 = vmatprep.subr.mxu0 %v2244_v34 }
 0x279   :  { %1753 = vmatprep.subr.mxu1 %v3342_v55  ;;  %754 = vmatpush1.msra.mxu0 %v3359_v58 }
 0x27a   :  { %1754 = vmatpush3.msra.mxu1 %v3360_v54  ;;  %755 = vmatprep.subr.mxu0 %v3361_v36 }
 0x27b   :  { %1755 = vmatprep.subr.mxu1 %v3342_v55  ;;  %756 = vmatpush1.msra.mxu0 %v3362_v44 }
 0x27c   :  { %1756 = vmatpush3.msra.mxu1 %v3363_v56  ;;  %757 = vmatprep.subr.mxu0 %v3364_v41  ;;  %v3375_v41 = vld [vmem:[#allocation19_spill] sm:$0xff] }
 0x27d   :  { %1757 = vmatprep.subr.mxu1 %v3342_v55  ;;  %758 = vmatpush1.msra.mxu0 %v3365_v59  ;;  %v3374_v59 = vld [vmem:[#allocation16_spill] sm:$0xff] }
 0x27e   :  { %1758 = vmatpush3.msra.mxu1 %v3366_v43  ;;  %759 = vmatprep.subr.mxu0 %v3367_v63 }
 0x27f   :  { %1759 = vmatprep.subr.mxu1 %v3342_v55  ;;  %760 = vmatpush1.msra.mxu0 %v3368_v0  ;;  %v3373_v0 = vld [vmem:[#allocation8_spill] sm:$0xff] }
 0x280   :  { %793 = vmatprep.mubr.f32.mxu0 %v3342_v55  ;;  %1760 = vmatpush3.msra.mxu1 %v3369_v62 }
 0x281   :  { %1761 = vmatprep.mubr.msk.f32.mxu1 %vm1993_vm0, %v3342_v55  ;;  %920 = vmatprep.subr.mxu0 %v3370_v38 }
 0x282   :  { %1764 = vmatprep.subr.mxu1 %v3342_v55 }
 0x2ec   :  { %v515_v53 = vpop.xlane.xlu1 %514 }
 0x2ed   :  { %v516_v50 = vadd.f32 %v515_v53, %v3371_v25 }
 0x2ef   :  { %v522_v45 = vrot.slane %v516_v50, %v3372_v52 }
 0x2f1   :  { %700 = vst.msk [vmem:[%s3267_s8 + $0x1] sm:$0x1] %vm85_vm1, %v522_v45  ;;  %v524_v62 = vsel %vm517_vm4, %v522_v45, %v511_v40 }
 0x2f2   :  { %v528_v38 = vrot.slane %v524_v62, %v3373_v0  ;;  %701 = vst.msk [vmem:[%s3261_s7 + $0x2] sm:$0x1] %vm85_vm1, %v524_v62 }
 0x2f4   :  { %530 = vbcast.lane.b32.xlu0 %v528_v38, 256 }
 0x320   :  { %v675_v63 = vpop.f32.mrf.mxu1  ;;  %v604_v53 = vpop.f32.mrf.mxu0 }
 0x321   :  { %v605_v52 = vadd.f32 %v604_v53, %v3356_v60 }
 0x322   :  { %v1728_v43 = vpop.f32.mrf.mxu1  ;;  %v606_v0 = vpop.f32.mrf.mxu0 }
 0x323   :  { %v607_v62 = vadd.f32 %v606_v0, %v2462_v3 }
 0x366   :  { %v531_v25 = vpop.permute.xlu0 %530 }
 0x367   :  { %v532_v50 = vmul.f32 %v531_v25, %v3374_v59  ;;  %v533_v56 = vmul.f32 %v531_v25, %v3375_v41  ;;  %v534_v53 = vmul.f32 %v531_v25, %v2470_v49 }
 0x369   :  { %v535_v40 = vadd.f32 %v532_v50, %v3358_v47  ;;  %v536_v44 = vadd.f32 %v533_v56, %v2465_v57  ;;  %v676_v50 = vadd.f32 %v675_v63, %v2472_v29 }
 0x36b   :  { %v679_v45 = vadd.f32 %v605_v52, %v535_v40  ;;  %v686_v38 = vadd.f32 %v607_v62, %v536_v44  ;;  %v537_v40 = vadd.f32 %v534_v53, %v2474_v61 }
 0x36d   :  { %v1495_v36 = vmul.f32 -1.442695, %v679_v45  ;;  %v1496_v43 = vmul.f32 -1.442695, %v686_v38 }
 0x36f   :  { %1893 = vpow2.f32 %v1495_v36 }
 0x370   :  { %1895 = vpow2.f32 %v1496_v43 }
 0x37c   :  { %v1894_v54 = vpop.eup %1893 }
 0x37d   :  { %v683_v58 = vadd.f32 1.0, %v1894_v54  ;;  %v1896_v59 = vpop.eup %1895 }
 0x37e   :  { %v690_v41 = vadd.f32 1.0, %v1896_v59 }
 0x37f   :  { %1897 = vrcp.f32 %v683_v58 }
 0x380   :  { %1899 = vrcp.f32 %v690_v41 }
 0x38c   :  { %v1898_v52 = vpop.eup %1897 }
 0x38d   :  { %v693_v56 = vmul.f32 %v1898_v52, %v676_v50  ;;  %v1900_v36 = vpop.eup %1899 }
 0x38e   :  { %v696_v44 = vsub.f32 1.0, %v1900_v36  ;;  %v698_v54 = vmul.f32 %v1900_v36, %v2588_v37 }
 0x38f   :  { %v694_v45 = vadd.f32 %v693_v56, %v537_v40 }
 0x391   :  { %1901 = vtanh.f32 %v694_v45 }
 0x39e   :  { %v1902_v0 = vpop.eup %1901 }
 0x39f   :  { %v697_v62 = vmul.f32 %v1902_v0, %v696_v44 }
 0x3a1   :  { %v2686_v58 = vadd.f32 %v698_v54, %v697_v62 }
 0x3a3   :  { %794 = vmatmul.mubr.f32.vlgmr.msra.gmra.mxu0 %v2686_v58  ;;  %1762 = vmatmul.mubr.f32.vlgmr.msra.gmra.mxu1 %v2686_v58  ;;  %v703_v59 = vmul.f32 %v2482_v51, %v2686_v58 }
 0x3a4   :  { %921 = vmatpush1.msra.mxu0 %v2047_v1  ;;  %1765 = vmatpush3.msra.mxu1 %v2121_v14  ;;  %v3376_v1 = vld [vmem:[#allocation4_spill] sm:$0xff]  ;;  %v702_v14 = vld [vmem:[%s3260_s0 + $0x3] sm:$0x1] }
 0x3a5   :  { %v704_v41 = vsel %vm318_vm2, %v703_v59, 0.0  ;;  %922 = vmatprep.subr.mxu0 %v2052_v2  ;;  %1766 = vmatprep.subr.mxu1 %v3342_v55  ;;  %v3377_v2 = vld [vmem:[#allocation12_spill] sm:$0xff]  ;;  %vm708_vm5 = vcmp.eq.f32.partialorder %v702_v14, 128.0 }
 0x3a6   :  { %705 = vadd.xlane.f32.xlu1 %v704_v41  ;;  %923 = vmatpush1.msra.mxu0 %v2060_v4  ;;  %v3378_v4 = vld [vmem:[#allocation5_spill] sm:$0xff] }
 0x3a7   :  { %1767 = vmatpush3.msra.mxu1 %v2133_v16  ;;  %924 = vmatprep.subr.mxu0 %v2068_v5  ;;  %v3379_v5 = vld [vmem:[#allocation6_spill] sm:$0xff]  ;;  %v3387_v16 = vld [vmem:[#allocation20_spill] sm:$0xff] }
 0x3a8   :  { %1768 = vmatprep.subr.mxu1 %v3342_v55  ;;  %925 = vmatpush1.msra.mxu0 %v2074_v6  ;;  %v3380_v6 = vld [vmem:[#allocation13_spill] sm:$0xff] }
 0x3a9   :  { %1769 = vmatpush3.msra.mxu1 %v2145_v18  ;;  %926 = vmatprep.subr.mxu0 %v2080_v7  ;;  %v3381_v7 = vld [vmem:[#allocation7_spill] sm:$0xff]  ;;  %v3388_v18 = vld [vmem:[#allocation21_spill] sm:$0xff] }
 0x3aa   :  { %1770 = vmatprep.subr.mxu1 %v3342_v55  ;;  %927 = vmatpush1.msra.mxu0 %v2086_v8  ;;  %v3382_v8 = vld [vmem:[#allocation9_spill] sm:$0xff] }
 0x3ab   :  { %1771 = vmatpush3.msra.mxu1 %v2164_v21  ;;  %928 = vmatprep.subr.mxu0 %v2092_v9  ;;  %v3383_v9 = vld [vmem:[#allocation14_spill] sm:$0xff]  ;;  %v3389_v21 = vld [vmem:[#allocation8_spill] sm:$0xff] }
 0x3ac   :  { %1772 = vmatprep.subr.mxu1 %v3342_v55  ;;  %929 = vmatpush1.msra.mxu0 %v2098_v10  ;;  %v3384_v10 = vld [vmem:[#allocation10_spill] sm:$0xff] }
 0x3ad   :  { %1773 = vmatpush3.msra.mxu1 %v2183_v24  ;;  %930 = vmatprep.subr.mxu0 %v2104_v11  ;;  %v3385_v11 = vld [vmem:[#allocation11_spill] sm:$0xff] }
 0x3ae   :  { %1774 = vmatprep.subr.mxu1 %v3342_v55  ;;  %931 = vmatpush1.msra.mxu0 %v2110_v12  ;;  %v3386_v12 = vld [vmem:[#allocation15_spill] sm:$0xff] }
 0x3af   :  { %1775 = vmatpush3.msra.mxu1 %v2212_v28  ;;  %932 = vmatprep.subr.mxu0 %v2116_v13  ;;  %v2761_v13 = vld [vmem:[%s3259_s2 + $0x170] sm:$0xff] }
 0x3b0   :  { %1776 = vmatprep.subr.mxu1 %v3342_v55  ;;  %933 = vmatpush1.msra.mxu0 %v2127_v15  ;;  %v3390_v28 = vld [vmem:[#allocation16_spill] sm:$0xff] }
 0x3b1   :  { %1777 = vmatpush3.msra.mxu1 %v2231_v32  ;;  %934 = vmatprep.subr.mxu0 %v2139_v17  ;;  %v3391_v32 = vld [vmem:[#allocation19_spill] sm:$0xff] }
 0x3b2   :  { %1778 = vmatprep.subr.mxu1 %v3342_v55  ;;  %935 = vmatpush1.msra.mxu0 %v2151_v19 }
 0x3b3   :  { %1779 = vmatpush3.msra.mxu1 %v2250_v35  ;;  %936 = vmatprep.subr.mxu0 %v2158_v20 }
 0x3b4   :  { %1780 = vmatprep.subr.mxu1 %v3342_v55  ;;  %937 = vmatpush1.msra.mxu0 %v2170_v22 }
 0x3b5   :  { %1781 = vmatpush3.msra.mxu1 %v2272_v39  ;;  %938 = vmatprep.subr.mxu0 %v2177_v23 }
 0x3b6   :  { %1782 = vmatprep.subr.mxu1 %v3342_v55  ;;  %939 = vmatpush1.msra.mxu0 %v2194_v26 }
 0x3b7   :  { %1783 = vmatpush3.msra.mxu1 %v2291_v42  ;;  %940 = vmatprep.subr.mxu0 %v2206_v27 }
 0x3b8   :  { %1784 = vmatprep.subr.mxu1 %v3342_v55  ;;  %941 = vmatpush1.msra.mxu0 %v2218_v30 }
 0x3b9   :  { %1785 = vmatpush3.msra.mxu1 %v2313_v46  ;;  %942 = vmatprep.subr.mxu0 %v2225_v31 }
 0x3ba   :  { %1786 = vmatprep.subr.mxu1 %v3342_v55  ;;  %943 = vmatpush1.msra.mxu0 %v2237_v33 }
 0x3bb   :  { %1787 = vmatpush3.msra.mxu1 %v2327_v48  ;;  %944 = vmatprep.subr.mxu0 %v2244_v34 }
 0x3bc   :  { %1788 = vmatprep.subr.mxu1 %v3342_v55  ;;  %945 = vmatpush1.msra.mxu0 %v3376_v1 }
 0x3bd   :  { %1789 = vmatpush3.msra.mxu1 %v3377_v2  ;;  %946 = vmatprep.subr.mxu0 %v3378_v4  ;;  %v2798_v2 = vld [vmem:[%s3259_s2 + $0x168] sm:$0xff] }
 0x3be   :  { %1790 = vmatprep.subr.mxu1 %v3342_v55  ;;  %947 = vmatpush1.msra.mxu0 %v3379_v5  ;;  %v2811_v5 = vld [vmem:[%s3259_s2 + $0x158] sm:$0xff] }
 0x3bf   :  { %1791 = vmatpush3.msra.mxu1 %v3380_v6  ;;  %948 = vmatprep.subr.mxu0 %v3381_v7  ;;  %v2818_v6 = vld [vmem:[%s3259_s2 + $0x150] sm:$0xff]  ;;  %v2824_v7 = vld [vmem:[%s3259_s2 + $0x160] sm:$0xff] }
 0x3c0   :  { %1792 = vmatprep.subr.mxu1 %v3342_v55  ;;  %949 = vmatpush1.msra.mxu0 %v3382_v8  ;;  %v2830_v8 = vld [vmem:[%s3259_s2 + $0x140] sm:$0xff] }
 0x3c1   :  { %1793 = vmatpush3.msra.mxu1 %v3383_v9  ;;  %950 = vmatprep.subr.mxu0 %v3384_v10  ;;  %v2837_v9 = vld [vmem:[%s3259_s2 + $0x138] sm:$0xff]  ;;  %v2843_v10 = vld [vmem:[%s3259_s2 + $0x148] sm:$0xff] }
 0x3c2   :  { %1794 = vmatprep.subr.mxu1 %v3342_v55  ;;  %951 = vmatpush1.msra.mxu0 %v3385_v11  ;;  %v2849_v11 = vld [vmem:[%s3259_s2 + $0x128] sm:$0xff] }
 0x3c3   :  { %984 = vmatprep.mubr.f32.mxu0 %v3342_v55  ;;  %1795 = vmatpush3.msra.mxu1 %v3386_v12  ;;  %v2856_v12 = vld [vmem:[%s3259_s2 + $0x120] sm:$0xff] }
 0x3c4   :  { %1796 = vmatprep.mubr.msk.f32.mxu1 %vm1993_vm0, %v3342_v55  ;;  %1111 = vmatprep.subr.mxu0 %v2761_v13 }
 0x3c5   :  { %1799 = vmatprep.subr.mxu1 %v3342_v55 }
 0x42f   :  { %v706_v15 = vpop.xlane.xlu1 %705 }
 0x430   :  { %v707_v17 = vadd.f32 %v706_v15, %v3387_v16  ;;  %v2868_v15 = vld [vmem:[%s3259_s2 + $0x110] sm:$0xff] }
 0x432   :  { %v713_v19 = vrot.slane %v707_v17, %v3388_v18  ;;  %v2875_v17 = vld [vmem:[%s3259_s2 + $0x108] sm:$0xff] }
 0x434   :  { %891 = vst.msk [vmem:[%s3267_s8 + $0x2] sm:$0x1] %vm85_vm1, %v713_v19  ;;  %v715_v20 = vsel %vm708_vm5, %v713_v19, %v702_v14  ;;  %v2862_v14 = vld [vmem:[%s3259_s2 + $0x130] sm:$0xff]  ;;  %v2881_v19 = vld [vmem:[%s3259_s2 + $0x118] sm:$0xff] }
 0x435   :  { %v719_v22 = vrot.slane %v715_v20, %v3389_v21  ;;  %892 = vst.msk [vmem:[%s3261_s7 + $0x3] sm:$0x1] %vm85_vm1, %v715_v20  ;;  %v2887_v20 = vld [vmem:[%s3259_s2 + $0xf8] sm:$0xff] }
 0x437   :  { %721 = vbcast.lane.b32.xlu1 %v719_v22, 256  ;;  %v2894_v22 = vld [vmem:[%s3259_s2 + $0xf0] sm:$0xff] }
 0x463   :  { %v866_v23 = vpop.f32.mrf.mxu1  ;;  %v795_v26 = vpop.f32.mrf.mxu0 }
 0x464   :  { %v796_v31 = vadd.f32 %v795_v26, %v3356_v60  ;;  %v867_v52 = vadd.f32 %v866_v23, %v2472_v29  ;;  %v2900_v23 = vld [vmem:[%s3259_s2 + $0x100] sm:$0xff]  ;;  %v2913_v26 = vld [vmem:[%s3259_s2 + $0xd8] sm:$0xff] }
 0x465   :  { %v1763_v24 = vpop.f32.mrf.mxu1  ;;  %v797_v39 = vpop.f32.mrf.mxu0 }
 0x466   :  { %v798_v48 = vadd.f32 %v797_v39, %v2462_v3  ;;  %v2906_v24 = vld [vmem:[%s3259_s2 + $0xe0] sm:$0xff]  ;;  %v2957_v39 = vld [vmem:[%s3259_s2 + $0xb8] sm:$0xff] }
 0x4a9   :  { %v722_v27 = vpop.permute.xlu1 %721 }
 0x4aa   :  { %v723_v30 = vmul.f32 %v722_v27, %v3390_v28  ;;  %v724_v33 = vmul.f32 %v722_v27, %v3391_v32  ;;  %v725_v53 = vmul.f32 %v722_v27, %v2470_v49  ;;  %v2919_v27 = vld [vmem:[%s3259_s2 + $0xe8] sm:$0xff] }
 0x4ac   :  { %v726_v34 = vadd.f32 %v723_v30, %v3358_v47  ;;  %v727_v42 = vadd.f32 %v724_v33, %v2465_v57  ;;  %v728_v56 = vadd.f32 %v725_v53, %v2474_v61  ;;  %v2925_v30 = vld [vmem:[%s3259_s2 + $0xc8] sm:$0xff]  ;;  %v2938_v33 = vld [vmem:[%s3259_s2 + $0xd0] sm:$0xff] }
 0x4ad   :  { %v3014_v53 = vld [vmem:[%s3259_s2 + $0x70] sm:$0xff] }
 0x4ae   :  { %v870_v35 = vadd.f32 %v796_v31, %v726_v34  ;;  %v877_v37 = vadd.f32 %v798_v48, %v727_v42  ;;  %v2932_v31 = vld [vmem:[%s3259_s2 + $0xc0] sm:$0xff]  ;;  %v2944_v34 = vld [vmem:[%s3259_s2 + $0xb0] sm:$0xff]  ;;  %v2963_v42 = vld [vmem:[%s3259_s2 + $0x98] sm:$0xff] }
 0x4af   :  { %v2976_v48 = vld [vmem:[%s3259_s2 + $0xa0] sm:$0xff] }
 0x4b0   :  { %v1497_v46 = vmul.f32 -1.442695, %v870_v35  ;;  %v1498_v63 = vmul.f32 -1.442695, %v877_v37  ;;  %v2951_v35 = vld [vmem:[%s3259_s2 + $0xa8] sm:$0xff]  ;;  %v2982_v37 = vld [vmem:[%s3259_s2 + $0x80] sm:$0xff] }
 0x4b2   :  { %1903 = vpow2.f32 %v1497_v46  ;;  %v2970_v46 = vld [vmem:[%s3259_s2 + $0x90] sm:$0xff] }
 0x4b3   :  { %1905 = vpow2.f32 %v1498_v63  ;;  %v2989_v63 = vld [vmem:[%s3259_s2 + $0x78] sm:$0xff] }
 0x4bf   :  { %v1904_v25 = vpop.eup %1903 }
 0x4c0   :  { %v874_v38 = vadd.f32 1.0, %v1904_v25  ;;  %v1906_v43 = vpop.eup %1905  ;;  %v2995_v25 = vld [vmem:[%s3259_s2 + $0x88] sm:$0xff] }
 0x4c1   :  { %v881_v50 = vadd.f32 1.0, %v1906_v43  ;;  %v3008_v43 = vld [vmem:[%s3259_s2 + $0x60] sm:$0xff] }
 0x4c2   :  { %1907 = vrcp.f32 %v874_v38  ;;  %v3001_v38 = vld [vmem:[%s3259_s2 + $0x68] sm:$0xff] }
 0x4c3   :  { %1909 = vrcp.f32 %v881_v50  ;;  %v3020_v50 = vld [vmem:[%s3259_s2 + $0x50] sm:$0xff] }
 0x4cf   :  { %v1908_v40 = vpop.eup %1907 }
 0x4d0   :  { %v884_v45 = vmul.f32 %v1908_v40, %v867_v52  ;;  %v1910_v44 = vpop.eup %1909  ;;  %v3027_v52 = vld [vmem:[%s3259_s2 + $0x48] sm:$0xff]  ;;  %v3033_v40 = vld [vmem:[%s3259_s2 + $0x58] sm:$0xff] }
 0x4d1   :  { %v887_v0 = vsub.f32 1.0, %v1910_v44  ;;  %v889_v59 = vmul.f32 %v1910_v44, %v2686_v58  ;;  %v2804_v58 = vld [vmem:[%s3259_s2 + $0x178] sm:$0xff]  ;;  %3392 = vst [vmem:[#allocation18_spill] sm:$0xff] %v3027_v52  ;;  %3393 = vst [vmem:[#allocation17_spill] sm:$0xff] %v3033_v40  ;;  %v3058_v44 = vld [vmem:[%s3259_s2 + $0x20] sm:$0xff] }
 0x4d2   :  { %v885_v36 = vadd.f32 %v884_v45, %v728_v56  ;;  %v3039_v56 = vld [vmem:[%s3259_s2 + $0x38] sm:$0xff]  ;;  %v3046_v45 = vld [vmem:[%s3259_s2 + $0x30] sm:$0xff]  ;;  %3397 = vst [vmem:[#allocation5_spill] sm:$0xff] %v3058_v44 }
 0x4d3   :  { %3394 = vst [vmem:[#allocation3_spill] sm:$0xff] %v3039_v56  ;;  %3395 = vst [vmem:[#allocation4_spill] sm:$0xff] %v3046_v45 }
 0x4d4   :  { %1911 = vtanh.f32 %v885_v36  ;;  %v3052_v36 = vld [vmem:[%s3259_s2 + $0x40] sm:$0xff] }
 0x4d5   :  { %3396 = vst [vmem:[#allocation12_spill] sm:$0xff] %v3052_v36 }
 0x4e1   :  { %v1912_v62 = vpop.eup %1911 }
 0x4e2   :  { %v888_v54 = vmul.f32 %v1912_v62, %v887_v0  ;;  %v3065_v0 = vld [vmem:[%s3259_s2 + $0x18] sm:$0xff]  ;;  %v3071_v62 = vld [vmem:[%s3259_s2 + $0x28] sm:$0xff] }
 0x4e3   :  { %3398 = vst [vmem:[#allocation6_spill] sm:$0xff] %v3065_v0  ;;  %3399 = vst [vmem:[#allocation13_spill] sm:$0xff] %v3071_v62 }
 0x4e4   :  { %v2789_v41 = vadd.f32 %v889_v59, %v888_v54  ;;  %v3077_v54 = vld [vmem:[%s3259_s2 + $0x8] sm:$0xff]  ;;  %v3084_v59 = vld [vmem:[%s3259_s2] sm:$0xff] }
 0x4e5   :  { %3400 = vst [vmem:[#allocation7_spill] sm:$0xff] %v3077_v54  ;;  %3401 = vst [vmem:[#allocation9_spill] sm:$0xff] %v3084_v59 }
 0x4e6   :  { %985 = vmatmul.mubr.f32.vlgmr.msra.gmra.mxu0 %v2789_v41  ;;  %1797 = vmatmul.mubr.f32.vlgmr.msra.gmra.mxu1 %v2789_v41  ;;  %v894_v1 = vmul.f32 %v2482_v51, %v2789_v41 }
 0x4e7   :  { %1112 = vmatpush1.msra.mxu0 %v2798_v2  ;;  %1800 = vmatpush3.msra.mxu1 %v2804_v58 }
 0x4e8   :  { %v895_v4 = vsel %vm318_vm2, %v894_v1, 0.0  ;;  %1113 = vmatprep.subr.mxu0 %v2811_v5  ;;  %1801 = vmatprep.subr.mxu1 %v3342_v55  ;;  %v3091_v1 = vld [vmem:[%s3259_s2 + $0x10] sm:$0xff] }
 0x4e9   :  { %896 = vadd.xlane.f32.xlu0 %v895_v4  ;;  %1114 = vmatpush1.msra.mxu0 %v2818_v6  ;;  %3402 = vst [vmem:[#allocation14_spill] sm:$0xff] %v3091_v1  ;;  %v893_v4 = vld [vmem:[%s3260_s0 + $0x4] sm:$0x1] }
 0x4ea   :  { %1802 = vmatpush3.msra.mxu1 %v2824_v7  ;;  %1115 = vmatprep.subr.mxu0 %v2830_v8  ;;  %vm899_vm6 = vcmp.eq.f32.partialorder %v893_v4, 128.0 }
 0x4eb   :  { %1803 = vmatprep.subr.mxu1 %v3342_v55  ;;  %1116 = vmatpush1.msra.mxu0 %v2837_v9 }
 0x4ec   :  { %1804 = vmatpush3.msra.mxu1 %v2843_v10  ;;  %1117 = vmatprep.subr.mxu0 %v2849_v11 }
 0x4ed   :  { %1805 = vmatprep.subr.mxu1 %v3342_v55  ;;  %1118 = vmatpush1.msra.mxu0 %v2856_v12 }
 0x4ee   :  { %1806 = vmatpush3.msra.mxu1 %v2862_v14  ;;  %1119 = vmatprep.subr.mxu0 %v2868_v15 }
 0x4ef   :  { %1807 = vmatprep.subr.mxu1 %v3342_v55  ;;  %1120 = vmatpush1.msra.mxu0 %v2875_v17 }
 0x4f0   :  { %1808 = vmatpush3.msra.mxu1 %v2881_v19  ;;  %1121 = vmatprep.subr.mxu0 %v2887_v20 }
 0x4f1   :  { %1809 = vmatprep.subr.mxu1 %v3342_v55  ;;  %1122 = vmatpush1.msra.mxu0 %v2894_v22 }
 0x4f2   :  { %1810 = vmatpush3.msra.mxu1 %v2900_v23  ;;  %1123 = vmatprep.subr.mxu0 %v2906_v24 }
 0x4f3   :  { %1811 = vmatprep.subr.mxu1 %v3342_v55  ;;  %1124 = vmatpush1.msra.mxu0 %v2913_v26 }
 0x4f4   :  { %1812 = vmatpush3.msra.mxu1 %v2919_v27  ;;  %1125 = vmatprep.subr.mxu0 %v2925_v30 }
 0x4f5   :  { %1813 = vmatprep.subr.mxu1 %v3342_v55  ;;  %1126 = vmatpush1.msra.mxu0 %v2932_v31 }
 0x4f6   :  { %1814 = vmatpush3.msra.mxu1 %v2938_v33  ;;  %1127 = vmatprep.subr.mxu0 %v2944_v34 }
 0x4f7   :  { %1815 = vmatprep.subr.mxu1 %v3342_v55  ;;  %1128 = vmatpush1.msra.mxu0 %v2951_v35 }
 0x4f8   :  { %1816 = vmatpush3.msra.mxu1 %v2957_v39  ;;  %1129 = vmatprep.subr.mxu0 %v2963_v42 }
 0x4f9   :  { %1817 = vmatprep.subr.mxu1 %v3342_v55  ;;  %1130 = vmatpush1.msra.mxu0 %v2970_v46 }
 0x4fa   :  { %1818 = vmatpush3.msra.mxu1 %v2976_v48  ;;  %1131 = vmatprep.subr.mxu0 %v2982_v37 }
 0x4fb   :  { %1819 = vmatprep.subr.mxu1 %v3342_v55  ;;  %1132 = vmatpush1.msra.mxu0 %v2989_v63 }
 0x4fc   :  { %1820 = vmatpush3.msra.mxu1 %v2995_v25  ;;  %1133 = vmatprep.subr.mxu0 %v3001_v38 }
 0x4fd   :  { %1821 = vmatprep.subr.mxu1 %v3342_v55  ;;  %1134 = vmatpush1.msra.mxu0 %v3008_v43 }
 0x4fe   :  { %1822 = vmatpush3.msra.mxu1 %v3014_v53  ;;  %1135 = vmatprep.subr.mxu0 %v3020_v50 }
 0x4ff   :  { %1823 = vmatprep.subr.mxu1 %v3342_v55  ;;  %1136 = vmatpush1.msra.mxu0 %v3027_v52 }
 0x500   :  { %1824 = vmatpush3.msra.mxu1 %v3033_v40  ;;  %1137 = vmatprep.subr.mxu0 %v3039_v56 }
 0x501   :  { %1825 = vmatprep.subr.mxu1 %v3342_v55  ;;  %1138 = vmatpush1.msra.mxu0 %v3046_v45 }
 0x502   :  { %1826 = vmatpush3.msra.mxu1 %v3052_v36  ;;  %1139 = vmatprep.subr.mxu0 %v3058_v44 }
 0x503   :  { %1827 = vmatprep.subr.mxu1 %v3342_v55  ;;  %1140 = vmatpush1.msra.mxu0 %v3065_v0 }
 0x504   :  { %1828 = vmatpush3.msra.mxu1 %v3071_v62  ;;  %1141 = vmatprep.subr.mxu0 %v3077_v54 }
 0x505   :  { %1829 = vmatprep.subr.mxu1 %v3342_v55  ;;  %1142 = vmatpush1.msra.mxu0 %v3084_v59 }
 0x506   :  { %1175 = vmatprep.mubr.f32.mxu0 %v3342_v55  ;;  %1830 = vmatpush3.msra.mxu1 %v3091_v1 }
 0x507   :  { %1831 = vmatprep.mubr.msk.f32.mxu1 %vm1993_vm0, %v3342_v55  ;;  %1302 = vmatprep.subr.mxu0 %v2761_v13 }
 0x508   :  { %1834 = vmatprep.subr.mxu1 %v3342_v55 }
 0x572   :  { %v897_v59 = vpop.xlane.xlu0 %896 }
 0x573   :  { %v898_v54 = vadd.f32 %v897_v59, %v3387_v16 }
 0x575   :  { %v904_v62 = vrot.slane %v898_v54, %v3388_v18 }
 0x577   :  { %1082 = vst.msk [vmem:[%s3267_s8 + $0x3] sm:$0x1] %vm85_vm1, %v904_v62  ;;  %v906_v1 = vsel %vm899_vm6, %v904_v62, %v893_v4 }
 0x578   :  { %v910_v13 = vrot.slane %v906_v1, %v3389_v21  ;;  %1083 = vst.msk [vmem:[%s3261_s7 + $0x4] sm:$0x1] %vm85_vm1, %v906_v1 }
 0x57a   :  { %912 = vbcast.lane.b32.xlu1 %v910_v13, 256 }
 0x5a6   :  { %v1057_v0 = vpop.f32.mrf.mxu1  ;;  %v986_v59 = vpop.f32.mrf.mxu0 }
 0x5a7   :  { %v987_v18 = vadd.f32 %v986_v59, %v3356_v60 }
 0x5a8   :  { %v1798_v44 = vpop.f32.mrf.mxu1  ;;  %v988_v21 = vpop.f32.mrf.mxu0 }
 0x5a9   :  { %v989_v1 = vadd.f32 %v988_v21, %v2462_v3 }
 0x5ec   :  { %v913_v16 = vpop.permute.xlu1 %912 }
 0x5ed   :  { %v914_v54 = vmul.f32 %v913_v16, %v3390_v28  ;;  %v915_v36 = vmul.f32 %v913_v16, %v3391_v32  ;;  %v916_v59 = vmul.f32 %v913_v16, %v2470_v49 }
 0x5ef   :  { %v917_v62 = vadd.f32 %v914_v54, %v3358_v47  ;;  %v918_v45 = vadd.f32 %v915_v36, %v2465_v57  ;;  %v1058_v54 = vadd.f32 %v1057_v0, %v2472_v29 }
 0x5f1   :  { %v1061_v4 = vadd.f32 %v987_v18, %v917_v62  ;;  %v1068_v13 = vadd.f32 %v989_v1, %v918_v45  ;;  %v919_v62 = vadd.f32 %v916_v59, %v2474_v61 }
 0x5f3   :  { %v1499_v56 = vmul.f32 -1.442695, %v1061_v4  ;;  %v1500_v44 = vmul.f32 -1.442695, %v1068_v13 }
 0x5f5   :  { %1913 = vpow2.f32 %v1499_v56 }
 0x5f6   :  { %1915 = vpow2.f32 %v1500_v44 }
 0x602   :  { %v1914_v40 = vpop.eup %1913 }
 0x603   :  { %v1065_v52 = vadd.f32 1.0, %v1914_v40  ;;  %v1916_v28 = vpop.eup %1915 }
 0x604   :  { %v1072_v32 = vadd.f32 1.0, %v1916_v28 }
 0x605   :  { %1917 = vrcp.f32 %v1065_v52 }
 0x606   :  { %1919 = vrcp.f32 %v1072_v32  ;;  %v3404_v32 = vld [vmem:[#allocation17_spill] sm:$0xff] }
 0x612   :  { %v1918_v18 = vpop.eup %1917 }
 0x613   :  { %v1075_v36 = vmul.f32 %v1918_v18, %v1058_v54  ;;  %v1920_v21 = vpop.eup %1919 }
 0x614   :  { %v1078_v56 = vsub.f32 1.0, %v1920_v21  ;;  %v1080_v40 = vmul.f32 %v1920_v21, %v2789_v41  ;;  %v3405_v41 = vld [vmem:[#allocation3_spill] sm:$0xff] }
 0x615   :  { %v1076_v4 = vadd.f32 %v1075_v36, %v919_v62 }
 0x617   :  { %1921 = vtanh.f32 %v1076_v4 }
 0x624   :  { %v1922_v45 = vpop.eup %1921 }
 0x625   :  { %v1079_v1 = vmul.f32 %v1922_v45, %v1078_v56 }
 0x627   :  { %v3122_v52 = vadd.f32 %v1080_v40, %v1079_v1  ;;  %v1991_v40 = vld [vmem:[%s3266_s5] ss:$0 sm:$0xff] }
 0x629   :  { %1176 = vmatmul.mubr.f32.vlgmr.msra.gmra.mxu0 %v3122_v52  ;;  %1832 = vmatmul.mubr.f32.vlgmr.msra.gmra.mxu1 %v3122_v52  ;;  %v1085_v16 = vmul.f32 %v2482_v51, %v3122_v52  ;;  %v3403_v51 = vld [vmem:[#allocation18_spill] sm:$0xff] }
 0x62a   :  { %1303 = vmatpush1.msra.mxu0 %v2798_v2  ;;  %1835 = vmatpush3.msra.mxu1 %v2804_v58  ;;  %v3406_v2 = vld [vmem:[#allocation4_spill] sm:$0xff] }
 0x62b   :  { %v1086_v28 = vsel %vm318_vm2, %v1085_v16, 0.0  ;;  %1304 = vmatprep.subr.mxu0 %v2811_v5  ;;  %1836 = vmatprep.subr.mxu1 %v3342_v55  ;;  %v3407_v58 = vld [vmem:[#allocation12_spill] sm:$0xff]  ;;  %v3408_v5 = vld [vmem:[#allocation5_spill] sm:$0xff] }
 0x62c   :  { %1087 = vadd.xlane.f32.xlu1 %v1086_v28  ;;  %1305 = vmatpush1.msra.mxu0 %v2818_v6  ;;  %v3409_v6 = vld [vmem:[#allocation6_spill] sm:$0xff] }
 0x62d   :  { %1837 = vmatpush3.msra.mxu1 %v2824_v7  ;;  %1306 = vmatprep.subr.mxu0 %v2830_v8  ;;  %v3410_v7 = vld [vmem:[#allocation13_spill] sm:$0xff]  ;;  %v3411_v8 = vld [vmem:[#allocation7_spill] sm:$0xff] }
 0x62e   :  { %1838 = vmatprep.subr.mxu1 %v3342_v55  ;;  %1307 = vmatpush1.msra.mxu0 %v2837_v9  ;;  %v3412_v9 = vld [vmem:[#allocation9_spill] sm:$0xff] }
 0x62f   :  { %1839 = vmatpush3.msra.mxu1 %v2843_v10  ;;  %1308 = vmatprep.subr.mxu0 %v2849_v11  ;;  %v3413_v10 = vld [vmem:[#allocation14_spill] sm:$0xff]  ;;  %v1084_v11 = vld [vmem:[%s3260_s0 + $0x5] sm:$0x1] }
 0x630   :  { %1840 = vmatprep.subr.mxu1 %v3342_v55  ;;  %1309 = vmatpush1.msra.mxu0 %v2856_v12  ;;  %vm1090_vm7 = vcmp.eq.f32.partialorder %v1084_v11, 128.0 }
 0x631   :  { %1841 = vmatpush3.msra.mxu1 %v2862_v14  ;;  %1310 = vmatprep.subr.mxu0 %v2868_v15  ;;  %v3414_v14 = vld [vmem:[#allocation20_spill] sm:$0xff] }
 0x632   :  { %1842 = vmatprep.subr.mxu1 %v3342_v55  ;;  %1311 = vmatpush1.msra.mxu0 %v2875_v17  ;;  %v3415_v17 = vld [vmem:[#allocation21_spill] sm:$0xff] }
 0x633   :  { %1843 = vmatpush3.msra.mxu1 %v2881_v19  ;;  %1312 = vmatprep.subr.mxu0 %v2887_v20 }
 0x634   :  { %1844 = vmatprep.subr.mxu1 %v3342_v55  ;;  %1313 = vmatpush1.msra.mxu0 %v2894_v22  ;;  %v3416_v22 = vld [vmem:[#allocation8_spill] sm:$0xff] }
 0x635   :  { %1845 = vmatpush3.msra.mxu1 %v2900_v23  ;;  %1314 = vmatprep.subr.mxu0 %v2906_v24 }
 0x636   :  { %1846 = vmatprep.subr.mxu1 %v3342_v55  ;;  %1315 = vmatpush1.msra.mxu0 %v2913_v26 }
 0x637   :  { %1847 = vmatpush3.msra.mxu1 %v2919_v27  ;;  %1316 = vmatprep.subr.mxu0 %v2925_v30  ;;  %v3417_v30 = vld [vmem:[#allocation16_spill] sm:$0xff] }
 0x638   :  { %1848 = vmatprep.subr.mxu1 %v3342_v55  ;;  %1317 = vmatpush1.msra.mxu0 %v2932_v31 }
 0x639   :  { %1849 = vmatpush3.msra.mxu1 %v2938_v33  ;;  %1318 = vmatprep.subr.mxu0 %v2944_v34  ;;  %v3418_v34 = vld [vmem:[#allocation19_spill] sm:$0xff] }
 0x63a   :  { %1850 = vmatprep.subr.mxu1 %v3342_v55  ;;  %1319 = vmatpush1.msra.mxu0 %v2951_v35 }
 0x63b   :  { %1851 = vmatpush3.msra.mxu1 %v2957_v39  ;;  %1320 = vmatprep.subr.mxu0 %v2963_v42 }
 0x63c   :  { %1852 = vmatprep.subr.mxu1 %v3342_v55  ;;  %1321 = vmatpush1.msra.mxu0 %v2970_v46 }
 0x63d   :  { %1853 = vmatpush3.msra.mxu1 %v2976_v48  ;;  %1322 = vmatprep.subr.mxu0 %v2982_v37 }
 0x63e   :  { %1854 = vmatprep.subr.mxu1 %v3342_v55  ;;  %1323 = vmatpush1.msra.mxu0 %v2989_v63 }
 0x63f   :  { %1855 = vmatpush3.msra.mxu1 %v2995_v25  ;;  %1324 = vmatprep.subr.mxu0 %v3001_v38 }
 0x640   :  { %1856 = vmatprep.subr.mxu1 %v3342_v55  ;;  %1325 = vmatpush1.msra.mxu0 %v3008_v43 }
 0x641   :  { %1857 = vmatpush3.msra.mxu1 %v3014_v53  ;;  %1326 = vmatprep.subr.mxu0 %v3020_v50 }
 0x642   :  { %1858 = vmatprep.subr.mxu1 %v3342_v55  ;;  %1327 = vmatpush1.msra.mxu0 %v3403_v51  ;;  %v1275_v51 = vld [vmem:[%s3260_s0 + $0x6] sm:$0x1] }
 0x643   :  { %1859 = vmatpush3.msra.mxu1 %v3404_v32  ;;  %1328 = vmatprep.subr.mxu0 %v3405_v41  ;;  %vm1281_vm8 = vcmp.eq.f32.partialorder %v1275_v51, 128.0 }
 0x644   :  { %1860 = vmatprep.subr.mxu1 %v3342_v55  ;;  %1329 = vmatpush1.msra.mxu0 %v3406_v2 }
 0x645   :  { %1861 = vmatpush3.msra.mxu1 %v3407_v58  ;;  %1330 = vmatprep.subr.mxu0 %v3408_v5 }
 0x646   :  { %1862 = vmatprep.subr.mxu1 %v3342_v55  ;;  %1331 = vmatpush1.msra.mxu0 %v3409_v6 }
 0x647   :  { %1863 = vmatpush3.msra.mxu1 %v3410_v7  ;;  %1332 = vmatprep.subr.mxu0 %v3411_v8 }
 0x648   :  { %1864 = vmatprep.subr.mxu1 %v3342_v55  ;;  %1333 = vmatpush1.msra.mxu0 %v3412_v9 }
 0x649   :  { %1366 = vmatprep.mubr.f32.mxu0 %v3342_v55  ;;  %1865 = vmatpush3.msra.mxu1 %v3413_v10 }
 0x64a   :  { %1866 = vmatprep.mubr.msk.f32.mxu1 %vm1993_vm0, %v3342_v55 }
 0x6b5   :  { %v1088_v12 = vpop.xlane.xlu1 %1087 }
 0x6b6   :  { %v1089_v15 = vadd.f32 %v1088_v12, %v3414_v14 }
 0x6b8   :  { %v1095_v19 = vrot.slane %v1089_v15, %v3415_v17 }
 0x6ba   :  { %1273 = vst.msk [vmem:[%s3267_s8 + $0x4] sm:$0x1] %vm85_vm1, %v1095_v19  ;;  %v1097_v20 = vsel %vm1090_vm7, %v1095_v19, %v1084_v11 }
 0x6bb   :  { %v1101_v23 = vrot.slane %v1097_v20, %v3416_v22  ;;  %1274 = vst.msk [vmem:[%s3261_s7 + $0x5] sm:$0x1] %vm85_vm1, %v1097_v20 }
 0x6bd   :  { %1103 = vbcast.lane.b32.xlu0 %v1101_v23, 256 }
 0x6e9   :  { %v1248_v55 = vpop.f32.mrf.mxu1  ;;  %v1177_v26 = vpop.f32.mrf.mxu0 }
 0x6ea   :  { %v1178_v33 = vadd.f32 %v1177_v26, %v3356_v60  ;;  %v1249_v44 = vadd.f32 %v1248_v55, %v2472_v29 }
 0x6eb   :  { %v1833_v24 = vpop.f32.mrf.mxu1  ;;  %v1179_v46 = vpop.f32.mrf.mxu0 }
 0x6ec   :  { %v1180_v63 = vadd.f32 %v1179_v46, %v2462_v3 }
 0x72f   :  { %v1104_v27 = vpop.permute.xlu0 %1103 }
 0x730   :  { %v1105_v31 = vmul.f32 %v1104_v27, %v3417_v30  ;;  %v1106_v35 = vmul.f32 %v1104_v27, %v3418_v34  ;;  %v1107_v0 = vmul.f32 %v1104_v27, %v2470_v49 }
 0x732   :  { %v1108_v39 = vadd.f32 %v1105_v31, %v3358_v47  ;;  %v1109_v48 = vadd.f32 %v1106_v35, %v2465_v57  ;;  %v1110_v54 = vadd.f32 %v1107_v0, %v2474_v61 }
 0x734   :  { %v1252_v42 = vadd.f32 %v1178_v33, %v1108_v39  ;;  %v1259_v25 = vadd.f32 %v1180_v63, %v1109_v48 }
 0x736   :  { %v1501_v37 = vmul.f32 -1.442695, %v1252_v42  ;;  %v1502_v38 = vmul.f32 -1.442695, %v1259_v25 }
 0x738   :  { %1923 = vpow2.f32 %v1501_v37 }
 0x739   :  { %1925 = vpow2.f32 %v1502_v38 }
 0x745   :  { %v1924_v43 = vpop.eup %1923 }
 0x746   :  { %v1256_v53 = vadd.f32 1.0, %v1924_v43  ;;  %v1926_v50 = vpop.eup %1925 }
 0x747   :  { %v1263_v13 = vadd.f32 1.0, %v1926_v50 }
 0x748   :  { %1927 = vrcp.f32 %v1256_v53 }
 0x749   :  { %1929 = vrcp.f32 %v1263_v13 }
 0x755   :  { %v1928_v59 = vpop.eup %1927 }
 0x756   :  { %v1266_v18 = vmul.f32 %v1928_v59, %v1249_v44  ;;  %v1930_v36 = vpop.eup %1929 }
 0x757   :  { %v1269_v4 = vsub.f32 1.0, %v1930_v36  ;;  %v1271_v45 = vmul.f32 %v1930_v36, %v3122_v52 }
 0x758   :  { %v1267_v62 = vadd.f32 %v1266_v18, %v1110_v54 }
 0x75a   :  { %1931 = vtanh.f32 %v1267_v62 }
 0x767   :  { %v1932_v21 = vpop.eup %1931 }
 0x768   :  { %v1270_v56 = vmul.f32 %v1932_v21, %v1269_v4 }
 0x76a   :  { %v1272_v1 = vadd.f32 %v1271_v45, %v1270_v56 }
 0x76c   :  { %1367 = vmatmul.mubr.f32.vlgmr.msra.gmra.mxu0 %v1272_v1  ;;  %1867 = vmatmul.mubr.f32.vlgmr.msra.gmra.mxu1 %v1272_v1  ;;  %v1276_v16 = vmul.f32 %v1991_v40, %v1272_v1 }
 0x76e   :  { %v1277_v28 = vsel %vm318_vm2, %v1276_v16, 0.0 }
 0x76f   :  { %1278 = vadd.xlane.f32.xlu1 %v1277_v28 }
 0x7f8   :  { %v1279_v32 = vpop.xlane.xlu1 %1278 }
 0x7f9   :  { %v1280_v41 = vadd.f32 %v1279_v32, %v3414_v14 }
 0x7fb   :  { %v1286_v52 = vrot.slane %v1280_v41, %v3415_v17 }
 0x7fd   :  { %1464 = vst.msk [vmem:[%s3267_s8 + $0x5] sm:$0x1] %vm85_vm1, %v1286_v52  ;;  %v1288_v2 = vsel %vm1281_vm8, %v1286_v52, %v1275_v51 }
 0x7fe   :  { %v1292_v58 = vrot.slane %v1288_v2, %v3416_v22  ;;  %1465 = vst.msk [vmem:[%s3261_s7 + $0x6] sm:$0x1] %vm85_vm1, %v1288_v2 }
 0x800   :  { %1294 = vbcast.lane.b32.xlu1 %v1292_v58, 256 }
 0x82c   :  { %v1439_v5 = vpop.f32.mrf.mxu1  ;;  %v1368_v7 = vpop.f32.mrf.mxu0 }
 0x82d   :  { %v1369_v10 = vadd.f32 %v1368_v7, %v3356_v60 }
 0x82e   :  { %v1868_v6 = vpop.f32.mrf.mxu1  ;;  %v1370_v19 = vpop.f32.mrf.mxu0 }
 0x82f   :  { %v1371_v23 = vadd.f32 %v1370_v19, %v2462_v3 }
 0x872   :  { %v1295_v8 = vpop.permute.xlu1 %1294 }
 0x873   :  { %v1296_v9 = vmul.f32 %v1295_v8, %v3417_v30  ;;  %v1297_v11 = vmul.f32 %v1295_v8, %v3418_v34  ;;  %v1298_v60 = vmul.f32 %v1295_v8, %v2470_v49  ;;  %v1466_v49 = vld [vmem:[%s3260_s0 + $0x7] sm:$0x1] }
 0x874   :  { %vm1472_vm9 = vcmp.eq.f32.partialorder %v1466_v49, 128.0 }
 0x875   :  { %v1299_v12 = vadd.f32 %v1296_v9, %v3358_v47  ;;  %v1300_v20 = vadd.f32 %v1297_v11, %v2465_v57  ;;  %v1440_v47 = vadd.f32 %v1439_v5, %v2472_v29  ;;  %v1301_v34 = vadd.f32 %v1298_v60, %v2474_v61 }
 0x877   :  { %v1443_v15 = vadd.f32 %v1369_v10, %v1299_v12  ;;  %v1450_v55 = vadd.f32 %v1371_v23, %v1300_v20 }
 0x879   :  { %v1503_v22 = vmul.f32 -1.442695, %v1443_v15  ;;  %v1504_v24 = vmul.f32 -1.442695, %v1450_v55 }
 0x87b   :  { %1933 = vpow2.f32 %v1503_v22 }
 0x87c   :  { %1935 = vpow2.f32 %v1504_v24 }
 0x888   :  { %v1934_v26 = vpop.eup %1933 }
 0x889   :  { %v1447_v27 = vadd.f32 1.0, %v1934_v26  ;;  %v1936_v30 = vpop.eup %1935 }
 0x88a   :  { %v1454_v31 = vadd.f32 1.0, %v1936_v30 }
 0x88b   :  { %1937 = vrcp.f32 %v1447_v27 }
 0x88c   :  { %1939 = vrcp.f32 %v1454_v31 }
 0x898   :  { %v1938_v33 = vpop.eup %1937 }
 0x899   :  { %v1457_v57 = vmul.f32 %v1938_v33, %v1440_v47  ;;  %v1940_v3 = vpop.eup %1939 }
 0x89a   :  { %v1460_v39 = vsub.f32 1.0, %v1940_v3  ;;  %v1462_v48 = vmul.f32 %v1940_v3, %v1272_v1 }
 0x89b   :  { %v1458_v35 = vadd.f32 %v1457_v57, %v1301_v34 }
 0x89d   :  { %1941 = vtanh.f32 %v1458_v35 }
 0x8aa   :  { %v1942_v42 = vpop.eup %1941 }
 0x8ab   :  { %v1461_v46 = vmul.f32 %v1942_v42, %v1460_v39 }
 0x8ad   :  { %v1463_v37 = vadd.f32 %v1462_v48, %v1461_v46 }
 0x8af   :  { %v1467_v63 = vmul.f32 %v1991_v40, %v1463_v37 }
 0x8b1   :  { %v1468_v25 = vsel %vm318_vm2, %v1467_v63, 0.0 }
 0x8b2   :  { %1469 = vadd.xlane.f32.xlu0 %v1468_v25 }
 0x93b   :  { %v1470_v29 = vpop.xlane.xlu0 %1469 }
 0x93c   :  { %v1471_v61 = vadd.f32 %v1470_v29, %v3414_v14 }
 0x93e   :  { %v1477_v38 = vrot.slane %v1471_v61, %v3415_v17 }
 0x940   :  { %v1479_v43 = vsel %vm1472_vm9, %v1477_v38, %v1466_v49  ;;  %1480 = vst.msk [vmem:[%s3267_s8 + $0x6] sm:$0x1] %vm85_vm1, %v1477_v38 }
 0x941   :  { %1481 = vst.msk [vmem:[%s3261_s7 + $0x7] sm:$0x1] %vm85_vm1, %v1479_v43 }

// kernel: model_forward.5
= control target key start
LH: loop header
LB: loop body
LE: loop exit
PB: predicated region body
PF: predicated region fallthrough
CT: control target
= control target key end

     0   :  { %v1215_v0 = vmov 2   ;;  %v1216_v1 = vmov 1   ;;  %v1217_v6 = vmov 3   ;;  %v1218_v7 = vmov 10   ;;  %s1242_s20 = smov 120   ;;  %s1243_s21 = smov 124   ;;  %s1781_s1 = inlined_call_operand.vmem [shape: bf16[16,27], index: 1, kind: input, shape index: {}]   ;;  %s1782_s0 = inlined_call_operand.vmem [shape: f32[2,1,112], index: 0, kind: input, shape index: {}]   ;;  %s1783_s2 = inlined_call_operand.vmem [shape: f32[16,1], index: 2, kind: input, shape index: {}]   ;;  %s1784_s3 = inlined_call_operand.vmem [shape: f32[16,1], index: 3, kind: input, shape index: {}]   ;;  %s1785_s4 = inlined_call_operand.vmem [shape: f32[2,16,8], index: 4, kind: output, shape index: {}]  }
   0x1   :  { %1054 = vset.pattern.permute.xlu1 %v1215_v0  ;;  %1048 = vset.pattern.permute.xlu0 %v1216_v1  ;;  %v992_v2 = vld [vmem:[%s1781_s1] sm:$0xff]   ;;  %v1219_v8 = vmov 4   ;;  %v1220_v9 = vmov 11   ;;  %v1221_v10 = vmov 5   ;;  %v1222_v11 = vmov 13   ;;  %s1245_s22 = smov 112  }
   0x2   :  { %v993_v3 = vunpack.c.l.bf16 %v992_v2  ;;  %v994_v4 = vunpack.c.h.bf16 %v992_v2  ;;  %v1223_v12 = vmov 6   ;;  %v1224_v13 = vmov 14   ;;  %v1332_v33 = vld [vmem:[%s1782_s0] ss:$0 sm:$0xff]  ;;  %v1342_v39 = vld [vmem:[%s1782_s0 + $0x1] ss:$0 sm:$0xff] }
   0x3   :  { %v1225_v14 = vmov 7   ;;  %v1226_v15 = vmov 16   ;;  %v1227_v16 = vmov 8   ;;  %v1228_v17 = vmov 17   ;;  %s1244_s0 = smov 116   ;;  %s1246_s23 = smov 108  }
   0x4   :  { %v1296_v5 = vpack.i.bf16 %v994_v4, %v993_v3  ;;  %v1229_v18 = vmov 9   ;;  %v1230_v19 = vmov 19   ;;  %v1231_v20 = vmov 12   ;;  %s1247_s24 = smov 104   ;;  %s1248_s25 = smov 100  }
   0x5   :  { %v1232_v21 = vmov 20   ;;  %v1233_v22 = vmov 15   ;;  %v1234_v23 = vmov 22   ;;  %v1235_v24 = vmov 18   ;;  %s1249_s26 = smov 96   ;;  %s1250_s27 = smov 92  }
   0x6   :  { %1056 = vperm.xlu1 %1054, %v1296_v5   ;;  %1050 = vperm.xlu0 %1048, %v1296_v5   ;;  %v1236_v25 = vmov 23   ;;  %v1237_v26 = vmov 21   ;;  %v1238_v27 = vmov 25   ;;  %v1239_v28 = vmov 24   ;;  %s1251_s28 = smov 88   ;;  %s1252_s29 = smov 84  }
   0x7   :  { %v1240_v29 = vmov 26   ;;  %v1241_v30 = vmov 0   ;;  %s1253_s30 = smov 80   ;;  %s1254_s5 = smov 76   ;;  %vm562_vm0 = vcmask 64512  }
   0x8   :  { %s1255_s6 = smov 72   ;;  %s1256_s7 = smov 68  }
   0x9   :  { %s1257_s8 = smov 64   ;;  %s1258_s9 = smov 60  }
   0xa   :  { %1060 = vset.pattern.permute.xlu0 %v1217_v6  ;;  %1102 = vset.pattern.permute.xlu1 %v1218_v7  ;;  %s1259_s10 = smov 56   ;;  %s1260_s11 = smov 52  }
   0xb   :  { %1062 = vperm.xlu0 %1060, %v1296_v5   ;;  %1104 = vperm.xlu1 %1102, %v1296_v5   ;;  %s1261_s12 = smov 48   ;;  %s1262_s13 = smov 44  }
   0xc   :  { %s1263_s14 = smov 40   ;;  %s1264_s15 = smov 36  }
   0xd   :  { %s1265_s16 = smov 32   ;;  %s1266_s1 = smov 28  }
   0xe   :  { %s1267_s17 = smov 24  }
   0xf   :  { %1066 = vset.pattern.permute.xlu0 %v1219_v8  ;;  %1108 = vset.pattern.permute.xlu1 %v1220_v9 }
  0x10   :  { %1068 = vperm.xlu0 %1066, %v1296_v5   ;;  %1110 = vperm.xlu1 %1108, %v1296_v5  }
  0x14   :  { %1072 = vset.pattern.permute.xlu0 %v1221_v10  ;;  %1120 = vset.pattern.permute.xlu1 %v1222_v11 }
  0x15   :  { %1074 = vperm.xlu0 %1072, %v1296_v5   ;;  %1122 = vperm.xlu1 %1120, %v1296_v5  }
  0x19   :  { %1078 = vset.pattern.permute.xlu0 %v1223_v12  ;;  %1126 = vset.pattern.permute.xlu1 %v1224_v13 }
  0x1a   :  { %1080 = vperm.xlu0 %1078, %v1296_v5   ;;  %1128 = vperm.xlu1 %1126, %v1296_v5  }
  0x1e   :  { %1084 = vset.pattern.permute.xlu0 %v1225_v14  ;;  %1138 = vset.pattern.permute.xlu1 %v1226_v15 }
  0x1f   :  { %1086 = vperm.xlu0 %1084, %v1296_v5   ;;  %1140 = vperm.xlu1 %1138, %v1296_v5  }
  0x23   :  { %1090 = vset.pattern.permute.xlu0 %v1227_v16  ;;  %1144 = vset.pattern.permute.xlu1 %v1228_v17 }
  0x24   :  { %1092 = vperm.xlu0 %1090, %v1296_v5   ;;  %1146 = vperm.xlu1 %1144, %v1296_v5  }
  0x28   :  { %1096 = vset.pattern.permute.xlu0 %v1229_v18  ;;  %1156 = vset.pattern.permute.xlu1 %v1230_v19 }
  0x29   :  { %1098 = vperm.xlu0 %1096, %v1296_v5   ;;  %1158 = vperm.xlu1 %1156, %v1296_v5  }
  0x2d   :  { %1114 = vset.pattern.permute.xlu0 %v1231_v20  ;;  %1162 = vset.pattern.permute.xlu1 %v1232_v21 }
  0x2e   :  { %1116 = vperm.xlu0 %1114, %v1296_v5   ;;  %1164 = vperm.xlu1 %1162, %v1296_v5  }
  0x32   :  { %1132 = vset.pattern.permute.xlu0 %v1233_v22  ;;  %1174 = vset.pattern.permute.xlu1 %v1234_v23 }
  0x33   :  { %1134 = vperm.xlu0 %1132, %v1296_v5   ;;  %1176 = vperm.xlu1 %1174, %v1296_v5  }
  0x37   :  { %1150 = vset.pattern.permute.xlu0 %v1235_v24  ;;  %1180 = vset.pattern.permute.xlu1 %v1236_v25 }
  0x38   :  { %1152 = vperm.xlu0 %1150, %v1296_v5   ;;  %1182 = vperm.xlu1 %1180, %v1296_v5  }
  0x3c   :  { %1168 = vset.pattern.permute.xlu0 %v1237_v26  ;;  %1198 = vset.pattern.permute.xlu1 %v1238_v27 }
  0x3d   :  { %1170 = vperm.xlu0 %1168, %v1296_v5   ;;  %1200 = vperm.xlu1 %1198, %v1296_v5  }
  0x41   :  { %1186 = vset.pattern.permute.xlu0 %v1239_v28  ;;  %1204 = vset.pattern.permute.xlu1 %v1240_v29 }
  0x42   :  { %1188 = vperm.xlu0 %1186, %v1296_v5   ;;  %1206 = vperm.xlu1 %1204, %v1296_v5  }
  0x46   :  { %1192 = vset.pattern.permute.xlu0 %v1241_v30  ;;  %1210 = vset.pattern.permute.xlu1 %v1241_v30 }
  0x47   :  { %1194 = vperm.xlu0 %1192, %v1296_v5  }
  0x81   :  { %v1325_v31 = vpop.permute.xlu1 %1056  ;;  %v1327_v32 = vpop.permute.xlu0 %1050 }
  0x82   :  { %v1058_v34 = vunpack.i.l.bf16 %v1325_v31  ;;  %v1052_v35 = vunpack.i.l.bf16 %v1327_v32  ;;  %v1053_v36 = vunpack.i.h.bf16 %v1327_v32  ;;  %v1059_v40 = vunpack.i.h.bf16 %v1325_v31 }
  0x84   :  { %v70_v37 = vmul.f32 %v1058_v34, %v1332_v33  ;;  %v50_v38 = vmul.f32 %v1052_v35, %v1332_v33  ;;  %v583_v42 = vmul.f32 %v1052_v35, %v1342_v39  ;;  %v51_v43 = vmul.f32 %v1053_v36, %v1332_v33 }
  0x85   :  { %v595_v45 = vmul.f32 %v1058_v34, %v1342_v39  ;;  %v71_v46 = vmul.f32 %v1059_v40, %v1332_v33 }
  0x86   :  { %74 = vrot.lane.b32.xlu0 %v70_v37, %s1242_s20  ;;  %54 = vrot.lane.b32.xlu1 %v50_v38, %s1243_s21  ;;  %v1347_v41 = vpop.permute.xlu0 %1062  ;;  %v1415_v12 = vpop.permute.xlu1 %1104  ;;  %v584_v37 = vmul.f32 %v1053_v36, %v1342_v39 }
  0x87   :  { %v1064_v44 = vunpack.i.l.bf16 %v1347_v41  ;;  %v1065_v51 = vunpack.i.h.bf16 %v1347_v41  ;;  %v1106_v14 = vunpack.i.l.bf16 %v1415_v12 }
  0x89   :  { %v607_v49 = vmul.f32 %v1064_v44, %v1342_v39  ;;  %v90_v50 = vmul.f32 %v1064_v44, %v1332_v33  ;;  %v91_v55 = vmul.f32 %v1065_v51, %v1332_v33  ;;  %v230_v17 = vmul.f32 %v1106_v14, %v1332_v33 }
  0x8a   :  { %587 = vrot.lane.b32.xlu0 %v583_v42, %s1243_s21  ;;  %56 = vrot.lane.b32.xlu1 %v51_v43, %s1243_s21  ;;  %v691_v22 = vmul.f32 %v1106_v14, %v1342_v39  ;;  %v596_v44 = vmul.f32 %v1059_v40, %v1342_v39  ;;  %v608_v36 = vmul.f32 %v1065_v51, %v1342_v39 }
  0x8b   :  { %v1360_v47 = vpop.permute.xlu0 %1068  ;;  %v1429_v19 = vpop.permute.xlu1 %1110 }
  0x8c   :  { %v1070_v48 = vunpack.i.l.bf16 %v1360_v47  ;;  %v1071_v60 = vunpack.i.h.bf16 %v1360_v47  ;;  %v1112_v21 = vunpack.i.l.bf16 %v1429_v19 }
  0x8e   :  { %599 = vrot.lane.b32.xlu0 %v595_v45, %s1242_s20  ;;  %76 = vrot.lane.b32.xlu1 %v71_v46, %s1242_s20  ;;  %v619_v54 = vmul.f32 %v1070_v48, %v1342_v39  ;;  %v110_v59 = vmul.f32 %v1070_v48, %v1332_v33  ;;  %v111_v0 = vmul.f32 %v1071_v60, %v1332_v33 }
  0x8f   :  { %v250_v24 = vmul.f32 %v1112_v21, %v1332_v33  ;;  %v703_v29 = vmul.f32 %v1112_v21, %v1342_v39  ;;  %v620_v46 = vmul.f32 %v1071_v60, %v1342_v39 }
  0x90   :  { %v1368_v52 = vpop.permute.xlu0 %1074  ;;  %v1452_v35 = vpop.permute.xlu1 %1122 }
  0x91   :  { %v1076_v53 = vunpack.i.l.bf16 %v1368_v52  ;;  %v1077_v4 = vunpack.i.h.bf16 %v1368_v52  ;;  %v1124_v38 = vunpack.i.l.bf16 %v1452_v35 }
  0x92   :  { %611 = vrot.lane.b32.xlu0 %v607_v49, %s1244_s0  ;;  %94 = vrot.lane.b32.xlu1 %v90_v50, %s1244_s0 }
  0x93   :  { %v631_v58 = vmul.f32 %v1076_v53, %v1342_v39  ;;  %v130_v2 = vmul.f32 %v1076_v53, %v1332_v33  ;;  %v131_v8 = vmul.f32 %v1077_v4, %v1332_v33  ;;  %v290_v32 = vmul.f32 %v1124_v38, %v1332_v33 }
  0x94   :  { %v727_v40 = vmul.f32 %v1124_v38, %v1342_v39  ;;  %v632_v50 = vmul.f32 %v1077_v4, %v1342_v39 }
  0x95   :  { %v1377_v56 = vpop.permute.xlu0 %1080  ;;  %v1461_v43 = vpop.permute.xlu1 %1128 }
  0x96   :  { %623 = vrot.lane.b32.xlu0 %v619_v54, %s1245_s22  ;;  %96 = vrot.lane.b32.xlu1 %v91_v55, %s1244_s0  ;;  %v1082_v57 = vunpack.i.l.bf16 %v1377_v56  ;;  %v1083_v13 = vunpack.i.h.bf16 %v1377_v56  ;;  %v1130_v31 = vunpack.i.l.bf16 %v1461_v43 }
  0x98   :  { %v643_v62 = vmul.f32 %v1082_v57, %v1342_v39  ;;  %v150_v10 = vmul.f32 %v1082_v57, %v1332_v33  ;;  %v151_v16 = vmul.f32 %v1083_v13, %v1332_v33  ;;  %v310_v41 = vmul.f32 %v1130_v31, %v1332_v33 }
  0x99   :  { %v739_v51 = vmul.f32 %v1130_v31, %v1342_v39  ;;  %v644_v53 = vmul.f32 %v1083_v13, %v1342_v39 }
  0x9a   :  { %635 = vrot.lane.b32.xlu0 %v631_v58, %s1246_s23  ;;  %114 = vrot.lane.b32.xlu1 %v110_v59, %s1245_s22  ;;  %v1387_v61 = vpop.permute.xlu0 %1086  ;;  %v1472_v45 = vpop.permute.xlu1 %1140 }
  0x9b   :  { %v1088_v63 = vunpack.i.l.bf16 %v1387_v61  ;;  %v1089_v20 = vunpack.i.h.bf16 %v1387_v61  ;;  %v1142_v59 = vunpack.i.l.bf16 %v1472_v45 }
  0x9d   :  { %v655_v1 = vmul.f32 %v1088_v63, %v1342_v39  ;;  %v170_v18 = vmul.f32 %v1088_v63, %v1332_v33  ;;  %v171_v23 = vmul.f32 %v1089_v20, %v1332_v33  ;;  %v656_v55 = vmul.f32 %v1089_v20, %v1342_v39 }
  0x9e   :  { %647 = vrot.lane.b32.xlu0 %v643_v62, %s1247_s24  ;;  %116 = vrot.lane.b32.xlu1 %v111_v0, %s1245_s22  ;;  %v350_v61 = vmul.f32 %v1142_v59, %v1332_v33 }
  0x9f   :  { %v1398_v3 = vpop.permute.xlu0 %1092  ;;  %v1484_v48 = vpop.permute.xlu1 %1146 }
  0xa0   :  { %v1094_v5 = vunpack.i.l.bf16 %v1398_v3  ;;  %v1095_v27 = vunpack.i.h.bf16 %v1398_v3  ;;  %v763_v3 = vmul.f32 %v1142_v59, %v1342_v39 }
  0xa2   :  { %659 = vrot.lane.b32.xlu0 %v655_v1, %s1248_s25  ;;  %134 = vrot.lane.b32.xlu1 %v130_v2, %s1246_s23  ;;  %v667_v6 = vmul.f32 %v1094_v5, %v1342_v39  ;;  %v190_v25 = vmul.f32 %v1094_v5, %v1332_v33  ;;  %v191_v30 = vmul.f32 %v1095_v27, %v1332_v33  ;;  %v1107_v1 = vunpack.i.h.bf16 %v1415_v12 }
  0xa3   :  { %v668_v60 = vmul.f32 %v1095_v27, %v1342_v39  ;;  %v1148_v2 = vunpack.i.l.bf16 %v1484_v48 }
  0xa4   :  { %v1405_v7 = vpop.permute.xlu0 %1098  ;;  %v1498_v54 = vpop.permute.xlu1 %1158  ;;  %v692_v12 = vmul.f32 %v1107_v1, %v1342_v39 }
  0xa5   :  { %v1100_v9 = vunpack.i.l.bf16 %v1405_v7  ;;  %v1101_v56 = vunpack.i.h.bf16 %v1405_v7  ;;  %v370_v7 = vmul.f32 %v1148_v2, %v1332_v33  ;;  %v1160_v21 = vunpack.i.l.bf16 %v1498_v54 }
  0xa6   :  { %671 = vrot.lane.b32.xlu0 %v667_v6, %s1249_s26  ;;  %136 = vrot.lane.b32.xlu1 %v131_v8, %s1246_s23  ;;  %v231_v8 = vmul.f32 %v1107_v1, %v1332_v33 }
  0xa7   :  { %v210_v11 = vmul.f32 %v1100_v9, %v1332_v33  ;;  %v679_v15 = vmul.f32 %v1100_v9, %v1342_v39  ;;  %v211_v62 = vmul.f32 %v1101_v56, %v1332_v33  ;;  %v680_v4 = vmul.f32 %v1101_v56, %v1342_v39 }
  0xa9   :  { %v1441_v26 = vpop.permute.xlu0 %1116  ;;  %v1507_v58 = vpop.permute.xlu1 %1164 }
  0xaa   :  { %214 = vrot.lane.b32.xlu0 %v210_v11, %s1250_s27  ;;  %154 = vrot.lane.b32.xlu1 %v150_v10, %s1247_s24  ;;  %v1118_v28 = vunpack.i.l.bf16 %v1441_v26  ;;  %v1113_v10 = vunpack.i.h.bf16 %v1429_v19  ;;  %v775_v11 = vmul.f32 %v1148_v2, %v1342_v39  ;;  %v1119_v20 = vunpack.i.h.bf16 %v1441_v26 }
  0xac   :  { %v270_v34 = vmul.f32 %v1118_v28, %v1332_v33  ;;  %v715_v42 = vmul.f32 %v1118_v28, %v1342_v39  ;;  %v271_v27 = vmul.f32 %v1119_v20, %v1332_v33  ;;  %v1125_v28 = vunpack.i.h.bf16 %v1452_v35 }
  0xad   :  { %v716_v38 = vmul.f32 %v1119_v20, %v1342_v39 }
  0xae   :  { %683 = vrot.lane.b32.xlu0 %v679_v15, %s1250_s27  ;;  %156 = vrot.lane.b32.xlu1 %v151_v16, %s1247_s24  ;;  %v1486_v49 = vpop.permute.xlu0 %1134  ;;  %v1516_v63 = vpop.permute.xlu1 %1176  ;;  %v251_v16 = vmul.f32 %v1113_v10, %v1332_v33 }
  0xaf   :  { %v1136_v47 = vunpack.i.l.bf16 %v1486_v49 }
  0xb1   :  { %v330_v52 = vmul.f32 %v1136_v47, %v1332_v33  ;;  %v751_v57 = vmul.f32 %v1136_v47, %v1342_v39 }
  0xb2   :  { %234 = vrot.lane.b32.xlu0 %v230_v17, %s1251_s28  ;;  %174 = vrot.lane.b32.xlu1 %v170_v18, %s1248_s25 }
  0xb3   :  { %v1518_v0 = vpop.permute.xlu0 %1152  ;;  %v1528_v5 = vpop.permute.xlu1 %1182 }
  0xb4   :  { %v1154_v9 = vunpack.i.l.bf16 %v1518_v0 }
  0xb6   :  { %695 = vrot.lane.b32.xlu0 %v691_v22, %s1251_s28  ;;  %176 = vrot.lane.b32.xlu1 %v171_v23, %s1248_s25  ;;  %v390_v15 = vmul.f32 %v1154_v9, %v1332_v33  ;;  %v787_v19 = vmul.f32 %v1154_v9, %v1342_v39  ;;  %v704_v22 = vmul.f32 %v1113_v10, %v1342_v39 }
  0xb8   :  { %v1530_v6 = vpop.permute.xlu0 %1170  ;;  %v1540_v13 = vpop.permute.xlu1 %1200 }
  0xba   :  { %254 = vrot.lane.b32.xlu0 %v250_v24, %s1252_s29  ;;  %194 = vrot.lane.b32.xlu1 %v190_v25, %s1249_s26  ;;  %v410_v25 = vmul.f32 %v1160_v21, %v1332_v33 }
  0xbd   :  { %v1542_v14 = vpop.permute.xlu0 %1188  ;;  %v1550_v17 = vpop.permute.xlu1 %1206 }
  0xbe   :  { %707 = vrot.lane.b32.xlu0 %v703_v29, %s1252_s29  ;;  %196 = vrot.lane.b32.xlu1 %v191_v30, %s1249_s26  ;;  %v1166_v29 = vunpack.i.l.bf16 %v1507_v58 }
  0xc0   :  { %v430_v35 = vmul.f32 %v1166_v29, %v1332_v33 }
  0xc2   :  { %274 = vrot.lane.b32.xlu0 %v270_v34, %s1253_s30  ;;  %589 = vrot.lane.b32.xlu1 %v584_v37, %s1243_s21  ;;  %v1552_v18 = vpop.permute.xlu0 %1194  ;;  %v799_v37 = vmul.f32 %v1160_v21, %v1342_v39 }
  0xc3   :  { %v1196_v26 = vunpack.i.l.bf16 %v1552_v18 }
  0xc6   :  { %719 = vrot.lane.b32.xlu0 %v715_v42, %s1253_s30  ;;  %601 = vrot.lane.b32.xlu1 %v596_v44, %s1242_s20  ;;  %v579_v42 = vmul.f32 %v1196_v26, %v1342_v39 }
  0xca   :  { %294 = vrot.lane.b32.xlu0 %v290_v32, %s1254_s5  ;;  %613 = vrot.lane.b32.xlu1 %v608_v36, %s1244_s0  ;;  %v291_v36 = vmul.f32 %v1125_v28, %v1332_v33 }
  0xce   :  { %731 = vrot.lane.b32.xlu0 %v727_v40, %s1254_s5  ;;  %625 = vrot.lane.b32.xlu1 %v620_v46, %s1245_s22  ;;  %v1172_v40 = vunpack.i.l.bf16 %v1530_v6 }
  0xd2   :  { %314 = vrot.lane.b32.xlu0 %v310_v41, %s1255_s6  ;;  %637 = vrot.lane.b32.xlu1 %v632_v50, %s1246_s23  ;;  %v1131_v41 = vunpack.i.h.bf16 %v1461_v43 }
  0xd4   :  { %v311_v59 = vmul.f32 %v1131_v41, %v1332_v33 }
  0xd6   :  { %743 = vrot.lane.b32.xlu0 %v739_v51, %s1255_s6  ;;  %649 = vrot.lane.b32.xlu1 %v644_v53, %s1247_s24  ;;  %v811_v51 = vmul.f32 %v1166_v29, %v1342_v39  ;;  %v728_v53 = vmul.f32 %v1125_v28, %v1342_v39 }
  0xda   :  { %334 = vrot.lane.b32.xlu0 %v330_v52, %s1256_s7  ;;  %661 = vrot.lane.b32.xlu1 %v656_v55, %s1248_s25  ;;  %v450_v55 = vmul.f32 %v1172_v40, %v1332_v33 }
  0xde   :  { %755 = vrot.lane.b32.xlu0 %v751_v57, %s1256_s7  ;;  %673 = vrot.lane.b32.xlu1 %v668_v60, %s1249_s26  ;;  %v823_v60 = vmul.f32 %v1172_v40, %v1342_v39 }
  0xe2   :  { %354 = vrot.lane.b32.xlu0 %v350_v61, %s1257_s8  ;;  %216 = vrot.lane.b32.xlu1 %v211_v62, %s1250_s27  ;;  %v1137_v61 = vunpack.i.h.bf16 %v1486_v49  ;;  %v1178_v62 = vunpack.i.l.bf16 %v1516_v63  ;;  %v1143_v49 = vunpack.i.h.bf16 %v1472_v45  ;;  %v38_v45 = vmul.f32 %v1196_v26, %v1332_v33 }
  0xe4   :  { %v331_v10 = vmul.f32 %v1137_v61, %v1332_v33 }
  0xe6   :  { %767 = vrot.lane.b32.xlu0 %v763_v3, %s1257_s8  ;;  %685 = vrot.lane.b32.xlu1 %v680_v4, %s1250_s27  ;;  %v740_v3 = vmul.f32 %v1131_v41, %v1342_v39 }
  0xea   :  { %374 = vrot.lane.b32.xlu0 %v370_v7, %s1258_s9  ;;  %236 = vrot.lane.b32.xlu1 %v231_v8, %s1251_s28  ;;  %v470_v7 = vmul.f32 %v1178_v62, %v1332_v33 }
  0xee   :  { %779 = vrot.lane.b32.xlu0 %v775_v11, %s1258_s9  ;;  %697 = vrot.lane.b32.xlu1 %v692_v12, %s1251_s28  ;;  %v752_v12 = vmul.f32 %v1137_v61, %v1342_v39 }
  0xf2   :  { %394 = vrot.lane.b32.xlu0 %v390_v15, %s1259_s10  ;;  %256 = vrot.lane.b32.xlu1 %v251_v16, %s1252_s29  ;;  %v835_v15 = vmul.f32 %v1178_v62, %v1342_v39  ;;  %v1184_v16 = vunpack.i.l.bf16 %v1528_v5 }
  0xf6   :  { %791 = vrot.lane.b32.xlu0 %v787_v19, %s1259_s10  ;;  %709 = vrot.lane.b32.xlu1 %v704_v22, %s1252_s29  ;;  %v351_v22 = vmul.f32 %v1143_v49, %v1332_v33 }
  0xf8   :  { %v1560_v23 = vpop.permute.xlu0 %74  ;;  %v1562_v24 = vpop.permute.xlu1 %54 }
  0xfa   :  { %414 = vrot.lane.b32.xlu0 %v410_v25, %s1260_s11  ;;  %276 = vrot.lane.b32.xlu1 %v271_v27, %s1253_s30  ;;  %v490_v25 = vmul.f32 %v1184_v16, %v1332_v33 }
  0xfc   :  { %v588_v30 = vpop.permute.xlu0 %587  ;;  %v1571_v34 = vpop.permute.xlu1 %56 }
  0xfd   :  { %v593_v31 = vadd.f32 %v588_v30, %v579_v42  ;;  %v1190_v30 = vunpack.i.l.bf16 %v1542_v14  ;;  %v847_v42 = vmul.f32 %v1184_v16, %v1342_v39 }
  0xfe   :  { %803 = vrot.lane.b32.xlu0 %v799_v37, %s1260_s11  ;;  %721 = vrot.lane.b32.xlu1 %v716_v38, %s1253_s30  ;;  %v764_v37 = vmul.f32 %v1143_v49, %v1342_v39  ;;  %v1149_v38 = vunpack.i.h.bf16 %v1484_v48 }
  0xff   :  { %v510_v26 = vmul.f32 %v1190_v30, %v1332_v33 }
 0x100   :  { %v600_v44 = vpop.permute.xlu0 %599  ;;  %v1580_v32 = vpop.permute.xlu1 %76 }
 0x101   :  { %v605_v46 = vadd.f32 %v600_v44, %v593_v31  ;;  %v371_v31 = vmul.f32 %v1149_v38, %v1332_v33 }
 0x102   :  { %434 = vrot.lane.b32.xlu0 %v430_v35, %s1261_s12  ;;  %296 = vrot.lane.b32.xlu1 %v291_v36, %s1254_s5  ;;  %v60_v36 = vadd.f32 %v1562_v24, %v38_v45 }
 0x104   :  { %v612_v50 = vpop.permute.xlu0 %611  ;;  %v1588_v47 = vpop.permute.xlu1 %94  ;;  %v80_v41 = vadd.f32 %v1560_v23, %v60_v36 }
 0x105   :  { %v617_v52 = vadd.f32 %v612_v50, %v605_v46  ;;  %v859_v50 = vmul.f32 %v1190_v30, %v1342_v39  ;;  %v1197_v30 = vunpack.i.h.bf16 %v1552_v18  ;;  %v1173_v18 = vunpack.i.h.bf16 %v1530_v6 }
 0x106   :  { %815 = vrot.lane.b32.xlu0 %v811_v51, %s1261_s12  ;;  %733 = vrot.lane.b32.xlu1 %v728_v53, %s1254_s5  ;;  %v100_v24 = vadd.f32 %v1588_v47, %v80_v41  ;;  %v776_v51 = vmul.f32 %v1149_v38, %v1342_v39  ;;  %v1155_v53 = vunpack.i.h.bf16 %v1518_v0 }
 0x107   :  { %v580_v38 = vmul.f32 %v1197_v30, %v1342_v39 }
 0x108   :  { %v624_v57 = vpop.permute.xlu0 %623  ;;  %v1595_v56 = vpop.permute.xlu1 %96 }
 0x109   :  { %v629_v43 = vadd.f32 %v624_v57, %v617_v52  ;;  %v1202_v52 = vunpack.i.l.bf16 %v1540_v13 }
 0x10a   :  { %454 = vrot.lane.b32.xlu0 %v450_v55, %s1262_s13  ;;  %316 = vrot.lane.b32.xlu1 %v311_v59, %s1255_s6 }
 0x10c   :  { %v636_v1 = vpop.permute.xlu0 %635  ;;  %v115_v2 = vpop.permute.xlu1 %114 }
 0x10d   :  { %v641_v4 = vadd.f32 %v636_v1, %v629_v43  ;;  %v120_v59 = vadd.f32 %v115_v2, %v100_v24  ;;  %v391_v43 = vmul.f32 %v1155_v53, %v1332_v33  ;;  %v1161_v2 = vunpack.i.h.bf16 %v1498_v54 }
 0x10e   :  { %827 = vrot.lane.b32.xlu0 %v823_v60, %s1262_s13  ;;  %745 = vrot.lane.b32.xlu1 %v740_v3, %s1255_s6  ;;  %v530_v60 = vmul.f32 %v1202_v52, %v1332_v33  ;;  %v788_v3 = vmul.f32 %v1155_v53, %v1342_v39  ;;  %v451_v24 = vmul.f32 %v1173_v18, %v1332_v33 }
 0x110   :  { %v648_v8 = vpop.permute.xlu0 %647  ;;  %v1607_v9 = vpop.permute.xlu1 %116 }
 0x111   :  { %v653_v11 = vadd.f32 %v648_v8, %v641_v4  ;;  %v871_v4 = vmul.f32 %v1202_v52, %v1342_v39 }
 0x112   :  { %474 = vrot.lane.b32.xlu0 %v470_v7, %s1263_s14  ;;  %336 = vrot.lane.b32.xlu1 %v331_v10, %s1256_s7  ;;  %v1208_v7 = vunpack.i.l.bf16 %v1550_v17 }
 0x114   :  { %v660_v19 = vpop.permute.xlu0 %659  ;;  %v135_v20 = vpop.permute.xlu1 %134 }
 0x115   :  { %v665_v21 = vadd.f32 %v660_v19, %v653_v11  ;;  %v140_v23 = vadd.f32 %v135_v20, %v120_v59  ;;  %v824_v59 = vmul.f32 %v1173_v18, %v1342_v39  ;;  %v1209_v18 = vunpack.i.h.bf16 %v1550_v17 }
 0x116   :  { %839 = vrot.lane.b32.xlu0 %v835_v15, %s1263_s14  ;;  %757 = vrot.lane.b32.xlu1 %v752_v12, %s1256_s7  ;;  %v411_v12 = vmul.f32 %v1161_v2, %v1332_v33  ;;  %v550_v15 = vmul.f32 %v1208_v7, %v1332_v33 }
 0x118   :  { %v672_v27 = vpop.permute.xlu0 %671  ;;  %v1620_v28 = vpop.permute.xlu1 %136 }
 0x119   :  { %v677_v29 = vadd.f32 %v672_v27, %v665_v21  ;;  %v883_v27 = vmul.f32 %v1208_v7, %v1342_v39  ;;  %v1185_v7 = vunpack.i.h.bf16 %v1528_v5 }
 0x11a   :  { %494 = vrot.lane.b32.xlu0 %v490_v25, %s1264_s15  ;;  %356 = vrot.lane.b32.xlu1 %v351_v22, %s1257_s8  ;;  %v800_v22 = vmul.f32 %v1161_v2, %v1342_v39  ;;  %v1167_v25 = vunpack.i.h.bf16 %v1507_v58 }
 0x11c   :  { %v215_v44 = vpop.permute.xlu0 %214  ;;  %v155_v35 = vpop.permute.xlu1 %154 }
 0x11d   :  { %v160_v62 = vadd.f32 %v155_v35, %v140_v23 }
 0x11e   :  { %851 = vrot.lane.b32.xlu0 %v847_v42, %s1264_s15  ;;  %769 = vrot.lane.b32.xlu1 %v764_v37, %s1257_s8  ;;  %v431_v42 = vmul.f32 %v1167_v25, %v1332_v33 }
 0x120   :  { %v684_v40 = vpop.permute.xlu0 %683  ;;  %v1636_v46 = vpop.permute.xlu1 %156 }
 0x121   :  { %v689_v48 = vadd.f32 %v684_v40, %v677_v29 }
 0x122   :  { %514 = vrot.lane.b32.xlu0 %v510_v26, %s1265_s16  ;;  %376 = vrot.lane.b32.xlu1 %v371_v31, %s1258_s9  ;;  %v812_v31 = vmul.f32 %v1167_v25, %v1342_v39  ;;  %v1191_v25 = vunpack.i.h.bf16 %v1542_v14  ;;  %v1203_v14 = vunpack.i.h.bf16 %v1540_v13 }
 0x124   :  { %v235_v55 = vpop.permute.xlu0 %234  ;;  %v175_v57 = vpop.permute.xlu1 %174 }
 0x125   :  { %v180_v0 = vadd.f32 %v175_v57, %v160_v62  ;;  %v1179_v57 = vunpack.i.h.bf16 %v1516_v63 }
 0x126   :  { %863 = vrot.lane.b32.xlu0 %v859_v50, %s1265_s16  ;;  %781 = vrot.lane.b32.xlu1 %v776_v51, %s1258_s9 }
 0x127   :  { %v471_v62 = vmul.f32 %v1179_v57, %v1332_v33 }
 0x128   :  { %v696_v61 = vpop.permute.xlu0 %695  ;;  %v1650_v47 = vpop.permute.xlu1 %176 }
 0x129   :  { %v701_v1 = vadd.f32 %v696_v61, %v689_v48  ;;  %v39_v61 = vmul.f32 %v1197_v30, %v1332_v33 }
 0x12a   :  { %534 = vrot.lane.b32.xlu0 %v530_v60, %s1266_s1  ;;  %396 = vrot.lane.b32.xlu1 %v391_v43, %s1259_s10 }
 0x12b   :  { %v61_v63 = vadd.f32 %v1571_v34, %v39_v61 }
 0x12c   :  { %v255_v8 = vpop.permute.xlu0 %254  ;;  %v195_v10 = vpop.permute.xlu1 %194 }
 0x12d   :  { %v200_v11 = vadd.f32 %v195_v10, %v180_v0 }
 0x12e   :  { %875 = vrot.lane.b32.xlu0 %v871_v4, %s1266_s1  ;;  %793 = vrot.lane.b32.xlu1 %v788_v3, %s1259_s10  ;;  %v836_v4 = vmul.f32 %v1179_v57, %v1342_v39 }
 0x12f   :  { %v220_v49 = vadd.f32 %v215_v44, %v200_v11  ;;  %v81_v11 = vadd.f32 %v1580_v32, %v61_v63 }
 0x130   :  { %v708_v16 = vpop.permute.xlu0 %707  ;;  %v1662_v54 = vpop.permute.xlu1 %196 }
 0x131   :  { %v713_v19 = vadd.f32 %v708_v16, %v701_v1  ;;  %v240_v20 = vadd.f32 %v235_v55, %v220_v49  ;;  %v491_v16 = vmul.f32 %v1185_v7, %v1332_v33 }
 0x132   :  { %554 = vrot.lane.b32.xlu0 %v550_v15, %s1267_s17  ;;  %416 = vrot.lane.b32.xlu1 %v411_v12, %s1260_s11  ;;  %v101_v15 = vadd.f32 %v1595_v56, %v81_v11 }
 0x133   :  { %v260_v21 = vadd.f32 %v255_v8, %v240_v20 }
 0x134   :  { %v275_v45 = vpop.permute.xlu0 %274  ;;  %v590_v29 = vpop.permute.xlu1 %589  ;;  %v121_v34 = vadd.f32 %v1607_v9, %v101_v15 }
 0x135   :  { %v280_v37 = vadd.f32 %v275_v45, %v260_v21  ;;  %v594_v36 = vadd.f32 %v590_v29, %v580_v38  ;;  %v511_v29 = vmul.f32 %v1191_v25, %v1332_v33 }
 0x136   :  { %887 = vrot.lane.b32.xlu0 %v883_v27, %s1267_s17  ;;  %805 = vrot.lane.b32.xlu1 %v800_v22, %s1260_s11  ;;  %v141_v32 = vadd.f32 %v1620_v28, %v121_v34  ;;  %v848_v22 = vmul.f32 %v1185_v7, %v1342_v39 }
 0x138   :  { %v720_v44 = vpop.permute.xlu0 %719  ;;  %v602_v35 = vpop.permute.xlu1 %601  ;;  %v161_v45 = vadd.f32 %v1636_v46, %v141_v32 }
 0x139   :  { %v725_v26 = vadd.f32 %v720_v44, %v713_v19  ;;  %v606_v58 = vadd.f32 %v602_v35, %v594_v36  ;;  %v860_v44 = vmul.f32 %v1191_v25, %v1342_v39 }
 0x13a   :  { %436 = vrot.lane.b32.xlu1 %v431_v42, %s1261_s12  ;;  %v181_v9 = vadd.f32 %v1650_v47, %v161_v45  ;;  %v531_v47 = vmul.f32 %v1203_v14, %v1332_v33 }
 0x13c   :  { %v295_v40 = vpop.permute.xlu0 %294  ;;  %v614_v41 = vpop.permute.xlu1 %613  ;;  %v201_v38 = vadd.f32 %v1662_v54, %v181_v9  ;;  %v872_v54 = vmul.f32 %v1203_v14, %v1342_v39 }
 0x13d   :  { %v300_v48 = vadd.f32 %v295_v40, %v280_v37  ;;  %v618_v50 = vadd.f32 %v614_v41, %v606_v58 }
 0x13e   :  { %817 = vrot.lane.b32.xlu1 %v812_v31, %s1261_s12 }
 0x140   :  { %v732_v51 = vpop.permute.xlu0 %731  ;;  %v626_v53 = vpop.permute.xlu1 %625 }
 0x141   :  { %v737_v52 = vadd.f32 %v732_v51, %v725_v26  ;;  %v630_v55 = vadd.f32 %v626_v53, %v618_v50  ;;  %v884_v53 = vmul.f32 %v1209_v18, %v1342_v39 }
 0x142   :  { %456 = vrot.lane.b32.xlu1 %v451_v24, %s1262_s13 }
 0x144   :  { %v315_v23 = vpop.permute.xlu0 %314  ;;  %v638_v6 = vpop.permute.xlu1 %637 }
 0x145   :  { %v320_v43 = vadd.f32 %v315_v23, %v300_v48  ;;  %v642_v60 = vadd.f32 %v638_v6, %v630_v55  ;;  %v551_v48 = vmul.f32 %v1209_v18, %v1332_v33 }
 0x146   :  { %829 = vrot.lane.b32.xlu1 %v824_v59, %s1262_s13 }
 0x148   :  { %v744_v1 = vpop.permute.xlu0 %743  ;;  %v650_v0 = vpop.permute.xlu1 %649 }
 0x149   :  { %v749_v2 = vadd.f32 %v744_v1, %v737_v52  ;;  %v654_v3 = vadd.f32 %v650_v0, %v642_v60 }
 0x14a   :  { %476 = vrot.lane.b32.xlu1 %v471_v62, %s1263_s14 }
 0x14c   :  { %v335_v8 = vpop.permute.xlu0 %334  ;;  %v662_v10 = vpop.permute.xlu1 %661 }
 0x14d   :  { %v1690_v49 = vadd.f32 %v335_v8, %v320_v43  ;;  %v666_v12 = vadd.f32 %v662_v10, %v654_v3 }
 0x14e   :  { %841 = vrot.lane.b32.xlu1 %v836_v4, %s1263_s14 }
 0x150   :  { %v756_v19 = vpop.permute.xlu0 %755  ;;  %v674_v20 = vpop.permute.xlu1 %673 }
 0x151   :  { %v1696_v21 = vadd.f32 %v756_v19, %v749_v2  ;;  %v678_v5 = vadd.f32 %v674_v20, %v666_v12 }
 0x152   :  { %496 = vrot.lane.b32.xlu1 %v491_v16, %s1264_s15 }
 0x154   :  { %v1702_v27 = vpop.permute.xlu0 %354  ;;  %v217_v56 = vpop.permute.xlu1 %216 }
 0x155   :  { %v221_v42 = vadd.f32 %v217_v56, %v201_v38  ;;  %v360_v34 = vadd.f32 %v1702_v27, %v1690_v49 }
 0x156   :  { %853 = vrot.lane.b32.xlu1 %v848_v22, %s1264_s15 }
 0x158   :  { %v768_v30 = vpop.permute.xlu0 %767  ;;  %v686_v37 = vpop.permute.xlu1 %685 }
 0x159   :  { %v690_v28 = vadd.f32 %v686_v37, %v678_v5  ;;  %v773_v25 = vadd.f32 %v768_v30, %v1696_v21 }
 0x15a   :  { %516 = vrot.lane.b32.xlu1 %v511_v29, %s1265_s16 }
 0x15c   :  { %v375_v35 = vpop.permute.xlu0 %374  ;;  %v237_v46 = vpop.permute.xlu1 %236 }
 0x15d   :  { %v241_v36 = vadd.f32 %v237_v46, %v221_v42  ;;  %v380_v5 = vadd.f32 %v375_v35, %v360_v34 }
 0x15e   :  { %865 = vrot.lane.b32.xlu1 %v860_v44, %s1265_s16 }
 0x160   :  { %v780_v26 = vpop.permute.xlu0 %779  ;;  %v698_v58 = vpop.permute.xlu1 %697 }
 0x161   :  { %v702_v31 = vadd.f32 %v698_v58, %v690_v28  ;;  %v785_v45 = vadd.f32 %v780_v26, %v773_v25 }
 0x162   :  { %536 = vrot.lane.b32.xlu1 %v531_v47, %s1266_s1 }
 0x164   :  { %v395_v40 = vpop.permute.xlu0 %394  ;;  %v257_v13 = vpop.permute.xlu1 %256 }
 0x165   :  { %v261_v41 = vadd.f32 %v257_v13, %v241_v36  ;;  %v400_v56 = vadd.f32 %v395_v40, %v380_v5 }
 0x166   :  { %877 = vrot.lane.b32.xlu1 %v872_v54, %s1266_s1 }
 0x168   :  { %v792_v50 = vpop.permute.xlu0 %791  ;;  %v710_v24 = vpop.permute.xlu1 %709 }
 0x169   :  { %v714_v51 = vadd.f32 %v710_v24, %v702_v31  ;;  %v797_v38 = vadd.f32 %v792_v50, %v785_v45 }
 0x16a   :  { %556 = vrot.lane.b32.xlu1 %v551_v48, %s1267_s17 }
 0x16c   :  { %v415_v52 = vpop.permute.xlu0 %414  ;;  %v277_v55 = vpop.permute.xlu1 %276 }
 0x16d   :  { %v281_v57 = vadd.f32 %v277_v55, %v261_v41  ;;  %v420_v9 = vadd.f32 %v415_v52, %v400_v56 }
 0x16e   :  { %889 = vrot.lane.b32.xlu1 %v884_v53, %s1267_s17 }
 0x170   :  { %v804_v17 = vpop.permute.xlu0 %803  ;;  %v722_v59 = vpop.permute.xlu1 %721 }
 0x171   :  { %v726_v23 = vadd.f32 %v722_v59, %v714_v51  ;;  %v809_v42 = vadd.f32 %v804_v17, %v797_v38 }
 0x174   :  { %v435_v6 = vpop.permute.xlu0 %434  ;;  %v297_v43 = vpop.permute.xlu1 %296 }
 0x175   :  { %v301_v60 = vadd.f32 %v297_v43, %v281_v57  ;;  %v440_v28 = vadd.f32 %v435_v6, %v420_v9 }
 0x178   :  { %v816_v61 = vpop.permute.xlu0 %815  ;;  %v734_v33 = vpop.permute.xlu1 %733 }
 0x179   :  { %v738_v62 = vadd.f32 %v734_v33, %v726_v23  ;;  %v821_v36 = vadd.f32 %v816_v61, %v809_v42 }
 0x17c   :  { %v455_v1 = vpop.permute.xlu0 %454  ;;  %v317_v0 = vpop.permute.xlu1 %316 }
 0x17d   :  { %v321_v2 = vadd.f32 %v317_v0, %v301_v60  ;;  %v460_v14 = vadd.f32 %v455_v1, %v440_v28 }
 0x180   :  { %v828_v3 = vpop.permute.xlu0 %827  ;;  %v746_v63 = vpop.permute.xlu1 %745 }
 0x181   :  { %v750_v39 = vadd.f32 %v746_v63, %v738_v62  ;;  %v833_v58 = vadd.f32 %v828_v3, %v821_v36 }
 0x184   :  { %v475_v4 = vpop.permute.xlu0 %474  ;;  %v337_v7 = vpop.permute.xlu1 %336 }
 0x185   :  { %v341_v8 = vadd.f32 %v337_v7, %v321_v2  ;;  %v480_v47 = vadd.f32 %v475_v4, %v460_v14 }
 0x188   :  { %v840_v10 = vpop.permute.xlu0 %839  ;;  %v758_v11 = vpop.permute.xlu1 %757 }
 0x189   :  { %v762_v12 = vadd.f32 %v758_v11, %v750_v39  ;;  %v845_v31 = vadd.f32 %v840_v10, %v833_v58 }
 0x18c   :  { %v495_v15 = vpop.permute.xlu0 %494  ;;  %v357_v16 = vpop.permute.xlu1 %356 }
 0x18d   :  { %v500_v49 = vadd.f32 %v495_v15, %v480_v47  ;;  %v361_v60 = vadd.f32 %v357_v16, %v341_v8 }
 0x190   :  { %v852_v19 = vpop.permute.xlu0 %851  ;;  %v770_v20 = vpop.permute.xlu1 %769 }
 0x191   :  { %v857_v21 = vadd.f32 %v852_v19, %v845_v31  ;;  %v774_v62 = vadd.f32 %v770_v20, %v762_v12 }
 0x194   :  { %v515_v32 = vpop.permute.xlu0 %514  ;;  %v377_v22 = vpop.permute.xlu1 %376 }
 0x195   :  { %v520_v54 = vadd.f32 %v515_v32, %v500_v49  ;;  %v381_v61 = vadd.f32 %v377_v22, %v361_v60 }
 0x198   :  { %v864_v29 = vpop.permute.xlu0 %863  ;;  %v782_v37 = vpop.permute.xlu1 %781 }
 0x199   :  { %v869_v40 = vadd.f32 %v864_v29, %v857_v21  ;;  %v786_v0 = vadd.f32 %v782_v37, %v774_v62 }
 0x19c   :  { %v535_v44 = vpop.permute.xlu0 %534  ;;  %v397_v46 = vpop.permute.xlu1 %396 }
 0x19d   :  { %v540_v30 = vadd.f32 %v535_v44, %v520_v54  ;;  %v401_v1 = vadd.f32 %v397_v46, %v381_v61 }
 0x1a0   :  { %v876_v27 = vpop.permute.xlu0 %875  ;;  %v794_v35 = vpop.permute.xlu1 %793 }
 0x1a1   :  { %v881_v41 = vadd.f32 %v876_v27, %v869_v40  ;;  %v798_v63 = vadd.f32 %v794_v35, %v786_v0 }
 0x1a4   :  { %v555_v26 = vpop.permute.xlu0 %554  ;;  %v417_v18 = vpop.permute.xlu1 %416 }
 0x1a5   :  { %v1725_v13 = vadd.f32 %v555_v26, %v540_v30  ;;  %v421_v2 = vadd.f32 %v417_v18, %v401_v1  ;;  %v936_v1 = vld [vmem:[%s1783_s2 + $0x8] sm:$0xff] }
 0x1a7   :  { %v563_v48 = vsel %vm562_vm0, %v1725_v13, 0.0 }
 0x1a8   :  { %v888_v50 = vpop.permute.xlu0 %887  ;;  %v806_v24 = vpop.permute.xlu1 %805  ;;  %564 = vadd.xlane.f32.xlu0 %v563_v48 }
 0x1a9   :  { %v1729_v51 = vadd.f32 %v888_v50, %v881_v41  ;;  %v810_v4 = vadd.f32 %v806_v24, %v798_v63 }
 0x1ab   :  { %v895_v53 = vsel %vm562_vm0, %v1729_v51, 0.0 }
 0x1ac   :  { %v437_v52 = vpop.permute.xlu1 %436  ;;  %896 = vadd.xlane.f32.xlu0 %v895_v53 }
 0x1ad   :  { %v441_v39 = vadd.f32 %v437_v52, %v421_v2 }
 0x1b0   :  { %v818_v55 = vpop.permute.xlu1 %817 }
 0x1b1   :  { %v822_v11 = vadd.f32 %v818_v55, %v810_v4  ;;  %v935_v55 = vld [vmem:[%s1783_s2] sm:$0xff] }
 0x1b4   :  { %v457_v57 = vpop.permute.xlu1 %456 }
 0x1b5   :  { %v461_v7 = vadd.f32 %v457_v57, %v441_v39 }
 0x1b8   :  { %v830_v17 = vpop.permute.xlu1 %829 }
 0x1b9   :  { %v834_v19 = vadd.f32 %v830_v17, %v822_v11 }
 0x1bc   :  { %v477_v59 = vpop.permute.xlu1 %476 }
 0x1bd   :  { %v481_v15 = vadd.f32 %v477_v59, %v461_v7  ;;  %v939_v59 = vld [vmem:[%s1784_s3] sm:$0xff] }
 0x1c0   :  { %v842_v23 = vpop.permute.xlu1 %841 }
 0x1c1   :  { %v846_v32 = vadd.f32 %v842_v23, %v834_v19 }
 0x1c4   :  { %v497_v6 = vpop.permute.xlu1 %496 }
 0x1c5   :  { %v501_v34 = vadd.f32 %v497_v6, %v481_v15 }
 0x1c8   :  { %v854_v43 = vpop.permute.xlu1 %853 }
 0x1c9   :  { %v858_v8 = vadd.f32 %v854_v43, %v846_v32 }
 0x1cc   :  { %v517_v33 = vpop.permute.xlu1 %516 }
 0x1cd   :  { %v521_v25 = vadd.f32 %v517_v33, %v501_v34 }
 0x1d0   :  { %v866_v3 = vpop.permute.xlu1 %865 }
 0x1d1   :  { %v870_v12 = vadd.f32 %v866_v3, %v858_v8  ;;  %v940_v3 = vld [vmem:[%s1784_s3 + $0x8] sm:$0xff] }
 0x1d4   :  { %v537_v10 = vpop.permute.xlu1 %536 }
 0x1d5   :  { %v541_v16 = vadd.f32 %v537_v10, %v521_v25 }
 0x1d8   :  { %v878_v5 = vpop.permute.xlu1 %877 }
 0x1d9   :  { %v882_v56 = vadd.f32 %v878_v5, %v870_v12 }
 0x1dc   :  { %v557_v22 = vpop.permute.xlu1 %556 }
 0x1dd   :  { %v1733_v20 = vadd.f32 %v557_v22, %v541_v16 }
 0x1df   :  { %v566_v45 = vsel %vm562_vm0, %v1733_v20, 0.0 }
 0x1e0   :  { %v890_v9 = vpop.permute.xlu1 %889  ;;  %567 = vadd.xlane.f32.xlu1 %v566_v45 }
 0x1e1   :  { %v1737_v29 = vadd.f32 %v890_v9, %v882_v56 }
 0x1e3   :  { %v898_v37 = vsel %vm562_vm0, %v1737_v29, 0.0 }
 0x1e4   :  { %899 = vadd.xlane.f32.xlu0 %v898_v37 }
 0x231   :  { %v565_v38 = vpop.xlane.xlu0 %564 }
 0x235   :  { %v897_v28 = vpop.xlane.xlu0 %896 }
 0x236   :  { %v901_v42 = vadd.f32 %v897_v28, %v565_v38 }
 0x238   :  { %v903_v14 = vmul.f32 0.0625, %v901_v42 }
 0x23a   :  { %v905_v44 = vsub.f32 %v1725_v13, %v903_v14  ;;  %v917_v46 = vsub.f32 %v1729_v51, %v903_v14 }
 0x23c   :  { %v907_v36 = vmul.f32 %v905_v44, %v905_v44  ;;  %v919_v58 = vmul.f32 %v917_v46, %v917_v46 }
 0x23e   :  { %v909_v47 = vsel %vm562_vm0, %v907_v36, 0.0  ;;  %v921_v49 = vsel %vm562_vm0, %v919_v58, 0.0 }
 0x23f   :  { %910 = vadd.xlane.f32.xlu1 %v909_v47 }
 0x243   :  { %922 = vadd.xlane.f32.xlu1 %v921_v49 }
 0x269   :  { %v568_v27 = vpop.xlane.xlu1 %567 }
 0x26d   :  { %v900_v35 = vpop.xlane.xlu0 %899 }
 0x26e   :  { %v902_v31 = vadd.f32 %v900_v35, %v568_v27 }
 0x270   :  { %v904_v54 = vmul.f32 0.0625, %v902_v31 }
 0x272   :  { %v906_v21 = vsub.f32 %v1733_v20, %v904_v54  ;;  %v918_v30 = vsub.f32 %v1737_v29, %v904_v54 }
 0x274   :  { %v908_v26 = vmul.f32 %v906_v21, %v906_v21  ;;  %v920_v40 = vmul.f32 %v918_v30, %v918_v30 }
 0x276   :  { %v912_v18 = vsel %vm562_vm0, %v908_v26, 0.0  ;;  %v924_v41 = vsel %vm562_vm0, %v920_v40, 0.0 }
 0x277   :  { %913 = vadd.xlane.f32.xlu0 %v912_v18 }
 0x27b   :  { %925 = vadd.xlane.f32.xlu0 %v924_v41 }
 0x2c8   :  { %v911_v48 = vpop.xlane.xlu1 %910 }
 0x2cc   :  { %v923_v50 = vpop.xlane.xlu1 %922 }
 0x2cd   :  { %v927_v24 = vadd.f32 %v923_v50, %v911_v48 }
 0x2cf   :  { %v929_v53 = vmul.f32 0.0625, %v927_v24 }
 0x2d1   :  { %v931_v52 = vadd.f32 1e-05, %v929_v53 }
 0x2d3   :  { %1211 = vrsqrt.f32 %v931_v52 }
 0x2e0   :  { %v1212_v57 = vpop.eup %1211 }
 0x2e1   :  { %v937_v17 = vmul.f32 %v1212_v57, %v935_v55 }
 0x2e3   :  { %947 = vperm.xlu1 %1210, %v937_v17   ;;  %v941_v23 = vmul.f32 %v937_v17, %v903_v14 }
 0x2e5   :  { %v943_v6 = vsub.f32 %v939_v59, %v941_v23 }
 0x2e7   :  { %959 = vperm.xlu1 %1210, %v943_v6  }
 0x300   :  { %v914_v43 = vpop.xlane.xlu0 %913 }
 0x304   :  { %v926_v60 = vpop.xlane.xlu0 %925 }
 0x305   :  { %v928_v61 = vadd.f32 %v926_v60, %v914_v43 }
 0x307   :  { %v930_v33 = vmul.f32 0.0625, %v928_v61 }
 0x309   :  { %v932_v62 = vadd.f32 1e-05, %v930_v33 }
 0x30b   :  { %1213 = vrsqrt.f32 %v932_v62 }
 0x318   :  { %v1214_v0 = vpop.eup %1213 }
 0x319   :  { %v938_v2 = vmul.f32 %v1214_v0, %v936_v1 }
 0x31b   :  { %952 = vperm.xlu0 %1192, %v938_v2   ;;  %v942_v63 = vmul.f32 %v938_v2, %v904_v54 }
 0x31d   :  { %v944_v39 = vsub.f32 %v940_v3, %v942_v63 }
 0x31f   :  { %964 = vperm.xlu1 %1210, %v944_v39  }
 0x35e   :  { %v948_v4 = vpop.permute.xlu1 %947 }
 0x35f   :  { %v955_v7 = vmul.f32 %v948_v4, %v1725_v13  ;;  %v971_v10 = vmul.f32 %v948_v4, %v1729_v51 }
 0x362   :  { %v960_v11 = vpop.permute.xlu1 %959 }
 0x363   :  { %v967_v15 = vadd.f32 %v960_v11, %v955_v7  ;;  %v973_v19 = vadd.f32 %v971_v10, %v960_v11 }
 0x365   :  { %v969_v34 = vmax.f32 %v967_v15, 0.0  ;;  %v975_v5 = vmax.f32 %v973_v19, 0.0 }
 0x367   :  { %977 = vst.msk [vmem:[%s1785_s4] sm:$0xff] %vm562_vm0, %v969_v34  ;;  %989 = vst.msk [vmem:[%s1785_s4 + $0x10] sm:$0xff] %vm562_vm0, %v975_v5 }
 0x396   :  { %v953_v32 = vpop.permute.xlu0 %952 }
 0x397   :  { %v956_v13 = vmul.f32 %v953_v32, %v1733_v20  ;;  %v972_v51 = vmul.f32 %v953_v32, %v1737_v29 }
 0x39a   :  { %v965_v25 = vpop.permute.xlu1 %964 }
 0x39b   :  { %v968_v8 = vadd.f32 %v965_v25, %v956_v13  ;;  %v974_v16 = vadd.f32 %v972_v51, %v965_v25 }
 0x39d   :  { %v970_v22 = vmax.f32 %v968_v8, 0.0  ;;  %v976_v12 = vmax.f32 %v974_v16, 0.0 }
 0x39f   :  { %978 = vst.msk [vmem:[%s1785_s4 + $0x8] sm:$0xff] %vm562_vm0, %v970_v22  ;;  %990 = vst.msk [vmem:[%s1785_s4 + $0x18] sm:$0xff] %vm562_vm0, %v976_v12 }

// kernel: model_forward.6
= control target key start
LH: loop header
LB: loop body
LE: loop exit
PB: predicated region body
PF: predicated region fallthrough
CT: control target
= control target key end

     0   :  { %v3403_v2 = vmov 0.0   ;;  %vm3404_vm0 = vmmov 0   ;;  %vm39_vm1 = vcmask 1045504   ;;  %s3405_s19 = smov 120   ;;  %s3406_s20 = smov 124   ;;  %vm35_vm2 = vcmask 97280   ;;  %s4065_s0 = inlined_call_operand.vmem [shape: f32[2,12,112], index: 0, kind: input, shape index: {}]   ;;  %s4066_s1 = inlined_call_operand.vmem [shape: bf16[16,324], index: 1, kind: input, shape index: {}]   ;;  %s4067_s2 = inlined_call_operand.vmem [shape: f32[16,1], index: 2, kind: input, shape index: {}]   ;;  %s4068_s3 = inlined_call_operand.vmem [shape: f32[16,1], index: 3, kind: input, shape index: {}]   ;;  %s4069_s4 = inlined_call_operand.vmem [shape: f32[2,16,8], index: 4, kind: output, shape index: {}]  }
   0x1   :  { %v22_v0 = vld [vmem:[%s4065_s0] sm:$0xff]  ;;  %v23_v1 = vld [vmem:[%s4065_s0 + $0x8] sm:$0xf]  ;;  %3042 = vmatprep.subr.bf16.mxu1 %v3403_v2  ;;  %3044 = vmatprep.mubr.msk.bf16.mxu1 %vm3404_vm0, %v3403_v2  ;;  %s3407_s23 = smov 116   ;;  %s3408_s24 = smov 92   ;;  %v2897_v8 = vld [vmem:[%s4065_s0 + $0x10] sm:$0xff] }
   0x2   :  { %v3470_v3 = vpack.c.bf16 %v23_v1, %v22_v0  ;;  %3036 = vmatprep.subr.bf16.mxu0 %v3403_v2  ;;  %3038 = vmatprep.mubr.msk.bf16.mxu0 %vm3404_vm0, %v3403_v2  ;;  %v3482_v4 = vld [vmem:[%s4066_s1] ss:$12 sps:$4 sm:$0xff]   ;;  %s3409_s25 = smov 104   ;;  %s3410_s26 = smov 108   ;;  %v3397_v6 = vld [vmem:[%s4066_s1 + $0x4] ss:$12 sps:$4 sm:$0xff]  }
   0x3   :  { %s3411_s27 = smov 112   ;;  %s3412_s28 = smov 68   ;;  %v3398_v7 = vld [vmem:[%s4066_s1 + $0x8] ss:$12 sps:$4 sm:$0xff]   ;;  %v2898_v9 = vld [vmem:[%s4065_s0 + $0x18] sm:$0xf] }
   0x4   :  { %133 = vrot.lane.b32.xlu1 %v3470_v3, %s3405_s19  ;;  %33 = vrot.lane.b32.xlu0 %v3470_v3, %s3406_s20  ;;  %v88_v5 = vsel %vm39_vm1, %v3470_v3, 0  ;;  %s3413_s29 = smov 80   ;;  %s3414_s30 = smov 100   ;;  %v3580_v10 = vpack.c.bf16 %v2898_v9, %v2897_v8  ;;  %vm562_vm3 = vcmask 64512   ;;  %vm1154_vm4 = vcmask 31744  }
   0x5   :  { %3043 = vmatpush3.bf16.msra.mxu1 %v88_v5  ;;  %s3415_s5 = smov 44   ;;  %s4070_s6 = smov 56  }
   0x6   :  { %3054 = vmatprep.subr.bf16.mxu1 %v3403_v2  ;;  %s3417_s7 = smov 96   ;;  %s3418_s8 = smov 20  }
   0x7   :  { %s3419_s9 = smov 32   ;;  %s3420_s10 = smov 84  }
   0x8   :  { %186 = vrot.lane.b32.xlu1 %v3470_v3, %s3407_s23  ;;  %30 = vrot.lane.b32.xlu0 %v3482_v4, %s3407_s23  ;;  %s3421_s11 = smov 88   ;;  %s3422_s14 = smov 8  }
   0x9   :  { %3045 = vmatmul.mubr.msk.bf16.vlgmr.msra.gmra.mxu1 %vm35_vm2, %v3482_v4  ;;  %s3423_s15 = smov 76   ;;  %s3424_s16 = smov 72  }
   0xa   :  { %3056 = vmatprep.mubr.msk.bf16.mxu1 %vm3404_vm0, %v3403_v2  ;;  %s3425_s17 = smov 64   ;;  %s4071_s18 = smov 60  }
   0xb   :  { %s4072_s21 = smov 52   ;;  %s3428_s22 = smov 40  }
   0xc   :  { %184 = vrot.lane.b32.xlu1 %v3482_v4, %s3408_s24  ;;  %131 = vrot.lane.b32.xlu0 %v3482_v4, %s3409_s25  ;;  %s3430_s12 = smov 28   ;;  %s3431_s13 = smov 16  }
   0xd   :  { %s4073_s0 = smov 60  }
  0x10   :  { %292 = vrot.lane.b32.xlu1 %v3470_v3, %s3410_s26  ;;  %239 = vrot.lane.b32.xlu0 %v3470_v3, %s3411_s27 }
  0x14   :  { %290 = vrot.lane.b32.xlu1 %v3482_v4, %s3412_s28  ;;  %237 = vrot.lane.b32.xlu0 %v3482_v4, %s3413_s29 }
  0x18   :  { %398 = vrot.lane.b32.xlu1 %v3470_v3, %s3414_s30  ;;  %345 = vrot.lane.b32.xlu0 %v3470_v3, %s3409_s25 }
  0x1c   :  { %396 = vrot.lane.b32.xlu1 %v3482_v4, %s3415_s5  ;;  %343 = vrot.lane.b32.xlu0 %v3482_v4, %s4070_s6 }
  0x20   :  { %504 = vrot.lane.b32.xlu1 %v3470_v3, %s3408_s24  ;;  %451 = vrot.lane.b32.xlu0 %v3470_v3, %s3417_s7 }
  0x24   :  { %502 = vrot.lane.b32.xlu1 %v3482_v4, %s3418_s8  ;;  %449 = vrot.lane.b32.xlu0 %v3482_v4, %s3419_s9  ;;  %s3429_s8 = smov 48  }
  0x28   :  { %617 = vrot.lane.b32.xlu1 %v3470_v3, %s3420_s10  ;;  %564 = vrot.lane.b32.xlu0 %v3470_v3, %s3421_s11 }
  0x2c   :  { %560 = vrot.lane.b32.xlu1 %v3397_v6, %s3422_s14  ;;  %558 = vrot.lane.b32.xlu0 %v3482_v4, %s3422_s14  ;;  %s3434_s14 = smov 24  }
  0x30   :  { %670 = vrot.lane.b32.xlu1 %v3470_v3, %s3413_s29  ;;  %615 = vrot.lane.b32.xlu0 %v3397_v6, %s3406_s20 }
  0x34   :  { %668 = vrot.lane.b32.xlu1 %v3397_v6, %s3411_s27  ;;  %723 = vrot.lane.b32.xlu0 %v3470_v3, %s3423_s15 }
  0x38   :  { %776 = vrot.lane.b32.xlu1 %v3470_v3, %s3424_s16  ;;  %721 = vrot.lane.b32.xlu0 %v3397_v6, %s3414_s30 }
  0x3c   :  { %774 = vrot.lane.b32.xlu1 %v3397_v6, %s3421_s11  ;;  %829 = vrot.lane.b32.xlu0 %v3470_v3, %s3412_s28 }
  0x40   :  { %882 = vrot.lane.b32.xlu1 %v3470_v3, %s3425_s17  ;;  %827 = vrot.lane.b32.xlu0 %v3397_v6, %s3423_s15 }
  0x44   :  { %880 = vrot.lane.b32.xlu1 %v3397_v6, %s3425_s17  ;;  %935 = vrot.lane.b32.xlu0 %v3470_v3, %s4071_s18  ;;  %s3432_s18 = smov 4  }
  0x48   :  { %988 = vrot.lane.b32.xlu1 %v3470_v3, %s4070_s6  ;;  %933 = vrot.lane.b32.xlu0 %v3397_v6, %s4072_s21 }
  0x4c   :  { %986 = vrot.lane.b32.xlu1 %v3397_v6, %s3428_s22  ;;  %1041 = vrot.lane.b32.xlu0 %v3470_v3, %s4072_s21  ;;  %s3433_s21 = smov 36  }
  0x50   :  { %1094 = vrot.lane.b32.xlu1 %v3470_v3, %s3429_s8  ;;  %1039 = vrot.lane.b32.xlu0 %v3397_v6, %s3430_s12 }
  0x54   :  { %1092 = vrot.lane.b32.xlu1 %v3397_v6, %s3431_s13  ;;  %1156 = vrot.lane.b32.xlu0 %v3470_v3, %s3415_s5 }
  0x58   :  { %1152 = vrot.lane.b32.xlu1 %v3398_v7, %s3432_s18  ;;  %1150 = vrot.lane.b32.xlu0 %v3397_v6, %s3432_s18 }
  0x5c   :  { %1209 = vrot.lane.b32.xlu0 %v3470_v3, %s3428_s22  ;;  %1262 = vrot.lane.b32.xlu1 %v3470_v3, %s3433_s21 }
  0x60   :  { %1207 = vrot.lane.b32.xlu0 %v3398_v7, %s3405_s19  ;;  %1260 = vrot.lane.b32.xlu1 %v3398_v7, %s3410_s26 }
  0x64   :  { %1315 = vrot.lane.b32.xlu0 %v3470_v3, %s3419_s9  ;;  %1368 = vrot.lane.b32.xlu1 %v3470_v3, %s3430_s12 }
  0x68   :  { %1313 = vrot.lane.b32.xlu0 %v3398_v7, %s3417_s7  ;;  %1366 = vrot.lane.b32.xlu1 %v3398_v7, %s3420_s10 }
  0x6c   :  { %1421 = vrot.lane.b32.xlu0 %v3470_v3, %s3434_s14  ;;  %1486 = vrot.lane.b32.xlu1 %v3580_v10, %s3406_s20  ;;  %s4075_s20 = smov 52  }
  0x70   :  { %1419 = vrot.lane.b32.xlu0 %v3398_v7, %s3424_s16  ;;  %1576 = vrot.lane.b32.xlu1 %v3580_v10, %s3405_s19  ;;  %s4074_s19 = smov 56  }
  0x74   :  { %1624 = vrot.lane.b32.xlu0 %v3580_v10, %s3407_s23  ;;  %1672 = vrot.lane.b32.xlu1 %v3580_v10, %s3411_s27 }
  0x76   :  { %v134_v11 = vpop.permute.xlu1 %133  ;;  %v34_v12 = vpop.permute.xlu0 %33 }
  0x77   :  { %v41_v13 = vsel %vm39_vm1, %v34_v12, 0  ;;  %v139_v16 = vsel %vm39_vm1, %v134_v11, 0 }
  0x78   :  { %3037 = vmatpush3.bf16.msra.mxu0 %v41_v13  ;;  %1720 = vrot.lane.b32.xlu0 %v3580_v10, %s3410_s26 }
  0x79   :  { %3048 = vmatprep.subr.bf16.mxu0 %v3403_v2  ;;  %1768 = vrot.lane.b32.xlu1 %v3580_v10, %s3409_s25 }
  0x7a   :  { %v187_v14 = vpop.permute.xlu1 %186  ;;  %v3599_v15 = vpop.permute.xlu0 %30 }
  0x7b   :  { %v192_v17 = vsel %vm39_vm1, %v187_v14, 0  ;;  %3039 = vmatmul.mubr.msk.bf16.vlgmr.msra.gmra.mxu0 %vm35_vm2, %v3599_v15 }
  0x7c   :  { %3049 = vmatpush3.bf16.msra.mxu0 %v139_v16  ;;  %3055 = vmatpush3.bf16.msra.mxu1 %v192_v17 }
  0x7d   :  { %3050 = vmatprep.mubr.msk.bf16.mxu0 %vm3404_vm0, %v3403_v2  ;;  %3060 = vmatprep.subr.bf16.mxu0 %v3403_v2 }
  0x7e   :  { %v3608_v18 = vpop.permute.xlu1 %184  ;;  %v3610_v19 = vpop.permute.xlu0 %131  ;;  %3066 = vmatprep.subr.bf16.mxu1 %v3403_v2  ;;  %1816 = vrot.lane.b32.xlu0 %v3580_v10, %s3414_s30 }
  0x7f   :  { %3057 = vmatmul.mubr.msk.bf16.vlgmr.msra.gmra.mxu1 %vm35_vm2, %v3608_v18  ;;  %1864 = vrot.lane.b32.xlu1 %v3580_v10, %s3417_s7 }
  0x80   :  { %3068 = vmatprep.mubr.msk.bf16.mxu1 %vm3404_vm0, %v3403_v2 }
  0x82   :  { %v293_v20 = vpop.permute.xlu1 %292  ;;  %v240_v21 = vpop.permute.xlu0 %239  ;;  %1912 = vrot.lane.b32.xlu0 %v3580_v10, %s3408_s24 }
  0x83   :  { %v298_v22 = vsel %vm39_vm1, %v293_v20, 0  ;;  %v245_v23 = vsel %vm39_vm1, %v240_v21, 0  ;;  %3051 = vmatmul.mubr.msk.bf16.vlgmr.msra.gmra.mxu0 %vm35_vm2, %v3610_v19  ;;  %1960 = vrot.lane.b32.xlu1 %v3580_v10, %s3421_s11 }
  0x84   :  { %3061 = vmatpush3.bf16.msra.mxu0 %v245_v23  ;;  %3067 = vmatpush3.bf16.msra.mxu1 %v298_v22 }
  0x85   :  { %3062 = vmatprep.mubr.msk.bf16.mxu0 %vm3404_vm0, %v3403_v2  ;;  %3072 = vmatprep.subr.bf16.mxu0 %v3403_v2 }
  0x86   :  { %v3632_v24 = vpop.permute.xlu1 %290  ;;  %v3634_v25 = vpop.permute.xlu0 %237  ;;  %3078 = vmatprep.subr.bf16.mxu1 %v3403_v2  ;;  %2008 = vrot.lane.b32.xlu0 %v3580_v10, %s3420_s10 }
  0x87   :  { %3069 = vmatmul.mubr.msk.bf16.vlgmr.msra.gmra.mxu1 %vm35_vm2, %v3632_v24  ;;  %2056 = vrot.lane.b32.xlu1 %v3580_v10, %s3413_s29 }
  0x88   :  { %3080 = vmatprep.mubr.msk.bf16.mxu1 %vm3404_vm0, %v3403_v2 }
  0x8a   :  { %v399_v26 = vpop.permute.xlu1 %398  ;;  %v346_v27 = vpop.permute.xlu0 %345  ;;  %2104 = vrot.lane.b32.xlu0 %v3580_v10, %s3423_s15 }
  0x8b   :  { %v404_v28 = vsel %vm39_vm1, %v399_v26, 0  ;;  %v351_v29 = vsel %vm39_vm1, %v346_v27, 0  ;;  %3063 = vmatmul.mubr.msk.bf16.vlgmr.msra.gmra.mxu0 %vm35_vm2, %v3634_v25  ;;  %2152 = vrot.lane.b32.xlu1 %v3580_v10, %s3424_s16 }
  0x8c   :  { %3073 = vmatpush3.bf16.msra.mxu0 %v351_v29  ;;  %3079 = vmatpush3.bf16.msra.mxu1 %v404_v28 }
  0x8d   :  { %3074 = vmatprep.mubr.msk.bf16.mxu0 %vm3404_vm0, %v3403_v2  ;;  %3084 = vmatprep.subr.bf16.mxu0 %v3403_v2 }
  0x8e   :  { %v3656_v30 = vpop.permute.xlu1 %396  ;;  %v3658_v31 = vpop.permute.xlu0 %343  ;;  %3090 = vmatprep.subr.bf16.mxu1 %v3403_v2  ;;  %2200 = vrot.lane.b32.xlu0 %v3580_v10, %s3412_s28 }
  0x8f   :  { %3081 = vmatmul.mubr.msk.bf16.vlgmr.msra.gmra.mxu1 %vm35_vm2, %v3656_v30  ;;  %2248 = vrot.lane.b32.xlu1 %v3580_v10, %s3425_s17 }
  0x90   :  { %3092 = vmatprep.mubr.msk.bf16.mxu1 %vm3404_vm0, %v3403_v2 }
  0x92   :  { %v505_v32 = vpop.permute.xlu1 %504  ;;  %v452_v33 = vpop.permute.xlu0 %451  ;;  %2296 = vrot.lane.b32.xlu0 %v3580_v10, %s4073_s0 }
  0x93   :  { %v510_v34 = vsel %vm39_vm1, %v505_v32, 0  ;;  %v457_v35 = vsel %vm39_vm1, %v452_v33, 0  ;;  %3075 = vmatmul.mubr.msk.bf16.vlgmr.msra.gmra.mxu0 %vm35_vm2, %v3658_v31  ;;  %2344 = vrot.lane.b32.xlu1 %v3580_v10, %s4074_s19 }
  0x94   :  { %3085 = vmatpush3.bf16.msra.mxu0 %v457_v35  ;;  %3091 = vmatpush3.bf16.msra.mxu1 %v510_v34 }
  0x95   :  { %3086 = vmatprep.mubr.msk.bf16.mxu0 %vm3404_vm0, %v3403_v2  ;;  %3096 = vmatprep.subr.bf16.mxu0 %v3403_v2 }
  0x96   :  { %v3680_v36 = vpop.permute.xlu1 %502  ;;  %v3682_v37 = vpop.permute.xlu0 %449  ;;  %3102 = vmatprep.subr.bf16.mxu1 %v3403_v2  ;;  %2392 = vrot.lane.b32.xlu0 %v3580_v10, %s4075_s20 }
  0x97   :  { %3093 = vmatmul.mubr.msk.bf16.vlgmr.msra.gmra.mxu1 %vm35_vm2, %v3680_v36  ;;  %2440 = vrot.lane.b32.xlu1 %v3580_v10, %s3429_s8 }
  0x98   :  { %3104 = vmatprep.mubr.msk.bf16.mxu1 %vm3404_vm0, %v3403_v2 }
  0x9a   :  { %v618_v38 = vpop.permute.xlu1 %617  ;;  %v565_v39 = vpop.permute.xlu0 %564  ;;  %2488 = vrot.lane.b32.xlu0 %v3580_v10, %s3415_s5 }
  0x9b   :  { %v623_v40 = vsel %vm39_vm1, %v618_v38, 0  ;;  %v570_v41 = vsel %vm39_vm1, %v565_v39, 0  ;;  %3087 = vmatmul.mubr.msk.bf16.vlgmr.msra.gmra.mxu0 %vm35_vm2, %v3682_v37  ;;  %2536 = vrot.lane.b32.xlu1 %v3580_v10, %s3428_s22 }
  0x9c   :  { %3097 = vmatpush3.bf16.msra.mxu0 %v570_v41  ;;  %3103 = vmatpush3.bf16.msra.mxu1 %v623_v40 }
  0x9d   :  { %3098 = vmatprep.mubr.msk.bf16.mxu0 %vm3404_vm0, %v3403_v2  ;;  %3108 = vmatprep.subr.bf16.mxu0 %v3403_v2 }
  0x9e   :  { %v561_v42 = vpop.permute.xlu1 %560  ;;  %v559_v43 = vpop.permute.xlu0 %558  ;;  %3114 = vmatprep.subr.bf16.mxu1 %v3403_v2  ;;  %2584 = vrot.lane.b32.xlu0 %v3580_v10, %s3433_s21 }
  0x9f   :  { %2632 = vrot.lane.b32.xlu1 %v3580_v10, %s3419_s9  ;;  %v3710_v44 = vsel %vm562_vm3, %v559_v43, %v561_v42 }
  0xa2   :  { %v671_v45 = vpop.permute.xlu1 %670  ;;  %v3712_v46 = vpop.permute.xlu0 %615  ;;  %2680 = vrot.lane.b32.xlu0 %v3580_v10, %s3430_s12 }
  0xa3   :  { %v676_v47 = vsel %vm39_vm1, %v671_v45, 0  ;;  %3099 = vmatmul.mubr.msk.bf16.vlgmr.msra.gmra.mxu0 %vm35_vm2, %v3710_v44  ;;  %3105 = vmatmul.mubr.msk.bf16.vlgmr.msra.gmra.mxu1 %vm35_vm2, %v3712_v46 }
  0xa4   :  { %3109 = vmatpush3.bf16.msra.mxu0 %v676_v47  ;;  %3110 = vmatprep.mubr.msk.bf16.mxu0 %vm3404_vm0, %v3403_v2 }
  0xa5   :  { %3116 = vmatprep.mubr.msk.bf16.mxu1 %vm3404_vm0, %v3403_v2  ;;  %3120 = vmatprep.subr.bf16.mxu0 %v3403_v2 }
  0xa6   :  { %v3726_v48 = vpop.permute.xlu1 %668  ;;  %v724_v49 = vpop.permute.xlu0 %723  ;;  %2728 = vrot.lane.b32.xlu1 %v3580_v10, %s3434_s14 }
  0xa7   :  { %v729_v50 = vsel %vm39_vm1, %v724_v49, 0  ;;  %v1533_v49 = vsel %vm39_vm1, %v3580_v10, 0 }
  0xa8   :  { %3115 = vmatpush3.bf16.msra.mxu1 %v729_v50 }
  0xa9   :  { %3126 = vmatprep.subr.bf16.mxu1 %v3403_v2 }
  0xaa   :  { %v777_v51 = vpop.permute.xlu1 %776  ;;  %v3732_v52 = vpop.permute.xlu0 %721 }
  0xab   :  { %v782_v53 = vsel %vm39_vm1, %v777_v51, 0  ;;  %3111 = vmatmul.mubr.msk.bf16.vlgmr.msra.gmra.mxu0 %vm35_vm2, %v3726_v48  ;;  %3117 = vmatmul.mubr.msk.bf16.vlgmr.msra.gmra.mxu1 %vm35_vm2, %v3732_v52 }
  0xac   :  { %3121 = vmatpush3.bf16.msra.mxu0 %v782_v53  ;;  %3122 = vmatprep.mubr.msk.bf16.mxu0 %vm3404_vm0, %v3403_v2 }
  0xad   :  { %3128 = vmatprep.mubr.msk.bf16.mxu1 %vm3404_vm0, %v3403_v2  ;;  %3132 = vmatprep.subr.bf16.mxu0 %v3403_v2 }
  0xae   :  { %v3744_v54 = vpop.permute.xlu1 %774  ;;  %v830_v55 = vpop.permute.xlu0 %829 }
  0xaf   :  { %v835_v56 = vsel %vm39_vm1, %v830_v55, 0 }
  0xb0   :  { %3127 = vmatpush3.bf16.msra.mxu1 %v835_v56 }
  0xb1   :  { %3138 = vmatprep.subr.bf16.mxu1 %v3403_v2 }
  0xb2   :  { %v883_v57 = vpop.permute.xlu1 %882  ;;  %v3748_v58 = vpop.permute.xlu0 %827 }
  0xb3   :  { %v888_v59 = vsel %vm39_vm1, %v883_v57, 0  ;;  %3123 = vmatmul.mubr.msk.bf16.vlgmr.msra.gmra.mxu0 %vm35_vm2, %v3744_v54  ;;  %3129 = vmatmul.mubr.msk.bf16.vlgmr.msra.gmra.mxu1 %vm35_vm2, %v3748_v58 }
  0xb4   :  { %3133 = vmatpush3.bf16.msra.mxu0 %v888_v59  ;;  %3134 = vmatprep.mubr.msk.bf16.mxu0 %vm3404_vm0, %v3403_v2 }
  0xb5   :  { %3140 = vmatprep.mubr.msk.bf16.mxu1 %vm3404_vm0, %v3403_v2  ;;  %3144 = vmatprep.subr.bf16.mxu0 %v3403_v2 }
  0xb6   :  { %v3760_v60 = vpop.permute.xlu1 %880  ;;  %v936_v61 = vpop.permute.xlu0 %935 }
  0xb7   :  { %v941_v62 = vsel %vm39_vm1, %v936_v61, 0 }
  0xb8   :  { %3139 = vmatpush3.bf16.msra.mxu1 %v941_v62 }
  0xb9   :  { %3150 = vmatprep.subr.bf16.mxu1 %v3403_v2 }
  0xba   :  { %v989_v63 = vpop.permute.xlu1 %988  ;;  %v3764_v0 = vpop.permute.xlu0 %933 }
  0xbb   :  { %v994_v1 = vsel %vm39_vm1, %v989_v63, 0  ;;  %3135 = vmatmul.mubr.msk.bf16.vlgmr.msra.gmra.mxu0 %vm35_vm2, %v3760_v60  ;;  %3141 = vmatmul.mubr.msk.bf16.vlgmr.msra.gmra.mxu1 %vm35_vm2, %v3764_v0 }
  0xbc   :  { %3145 = vmatpush3.bf16.msra.mxu0 %v994_v1  ;;  %3146 = vmatprep.mubr.msk.bf16.mxu0 %vm3404_vm0, %v3403_v2 }
  0xbd   :  { %3152 = vmatprep.mubr.msk.bf16.mxu1 %vm3404_vm0, %v3403_v2  ;;  %3156 = vmatprep.subr.bf16.mxu0 %v3403_v2 }
  0xbe   :  { %v3776_v3 = vpop.permute.xlu1 %986  ;;  %v1042_v5 = vpop.permute.xlu0 %1041 }
  0xbf   :  { %v1047_v6 = vsel %vm39_vm1, %v1042_v5, 0 }
  0xc0   :  { %3151 = vmatpush3.bf16.msra.mxu1 %v1047_v6 }
  0xc1   :  { %3162 = vmatprep.subr.bf16.mxu1 %v3403_v2 }
  0xc2   :  { %v1095_v7 = vpop.permute.xlu1 %1094  ;;  %v3780_v8 = vpop.permute.xlu0 %1039 }
  0xc3   :  { %v1100_v9 = vsel %vm39_vm1, %v1095_v7, 0  ;;  %3147 = vmatmul.mubr.msk.bf16.vlgmr.msra.gmra.mxu0 %vm35_vm2, %v3776_v3  ;;  %3153 = vmatmul.mubr.msk.bf16.vlgmr.msra.gmra.mxu1 %vm35_vm2, %v3780_v8 }
  0xc4   :  { %3157 = vmatpush3.bf16.msra.mxu0 %v1100_v9  ;;  %3158 = vmatprep.mubr.msk.bf16.mxu0 %vm3404_vm0, %v3403_v2 }
  0xc5   :  { %3164 = vmatprep.mubr.msk.bf16.mxu1 %vm3404_vm0, %v3403_v2  ;;  %3168 = vmatprep.subr.bf16.mxu0 %v3403_v2 }
  0xc6   :  { %v3792_v11 = vpop.permute.xlu1 %1092  ;;  %v1157_v12 = vpop.permute.xlu0 %1156 }
  0xc7   :  { %v1162_v13 = vsel %vm39_vm1, %v1157_v12, 0 }
  0xc8   :  { %3163 = vmatpush3.bf16.msra.mxu1 %v1162_v13 }
  0xc9   :  { %3174 = vmatprep.subr.bf16.mxu1 %v3403_v2  ;;  %v3796_v14 = vpop.f32.mrf.mxu1 }
  0xca   :  { %v1153_v16 = vpop.permute.xlu1 %1152  ;;  %v1151_v17 = vpop.permute.xlu0 %1150 }
  0xcb   :  { %v3798_v20 = vsel %vm1154_vm4, %v1151_v17, %v1153_v16  ;;  %3159 = vmatmul.mubr.msk.bf16.vlgmr.msra.gmra.mxu0 %vm35_vm2, %v3792_v11  ;;  %v3046_v21 = vpop.f32.mrf.mxu1 }
  0xcc   :  { %3165 = vmatmul.mubr.msk.bf16.vlgmr.msra.gmra.mxu1 %vm35_vm2, %v3798_v20  ;;  %3170 = vmatprep.mubr.msk.bf16.mxu0 %vm3404_vm0, %v3403_v2 }
  0xcd   :  { %3176 = vmatprep.mubr.msk.bf16.mxu1 %vm3404_vm0, %v3403_v2  ;;  %v3808_v22 = vpop.f32.mrf.mxu1 }
  0xce   :  { %v1210_v23 = vpop.permute.xlu0 %1209  ;;  %v1263_v26 = vpop.permute.xlu1 %1262 }
  0xcf   :  { %v1215_v27 = vsel %vm39_vm1, %v1210_v23, 0  ;;  %v1268_v28 = vsel %vm39_vm1, %v1263_v26, 0  ;;  %v3047_v29 = vpop.f32.mrf.mxu1 }
  0xd0   :  { %3169 = vmatpush3.bf16.msra.mxu0 %v1215_v27  ;;  %3175 = vmatpush3.bf16.msra.mxu1 %v1268_v28 }
  0xd1   :  { %3180 = vmatprep.subr.bf16.mxu0 %v3403_v2  ;;  %3186 = vmatprep.subr.bf16.mxu1 %v3403_v2 }
  0xd2   :  { %v3814_v32 = vpop.permute.xlu0 %1207  ;;  %v3816_v33 = vpop.permute.xlu1 %1260 }
  0xd3   :  { %3171 = vmatmul.mubr.msk.bf16.vlgmr.msra.gmra.mxu0 %vm35_vm2, %v3814_v32 }
  0xd4   :  { %3177 = vmatmul.mubr.msk.bf16.vlgmr.msra.gmra.mxu1 %vm35_vm2, %v3816_v33  ;;  %3182 = vmatprep.mubr.msk.bf16.mxu0 %vm3404_vm0, %v3403_v2 }
  0xd5   :  { %3188 = vmatprep.mubr.msk.bf16.mxu1 %vm3404_vm0, %v3403_v2 }
  0xd6   :  { %v1316_v34 = vpop.permute.xlu0 %1315  ;;  %v1369_v35 = vpop.permute.xlu1 %1368 }
  0xd7   :  { %v1321_v38 = vsel %vm39_vm1, %v1316_v34, 0  ;;  %v1374_v39 = vsel %vm39_vm1, %v1369_v35, 0 }
  0xd8   :  { %3181 = vmatpush3.bf16.msra.mxu0 %v1321_v38  ;;  %3187 = vmatpush3.bf16.msra.mxu1 %v1374_v39 }
  0xd9   :  { %3192 = vmatprep.subr.bf16.mxu0 %v3403_v2  ;;  %3198 = vmatprep.subr.bf16.mxu1 %v3403_v2 }
  0xda   :  { %v3830_v40 = vpop.permute.xlu0 %1313  ;;  %v3832_v41 = vpop.permute.xlu1 %1366 }
  0xdb   :  { %3183 = vmatmul.mubr.msk.bf16.vlgmr.msra.gmra.mxu0 %vm35_vm2, %v3830_v40 }
  0xdc   :  { %3189 = vmatmul.mubr.msk.bf16.vlgmr.msra.gmra.mxu1 %vm35_vm2, %v3832_v41  ;;  %3194 = vmatprep.mubr.msk.bf16.mxu0 %vm3404_vm0, %v3403_v2 }
  0xdd   :  { %3200 = vmatprep.mubr.msk.bf16.mxu1 %vm3404_vm0, %v3403_v2 }
  0xde   :  { %v1422_v42 = vpop.permute.xlu0 %1421  ;;  %v1487_v43 = vpop.permute.xlu1 %1486 }
  0xdf   :  { %v1427_v45 = vsel %vm39_vm1, %v1422_v42, 0  ;;  %v1489_v47 = vsel %vm39_vm1, %v1487_v43, 0 }
  0xe0   :  { %3193 = vmatpush3.bf16.msra.mxu0 %v1427_v45  ;;  %3199 = vmatpush3.bf16.msra.mxu1 %v1489_v47 }
  0xe1   :  { %3204 = vmatprep.subr.bf16.mxu0 %v3403_v2  ;;  %3210 = vmatprep.subr.bf16.mxu1 %v3403_v2 }
  0xe2   :  { %v3848_v50 = vpop.permute.xlu0 %1419  ;;  %v1577_v51 = vpop.permute.xlu1 %1576 }
  0xe3   :  { %3195 = vmatmul.mubr.msk.bf16.vlgmr.msra.gmra.mxu0 %vm35_vm2, %v3848_v50  ;;  %v1579_v53 = vsel %vm39_vm1, %v1577_v51, 0 }
  0xe4   :  { %3201 = vmatmul.mubr.msk.bf16.vlgmr.msra.gmra.mxu1 %vm35_vm2, %v3599_v15  ;;  %3205 = vmatpush3.bf16.msra.mxu0 %v1533_v49 }
  0xe5   :  { %3211 = vmatpush3.bf16.msra.mxu1 %v1579_v53  ;;  %3206 = vmatprep.mubr.msk.bf16.mxu0 %vm3404_vm0, %v3403_v2 }
  0xe6   :  { %3212 = vmatprep.mubr.msk.bf16.mxu1 %vm3404_vm0, %v3403_v2  ;;  %v1625_v10 = vpop.permute.xlu0 %1624  ;;  %3216 = vmatprep.subr.bf16.mxu0 %v3403_v2  ;;  %v1673_v55 = vpop.permute.xlu1 %1672 }
  0xe7   :  { %3222 = vmatprep.subr.bf16.mxu1 %v3403_v2  ;;  %v1627_v56 = vsel %vm39_vm1, %v1625_v10, 0  ;;  %v1675_v57 = vsel %vm39_vm1, %v1673_v55, 0 }
  0xea   :  { %v1721_v15 = vpop.permute.xlu0 %1720 }
  0xeb   :  { %3207 = vmatmul.mubr.msk.bf16.vlgmr.msra.gmra.mxu0 %vm35_vm2, %v3482_v4  ;;  %v1769_v59 = vpop.permute.xlu1 %1768  ;;  %v1723_v61 = vsel %vm39_vm1, %v1721_v15, 0 }
  0xec   :  { %3213 = vmatmul.mubr.msk.bf16.vlgmr.msra.gmra.mxu1 %vm35_vm2, %v3610_v19  ;;  %3217 = vmatpush3.bf16.msra.mxu0 %v1627_v56  ;;  %v1771_v4 = vsel %vm39_vm1, %v1769_v59, 0 }
  0xed   :  { %3223 = vmatpush3.bf16.msra.mxu1 %v1675_v57  ;;  %3218 = vmatprep.mubr.msk.bf16.mxu0 %vm3404_vm0, %v3403_v2 }
  0xee   :  { %3224 = vmatprep.mubr.msk.bf16.mxu1 %vm3404_vm0, %v3403_v2  ;;  %3228 = vmatprep.subr.bf16.mxu0 %v3403_v2 }
  0xef   :  { %3234 = vmatprep.subr.bf16.mxu1 %v3403_v2 }
  0xf0   :  { %v1817_v19 = vpop.permute.xlu0 %1816 }
  0xf1   :  { %v1865_v62 = vpop.permute.xlu1 %1864  ;;  %v1819_v63 = vsel %vm39_vm1, %v1817_v19, 0 }
  0xf3   :  { %3219 = vmatmul.mubr.msk.bf16.vlgmr.msra.gmra.mxu0 %vm35_vm2, %v3608_v18  ;;  %v1867_v18 = vsel %vm39_vm1, %v1865_v62, 0 }
  0xf4   :  { %3225 = vmatmul.mubr.msk.bf16.vlgmr.msra.gmra.mxu1 %vm35_vm2, %v3634_v25  ;;  %3229 = vmatpush3.bf16.msra.mxu0 %v1723_v61  ;;  %v1913_v25 = vpop.permute.xlu0 %1912 }
  0xf5   :  { %3235 = vmatpush3.bf16.msra.mxu1 %v1771_v4  ;;  %3230 = vmatprep.mubr.msk.bf16.mxu0 %vm3404_vm0, %v3403_v2  ;;  %v1961_v1 = vpop.permute.xlu1 %1960  ;;  %v1915_v5 = vsel %vm39_vm1, %v1913_v25, 0 }
  0xf6   :  { %3236 = vmatprep.mubr.msk.bf16.mxu1 %vm3404_vm0, %v3403_v2  ;;  %3240 = vmatprep.subr.bf16.mxu0 %v3403_v2 }
  0xf7   :  { %3246 = vmatprep.subr.bf16.mxu1 %v3403_v2 }
  0xf9   :  { %v2057_v6 = vpop.permute.xlu1 %2056 }
  0xfb   :  { %3231 = vmatmul.mubr.msk.bf16.vlgmr.msra.gmra.mxu0 %vm35_vm2, %v3632_v24  ;;  %v1963_v24 = vsel %vm39_vm1, %v1961_v1, 0 }
  0xfc   :  { %3237 = vmatmul.mubr.msk.bf16.vlgmr.msra.gmra.mxu1 %vm35_vm2, %v3658_v31  ;;  %3241 = vmatpush3.bf16.msra.mxu0 %v1819_v63  ;;  %v2009_v31 = vpop.permute.xlu0 %2008 }
  0xfd   :  { %3247 = vmatpush3.bf16.msra.mxu1 %v1867_v18  ;;  %3242 = vmatprep.mubr.msk.bf16.mxu0 %vm3404_vm0, %v3403_v2  ;;  %v2011_v7 = vsel %vm39_vm1, %v2009_v31, 0  ;;  %v2153_v9 = vpop.permute.xlu1 %2152 }
  0xfe   :  { %3248 = vmatprep.mubr.msk.bf16.mxu1 %vm3404_vm0, %v3403_v2  ;;  %3252 = vmatprep.subr.bf16.mxu0 %v3403_v2 }
  0xff   :  { %3258 = vmatprep.subr.bf16.mxu1 %v3403_v2 }
 0x101   :  { %v2249_v13 = vpop.permute.xlu1 %2248 }
 0x103   :  { %3243 = vmatmul.mubr.msk.bf16.vlgmr.msra.gmra.mxu0 %vm35_vm2, %v3656_v30  ;;  %v2059_v30 = vsel %vm39_vm1, %v2057_v6, 0 }
 0x104   :  { %3249 = vmatmul.mubr.msk.bf16.vlgmr.msra.gmra.mxu1 %vm35_vm2, %v3682_v37  ;;  %3253 = vmatpush3.bf16.msra.mxu0 %v1915_v5  ;;  %v2105_v37 = vpop.permute.xlu0 %2104 }
 0x105   :  { %3259 = vmatpush3.bf16.msra.mxu1 %v1963_v24  ;;  %3254 = vmatprep.mubr.msk.bf16.mxu0 %vm3404_vm0, %v3403_v2  ;;  %v2107_v12 = vsel %vm39_vm1, %v2105_v37, 0  ;;  %v2345_v17 = vpop.permute.xlu1 %2344 }
 0x106   :  { %3260 = vmatprep.mubr.msk.bf16.mxu1 %vm3404_vm0, %v3403_v2  ;;  %3264 = vmatprep.subr.bf16.mxu0 %v3403_v2 }
 0x107   :  { %3270 = vmatprep.subr.bf16.mxu1 %v3403_v2 }
 0x109   :  { %v2441_v23 = vpop.permute.xlu1 %2440 }
 0x10b   :  { %3255 = vmatmul.mubr.msk.bf16.vlgmr.msra.gmra.mxu0 %vm35_vm2, %v3680_v36  ;;  %v2155_v36 = vsel %vm39_vm1, %v2153_v9, 0 }
 0x10c   :  { %3261 = vmatmul.mubr.msk.bf16.vlgmr.msra.gmra.mxu1 %vm35_vm2, %v3710_v44  ;;  %3265 = vmatpush3.bf16.msra.mxu0 %v2011_v7  ;;  %v2201_v44 = vpop.permute.xlu0 %2200 }
 0x10d   :  { %3271 = vmatpush3.bf16.msra.mxu1 %v2059_v30  ;;  %3266 = vmatprep.mubr.msk.bf16.mxu0 %vm3404_vm0, %v3403_v2  ;;  %v2203_v16 = vsel %vm39_vm1, %v2201_v44, 0  ;;  %v2537_v27 = vpop.permute.xlu1 %2536 }
 0x10e   :  { %3272 = vmatprep.mubr.msk.bf16.mxu1 %vm3404_vm0, %v3403_v2  ;;  %3276 = vmatprep.subr.bf16.mxu0 %v3403_v2 }
 0x10f   :  { %3282 = vmatprep.subr.bf16.mxu1 %v3403_v2 }
 0x111   :  { %v2633_v29 = vpop.permute.xlu1 %2632 }
 0x113   :  { %3267 = vmatmul.mubr.msk.bf16.vlgmr.msra.gmra.mxu0 %vm35_vm2, %v3712_v46  ;;  %v2251_v46 = vsel %vm39_vm1, %v2249_v13, 0 }
 0x114   :  { %3273 = vmatmul.mubr.msk.bf16.vlgmr.msra.gmra.mxu1 %vm35_vm2, %v3726_v48  ;;  %3277 = vmatpush3.bf16.msra.mxu0 %v2107_v12  ;;  %v2297_v48 = vpop.permute.xlu0 %2296 }
 0x115   :  { %3283 = vmatpush3.bf16.msra.mxu1 %v2155_v36  ;;  %3278 = vmatprep.mubr.msk.bf16.mxu0 %vm3404_vm0, %v3403_v2  ;;  %v2299_v21 = vsel %vm39_vm1, %v2297_v48, 0 }
 0x116   :  { %3284 = vmatprep.mubr.msk.bf16.mxu1 %vm3404_vm0, %v3403_v2  ;;  %3288 = vmatprep.subr.bf16.mxu0 %v3403_v2 }
 0x117   :  { %3294 = vmatprep.subr.bf16.mxu1 %v3403_v2 }
 0x118   :  { %v2729_v39 = vpop.permute.xlu1 %2728 }
 0x119   :  { %v2731_v47 = vsel %vm39_vm1, %v2729_v39, 0 }
 0x11b   :  { %3279 = vmatmul.mubr.msk.bf16.vlgmr.msra.gmra.mxu0 %vm35_vm2, %v3732_v52  ;;  %v2347_v52 = vsel %vm39_vm1, %v2345_v17, 0 }
 0x11c   :  { %3285 = vmatmul.mubr.msk.bf16.vlgmr.msra.gmra.mxu1 %vm35_vm2, %v3744_v54  ;;  %3289 = vmatpush3.bf16.msra.mxu0 %v2203_v16  ;;  %v2393_v54 = vpop.permute.xlu0 %2392 }
 0x11d   :  { %3295 = vmatpush3.bf16.msra.mxu1 %v2251_v46  ;;  %3290 = vmatprep.mubr.msk.bf16.mxu0 %vm3404_vm0, %v3403_v2  ;;  %v2395_v26 = vsel %vm39_vm1, %v2393_v54, 0 }
 0x11e   :  { %3296 = vmatprep.mubr.msk.bf16.mxu1 %vm3404_vm0, %v3403_v2  ;;  %3300 = vmatprep.subr.bf16.mxu0 %v3403_v2 }
 0x11f   :  { %3306 = vmatprep.subr.bf16.mxu1 %v3403_v2 }
 0x123   :  { %3291 = vmatmul.mubr.msk.bf16.vlgmr.msra.gmra.mxu0 %vm35_vm2, %v3748_v58  ;;  %v2443_v58 = vsel %vm39_vm1, %v2441_v23, 0 }
 0x124   :  { %3297 = vmatmul.mubr.msk.bf16.vlgmr.msra.gmra.mxu1 %vm35_vm2, %v3760_v60  ;;  %3301 = vmatpush3.bf16.msra.mxu0 %v2299_v21  ;;  %v2489_v60 = vpop.permute.xlu0 %2488 }
 0x125   :  { %3307 = vmatpush3.bf16.msra.mxu1 %v2347_v52  ;;  %3302 = vmatprep.mubr.msk.bf16.mxu0 %vm3404_vm0, %v3403_v2  ;;  %v2491_v28 = vsel %vm39_vm1, %v2489_v60, 0 }
 0x126   :  { %3308 = vmatprep.mubr.msk.bf16.mxu1 %vm3404_vm0, %v3403_v2  ;;  %3312 = vmatprep.subr.bf16.mxu0 %v3403_v2 }
 0x127   :  { %3318 = vmatprep.subr.bf16.mxu1 %v3403_v2 }
 0x12b   :  { %3303 = vmatmul.mubr.msk.bf16.vlgmr.msra.gmra.mxu0 %vm35_vm2, %v3764_v0  ;;  %v2539_v0 = vsel %vm39_vm1, %v2537_v27, 0 }
 0x12c   :  { %3309 = vmatmul.mubr.msk.bf16.vlgmr.msra.gmra.mxu1 %vm35_vm2, %v3776_v3  ;;  %3313 = vmatpush3.bf16.msra.mxu0 %v2395_v26  ;;  %v2585_v3 = vpop.permute.xlu0 %2584 }
 0x12d   :  { %3319 = vmatpush3.bf16.msra.mxu1 %v2443_v58  ;;  %3314 = vmatprep.mubr.msk.bf16.mxu0 %vm3404_vm0, %v3403_v2  ;;  %v2587_v34 = vsel %vm39_vm1, %v2585_v3, 0 }
 0x12e   :  { %3320 = vmatprep.mubr.msk.bf16.mxu1 %vm3404_vm0, %v3403_v2  ;;  %3324 = vmatprep.subr.bf16.mxu0 %v3403_v2 }
 0x12f   :  { %3330 = vmatprep.subr.bf16.mxu1 %v3403_v2 }
 0x130   :  { %v2681_v38 = vpop.permute.xlu0 %2680 }
 0x133   :  { %3315 = vmatmul.mubr.msk.bf16.vlgmr.msra.gmra.mxu0 %vm35_vm2, %v3780_v8  ;;  %v2635_v8 = vsel %vm39_vm1, %v2633_v29, 0 }
 0x134   :  { %3321 = vmatmul.mubr.msk.bf16.vlgmr.msra.gmra.mxu1 %vm35_vm2, %v3792_v11  ;;  %3325 = vmatpush3.bf16.msra.mxu0 %v2491_v28 }
 0x135   :  { %3331 = vmatpush3.bf16.msra.mxu1 %v2539_v0  ;;  %3326 = vmatprep.mubr.msk.bf16.mxu0 %vm3404_vm0, %v3403_v2 }
 0x136   :  { %3332 = vmatprep.mubr.msk.bf16.mxu1 %vm3404_vm0, %v3403_v2  ;;  %3336 = vmatprep.subr.bf16.mxu0 %v3403_v2 }
 0x137   :  { %3342 = vmatprep.subr.bf16.mxu1 %v3403_v2 }
 0x13b   :  { %v77_v35 = vpop.f32.mrf.mxu0  ;;  %3327 = vmatmul.mubr.msk.bf16.vlgmr.msra.gmra.mxu0 %vm35_vm2, %v3798_v20 }
 0x13c   :  { %3333 = vmatmul.mubr.msk.bf16.vlgmr.msra.gmra.mxu1 %vm35_vm2, %v3814_v32  ;;  %3337 = vmatpush3.bf16.msra.mxu0 %v2587_v34  ;;  %v2683_v32 = vsel %vm39_vm1, %v2681_v38, 0  ;;  %v125_v7 = vadd.f32 %v3796_v14, %v77_v35 }
 0x13d   :  { %v3040_v11 = vpop.f32.mrf.mxu0  ;;  %3343 = vmatpush3.bf16.msra.mxu1 %v2635_v8  ;;  %3338 = vmatprep.mubr.msk.bf16.mxu0 %vm3404_vm0, %v3403_v2 }
 0x13e   :  { %3344 = vmatprep.mubr.msk.bf16.mxu1 %vm3404_vm0, %v3403_v2  ;;  %3348 = vmatprep.subr.bf16.mxu0 %v3403_v2 }
 0x13f   :  { %v80_v42 = vpop.f32.mrf.mxu0  ;;  %v228_v43 = vpop.f32.mrf.mxu1  ;;  %3354 = vmatprep.subr.bf16.mxu1 %v3403_v2 }
 0x140   :  { %v128_v12 = vadd.f32 %v3808_v22, %v80_v42 }
 0x141   :  { %v3041_v20 = vpop.f32.mrf.mxu0  ;;  %v3058_v45 = vpop.f32.mrf.mxu1 }
 0x143   :  { %v175_v49 = vpop.f32.mrf.mxu0  ;;  %v231_v51 = vpop.f32.mrf.mxu1  ;;  %3339 = vmatmul.mubr.msk.bf16.vlgmr.msra.gmra.mxu0 %vm35_vm2, %v3816_v33 }
 0x144   :  { %3345 = vmatmul.mubr.msk.bf16.vlgmr.msra.gmra.mxu1 %vm35_vm2, %v3830_v40  ;;  %3349 = vmatpush3.bf16.msra.mxu0 %v2683_v32  ;;  %v182_v37 = vadd.f32 %v175_v49, %v125_v7 }
 0x145   :  { %v3052_v53 = vpop.f32.mrf.mxu0  ;;  %v3059_v10 = vpop.f32.mrf.mxu1  ;;  %3355 = vmatpush3.bf16.msra.mxu1 %v2731_v47  ;;  %3350 = vmatprep.mubr.msk.bf16.mxu0 %vm3404_vm0, %v3403_v2 }
 0x146   :  { %3356 = vmatprep.mubr.msk.bf16.mxu1 %vm3404_vm0, %v3403_v2  ;;  %v235_v13 = vadd.f32 %v228_v43, %v182_v37 }
 0x147   :  { %v178_v55 = vpop.f32.mrf.mxu0  ;;  %v334_v56 = vpop.f32.mrf.mxu1 }
 0x148   :  { %v183_v44 = vadd.f32 %v178_v55, %v128_v12 }
 0x149   :  { %v3053_v57 = vpop.f32.mrf.mxu0  ;;  %v3070_v15 = vpop.f32.mrf.mxu1 }
 0x14a   :  { %v236_v21 = vadd.f32 %v231_v51, %v183_v44 }
 0x14b   :  { %v281_v59 = vpop.f32.mrf.mxu0  ;;  %v337_v61 = vpop.f32.mrf.mxu1  ;;  %3351 = vmatmul.mubr.msk.bf16.vlgmr.msra.gmra.mxu0 %vm35_vm2, %v3832_v41 }
 0x14c   :  { %3357 = vmatmul.mubr.msk.bf16.vlgmr.msra.gmra.mxu1 %vm35_vm2, %v3848_v50  ;;  %v288_v46 = vadd.f32 %v281_v59, %v235_v13 }
 0x14d   :  { %v3064_v33 = vpop.f32.mrf.mxu0  ;;  %v3071_v40 = vpop.f32.mrf.mxu1 }
 0x14e   :  { %v341_v26 = vadd.f32 %v334_v56, %v288_v46 }
 0x14f   :  { %v284_v4 = vpop.f32.mrf.mxu0  ;;  %v440_v19 = vpop.f32.mrf.mxu1 }
 0x150   :  { %v289_v23 = vadd.f32 %v284_v4, %v236_v21 }
 0x151   :  { %v3065_v62 = vpop.f32.mrf.mxu0  ;;  %v3082_v63 = vpop.f32.mrf.mxu1 }
 0x152   :  { %v342_v0 = vadd.f32 %v337_v61, %v289_v23 }
 0x153   :  { %v387_v18 = vpop.f32.mrf.mxu0  ;;  %v443_v2 = vpop.f32.mrf.mxu1 }
 0x154   :  { %v394_v60 = vadd.f32 %v387_v18, %v341_v26 }
 0x155   :  { %v3076_v25 = vpop.f32.mrf.mxu0  ;;  %v3083_v1 = vpop.f32.mrf.mxu1 }
 0x156   :  { %v447_v34 = vadd.f32 %v440_v19, %v394_v60 }
 0x157   :  { %v390_v5 = vpop.f32.mrf.mxu0  ;;  %v546_v24 = vpop.f32.mrf.mxu1 }
 0x158   :  { %v395_v29 = vadd.f32 %v390_v5, %v342_v0 }
 0x159   :  { %v3077_v31 = vpop.f32.mrf.mxu0  ;;  %v3094_v6 = vpop.f32.mrf.mxu1 }
 0x15a   :  { %v448_v42 = vadd.f32 %v443_v2, %v395_v29 }
 0x15b   :  { %v493_v41 = vpop.f32.mrf.mxu0  ;;  %v549_v30 = vpop.f32.mrf.mxu1 }
 0x15c   :  { %v500_v11 = vadd.f32 %v493_v41, %v447_v34 }
 0x15d   :  { %v3088_v50 = vpop.f32.mrf.mxu0  ;;  %v3095_v9 = vpop.f32.mrf.mxu1 }
 0x15e   :  { %v553_v32 = vadd.f32 %v546_v24, %v500_v11 }
 0x15f   :  { %v496_v36 = vpop.f32.mrf.mxu0 }
 0x160   :  { %v501_v45 = vadd.f32 %v496_v36, %v448_v42 }
 0x161   :  { %v3089_v16 = vpop.f32.mrf.mxu0 }
 0x162   :  { %v554_v55 = vadd.f32 %v549_v30, %v501_v45 }
 0x163   :  { %v606_v48 = vpop.f32.mrf.mxu0  ;;  %v659_v17 = vpop.f32.mrf.mxu1 }
 0x164   :  { %v613_v51 = vadd.f32 %v606_v48, %v553_v32 }
 0x165   :  { %v3100_v52 = vpop.f32.mrf.mxu0  ;;  %v3106_v54 = vpop.f32.mrf.mxu1 }
 0x166   :  { %v666_v15 = vadd.f32 %v659_v17, %v613_v51 }
 0x167   :  { %v609_v14 = vpop.f32.mrf.mxu0  ;;  %v662_v58 = vpop.f32.mrf.mxu1 }
 0x168   :  { %v614_v59 = vadd.f32 %v609_v14, %v554_v55 }
 0x169   :  { %v3101_v27 = vpop.f32.mrf.mxu0  ;;  %v3107_v28 = vpop.f32.mrf.mxu1 }
 0x16a   :  { %v667_v62 = vadd.f32 %v662_v58, %v614_v59 }
 0x16b   :  { %v712_v3 = vpop.f32.mrf.mxu0  ;;  %v765_v22 = vpop.f32.mrf.mxu1 }
 0x16c   :  { %v719_v40 = vadd.f32 %v712_v3, %v666_v15 }
 0x16d   :  { %v3112_v8 = vpop.f32.mrf.mxu0  ;;  %v3118_v35 = vpop.f32.mrf.mxu1 }
 0x16e   :  { %v772_v2 = vadd.f32 %v765_v22, %v719_v40 }
 0x16f   :  { %v715_v38 = vpop.f32.mrf.mxu0  ;;  %v768_v39 = vpop.f32.mrf.mxu1 }
 0x170   :  { %v720_v25 = vadd.f32 %v715_v38, %v667_v62 }
 0x171   :  { %v3113_v43 = vpop.f32.mrf.mxu0  ;;  %v3119_v20 = vpop.f32.mrf.mxu1 }
 0x172   :  { %v773_v7 = vadd.f32 %v768_v39, %v720_v25 }
 0x173   :  { %v818_v47 = vpop.f32.mrf.mxu0  ;;  %v871_v49 = vpop.f32.mrf.mxu1 }
 0x174   :  { %v825_v24 = vadd.f32 %v818_v47, %v772_v2 }
 0x175   :  { %v3124_v53 = vpop.f32.mrf.mxu0  ;;  %v3130_v10 = vpop.f32.mrf.mxu1 }
 0x176   :  { %v878_v37 = vadd.f32 %v871_v49, %v825_v24 }
 0x177   :  { %v821_v56 = vpop.f32.mrf.mxu0  ;;  %v874_v57 = vpop.f32.mrf.mxu1 }
 0x178   :  { %v826_v50 = vadd.f32 %v821_v56, %v773_v7 }
 0x179   :  { %v3125_v61 = vpop.f32.mrf.mxu0  ;;  %v3131_v33 = vpop.f32.mrf.mxu1 }
 0x17a   :  { %v879_v16 = vadd.f32 %v874_v57, %v826_v50 }
 0x17b   :  { %v924_v4 = vpop.f32.mrf.mxu0  ;;  %v977_v19 = vpop.f32.mrf.mxu1 }
 0x17c   :  { %v931_v36 = vadd.f32 %v924_v4, %v878_v37 }
 0x17d   :  { %v3136_v63 = vpop.f32.mrf.mxu0  ;;  %v3142_v18 = vpop.f32.mrf.mxu1 }
 0x17e   :  { %v984_v17 = vadd.f32 %v977_v19, %v931_v36 }
 0x17f   :  { %v927_v1 = vpop.f32.mrf.mxu0  ;;  %v980_v5 = vpop.f32.mrf.mxu1 }
 0x180   :  { %v932_v21 = vadd.f32 %v927_v1, %v879_v16 }
 0x181   :  { %v3137_v31 = vpop.f32.mrf.mxu0  ;;  %v3143_v6 = vpop.f32.mrf.mxu1 }
 0x182   :  { %v985_v14 = vadd.f32 %v980_v5, %v932_v21 }
 0x183   :  { %v1030_v41 = vpop.f32.mrf.mxu0  ;;  %v1083_v30 = vpop.f32.mrf.mxu1 }
 0x184   :  { %v1037_v54 = vadd.f32 %v1030_v41, %v984_v17 }
 0x185   :  { %v3148_v9 = vpop.f32.mrf.mxu0  ;;  %v3154_v12 = vpop.f32.mrf.mxu1 }
 0x186   :  { %v1090_v27 = vadd.f32 %v1083_v30, %v1037_v54 }
 0x187   :  { %v1033_v44 = vpop.f32.mrf.mxu0  ;;  %v1086_v13 = vpop.f32.mrf.mxu1 }
 0x188   :  { %v1038_v28 = vadd.f32 %v1033_v44, %v985_v14 }
 0x189   :  { %v3149_v46 = vpop.f32.mrf.mxu0  ;;  %v3155_v48 = vpop.f32.mrf.mxu1 }
 0x18a   :  { %v1091_v8 = vadd.f32 %v1086_v13, %v1038_v28 }
 0x18b   :  { %v1136_v52 = vpop.f32.mrf.mxu0 }
 0x18c   :  { %v1198_v23 = vpop.f32.mrf.mxu1  ;;  %v1143_v22 = vadd.f32 %v1136_v52, %v1090_v27 }
 0x18d   :  { %v3160_v26 = vpop.f32.mrf.mxu0 }
 0x18e   :  { %v3166_v58 = vpop.f32.mrf.mxu1  ;;  %v1205_v38 = vadd.f32 %v1198_v23, %v1143_v22 }
 0x18f   :  { %v1139_v60 = vpop.f32.mrf.mxu0 }
 0x190   :  { %v1201_v0 = vpop.f32.mrf.mxu1  ;;  %v1144_v39 = vadd.f32 %v1139_v60, %v1091_v8 }
 0x191   :  { %v3161_v3 = vpop.f32.mrf.mxu0 }
 0x192   :  { %v3167_v29 = vpop.f32.mrf.mxu1  ;;  %v1206_v47 = vadd.f32 %v1201_v0, %v1144_v39 }
 0x193   :  { %v1251_v34 = vpop.f32.mrf.mxu0 }
 0x194   :  { %v1304_v35 = vpop.f32.mrf.mxu1  ;;  %v1258_v20 = vadd.f32 %v1251_v34, %v1205_v38 }
 0x195   :  { %v3172_v11 = vpop.f32.mrf.mxu0 }
 0x196   :  { %v3178_v42 = vpop.f32.mrf.mxu1  ;;  %v1311_v53 = vadd.f32 %v1304_v35, %v1258_v20 }
 0x197   :  { %v1254_v43 = vpop.f32.mrf.mxu0 }
 0x198   :  { %v1307_v45 = vpop.f32.mrf.mxu1  ;;  %v1259_v10 = vadd.f32 %v1254_v43, %v1206_v47 }
 0x199   :  { %v3173_v32 = vpop.f32.mrf.mxu0 }
 0x19a   :  { %v3179_v49 = vpop.f32.mrf.mxu1  ;;  %v1312_v61 = vadd.f32 %v1307_v45, %v1259_v10 }
 0x19b   :  { %v1357_v51 = vpop.f32.mrf.mxu0 }
 0x19c   :  { %v1410_v55 = vpop.f32.mrf.mxu1  ;;  %v1364_v57 = vadd.f32 %v1357_v51, %v1311_v53 }
 0x19d   :  { %v3184_v56 = vpop.f32.mrf.mxu0 }
 0x19e   :  { %v3190_v15 = vpop.f32.mrf.mxu1  ;;  %v1417_v4 = vadd.f32 %v1410_v55, %v1364_v57 }
 0x19f   :  { %v1360_v59 = vpop.f32.mrf.mxu0 }
 0x1a0   :  { %v1413_v33 = vpop.f32.mrf.mxu1  ;;  %v1365_v19 = vadd.f32 %v1360_v59, %v1312_v61 }
 0x1a1   :  { %v3185_v40 = vpop.f32.mrf.mxu0 }
 0x1a2   :  { %v3191_v62 = vpop.f32.mrf.mxu1  ;;  %v1418_v1 = vadd.f32 %v1413_v33, %v1365_v19 }
 0x1a3   :  { %v1463_v63 = vpop.f32.mrf.mxu0 }
 0x1a4   :  { %v4009_v18 = vadd.f32 %v1463_v63, %v1417_v4  ;;  %v1525_v2 = vpop.f32.mrf.mxu1 }
 0x1a5   :  { %v3196_v25 = vpop.f32.mrf.mxu0 }
 0x1a6   :  { %v3202_v5 = vpop.f32.mrf.mxu1  ;;  %v1473_v24 = vsel %vm562_vm3, %v4009_v18, 0.0 }
 0x1a7   :  { %v1466_v31 = vpop.f32.mrf.mxu0  ;;  %1474 = vadd.xlane.f32.xlu0 %v1473_v24 }
 0x1a8   :  { %v4013_v6 = vadd.f32 %v1466_v31, %v1418_v1  ;;  %v1528_v7 = vpop.f32.mrf.mxu1 }
 0x1a9   :  { %v3197_v41 = vpop.f32.mrf.mxu0 }
 0x1aa   :  { %v3203_v30 = vpop.f32.mrf.mxu1  ;;  %v1476_v37 = vsel %vm562_vm3, %v4013_v6, 0.0 }
 0x1ab   :  { %v1569_v50 = vpop.f32.mrf.mxu0  ;;  %1477 = vadd.xlane.f32.xlu1 %v1476_v37 }
 0x1ac   :  { %v1615_v9 = vpop.f32.mrf.mxu1  ;;  %v1570_v8 = vadd.f32 %v1569_v50, %v1525_v2 }
 0x1ad   :  { %v3208_v12 = vpop.f32.mrf.mxu0 }
 0x1ae   :  { %v3214_v36 = vpop.f32.mrf.mxu1  ;;  %v1622_v42 = vadd.f32 %v1615_v9, %v1570_v8 }
 0x1af   :  { %v1572_v44 = vpop.f32.mrf.mxu0 }
 0x1b0   :  { %v1618_v13 = vpop.f32.mrf.mxu1  ;;  %v1573_v43 = vadd.f32 %v1572_v44, %v1528_v7 }
 0x1b1   :  { %v3209_v16 = vpop.f32.mrf.mxu0 }
 0x1b2   :  { %v3215_v46 = vpop.f32.mrf.mxu1  ;;  %v1623_v51 = vadd.f32 %v1618_v13, %v1573_v43 }
 0x1b3   :  { %v1663_v48 = vpop.f32.mrf.mxu0 }
 0x1b4   :  { %v1711_v17 = vpop.f32.mrf.mxu1  ;;  %v1670_v32 = vadd.f32 %v1663_v48, %v1622_v42 }
 0x1b5   :  { %v3220_v21 = vpop.f32.mrf.mxu0 }
 0x1b6   :  { %v3226_v52 = vpop.f32.mrf.mxu1  ;;  %v1718_v55 = vadd.f32 %v1711_v17, %v1670_v32 }
 0x1b7   :  { %v1666_v54 = vpop.f32.mrf.mxu0 }
 0x1b8   :  { %v1714_v23 = vpop.f32.mrf.mxu1  ;;  %v1671_v56 = vadd.f32 %v1666_v54, %v1623_v51 }
 0x1b9   :  { %v3221_v26 = vpop.f32.mrf.mxu0 }
 0x1ba   :  { %v3227_v14 = vpop.f32.mrf.mxu1  ;;  %v1719_v40 = vadd.f32 %v1714_v23, %v1671_v56 }
 0x1bb   :  { %v1759_v58 = vpop.f32.mrf.mxu0 }
 0x1bc   :  { %v1807_v60 = vpop.f32.mrf.mxu1  ;;  %v1766_v59 = vadd.f32 %v1759_v58, %v1718_v55 }
 0x1bd   :  { %v3232_v27 = vpop.f32.mrf.mxu0 }
 0x1be   :  { %v3238_v28 = vpop.f32.mrf.mxu1  ;;  %v1814_v62 = vadd.f32 %v1807_v60, %v1766_v59 }
 0x1bf   :  { %v1762_v0 = vpop.f32.mrf.mxu0 }
 0x1c0   :  { %v1810_v3 = vpop.f32.mrf.mxu1  ;;  %v1767_v63 = vadd.f32 %v1762_v0, %v1719_v40 }
 0x1c1   :  { %v3233_v22 = vpop.f32.mrf.mxu0 }
 0x1c2   :  { %v3239_v29 = vpop.f32.mrf.mxu1  ;;  %v1815_v31 = vadd.f32 %v1810_v3, %v1767_v63 }
 0x1c3   :  { %v1855_v34 = vpop.f32.mrf.mxu0 }
 0x1c4   :  { %v1903_v35 = vpop.f32.mrf.mxu1  ;;  %v1862_v1 = vadd.f32 %v1855_v34, %v1814_v62 }
 0x1c5   :  { %v3244_v11 = vpop.f32.mrf.mxu0 }
 0x1c6   :  { %v3250_v38 = vpop.f32.mrf.mxu1  ;;  %v1910_v30 = vadd.f32 %v1903_v35, %v1862_v1 }
 0x1c7   :  { %v1858_v39 = vpop.f32.mrf.mxu0 }
 0x1c8   :  { %v1906_v20 = vpop.f32.mrf.mxu1  ;;  %v1863_v37 = vadd.f32 %v1858_v39, %v1815_v31 }
 0x1c9   :  { %v3245_v45 = vpop.f32.mrf.mxu0 }
 0x1ca   :  { %v3251_v47 = vpop.f32.mrf.mxu1  ;;  %v1911_v13 = vadd.f32 %v1906_v20, %v1863_v37 }
 0x1cb   :  { %v1951_v49 = vpop.f32.mrf.mxu0 }
 0x1cc   :  { %v1999_v53 = vpop.f32.mrf.mxu1  ;;  %v1958_v12 = vadd.f32 %v1951_v49, %v1910_v30 }
 0x1cd   :  { %v3256_v10 = vpop.f32.mrf.mxu0 }
 0x1ce   :  { %v3262_v57 = vpop.f32.mrf.mxu1  ;;  %v2006_v48 = vadd.f32 %v1999_v53, %v1958_v12 }
 0x1cf   :  { %v1954_v15 = vpop.f32.mrf.mxu0 }
 0x1d0   :  { %v2002_v61 = vpop.f32.mrf.mxu1  ;;  %v1959_v17 = vadd.f32 %v1954_v15, %v1911_v13 }
 0x1d1   :  { %v3257_v33 = vpop.f32.mrf.mxu0 }
 0x1d2   :  { %v3263_v4 = vpop.f32.mrf.mxu1  ;;  %v2007_v14 = vadd.f32 %v2002_v61, %v1959_v17 }
 0x1d3   :  { %v2047_v19 = vpop.f32.mrf.mxu0 }
 0x1d4   :  { %v2095_v2 = vpop.f32.mrf.mxu1  ;;  %v2054_v54 = vadd.f32 %v2047_v19, %v2006_v48 }
 0x1d5   :  { %v3268_v25 = vpop.f32.mrf.mxu0 }
 0x1d6   :  { %v3274_v5 = vpop.f32.mrf.mxu1  ;;  %v2102_v27 = vadd.f32 %v2095_v2, %v2054_v54 }
 0x1d7   :  { %v2050_v24 = vpop.f32.mrf.mxu0 }
 0x1d8   :  { %v2098_v7 = vpop.f32.mrf.mxu1  ;;  %v2055_v28 = vadd.f32 %v2050_v24, %v2007_v14 }
 0x1d9   :  { %v3269_v41 = vpop.f32.mrf.mxu0 }
 0x1da   :  { %v3275_v50 = vpop.f32.mrf.mxu1  ;;  %v2103_v8 = vadd.f32 %v2098_v7, %v2055_v28 }
 0x1db   :  { %v2143_v9 = vpop.f32.mrf.mxu0 }
 0x1dc   :  { %v2191_v36 = vpop.f32.mrf.mxu1  ;;  %v2150_v22 = vadd.f32 %v2143_v9, %v2102_v27 }
 0x1dd   :  { %v3280_v44 = vpop.f32.mrf.mxu0 }
 0x1de   :  { %v3286_v16 = vpop.f32.mrf.mxu1  ;;  %v2198_v38 = vadd.f32 %v2191_v36, %v2150_v22 }
 0x1df   :  { %v2146_v46 = vpop.f32.mrf.mxu0 }
 0x1e0   :  { %v2194_v21 = vpop.f32.mrf.mxu1  ;;  %v2151_v39 = vadd.f32 %v2146_v46, %v2103_v8 }
 0x1e1   :  { %v3281_v52 = vpop.f32.mrf.mxu0 }
 0x1e2   :  { %v3287_v23 = vpop.f32.mrf.mxu1  ;;  %v2199_v47 = vadd.f32 %v2194_v21, %v2151_v39 }
 0x1e3   :  { %v2239_v26 = vpop.f32.mrf.mxu0 }
 0x1e4   :  { %v2287_v58 = vpop.f32.mrf.mxu1  ;;  %v2246_v20 = vadd.f32 %v2239_v26, %v2198_v38 }
 0x1e5   :  { %v3292_v60 = vpop.f32.mrf.mxu0 }
 0x1e6   :  { %v3298_v0 = vpop.f32.mrf.mxu1  ;;  %v2294_v53 = vadd.f32 %v2287_v58, %v2246_v20 }
 0x1e7   :  { %v2242_v3 = vpop.f32.mrf.mxu0 }
 0x1e8   :  { %v2290_v29 = vpop.f32.mrf.mxu1  ;;  %v2247_v10 = vadd.f32 %v2242_v3, %v2199_v47 }
 0x1e9   :  { %v3293_v34 = vpop.f32.mrf.mxu0 }
 0x1ea   :  { %v3299_v35 = vpop.f32.mrf.mxu1  ;;  %v2295_v61 = vadd.f32 %v2290_v29, %v2247_v10 }
 0x1eb   :  { %v2335_v11 = vpop.f32.mrf.mxu0 }
 0x1ec   :  { %v2383_v42 = vpop.f32.mrf.mxu1  ;;  %v2342_v57 = vadd.f32 %v2335_v11, %v2294_v53 }
 0x1ed   :  { %v3304_v43 = vpop.f32.mrf.mxu0 }
 0x1ee   :  { %v3310_v45 = vpop.f32.mrf.mxu1  ;;  %v2390_v4 = vadd.f32 %v2383_v42, %v2342_v57 }
 0x1ef   :  { %v2338_v32 = vpop.f32.mrf.mxu0 }
 0x1f0   :  { %v2386_v49 = vpop.f32.mrf.mxu1  ;;  %v2343_v19 = vadd.f32 %v2338_v32, %v2295_v61 }
 0x1f1   :  { %v3305_v51 = vpop.f32.mrf.mxu0 }
 0x1f2   :  { %v3311_v55 = vpop.f32.mrf.mxu1  ;;  %v2391_v5 = vadd.f32 %v2386_v49, %v2343_v19 }
 0x1f3   :  { %v2431_v56 = vpop.f32.mrf.mxu0 }
 0x1f4   :  { %v2479_v15 = vpop.f32.mrf.mxu1  ;;  %v2438_v2 = vadd.f32 %v2431_v56, %v2390_v4 }
 0x1f5   :  { %v3316_v59 = vpop.f32.mrf.mxu0 }
 0x1f6   :  { %v3322_v33 = vpop.f32.mrf.mxu1  ;;  %v2486_v7 = vadd.f32 %v2479_v15, %v2438_v2 }
 0x1f7   :  { %v2434_v40 = vpop.f32.mrf.mxu0 }
 0x1f8   :  { %v2482_v62 = vpop.f32.mrf.mxu1  ;;  %v2439_v41 = vadd.f32 %v2434_v40, %v2391_v5 }
 0x1f9   :  { %v3317_v63 = vpop.f32.mrf.mxu0 }
 0x1fa   :  { %v3323_v25 = vpop.f32.mrf.mxu1  ;;  %v2487_v36 = vadd.f32 %v2482_v62, %v2439_v41 }
 0x1fb   :  { %v2527_v1 = vpop.f32.mrf.mxu0 }
 0x1fc   :  { %v2575_v24 = vpop.f32.mrf.mxu1  ;;  %v2534_v50 = vadd.f32 %v2527_v1, %v2486_v7  ;;  %v3435_v1 = vmov 0  }
 0x1fd   :  { %v3328_v31 = vpop.f32.mrf.mxu0  ;;  %3393 = vset.pattern.permute.xlu1 %v3435_v1  ;;  %3394 = vset.pattern.permute.xlu0 %v3435_v1 }
 0x1fe   :  { %v3334_v30 = vpop.f32.mrf.mxu1  ;;  %v2582_v16 = vadd.f32 %v2575_v24, %v2534_v50 }
 0x1ff   :  { %v2530_v37 = vpop.f32.mrf.mxu0 }
 0x200   :  { %v2578_v9 = vpop.f32.mrf.mxu1  ;;  %v2535_v46 = vadd.f32 %v2530_v37, %v2487_v36  ;;  %v2816_v36 = vld [vmem:[%s4067_s2] sm:$0xff] }
 0x201   :  { %v3329_v12 = vpop.f32.mrf.mxu0 }
 0x202   :  { %v3335_v44 = vpop.f32.mrf.mxu1  ;;  %v2583_v23 = vadd.f32 %v2578_v9, %v2535_v46  ;;  %v2817_v46 = vld [vmem:[%s4067_s2 + $0x8] sm:$0xff] }
 0x203   :  { %v2623_v13 = vpop.f32.mrf.mxu0 }
 0x204   :  { %v2671_v48 = vpop.f32.mrf.mxu1  ;;  %v2630_v21 = vadd.f32 %v2623_v13, %v2582_v16  ;;  %v2820_v16 = vld [vmem:[%s4068_s3] sm:$0xff] }
 0x205   :  { %v3340_v17 = vpop.f32.mrf.mxu0 }
 0x206   :  { %v3346_v52 = vpop.f32.mrf.mxu1  ;;  %v2678_v58 = vadd.f32 %v2671_v48, %v2630_v21 }
 0x207   :  { %v2626_v54 = vpop.f32.mrf.mxu0 }
 0x208   :  { %v2674_v26 = vpop.f32.mrf.mxu1  ;;  %v2631_v60 = vadd.f32 %v2626_v54, %v2583_v23  ;;  %v2821_v54 = vld [vmem:[%s4068_s3 + $0x8] sm:$0xff] }
 0x209   :  { %v3341_v14 = vpop.f32.mrf.mxu0 }
 0x20a   :  { %v3347_v27 = vpop.f32.mrf.mxu1  ;;  %v2679_v29 = vadd.f32 %v2674_v26, %v2631_v60 }
 0x20b   :  { %v2719_v28 = vpop.f32.mrf.mxu0 }
 0x20c   :  { %v2726_v0 = vadd.f32 %v2719_v28, %v2678_v58  ;;  %v2767_v3 = vpop.f32.mrf.mxu1 }
 0x20d   :  { %v3352_v22 = vpop.f32.mrf.mxu0 }
 0x20e   :  { %v4017_v34 = vadd.f32 %v2767_v3, %v2726_v0  ;;  %v3358_v8 = vpop.f32.mrf.mxu1 }
 0x20f   :  { %v2722_v35 = vpop.f32.mrf.mxu0 }
 0x210   :  { %v2727_v11 = vadd.f32 %v2722_v35, %v2679_v29  ;;  %v2770_v38 = vpop.f32.mrf.mxu1  ;;  %v2776_v39 = vsel %vm562_vm3, %v4017_v34, 0.0 }
 0x211   :  { %v3353_v42 = vpop.f32.mrf.mxu0  ;;  %2777 = vadd.xlane.f32.xlu0 %v2776_v39 }
 0x212   :  { %v4021_v43 = vadd.f32 %v2770_v38, %v2727_v11  ;;  %v3359_v20 = vpop.f32.mrf.mxu1 }
 0x214   :  { %v2779_v45 = vsel %vm562_vm3, %v4021_v43, 0.0 }
 0x215   :  { %2780 = vadd.xlane.f32.xlu0 %v2779_v45 }
 0x230   :  { %v1475_v32 = vpop.xlane.xlu0 %1474 }
 0x234   :  { %v1478_v53 = vpop.xlane.xlu1 %1477 }
 0x29a   :  { %v2778_v47 = vpop.xlane.xlu0 %2777 }
 0x29b   :  { %v2782_v49 = vadd.f32 %v2778_v47, %v1475_v32 }
 0x29d   :  { %v2784_v51 = vmul.f32 0.0625, %v2782_v49 }
 0x29e   :  { %v2781_v10 = vpop.xlane.xlu0 %2780 }
 0x29f   :  { %v2783_v55 = vadd.f32 %v2781_v10, %v1478_v53  ;;  %v2786_v56 = vsub.f32 %v4009_v18, %v2784_v51  ;;  %v2798_v57 = vsub.f32 %v4017_v34, %v2784_v51 }
 0x2a1   :  { %v2785_v15 = vmul.f32 0.0625, %v2783_v55  ;;  %v2788_v59 = vmul.f32 %v2786_v56, %v2786_v56  ;;  %v2800_v33 = vmul.f32 %v2798_v57, %v2798_v57 }
 0x2a3   :  { %v2790_v61 = vsel %vm562_vm3, %v2788_v59, 0.0  ;;  %v2787_v40 = vsub.f32 %v4013_v6, %v2785_v15  ;;  %v2799_v4 = vsub.f32 %v4021_v43, %v2785_v15  ;;  %v2802_v62 = vsel %vm562_vm3, %v2800_v33, 0.0 }
 0x2a4   :  { %2791 = vadd.xlane.f32.xlu1 %v2790_v61 }
 0x2a5   :  { %v2789_v19 = vmul.f32 %v2787_v40, %v2787_v40  ;;  %v2801_v2 = vmul.f32 %v2799_v4, %v2799_v4 }
 0x2a7   :  { %v2793_v63 = vsel %vm562_vm3, %v2789_v19, 0.0  ;;  %v2805_v25 = vsel %vm562_vm3, %v2801_v2, 0.0 }
 0x2a8   :  { %2803 = vadd.xlane.f32.xlu1 %v2802_v62  ;;  %2794 = vadd.xlane.f32.xlu0 %v2793_v63 }
 0x2ac   :  { %2806 = vadd.xlane.f32.xlu0 %v2805_v25 }
 0x32d   :  { %v2792_v5 = vpop.xlane.xlu1 %2791 }
 0x331   :  { %v2804_v24 = vpop.xlane.xlu1 %2803  ;;  %v2795_v31 = vpop.xlane.xlu0 %2794 }
 0x332   :  { %v2808_v7 = vadd.f32 %v2804_v24, %v2792_v5 }
 0x334   :  { %v2810_v41 = vmul.f32 0.0625, %v2808_v7 }
 0x335   :  { %v2807_v30 = vpop.xlane.xlu0 %2806 }
 0x336   :  { %v2812_v37 = vadd.f32 1e-05, %v2810_v41  ;;  %v2809_v50 = vadd.f32 %v2807_v30, %v2795_v31 }
 0x338   :  { %3399 = vrsqrt.f32 %v2812_v37  ;;  %v2811_v9 = vmul.f32 0.0625, %v2809_v50 }
 0x33a   :  { %v2813_v12 = vadd.f32 1e-05, %v2811_v9 }
 0x33c   :  { %3401 = vrsqrt.f32 %v2813_v12 }
 0x345   :  { %v3400_v44 = vpop.eup %3399 }
 0x346   :  { %v2818_v13 = vmul.f32 %v3400_v44, %v2816_v36 }
 0x348   :  { %2828 = vperm.xlu1 %3393, %v2818_v13   ;;  %v2822_v48 = vmul.f32 %v2818_v13, %v2784_v51 }
 0x349   :  { %v3402_v17 = vpop.eup %3401 }
 0x34a   :  { %v2824_v21 = vsub.f32 %v2820_v16, %v2822_v48  ;;  %v2819_v52 = vmul.f32 %v3402_v17, %v2817_v46 }
 0x34c   :  { %2840 = vperm.xlu1 %3393, %v2824_v21   ;;  %2833 = vperm.xlu0 %3394, %v2819_v52   ;;  %v2823_v23 = vmul.f32 %v2819_v52, %v2785_v15 }
 0x34e   :  { %v2825_v26 = vsub.f32 %v2821_v54, %v2823_v23 }
 0x350   :  { %2845 = vperm.xlu1 %3393, %v2825_v26  }
 0x3c3   :  { %v2829_v14 = vpop.permute.xlu1 %2828 }
 0x3c4   :  { %v2836_v58 = vmul.f32 %v2829_v14, %v4009_v18  ;;  %v2852_v60 = vmul.f32 %v2829_v14, %v4017_v34 }
 0x3c7   :  { %v2841_v27 = vpop.permute.xlu1 %2840  ;;  %v2834_v28 = vpop.permute.xlu0 %2833 }
 0x3c8   :  { %v2848_v0 = vadd.f32 %v2841_v27, %v2836_v58  ;;  %v2854_v3 = vadd.f32 %v2852_v60, %v2841_v27  ;;  %v2837_v8 = vmul.f32 %v2834_v28, %v4013_v6  ;;  %v2853_v35 = vmul.f32 %v2834_v28, %v4021_v43 }
 0x3ca   :  { %v2850_v22 = vmax.f32 %v2848_v0, 0.0  ;;  %v2856_v29 = vmax.f32 %v2854_v3, 0.0 }
 0x3cb   :  { %v2846_v11 = vpop.permute.xlu1 %2845 }
 0x3cc   :  { %2858 = vst.msk [vmem:[%s4069_s4] sm:$0xff] %vm562_vm3, %v2850_v22  ;;  %2926 = vst.msk [vmem:[%s4069_s4 + $0x10] sm:$0xff] %vm562_vm3, %v2856_v29  ;;  %v2849_v18 = vadd.f32 %v2846_v11, %v2837_v8  ;;  %v2855_v34 = vadd.f32 %v2853_v35, %v2846_v11 }
 0x3ce   :  { %v2851_v38 = vmax.f32 %v2849_v18, 0.0  ;;  %v2857_v39 = vmax.f32 %v2855_v34, 0.0 }
 0x3d0   :  { %2859 = vst.msk [vmem:[%s4069_s4 + $0x8] sm:$0xff] %vm562_vm3, %v2851_v38  ;;  %2927 = vst.msk [vmem:[%s4069_s4 + $0x18] sm:$0xff] %vm562_vm3, %v2857_v39 }

// kernel: model_forward.7
= control target key start
LH: loop header
LB: loop body
LE: loop exit
PB: predicated region body
PF: predicated region fallthrough
CT: control target
= control target key end

     0   :  { %s2000_s0 = inlined_call_operand.vmem [shape: f32[2,12,24], index: 0, kind: input, shape index: {}]   ;;  %s2001_s1 = inlined_call_operand.vmem [shape: bf16[48,60], index: 1, kind: input, shape index: {}]   ;;  %s2002_s2 = inlined_call_operand.vmem [shape: f32[48,1], index: 2, kind: input, shape index: {}]   ;;  %s2003_s3 = inlined_call_operand.vmem [shape: f32[48,1], index: 3, kind: input, shape index: {}]   ;;  %s2004_s4 = inlined_call_operand.vmem [shape: f32[1,48], index: 4, kind: input, shape index: {}]   ;;  %s2005_s5 = inlined_call_operand.<no memory space> [shape: f32[1,1], index: 5, kind: input, shape index: {}]   ;;  %s2006_s6 = inlined_call_operand.hbm [shape: f32[1,2], index: 6, kind: output, shape index: {}]  }
   0x1   :  { %v11_v0 = vstv %s2005_s5 }
   0x2   :  { %12 = vst [vmem:[#allocation3] sm:$0x1] %v11_v0 }
   0x3   :  { %v39_v1 = vld [vmem:[%s2000_s0] sm:$0xff]  ;;  %v40_v2 = vld [vmem:[%s2000_s0 + $0x8] sm:$0xf]  ;;  %v1628_v5 = vld [vmem:[%s2001_s1 + $0x10] sm:$0xff]   ;;  %s1565_s5 = smov 124   ;;  %s1566_s7 = smov 116  }
   0x4   :  { %v41_v3 = vpack.c.bf16 %v40_v2, %v39_v1  ;;  %v1623_v4 = vld [vmem:[%s2001_s1 + $0x8] sm:$0xff]   ;;  %v1636_v6 = vld [vmem:[%s2001_s1] sm:$0xff]   ;;  %v1567_v7 = vmov 0.0   ;;  %vm76_vm0 = vcmask 1045504  }
   0x5   :  { %59 = vrot.lane.b32.xlu1 %v1623_v4, %s1566_s7  ;;  %1359 = vmatprep.subr.bf16.mxu1 %v1567_v7 }
   0x6   :  { %64 = vrot.lane.b32.xlu0 %v41_v3, %s1565_s5  ;;  %1345 = vmatprep.subr.bf16.mxu0 %v1567_v7  ;;  %v147_v8 = vsel %vm76_vm0, %v41_v3, 0 }
   0x7   :  { %13 = vsyncpa [#allocation5], 0  ;;  %1360 = vmatpush3.bf16.msra.mxu1 %v147_v8  ;;  %vm1568_vm1 = vmmov 0   ;;  %vm66_vm2 = vcmask 97280   ;;  %s1569_s1 = smov 120   ;;  %s1570_s10 = smov 92  }
   0x8   :  { %1361 = vmatprep.mubr.msk.bf16.mxu1 %vm1568_vm1, %v1567_v7  ;;  %1347 = vmatprep.mubr.msk.bf16.mxu0 %vm1568_vm1, %v1567_v7  ;;  %s1571_s11 = smov 104   ;;  %v1272_v9 = vld [vmem:[%s2000_s0 + $0x10] sm:$0xff]  ;;  %v1273_v10 = vld [vmem:[%s2000_s0 + $0x18] sm:$0xf]  ;;  %s1572_s16 = smov 112   ;;  %vm455_vm3 = vcmask 64512  }
   0x9   :  { %61 = vrot.lane.b32.xlu1 %v1628_v5, %s1566_s7  ;;  %1387 = vmatprep.subr.bf16.mxu1 %v1567_v7  ;;  %v1670_v11 = vpack.c.bf16 %v1273_v10, %v1272_v9  ;;  %s1573_s17 = smov 80   ;;  %vm31_vm4 = vcmask 58368   ;;  %vm1058_vm5 = vcmask 392192   ;;  %vm1134_vm6 = vcmask 57344  }
   0xa   :  { %57 = vrot.lane.b32.xlu0 %v1636_v6, %s1566_s7  ;;  %1362 = vmatmul.mubr.msk.bf16.vlgmr.msra.gmra.mxu1 %vm66_vm2, %v1636_v6  ;;  %32 = vst.msk [vmem:[#allocation2] sm:$0x3] %vm31_vm4, %v1567_v7  ;;  %vm1238_vm7 = vcmask 8192  }
   0xb   :  { %1365 = vmatprep.mubr.msk.bf16.mxu1 %vm1568_vm1, %v1567_v7  ;;  %v548_v35 = vsel %vm76_vm0, %v1670_v11, 0 }
   0xd   :  { %295 = vrot.lane.b32.xlu1 %v41_v3, %s1566_s7 }
   0xe   :  { %212 = vrot.lane.b32.xlu0 %v41_v3, %s1569_s1 }
  0x11   :  { %289 = vrot.lane.b32.xlu1 %v1636_v6, %s1570_s10 }
  0x12   :  { %206 = vrot.lane.b32.xlu0 %v1636_v6, %s1571_s11  ;;  %1366 = vmatmul.mubr.msk.bf16.gmra.mxu1 %vm66_vm2, %v1623_v4 }
  0x13   :  { %1369 = vmatprep.mubr.msk.bf16.mxu1 %vm1568_vm1, %v1567_v7 }
  0x15   :  { %291 = vrot.lane.b32.xlu1 %v1623_v4, %s1570_s10 }
  0x16   :  { %208 = vrot.lane.b32.xlu0 %v1623_v4, %s1571_s11 }
  0x19   :  { %293 = vrot.lane.b32.xlu1 %v1628_v5, %s1570_s10 }
  0x1a   :  { %210 = vrot.lane.b32.xlu0 %v1628_v5, %s1571_s11  ;;  %1370 = vmatmul.mubr.msk.bf16.gmra.mxu1 %vm66_vm2, %v1628_v5 }
  0x1b   :  { %1389 = vmatprep.mubr.msk.bf16.mxu1 %vm1568_vm1, %v1567_v7 }
  0x1d   :  { %485 = vrot.lane.b32.xlu1 %v1670_v11, %s1565_s5 }
  0x1e   :  { %378 = vrot.lane.b32.xlu0 %v41_v3, %s1572_s16 }
  0x21   :  { %374 = vrot.lane.b32.xlu1 %v1623_v4, %s1573_s17 }
  0x22   :  { %372 = vrot.lane.b32.xlu0 %v1636_v6, %s1573_s17 }
  0x25   :  { %607 = vrot.lane.b32.xlu1 %v1670_v11, %s1569_s1 }
  0x26   :  { %376 = vrot.lane.b32.xlu0 %v1628_v5, %s1573_s17 }
  0x29   :  { %743 = vrot.lane.b32.xlu1 %v1670_v11, %s1572_s16 }
  0x2a   :  { %675 = vrot.lane.b32.xlu0 %v1670_v11, %s1566_s7 }
  0x77   :  { %v60_v13 = vpop.permute.xlu1 %59 }
  0x78   :  { %v65_v12 = vpop.permute.xlu0 %64 }
  0x79   :  { %v78_v14 = vsel %vm76_vm0, %v65_v12, 0 }
  0x7a   :  { %1346 = vmatpush3.bf16.msra.mxu0 %v78_v14 }
  0x7b   :  { %1373 = vmatprep.subr.bf16.mxu0 %v1567_v7  ;;  %v62_v15 = vpop.permute.xlu1 %61 }
  0x7c   :  { %v58_v16 = vpop.permute.xlu0 %57 }
  0x7d   :  { %1348 = vmatmul.mubr.msk.bf16.vlgmr.msra.gmra.mxu0 %vm66_vm2, %v58_v16 }
  0x7e   :  { %1351 = vmatprep.mubr.msk.bf16.mxu0 %vm1568_vm1, %v1567_v7 }
  0x7f   :  { %v296_v17 = vpop.permute.xlu1 %295 }
  0x80   :  { %v213_v18 = vpop.permute.xlu0 %212  ;;  %v307_v19 = vsel %vm76_vm0, %v296_v17, 0 }
  0x81   :  { %v224_v20 = vsel %vm76_vm0, %v213_v18, 0  ;;  %1388 = vmatpush3.bf16.msra.mxu1 %v307_v19 }
  0x82   :  { %1374 = vmatpush3.bf16.msra.mxu0 %v224_v20  ;;  %1415 = vmatprep.subr.bf16.mxu1 %v1567_v7 }
  0x83   :  { %1401 = vmatprep.subr.bf16.mxu0 %v1567_v7  ;;  %v1695_v21 = vpop.permute.xlu1 %289 }
  0x84   :  { %v207_v22 = vpop.permute.xlu0 %206  ;;  %1390 = vmatmul.mubr.msk.bf16.vlgmr.msra.gmra.mxu1 %vm66_vm2, %v1695_v21 }
  0x85   :  { %1352 = vmatmul.mubr.msk.bf16.gmra.mxu0 %vm66_vm2, %v60_v13  ;;  %1393 = vmatprep.mubr.msk.bf16.mxu1 %vm1568_vm1, %v1567_v7 }
  0x86   :  { %1355 = vmatprep.mubr.msk.bf16.mxu0 %vm1568_vm1, %v1567_v7 }
  0x87   :  { %v1704_v23 = vpop.permute.xlu1 %291 }
  0x88   :  { %v209_v24 = vpop.permute.xlu0 %208 }
  0x8b   :  { %v1706_v25 = vpop.permute.xlu1 %293 }
  0x8c   :  { %v211_v26 = vpop.permute.xlu0 %210  ;;  %1394 = vmatmul.mubr.msk.bf16.gmra.mxu1 %vm66_vm2, %v1704_v23 }
  0x8d   :  { %1356 = vmatmul.mubr.msk.bf16.gmra.mxu0 %vm66_vm2, %v62_v15  ;;  %1397 = vmatprep.mubr.msk.bf16.mxu1 %vm1568_vm1, %v1567_v7 }
  0x8e   :  { %1375 = vmatprep.mubr.msk.bf16.mxu0 %vm1568_vm1, %v1567_v7 }
  0x8f   :  { %v486_v27 = vpop.permute.xlu1 %485 }
  0x90   :  { %v488_v28 = vsel %vm76_vm0, %v486_v27, 0  ;;  %v379_v29 = vpop.permute.xlu0 %378 }
  0x91   :  { %1416 = vmatpush3.bf16.msra.mxu1 %v488_v28  ;;  %v390_v30 = vsel %vm76_vm0, %v379_v29, 0 }
  0x92   :  { %1443 = vmatprep.subr.bf16.mxu1 %v1567_v7 }
  0x93   :  { %v375_v31 = vpop.permute.xlu1 %374 }
  0x94   :  { %1398 = vmatmul.mubr.msk.bf16.gmra.mxu1 %vm66_vm2, %v1706_v25  ;;  %v373_v34 = vpop.permute.xlu0 %372 }
  0x95   :  { %1376 = vmatmul.mubr.msk.bf16.vlgmr.msra.gmra.mxu0 %vm66_vm2, %v207_v22  ;;  %1417 = vmatprep.mubr.msk.bf16.mxu1 %vm1568_vm1, %v1567_v7 }
  0x96   :  { %1379 = vmatprep.mubr.msk.bf16.mxu0 %vm1568_vm1, %v1567_v7  ;;  %1402 = vmatpush3.bf16.msra.mxu0 %v390_v30 }
  0x97   :  { %1429 = vmatprep.subr.bf16.mxu0 %v1567_v7  ;;  %v608_v32 = vpop.permute.xlu1 %607 }
  0x98   :  { %v610_v33 = vsel %vm76_vm0, %v608_v32, 0  ;;  %v377_v38 = vpop.permute.xlu0 %376 }
  0x9b   :  { %v744_v36 = vpop.permute.xlu1 %743 }
  0x9c   :  { %1418 = vmatmul.mubr.msk.bf16.vlgmr.msra.gmra.mxu1 %vm66_vm2, %v58_v16  ;;  %v746_v37 = vsel %vm76_vm0, %v744_v36, 0  ;;  %v676_v39 = vpop.permute.xlu0 %675 }
  0x9d   :  { %1380 = vmatmul.mubr.msk.bf16.gmra.mxu0 %vm66_vm2, %v209_v24  ;;  %1421 = vmatprep.mubr.msk.bf16.mxu1 %vm1568_vm1, %v1567_v7  ;;  %v678_v40 = vsel %vm76_vm0, %v676_v39, 0 }
  0x9e   :  { %1383 = vmatprep.mubr.msk.bf16.mxu0 %vm1568_vm1, %v1567_v7  ;;  %1444 = vmatpush3.bf16.msra.mxu1 %v610_v33 }
  0x9f   :  { %1471 = vmatprep.subr.bf16.mxu1 %v1567_v7 }
  0xa4   :  { %1422 = vmatmul.mubr.msk.bf16.gmra.mxu1 %vm66_vm2, %v60_v13 }
  0xa5   :  { %1384 = vmatmul.mubr.msk.bf16.gmra.mxu0 %vm66_vm2, %v211_v26  ;;  %1425 = vmatprep.mubr.msk.bf16.mxu1 %vm1568_vm1, %v1567_v7 }
  0xa6   :  { %1403 = vmatprep.mubr.msk.bf16.mxu0 %vm1568_vm1, %v1567_v7 }
  0xac   :  { %1426 = vmatmul.mubr.msk.bf16.gmra.mxu1 %vm66_vm2, %v62_v15 }
  0xad   :  { %1404 = vmatmul.mubr.msk.bf16.vlgmr.msra.gmra.mxu0 %vm66_vm2, %v373_v34  ;;  %1445 = vmatprep.mubr.msk.bf16.mxu1 %vm1568_vm1, %v1567_v7 }
  0xae   :  { %1407 = vmatprep.mubr.msk.bf16.mxu0 %vm1568_vm1, %v1567_v7  ;;  %1430 = vmatpush3.bf16.msra.mxu0 %v548_v35 }
  0xaf   :  { %1457 = vmatprep.subr.bf16.mxu0 %v1567_v7 }
  0xb4   :  { %1446 = vmatmul.mubr.msk.bf16.vlgmr.msra.gmra.mxu1 %vm66_vm2, %v207_v22 }
  0xb5   :  { %1408 = vmatmul.mubr.msk.bf16.gmra.mxu0 %vm66_vm2, %v375_v31  ;;  %1449 = vmatprep.mubr.msk.bf16.mxu1 %vm1568_vm1, %v1567_v7 }
  0xb6   :  { %1411 = vmatprep.mubr.msk.bf16.mxu0 %vm1568_vm1, %v1567_v7  ;;  %1472 = vmatpush3.bf16.msra.mxu1 %v746_v37 }
  0xb7   :  { %1500 = vmatprep.subr.mxu1 %v1567_v7 }
  0xbc   :  { %1450 = vmatmul.mubr.msk.bf16.gmra.mxu1 %vm66_vm2, %v209_v24 }
  0xbd   :  { %1412 = vmatmul.mubr.msk.bf16.gmra.mxu0 %vm66_vm2, %v377_v38  ;;  %1453 = vmatprep.mubr.msk.bf16.mxu1 %vm1568_vm1, %v1567_v7 }
  0xbe   :  { %1431 = vmatprep.mubr.msk.bf16.mxu0 %vm1568_vm1, %v1567_v7 }
  0xc4   :  { %1454 = vmatmul.mubr.msk.bf16.gmra.mxu1 %vm66_vm2, %v211_v26 }
  0xc5   :  { %1432 = vmatmul.mubr.msk.bf16.vlgmr.msra.gmra.mxu0 %vm66_vm2, %v1636_v6  ;;  %1473 = vmatprep.mubr.msk.bf16.mxu1 %vm1568_vm1, %v1567_v7 }
  0xc6   :  { %1435 = vmatprep.mubr.msk.bf16.mxu0 %vm1568_vm1, %v1567_v7  ;;  %1458 = vmatpush3.bf16.msra.mxu0 %v678_v40 }
  0xc7   :  { %1485 = vmatprep.subr.mxu0 %v1567_v7 }
  0xca   :  { %v183_v41 = vpop.f32.mrf.mxu1 }
  0xcc   :  { %1474 = vmatmul.mubr.msk.bf16.vlgmr.msra.gmra.mxu1 %vm66_vm2, %v373_v34  ;;  %v1363_v42 = vpop.f32.mrf.mxu1 }
  0xcd   :  { %1436 = vmatmul.mubr.msk.bf16.gmra.mxu0 %vm66_vm2, %v1623_v4  ;;  %1477 = vmatprep.mubr.msk.bf16.mxu1 %vm1568_vm1, %v1567_v7 }
  0xce   :  { %1439 = vmatprep.mubr.msk.bf16.mxu0 %vm1568_vm1, %v1567_v7  ;;  %v186_v43 = vpop.f32.mrf.mxu1 }
  0xd0   :  { %v1364_v44 = vpop.f32.mrf.mxu1 }
  0xd2   :  { %v191_v45 = vpop.f32.mrf.mxu1 }
  0xd4   :  { %1478 = vmatmul.mubr.msk.bf16.gmra.mxu1 %vm66_vm2, %v375_v31  ;;  %v1367_v46 = vpop.f32.mrf.mxu1 }
  0xd5   :  { %1440 = vmatmul.mubr.msk.bf16.gmra.mxu0 %vm66_vm2, %v1628_v5  ;;  %1481 = vmatprep.mubr.msk.bf16.mxu1 %vm1568_vm1, %v1567_v7 }
  0xd6   :  { %1459 = vmatprep.mubr.msk.bf16.mxu0 %vm1568_vm1, %v1567_v7  ;;  %v1786_v47 = vpop.f32.mrf.mxu1 }
  0xd8   :  { %v1368_v48 = vpop.f32.mrf.mxu1 }
  0xda   :  { %v1788_v49 = vpop.f32.mrf.mxu1 }
  0xdc   :  { %1482 = vmatmul.mubr.msk.bf16.gmra.mxu1 %vm66_vm2, %v377_v38  ;;  %v1371_v50 = vpop.f32.mrf.mxu1 }
  0xdd   :  { %1460 = vmatmul.mubr.msk.bf16.vlgmr.msra.gmra.mxu0 %vm66_vm2, %v1695_v21  ;;  %1512 = vmatprep.mubr.msk.f32.mxu1 %vm1568_vm1, %v1567_v7 }
  0xde   :  { %1463 = vmatprep.mubr.msk.bf16.mxu0 %vm1568_vm1, %v1567_v7  ;;  %v1797_v51 = vpop.f32.mrf.mxu1 }
  0xe0   :  { %v1372_v52 = vpop.f32.mrf.mxu1 }
  0xe5   :  { %1464 = vmatmul.mubr.msk.bf16.gmra.mxu0 %vm66_vm2, %v1704_v23 }
  0xe6   :  { %1467 = vmatprep.mubr.msk.bf16.mxu0 %vm1568_vm1, %v1567_v7 }
  0xed   :  { %1468 = vmatmul.mubr.msk.bf16.gmra.mxu0 %vm66_vm2, %v1706_v25 }
  0xee   :  { %1497 = vmatprep.mubr.msk.f32.mxu0 %vm1568_vm1, %v1567_v7 }
 0x13d   :  { %v114_v53 = vpop.f32.mrf.mxu0 }
 0x13e   :  { %v184_v10 = vadd.f32 %v183_v41, %v114_v53 }
 0x13f   :  { %v1349_v54 = vpop.f32.mrf.mxu0 }
 0x141   :  { %v117_v55 = vpop.f32.mrf.mxu0 }
 0x142   :  { %v187_v16 = vadd.f32 %v186_v43, %v117_v55 }
 0x143   :  { %v1350_v56 = vpop.f32.mrf.mxu0 }
 0x144   :  { %v343_v58 = vpop.f32.mrf.mxu1 }
 0x145   :  { %v122_v57 = vpop.f32.mrf.mxu0 }
 0x146   :  { %v1391_v60 = vpop.f32.mrf.mxu1  ;;  %v192_v23 = vadd.f32 %v191_v45, %v122_v57 }
 0x147   :  { %v1353_v59 = vpop.f32.mrf.mxu0 }
 0x148   :  { %v346_v62 = vpop.f32.mrf.mxu1 }
 0x149   :  { %v125_v61 = vpop.f32.mrf.mxu0 }
 0x14a   :  { %v1392_v0 = vpop.f32.mrf.mxu1  ;;  %v195_v53 = vadd.f32 %v1786_v47, %v125_v61 }
 0x14b   :  { %v1354_v63 = vpop.f32.mrf.mxu0 }
 0x14c   :  { %v351_v2 = vpop.f32.mrf.mxu1 }
 0x14d   :  { %v130_v1 = vpop.f32.mrf.mxu0 }
 0x14e   :  { %v1395_v4 = vpop.f32.mrf.mxu1  ;;  %v200_v60 = vadd.f32 %v1788_v49, %v130_v1 }
 0x14f   :  { %v1357_v3 = vpop.f32.mrf.mxu0 }
 0x150   :  { %v354_v6 = vpop.f32.mrf.mxu1 }
 0x151   :  { %v133_v5 = vpop.f32.mrf.mxu0 }
 0x152   :  { %v1396_v9 = vpop.f32.mrf.mxu1  ;;  %v203_v47 = vadd.f32 %v1797_v51, %v133_v5 }
 0x153   :  { %v1358_v8 = vpop.f32.mrf.mxu0 }
 0x154   :  { %v359_v12 = vpop.f32.mrf.mxu1 }
 0x155   :  { %v260_v11 = vpop.f32.mrf.mxu0 }
 0x156   :  { %v283_v13 = vadd.f32 %v260_v11, %v184_v10  ;;  %v1399_v15 = vpop.f32.mrf.mxu1 }
 0x157   :  { %v1377_v14 = vpop.f32.mrf.mxu0 }
 0x158   :  { %v366_v17 = vadd.f32 %v343_v58, %v283_v13  ;;  %v362_v19 = vpop.f32.mrf.mxu1 }
 0x159   :  { %v263_v18 = vpop.f32.mrf.mxu0 }
 0x15a   :  { %v284_v20 = vadd.f32 %v263_v18, %v187_v16  ;;  %v1400_v22 = vpop.f32.mrf.mxu1 }
 0x15b   :  { %v1378_v21 = vpop.f32.mrf.mxu0 }
 0x15c   :  { %v367_v24 = vadd.f32 %v346_v62, %v284_v20  ;;  %v1807_v26 = vpop.f32.mrf.mxu1 }
 0x15d   :  { %v268_v25 = vpop.f32.mrf.mxu0 }
 0x15e   :  { %v285_v27 = vadd.f32 %v268_v25, %v192_v23  ;;  %v1419_v29 = vpop.f32.mrf.mxu1 }
 0x15f   :  { %v1381_v28 = vpop.f32.mrf.mxu0 }
 0x160   :  { %v368_v30 = vadd.f32 %v351_v2, %v285_v27  ;;  %v1809_v32 = vpop.f32.mrf.mxu1 }
 0x161   :  { %v271_v31 = vpop.f32.mrf.mxu0 }
 0x162   :  { %v1420_v34 = vpop.f32.mrf.mxu1  ;;  %v286_v57 = vadd.f32 %v271_v31, %v195_v53 }
 0x163   :  { %v1382_v33 = vpop.f32.mrf.mxu0 }
 0x164   :  { %v1811_v36 = vpop.f32.mrf.mxu1  ;;  %v369_v3 = vadd.f32 %v354_v6, %v286_v57 }
 0x165   :  { %v276_v35 = vpop.f32.mrf.mxu0 }
 0x166   :  { %v1423_v38 = vpop.f32.mrf.mxu1  ;;  %v287_v2 = vadd.f32 %v276_v35, %v200_v60 }
 0x167   :  { %v1385_v37 = vpop.f32.mrf.mxu0 }
 0x168   :  { %v1813_v40 = vpop.f32.mrf.mxu1  ;;  %v370_v1 = vadd.f32 %v359_v12, %v287_v2 }
 0x169   :  { %v279_v39 = vpop.f32.mrf.mxu0 }
 0x16a   :  { %v1424_v42 = vpop.f32.mrf.mxu1  ;;  %v288_v11 = vadd.f32 %v279_v39, %v203_v47 }
 0x16b   :  { %v1386_v41 = vpop.f32.mrf.mxu0 }
 0x16c   :  { %v1815_v44 = vpop.f32.mrf.mxu1  ;;  %v371_v5 = vadd.f32 %v362_v19, %v288_v11 }
 0x16d   :  { %v426_v43 = vpop.f32.mrf.mxu0 }
 0x16e   :  { %v1817_v45 = vadd.f32 %v426_v43, %v366_v17  ;;  %v1427_v48 = vpop.f32.mrf.mxu1 }
 0x16f   :  { %v1405_v46 = vpop.f32.mrf.mxu0 }
 0x170   :  { %v1819_v52 = vpop.f32.mrf.mxu1 }
 0x171   :  { %v429_v50 = vpop.f32.mrf.mxu0 }
 0x172   :  { %v1822_v54 = vadd.f32 %v429_v50, %v367_v24  ;;  %v1428_v56 = vpop.f32.mrf.mxu1 }
 0x173   :  { %v1406_v55 = vpop.f32.mrf.mxu0 }
 0x174   :  { %v646_v59 = vpop.f32.mrf.mxu1 }
 0x175   :  { %v434_v58 = vpop.f32.mrf.mxu0 }
 0x176   :  { %v1825_v62 = vadd.f32 %v434_v58, %v368_v30  ;;  %v1447_v0 = vpop.f32.mrf.mxu1 }
 0x177   :  { %v1409_v63 = vpop.f32.mrf.mxu0 }
 0x178   :  { %v1827_v8 = vpop.f32.mrf.mxu1 }
 0x179   :  { %v437_v4 = vpop.f32.mrf.mxu0 }
 0x17a   :  { %v1830_v61 = vadd.f32 %v437_v4, %v369_v3  ;;  %v1448_v10 = vpop.f32.mrf.mxu1 }
 0x17b   :  { %v1410_v9 = vpop.f32.mrf.mxu0 }
 0x17c   :  { %v465_v49 = vsel %vm455_vm3, %v1830_v61, 0.0  ;;  %v654_v13 = vpop.f32.mrf.mxu1 }
 0x17d   :  { %466 = vadd.xlane.f32.xlu1 %v465_v49  ;;  %v442_v14 = vpop.f32.mrf.mxu0 }
 0x17e   :  { %v1834_v15 = vadd.f32 %v442_v14, %v370_v1  ;;  %v1451_v16 = vpop.f32.mrf.mxu1 }
 0x17f   :  { %v1413_v6 = vpop.f32.mrf.mxu0 }
 0x180   :  { %v468_v51 = vsel %vm455_vm3, %v1834_v15, 0.0  ;;  %v657_v17 = vpop.f32.mrf.mxu1 }
 0x181   :  { %469 = vadd.xlane.f32.xlu0 %v468_v51  ;;  %v445_v18 = vpop.f32.mrf.mxu0 }
 0x182   :  { %v1838_v20 = vadd.f32 %v445_v18, %v371_v5  ;;  %v1452_v22 = vpop.f32.mrf.mxu1 }
 0x183   :  { %v1414_v21 = vpop.f32.mrf.mxu0 }
 0x184   :  { %v471_v12 = vsel %vm455_vm3, %v1838_v20, 0.0  ;;  %v662_v23 = vpop.f32.mrf.mxu1 }
 0x185   :  { %472 = vadd.xlane.f32.xlu0 %v471_v12  ;;  %v584_v24 = vpop.f32.mrf.mxu0 }
 0x186   :  { %v585_v25 = vadd.f32 %v584_v24, %v1807_v26  ;;  %v1455_v28 = vpop.f32.mrf.mxu1 }
 0x187   :  { %v1433_v27 = vpop.f32.mrf.mxu0 }
 0x188   :  { %v669_v29 = vadd.f32 %v646_v59, %v585_v25  ;;  %v665_v19 = vpop.f32.mrf.mxu1 }
 0x189   :  { %v587_v30 = vpop.f32.mrf.mxu0 }
 0x18a   :  { %v1456_v33 = vpop.f32.mrf.mxu1  ;;  %v588_v16 = vadd.f32 %v587_v30, %v1809_v32 }
 0x18b   :  { %v1434_v31 = vpop.f32.mrf.mxu0 }
 0x18c   :  { %v782_v35 = vpop.f32.mrf.mxu1 }
 0x18d   :  { %v592_v34 = vpop.f32.mrf.mxu0 }
 0x18e   :  { %v1475_v38 = vpop.f32.mrf.mxu1  ;;  %v593_v11 = vadd.f32 %v592_v34, %v1811_v36 }
 0x18f   :  { %v1437_v37 = vpop.f32.mrf.mxu0 }
 0x190   :  { %v785_v41 = vpop.f32.mrf.mxu1  ;;  %v671_v18 = vadd.f32 %v654_v13, %v593_v11 }
 0x191   :  { %v595_v39 = vpop.f32.mrf.mxu0 }
 0x192   :  { %v1476_v43 = vpop.f32.mrf.mxu1  ;;  %v596_v47 = vadd.f32 %v595_v39, %v1813_v40  ;;  %v462_v39 = vsel %vm455_vm3, %v1825_v62, 0.0 }
 0x193   :  { %v1438_v42 = vpop.f32.mrf.mxu0 }
 0x194   :  { %v790_v48 = vpop.f32.mrf.mxu1  ;;  %v672_v1 = vadd.f32 %v657_v17, %v596_v47  ;;  %v670_v17 = vadd.f32 %v1827_v8, %v588_v16 }
 0x195   :  { %v600_v46 = vpop.f32.mrf.mxu0 }
 0x196   :  { %v1479_v53 = vpop.f32.mrf.mxu1  ;;  %v601_v49 = vadd.f32 %v600_v46, %v1815_v44 }
 0x197   :  { %v1441_v50 = vpop.f32.mrf.mxu0 }
 0x198   :  { %v793_v55 = vpop.f32.mrf.mxu1  ;;  %v673_v22 = vadd.f32 %v662_v23, %v601_v49 }
 0x199   :  { %v603_v26 = vpop.f32.mrf.mxu0 }
 0x19a   :  { %v1480_v57 = vpop.f32.mrf.mxu1  ;;  %v604_v5 = vadd.f32 %v603_v26, %v1819_v52 }
 0x19b   :  { %v1442_v56 = vpop.f32.mrf.mxu0 }
 0x19c   :  { %v798_v59 = vpop.f32.mrf.mxu1  ;;  %v674_v32 = vadd.f32 %v665_v19, %v604_v5 }
 0x19d   :  { %v714_v58 = vpop.f32.mrf.mxu0 }
 0x19e   :  { %v1483_v63 = vpop.f32.mrf.mxu1  ;;  %v737_v33 = vadd.f32 %v714_v58, %v669_v29 }
 0x19f   :  { %v1461_v60 = vpop.f32.mrf.mxu0 }
 0x1a0   :  { %v801_v2 = vpop.f32.mrf.mxu1  ;;  %v1867_v37 = vadd.f32 %v782_v35, %v737_v33  ;;  %v456_v35 = vsel %vm455_vm3, %v1817_v45, 0.0 }
 0x1a1   :  { %v717_v0 = vpop.f32.mrf.mxu0 }
 0x1a2   :  { %v1484_v4 = vpop.f32.mrf.mxu1  ;;  %v738_v28 = vadd.f32 %v717_v0, %v670_v17  ;;  %v811_v29 = vsel %vm455_vm3, %v1867_v37, 0.0 }
 0x1a3   :  { %v1462_v3 = vpop.f32.mrf.mxu0 }
 0x1a4   :  { %v1861_v34 = vadd.f32 %v785_v41, %v738_v28  ;;  %v459_v41 = vsel %vm455_vm3, %v1822_v54, 0.0 }
 0x1a5   :  { %v722_v9 = vpop.f32.mrf.mxu0 }
 0x1a6   :  { %v739_v40 = vadd.f32 %v722_v9, %v671_v18  ;;  %v814_v38 = vsel %vm455_vm3, %v1861_v34, 0.0 }
 0x1a7   :  { %v1465_v10 = vpop.f32.mrf.mxu0 }
 0x1a8   :  { %v1855_v52 = vadd.f32 %v790_v48, %v739_v40 }
 0x1a9   :  { %v725_v14 = vpop.f32.mrf.mxu0 }
 0x1aa   :  { %v740_v6 = vadd.f32 %v725_v14, %v672_v1  ;;  %v817_v8 = vsel %vm455_vm3, %v1855_v52, 0.0 }
 0x1ab   :  { %v1466_v51 = vpop.f32.mrf.mxu0 }
 0x1ac   :  { %v1848_v21 = vadd.f32 %v793_v55, %v740_v6 }
 0x1ad   :  { %v730_v12 = vpop.f32.mrf.mxu0 }
 0x1ae   :  { %v741_v24 = vadd.f32 %v730_v12, %v673_v22  ;;  %v820_v36 = vsel %vm455_vm3, %v1848_v21, 0.0 }
 0x1af   :  { %821 = vadd.xlane.f32.xlu0 %v820_v36  ;;  %v1469_v44 = vpop.f32.mrf.mxu0 }
 0x1b0   :  { %v1853_v25 = vadd.f32 %v798_v59, %v741_v24 }
 0x1b1   :  { %v733_v27 = vpop.f32.mrf.mxu0 }
 0x1b2   :  { %v742_v13 = vadd.f32 %v733_v27, %v674_v32  ;;  %v823_v23 = vsel %vm455_vm3, %v1853_v25, 0.0 }
 0x1b3   :  { %824 = vadd.xlane.f32.xlu0 %v823_v23  ;;  %v1470_v30 = vpop.f32.mrf.mxu0 }
 0x1b4   :  { %v1859_v31 = vadd.f32 %v801_v2, %v742_v13 }
 0x1b6   :  { %v826_v19 = vsel %vm455_vm3, %v1859_v31, 0.0 }
 0x1b7   :  { %818 = vadd.xlane.f32.xlu0 %v817_v8  ;;  %827 = vadd.xlane.f32.xlu1 %v826_v19 }
 0x1bb   :  { %815 = vadd.xlane.f32.xlu0 %v814_v38  ;;  %463 = vadd.xlane.f32.xlu1 %v462_v39 }
 0x1bf   :  { %812 = vadd.xlane.f32.xlu0 %v811_v29  ;;  %460 = vadd.xlane.f32.xlu1 %v459_v41 }
 0x1c3   :  { %457 = vadd.xlane.f32.xlu1 %v456_v35 }
 0x206   :  { %v467_v46 = vpop.xlane.xlu1 %466 }
 0x20a   :  { %v470_v42 = vpop.xlane.xlu0 %469 }
 0x20e   :  { %v473_v43 = vpop.xlane.xlu0 %472 }
 0x238   :  { %v822_v48 = vpop.xlane.xlu0 %821 }
 0x239   :  { %v832_v50 = vadd.f32 %v822_v48, %v467_v46 }
 0x23b   :  { %v1879_v53 = vmul.f32 0.0625, %v832_v50 }
 0x23c   :  { %v825_v26 = vpop.xlane.xlu0 %824 }
 0x23d   :  { %v833_v55 = vadd.f32 %v825_v26, %v470_v42  ;;  %v880_v56 = vsub.f32 %v1848_v21, %v1879_v53  ;;  %v844_v57 = vsub.f32 %v1830_v61, %v1879_v53 }
 0x23f   :  { %v1885_v58 = vmul.f32 0.0625, %v833_v55  ;;  %v886_v59 = vmul.f32 %v880_v56, %v880_v56  ;;  %v850_v60 = vmul.f32 %v844_v57, %v844_v57 }
 0x240   :  { %v819_v63 = vpop.xlane.xlu0 %818  ;;  %v828_v0 = vpop.xlane.xlu1 %827 }
 0x241   :  { %v834_v2 = vadd.f32 %v828_v0, %v473_v43  ;;  %v898_v3 = vsel %vm455_vm3, %v886_v59, 0.0  ;;  %v862_v4 = vsel %vm455_vm3, %v850_v60, 0.0  ;;  %v881_v47 = vsub.f32 %v1853_v25, %v1885_v58 }
 0x242   :  { %899 = vadd.xlane.f32.xlu0 %v898_v3  ;;  %863 = vadd.xlane.f32.xlu1 %v862_v4  ;;  %v845_v9 = vsub.f32 %v1834_v15, %v1885_v58  ;;  %v1574_v59 = vmov 0  }
 0x243   :  { %v1893_v10 = vmul.f32 0.0625, %v834_v2  ;;  %v887_v11 = vmul.f32 %v881_v47, %v881_v47  ;;  %1527 = vset.pattern.permute.xlu1 %v1574_v59  ;;  %1526 = vset.pattern.permute.xlu0 %v1574_v59  ;;  %v944_v59 = vld [vmem:[%s2003_s3 + $0x8] sm:$0xff] }
 0x244   :  { %v464_v49 = vpop.xlane.xlu1 %463  ;;  %v851_v1 = vmul.f32 %v845_v9, %v845_v9  ;;  %v816_v5 = vpop.xlane.xlu0 %815 }
 0x245   :  { %v831_v14 = vadd.f32 %v819_v63, %v464_v49  ;;  %v901_v6 = vsel %vm455_vm3, %v887_v11, 0.0  ;;  %v882_v16 = vsub.f32 %v1859_v31, %v1893_v10  ;;  %v846_v51 = vsub.f32 %v1838_v20, %v1893_v10 }
 0x246   :  { %902 = vadd.xlane.f32.xlu0 %v901_v6  ;;  %v865_v18 = vsel %vm455_vm3, %v851_v1, 0.0 }
 0x247   :  { %v1901_v22 = vmul.f32 0.0625, %v831_v14  ;;  %866 = vadd.xlane.f32.xlu1 %v865_v18  ;;  %v888_v12 = vmul.f32 %v882_v16, %v882_v16  ;;  %v852_v40 = vmul.f32 %v846_v51, %v846_v51 }
 0x248   :  { %v461_v24 = vpop.xlane.xlu1 %460  ;;  %v813_v23 = vpop.xlane.xlu0 %812 }
 0x249   :  { %v830_v36 = vadd.f32 %v816_v5, %v461_v24  ;;  %v904_v44 = vsel %vm455_vm3, %v888_v12, 0.0  ;;  %v868_v17 = vsel %vm455_vm3, %v852_v40, 0.0  ;;  %v879_v32 = vsub.f32 %v1855_v52, %v1901_v22 }
 0x24a   :  { %905 = vadd.xlane.f32.xlu0 %v904_v44  ;;  %v843_v27 = vsub.f32 %v1825_v62, %v1901_v22  ;;  %v934_v44 = vld [vmem:[%s2002_s2 + $0x18] sm:$0xff] }
 0x24b   :  { %v1909_v28 = vmul.f32 0.0625, %v830_v36  ;;  %869 = vadd.xlane.f32.xlu1 %v868_v17  ;;  %v885_v13 = vmul.f32 %v879_v32, %v879_v32 }
 0x24c   :  { %v458_v30 = vpop.xlane.xlu1 %457  ;;  %v849_v33 = vmul.f32 %v843_v27, %v843_v27 }
 0x24d   :  { %v829_v8 = vadd.f32 %v813_v23, %v458_v30  ;;  %v895_v19 = vsel %vm455_vm3, %v885_v13, 0.0  ;;  %v878_v38 = vsub.f32 %v1861_v34, %v1909_v28  ;;  %v842_v39 = vsub.f32 %v1822_v54, %v1909_v28  ;;  %v935_v30 = vld [vmem:[%s2002_s2 + $0x20] sm:$0xff] }
 0x24e   :  { %896 = vadd.xlane.f32.xlu0 %v895_v19  ;;  %v859_v29 = vsel %vm455_vm3, %v849_v33, 0.0 }
 0x24f   :  { %v1917_v41 = vmul.f32 0.0625, %v829_v8  ;;  %860 = vadd.xlane.f32.xlu1 %v859_v29  ;;  %v884_v35 = vmul.f32 %v878_v38, %v878_v38  ;;  %v848_v42 = vmul.f32 %v842_v39, %v842_v39 }
 0x251   :  { %v892_v43 = vsel %vm455_vm3, %v884_v35, 0.0  ;;  %v856_v46 = vsel %vm455_vm3, %v848_v42, 0.0  ;;  %v877_v48 = vsub.f32 %v1867_v37, %v1917_v41  ;;  %v841_v50 = vsub.f32 %v1817_v45, %v1917_v41  ;;  %v933_v35 = vld [vmem:[%s2002_s2 + $0x10] sm:$0xff] }
 0x252   :  { %893 = vadd.xlane.f32.xlu0 %v892_v43 }
 0x253   :  { %857 = vadd.xlane.f32.xlu1 %v856_v46  ;;  %v883_v26 = vmul.f32 %v877_v48, %v877_v48  ;;  %v847_v55 = vmul.f32 %v841_v50, %v841_v50  ;;  %v932_v48 = vld [vmem:[%s2002_s2 + $0x8] sm:$0xff] }
 0x255   :  { %v889_v56 = vsel %vm455_vm3, %v883_v26, 0.0  ;;  %v853_v57 = vsel %vm455_vm3, %v847_v55, 0.0 }
 0x256   :  { %890 = vadd.xlane.f32.xlu0 %v889_v56 }
 0x257   :  { %854 = vadd.xlane.f32.xlu1 %v853_v57  ;;  %v946_v57 = vld [vmem:[%s2003_s3 + $0x18] sm:$0xff] }
 0x2cb   :  { %v900_v60 = vpop.xlane.xlu0 %899  ;;  %v864_v63 = vpop.xlane.xlu1 %863 }
 0x2cc   :  { %v910_v0 = vadd.f32 %v900_v60, %v864_v63 }
 0x2ce   :  { %v916_v2 = vmul.f32 0.0625, %v910_v0 }
 0x2cf   :  { %v903_v3 = vpop.xlane.xlu0 %902 }
 0x2d0   :  { %v922_v4 = vadd.f32 1e-05, %v916_v2  ;;  %v867_v47 = vpop.xlane.xlu1 %866 }
 0x2d1   :  { %v911_v9 = vadd.f32 %v903_v3, %v867_v47  ;;  %v936_v3 = vld [vmem:[%s2002_s2 + $0x28] sm:$0xff]  ;;  %v947_v47 = vld [vmem:[%s2003_s3 + $0x20] sm:$0xff] }
 0x2d2   :  { %1531 = vrsqrt.f32 %v922_v4 }
 0x2d3   :  { %v917_v11 = vmul.f32 0.0625, %v911_v9  ;;  %v906_v49 = vpop.xlane.xlu0 %905 }
 0x2d4   :  { %v870_v1 = vpop.xlane.xlu1 %869 }
 0x2d5   :  { %v923_v14 = vadd.f32 1e-05, %v917_v11  ;;  %v912_v40 = vadd.f32 %v906_v49, %v870_v1  ;;  %v948_v11 = vld [vmem:[%s2003_s3 + $0x28] sm:$0xff] }
 0x2d7   :  { %1533 = vrsqrt.f32 %v923_v14  ;;  %v897_v6 = vpop.xlane.xlu0 %896  ;;  %v918_v13 = vmul.f32 0.0625, %v912_v40 }
 0x2d8   :  { %v861_v16 = vpop.xlane.xlu1 %860 }
 0x2d9   :  { %v909_v51 = vadd.f32 %v897_v6, %v861_v16  ;;  %v924_v8 = vadd.f32 1e-05, %v918_v13  ;;  %v931_v6 = vld [vmem:[%s2002_s2] sm:$0xff] }
 0x2db   :  { %v915_v5 = vmul.f32 0.0625, %v909_v51  ;;  %v894_v18 = vpop.xlane.xlu0 %893 }
 0x2dc   :  { %v858_v12 = vpop.xlane.xlu1 %857 }
 0x2dd   :  { %v921_v24 = vadd.f32 1e-05, %v915_v5  ;;  %v908_v36 = vadd.f32 %v894_v18, %v858_v12  ;;  %v943_v5 = vld [vmem:[%s2003_s3] sm:$0xff] }
 0x2de   :  { %v1219_v18 = vld [vmem:[#allocation3] sm:$0x1] }
 0x2df   :  { %v1532_v17 = vpop.eup %1531  ;;  %1535 = vrsqrt.f32 %v921_v24  ;;  %v914_v32 = vmul.f32 0.0625, %v908_v36  ;;  %v891_v38 = vpop.xlane.xlu0 %890 }
 0x2e0   :  { %v940_v27 = vmul.f32 %v1532_v17, %v934_v44  ;;  %v855_v39 = vpop.xlane.xlu1 %854 }
 0x2e1   :  { %v920_v23 = vadd.f32 1e-05, %v914_v32  ;;  %v907_v29 = vadd.f32 %v891_v38, %v855_v39 }
 0x2e2   :  { %978 = vperm.xlu1 %1527, %v940_v27   ;;  %v952_v56 = vmul.f32 %v940_v27, %v1879_v53 }
 0x2e3   :  { %1537 = vrsqrt.f32 %v920_v23  ;;  %v913_v43 = vmul.f32 0.0625, %v907_v29 }
 0x2e4   :  { %v1534_v33 = vpop.eup %1533  ;;  %1539 = vrsqrt.f32 %v924_v8  ;;  %v958_v63 = vsub.f32 %v946_v57, %v952_v56 }
 0x2e5   :  { %v941_v19 = vmul.f32 %v1534_v33, %v935_v30  ;;  %v919_v26 = vadd.f32 1e-05, %v913_v43 }
 0x2e7   :  { %983 = vperm.xlu0 %1526, %v941_v19   ;;  %1541 = vrsqrt.f32 %v919_v26  ;;  %v953_v4 = vmul.f32 %v941_v19, %v1885_v58  ;;  %v945_v58 = vld [vmem:[%s2003_s3 + $0x10] sm:$0xff] }
 0x2e9   :  { %v959_v9 = vsub.f32 %v947_v47, %v953_v4 }
 0x2ec   :  { %v1536_v42 = vpop.eup %1535 }
 0x2ed   :  { %v939_v46 = vmul.f32 %v1536_v42, %v933_v35 }
 0x2ef   :  { %973 = vperm.xlu1 %1527, %v939_v46   ;;  %v951_v1 = vmul.f32 %v939_v46, %v1901_v22 }
 0x2f0   :  { %v1538_v50 = vpop.eup %1537 }
 0x2f1   :  { %v938_v55 = vmul.f32 %v1538_v50, %v932_v48  ;;  %v1540_v2 = vpop.eup %1539  ;;  %v957_v16 = vsub.f32 %v945_v58, %v951_v1 }
 0x2f2   :  { %v942_v53 = vmul.f32 %v1540_v2, %v936_v3 }
 0x2f3   :  { %968 = vperm.xlu1 %1527, %v938_v55   ;;  %v950_v60 = vmul.f32 %v938_v55, %v1909_v28 }
 0x2f4   :  { %v954_v28 = vmul.f32 %v942_v53, %v1893_v10  ;;  %v1542_v14 = vpop.eup %1541 }
 0x2f5   :  { %v956_v0 = vsub.f32 %v944_v59, %v950_v60  ;;  %v937_v10 = vmul.f32 %v1542_v14, %v931_v6 }
 0x2f6   :  { %v960_v49 = vsub.f32 %v948_v11, %v954_v28  ;;  %v1206_v28 = vld [vmem:[#allocation2 + $0x1] sm:$0x1] }
 0x2f7   :  { %1014 = vperm.xlu1 %1527, %v958_v63   ;;  %1004 = vperm.xlu0 %1526, %v956_v0   ;;  %v949_v51 = vmul.f32 %v937_v10, %v1917_v41 }
 0x2f9   :  { %v955_v22 = vsub.f32 %v943_v5, %v949_v51 }
 0x2fb   :  { %988 = vperm.xlu1 %1527, %v942_v53  }
 0x2ff   :  { %1019 = vperm.xlu1 %1527, %v959_v9  }
 0x303   :  { %1024 = vperm.xlu1 %1527, %v960_v49  }
 0x307   :  { %1009 = vperm.xlu1 %1527, %v957_v16  }
 0x30b   :  { %963 = vperm.xlu1 %1527, %v937_v10   ;;  %v1225_v10 = vlaneseq }
 0x30d   :  { %v1226_v51 = vshrl.u32 %v1225_v10, 7 }
 0x30f   :  { %999 = vperm.xlu1 %1527, %v955_v22   ;;  %v1227_v5 = vsub.s32 0, %v1226_v51  ;;  %v1232_v22 = vand.u32 127, %v1225_v10 }
 0x313   :  { %1222 = vperm.xlu1 %1527, %v1219_v18  }
 0x35d   :  { %v979_v12 = vpop.permute.xlu1 %978 }
 0x35e   :  { %v994_v30 = vmul.f32 %v979_v12, %v1830_v61  ;;  %v1042_v33 = vmul.f32 %v979_v12, %v1848_v21 }
 0x362   :  { %v984_v17 = vpop.permute.xlu0 %983 }
 0x363   :  { %v995_v32 = vmul.f32 %v984_v17, %v1834_v15  ;;  %v1043_v27 = vmul.f32 %v984_v17, %v1853_v25 }
 0x36a   :  { %v974_v40 = vpop.permute.xlu1 %973 }
 0x36b   :  { %v993_v35 = vmul.f32 %v974_v40, %v1825_v62  ;;  %v1041_v42 = vmul.f32 %v974_v40, %v1855_v52 }
 0x36e   :  { %v969_v24 = vpop.permute.xlu1 %968 }
 0x372   :  { %v1015_v36 = vpop.permute.xlu1 %1014  ;;  %v1005_v61 = vpop.permute.xlu0 %1004 }
 0x373   :  { %v1030_v15 = vadd.f32 %v1015_v36, %v994_v30  ;;  %v1048_v43 = vadd.f32 %v1042_v33, %v1015_v36  ;;  %v1235_v36 = vsub.s32 %v1232_v22, %v1226_v51 }
 0x375   :  { %v1036_v56 = vmax.f32 %v1030_v15, 0.0  ;;  %v1054_v57 = vmax.f32 %v1048_v43, 0.0 }
 0x376   :  { %v989_v44 = vpop.permute.xlu1 %988 }
 0x377   :  { %v996_v13 = vmul.f32 %v989_v44, %v1838_v20  ;;  %v1044_v23 = vmul.f32 %v989_v44, %v1859_v31  ;;  %v992_v20 = vmul.f32 %v969_v24, %v1822_v54  ;;  %v1040_v31 = vmul.f32 %v969_v24, %v1861_v34 }
 0x379   :  { %v1028_v62 = vadd.f32 %v1005_v61, %v992_v20  ;;  %v1046_v52 = vadd.f32 %v1040_v31, %v1005_v61 }
 0x37a   :  { %v1020_v41 = vpop.permute.xlu1 %1019 }
 0x37b   :  { %v1031_v19 = vadd.f32 %v1020_v41, %v995_v32  ;;  %v1049_v38 = vadd.f32 %v1043_v27, %v1020_v41  ;;  %v1034_v60 = vmax.f32 %v1028_v62, 0.0  ;;  %v1052_v63 = vmax.f32 %v1046_v52, 0.0 }
 0x37d   :  { %v1037_v21 = vmax.f32 %v1031_v19, 0.0  ;;  %v1055_v50 = vmax.f32 %v1049_v38, 0.0 }
 0x37e   :  { %v1025_v8 = vpop.permute.xlu1 %1024 }
 0x37f   :  { %v1032_v39 = vadd.f32 %v1025_v8, %v996_v13  ;;  %v1050_v29 = vadd.f32 %v1044_v23, %v1025_v8 }
 0x381   :  { %v1038_v25 = vmax.f32 %v1032_v39, 0.0  ;;  %v1056_v46 = vmax.f32 %v1050_v29, 0.0 }
 0x382   :  { %v1010_v48 = vpop.permute.xlu1 %1009 }
 0x383   :  { %v1029_v26 = vadd.f32 %v1010_v48, %v993_v35  ;;  %v1047_v55 = vadd.f32 %v1041_v42, %v1010_v48  ;;  %1486 = vmatpush3.msra.mxu0 %v1038_v25  ;;  %1501 = vmatpush3.msra.mxu1 %v1056_v46 }
 0x384   :  { %1487 = vmatprep.subr.mxu0 %v1567_v7  ;;  %1502 = vmatprep.subr.mxu1 %v1567_v7 }
 0x385   :  { %1488 = vmatpush3.msra.mxu0 %v1037_v21  ;;  %1503 = vmatpush3.msra.mxu1 %v1055_v50  ;;  %v1035_v34 = vmax.f32 %v1029_v26, 0.0  ;;  %v1053_v59 = vmax.f32 %v1047_v55, 0.0 }
 0x386   :  { %1489 = vmatprep.subr.mxu0 %v1567_v7  ;;  %1504 = vmatprep.subr.mxu1 %v1567_v7  ;;  %v964_v54 = vpop.permute.xlu1 %963 }
 0x387   :  { %1490 = vmatpush3.msra.mxu0 %v1036_v56  ;;  %1505 = vmatpush3.msra.mxu1 %v1054_v57  ;;  %v991_v0 = vmul.f32 %v964_v54, %v1817_v45  ;;  %v1039_v2 = vmul.f32 %v964_v54, %v1867_v37  ;;  %v1057_v45 = vld [vmem:[%s2004_s4] sm:$0x1]  ;;  %s1575_s4 = smov [#allocation4]  }
 0x388   :  { %1491 = vmatprep.subr.mxu0 %v1567_v7  ;;  %1506 = vmatprep.subr.mxu1 %v1567_v7  ;;  %v1132_v37 = vld [vmem:[#allocation2] sm:$0x1]  ;;  %s1246_s15 = sshll.u32 %s1575_s4, 4  ;;  %s1247_s15 = int_to_ptr.vmem [resolvable:$true] %s1246_s15 }
 0x389   :  { %1492 = vmatpush3.msra.mxu0 %v1035_v34  ;;  %1507 = vmatpush3.msra.mxu1 %v1053_v59  ;;  %s1543_s16 = scalar_lea.vmem %s1247_s15, 16  ;;  %s1547_s17 = scalar_lea.vmem %s1247_s15, 32 }
 0x38a   :  { %1493 = vmatprep.subr.mxu0 %v1567_v7  ;;  %1508 = vmatprep.subr.mxu1 %v1567_v7  ;;  %v1000_v3 = vpop.permute.xlu1 %999  ;;  %p1544_p0 = scmp.ne.s32.totalorder %s1247_s15, %s1543_s16  ;;  %p1548_p1 = scmp.lt.s32.totalorder %s1247_s15, %s1247_s15 }
 0x38b   :  { %v1027_v53 = vadd.f32 %v1000_v3, %v991_v0  ;;  %v1045_v4 = vadd.f32 %v1039_v2, %v1000_v3  ;;  %1494 = vmatpush3.msra.mxu0 %v1034_v60  ;;  %1509 = vmatpush3.msra.mxu1 %v1052_v63  ;;  %p1549_p2 = scmp.lt.s32.totalorder %s1547_s17, %s1543_s16 }
 0x38c   :  { %1495 = vmatprep.subr.mxu0 %v1567_v7  ;;  %1510 = vmatprep.subr.mxu1 %v1567_v7 }
 0x38d   :  { %v1033_v47 = vmax.f32 %v1027_v53, 0.0  ;;  %v1051_v9 = vmax.f32 %v1045_v4, 0.0  ;;  %p1550_p3 = por %p1549_p2, %p1548_p1 }
 0x38e   :  { %v1223_v18 = vpop.permute.xlu1 %1222 }
 0x38f   :  { %1496 = vmatpush3.msra.mxu0 %v1033_v47  ;;  %1511 = vmatpush3.msra.mxu1 %v1051_v9  ;;  %v1228_v40 = vrot.slane %v1223_v18, %v1227_v5  ;;  %p1551_p4 = pnand %p1550_p3, %p1544_p0 }
 0x390   :  { %1498 = vmatmul.mubr.msk.f32.vlgmr.msra.gmra.mxu0 %vm1058_vm5, %v1057_v45  ;;  %1513 = vmatmul.mubr.msk.f32.vlgmr.msra.gmra.mxu1 %vm1058_vm5, %v1057_v45 }
 0x450   :  { %v1128_v11 = vpop.f32.mrf.mxu0  ;;  %v1202_v49 = vpop.f32.mrf.mxu1 }
 0x451   :  { %v1133_v1 = vadd.f32 %v1132_v37, %v1128_v11  ;;  %v1207_v14 = vadd.f32 %v1206_v28, %v1202_v49 }
 0x452   :  { %v1499_v58 = vpop.f32.mrf.mxu0  ;;  %v1514_v7 = vpop.f32.mrf.mxu1 }
 0x453   :  { %1135 = vst.msk [vmem:[#allocation2] sm:$0x1] %vm1134_vm6, %v1133_v1  ;;  %1208 = vst.msk [vmem:[#allocation2 + $0x1] sm:$0x1] %vm1134_vm6, %v1207_v14 }
 0x45a   :  { %v1212_v6 = vld [vmem:[#allocation2] sm:$0x3] }
 0x45b   :  { %v1214_v16 = vsel %vm31_vm4, %v1212_v6, 0.0 }
 0x45c   :  { %1215 = vadd.xlane.f32.xlu0 %v1214_v16 }
 0x4e5   :  { %v1216_v12 = vpop.xlane.xlu0 %1215 }
 0x4e6   :  { %v1218_v24 = vmul.f32 0.125, %v1216_v12 }
 0x4e8   :  { %v1229_v44 = vadd.f32 %v1228_v40, %v1218_v24 }
 0x4ea   :  { %v1236_v17 = vrot.slane %v1229_v44, %v1235_v36 }
 0x4ec   :  { %1239 = vst.msk [vmem:[#allocation4] sm:$0x1] %vm1238_vm7, %v1236_v17 }
 0x4ed   :  { %1554 = shalt.err (!%p1551_p4)
}
 0x4ee   :  { %1249 = dma.vmem_to_hbm [thread:$0]  %s1247_s15, 16, %s2006_s6, [#allocation5]  }
 0x4ef   :  { %1563 = dma.done.wait [#allocation5], 16  }
 0x4f0   :  { %1564 = vsyncadd [#allocation5], 4294967280 }
 0x4f1   :  { %1253 = vsyncpa [#allocation5], 1 }

</bundles_post_ra>
